<compile_context>
chip_gen: v5e
topology: v5e:2x2
jax: 0.10.0
libtpu: 0.0.40
codegen_flags: <defaults>
</compile_context>

<pallas_src>
import jax
import jax.numpy as jnp
import numpy as np
from jax.experimental import pallas as pl
from jax.experimental.pallas import tpu as pltpu

_LANES = 128


# -----------------------------------------------------------------------------
# Parameter construction (deterministic, PyTorch-shaped)
# -----------------------------------------------------------------------------
def init_lstm_model_params(key, input_size, hidden, fc_dim, out_size, n_layers):
    params = {"lstm": []}
    bound = 1.0 / np.sqrt(hidden)
    for l in range(n_layers):
        in_l = input_size if l == 0 else hidden
        key, k1, k2, k3, k4 = jax.random.split(key, 5)
        w_ih = jax.random.uniform(k1, (4 * hidden, in_l), jnp.float32, -bound, bound)
        w_hh = jax.random.uniform(k2, (4 * hidden, hidden), jnp.float32, -bound, bound)
        b_ih = jax.random.uniform(k3, (4 * hidden,), jnp.float32, -bound, bound)
        b_hh = jax.random.uniform(k4, (4 * hidden,), jnp.float32, -bound, bound)
        params["lstm"].append({
            "w_ih_t": w_ih.T,                      # (F, 4H), PyTorch gate order i,f,g,o
            "w_hh_t": w_hh.T,                      # (H, 4H)
            "bias":  (b_ih + b_hh)[None, :],       # (1, 4H)
        })
    key, k1, k2, k3, k4 = jax.random.split(key, 5)
    b1 = 1.0 / np.sqrt(hidden)
    b2 = 1.0 / np.sqrt(fc_dim)
    params["fc1_w_t"] = jax.random.uniform(k1, (fc_dim, hidden), jnp.float32, -b1, b1).T
    params["fc1_b"] = jax.random.uniform(k2, (fc_dim,), jnp.float32, -b1, b1)[None, :]
    params["fc2_w_t"] = jax.random.uniform(k3, (out_size, fc_dim), jnp.float32, -b2, b2).T
    params["fc2_b"] = jax.random.uniform(k4, (out_size,), jnp.float32, -b2, b2)[None, :]
    return params


def init_hir_full_model(key, output_size=4, hidden_dim=32, fc_dim=32):
    ka, kt, ktop = jax.random.split(key, 3)
    return {
        "audio_lstm": init_lstm_model_params(ka, 33, hidden_dim, fc_dim, output_size, 2),
        "text_lstm":  init_lstm_model_params(kt, 768, hidden_dim, fc_dim, output_size, 2),
        "top_lstm":   init_lstm_model_params(ktop, 2 * output_size, hidden_dim, fc_dim,
                                             output_size, 1),
    }


# -----------------------------------------------------------------------------
# Host-side weight packing: one (R,128) f32 slab + bf16 text layer-0 w_ih
# -----------------------------------------------------------------------------
def _collect_lstm_model_entries(entries, params, prefix, skip_wih0=False):
    for l, layer in enumerate(params["lstm"]):
        if not (skip_wih0 and l == 0):
            entries.append((f"{prefix}_wih{l}", layer["w_ih_t"]))
        entries.append((f"{prefix}_whh{l}", layer["w_hh_t"]))
        entries.append((f"{prefix}_b{l}", layer["bias"]))
    entries.append((f"{prefix}_f1w", params["fc1_w_t"]))
    entries.append((f"{prefix}_f1b", params["fc1_b"]))
    entries.append((f"{prefix}_f2w", params["fc2_w_t"]))
    entries.append((f"{prefix}_f2b", params["fc2_b"]))


def build_weight_pack(params):
    """Pack every f32 weight (8-row aligned, zero-padded to 128 lanes) into one slab.
    Returns (pack (R,128) f32, text_wih0 (768,128) bf16, offsets {name:(row,r,c)})."""
    entries = []
    _collect_lstm_model_entries(entries, params["audio_lstm"], "a")
    _collect_lstm_model_entries(entries, params["text_lstm"], "t", skip_wih0=True)
    _collect_lstm_model_entries(entries, params["top_lstm"], "p")

    offsets, pieces, row = {}, [], 0
    for name, arr in entries:
        arr = np.asarray(arr, np.float32)
        r, c = arr.shape
        assert c <= _LANES
        r_pad = ((r + 7) // 8) * 8
        buf = np.zeros((r_pad, _LANES), np.float32)
        buf[:r, :c] = arr
        offsets[name] = (row, r, c)
        pieces.append(buf)
        row += r_pad
    pack = jnp.asarray(np.concatenate(pieces, axis=0))
    t_wih0_bf16 = jnp.asarray(
        np.asarray(params["text_lstm"]["lstm"][0]["w_ih_t"], np.float32)
    ).astype(jnp.bfloat16)
    return pack, t_wih0_bf16, offsets


# -----------------------------------------------------------------------------
# Single fused kernel (whole model, everything VMEM-resident)
# -----------------------------------------------------------------------------
def make_hir_kernel(offsets, hidden_dim, output_size):
    H = hidden_dim
    O = output_size

    def kernel(audio_ref, text_ref, t_wih0_ref, pack_ref, out_ref, hn_ref, cn_ref):
        B, S, _ = audio_ref.shape
        BS = B * S

        def w(name):
            off, r, c = offsets[name]
            return pack_ref[off:off + r, :c]        # static, sublane-aligned slice

        def proj(x2d, wih, bias):
            # Time-batched input projection; bias folded in once (not per step).
            y = jnp.dot(x2d, wih, preferred_element_type=jnp.float32) + bias
            return y.reshape(B, S, 4 * H)

        def recur(xp, whh):
            # xp: (B, S, 4H) pre-projected gates.  Only the h recurrence + gate
            # nonlinearities stay inside the statically unrolled time loop.
            h = jnp.zeros((B, H), jnp.float32)
            c = jnp.zeros((B, H), jnp.float32)
            hs = []
            for t in range(S):
                gates = xp[:, t, :] + jnp.dot(h, whh,
                                              preferred_element_type=jnp.float32)
                sg = jax.nn.sigmoid(gates)          # full 4H = 128-lane vreg
                th = jnp.tanh(gates)                # full 4H = 128-lane vreg
                c = sg[:, H:2 * H] * c + sg[:, :H] * th[:, 2 * H:3 * H]
                h = sg[:, 3 * H:] * jnp.tanh(c)
                hs.append(h)
            h_all = jnp.stack(hs, axis=1).reshape(BS, H)   # row order b*S + t
            return h_all, h, c

        def head(h2d, prefix):
            # relu -> fc1 -> relu -> (dropout = eval identity) -> fc2, batched
            # over all B*S rows at once.
            y = jnp.maximum(h2d, 0.0)
            y = jnp.dot(y, w(prefix + "_f1w"),
                        preferred_element_type=jnp.float32) + w(prefix + "_f1b")
            y = jnp.maximum(y, 0.0)
            return jnp.dot(y, w(prefix + "_f2w"),
                           preferred_element_type=jnp.float32) + w(prefix + "_f2b")

        # ---------------- audio branch (2-layer LSTM + head) -----------------
        a_x = audio_ref[...].reshape(BS, -1)                       # (B*S, 33)
        a_h0, _, _ = recur(proj(a_x, w("a_wih0"), w("a_b0")), w("a_whh0"))
        a_h1, _, _ = recur(proj(a_h0, w("a_wih1"), w("a_b1")), w("a_whh1"))
        a_y = head(a_h1, "a")                                      # (B*S, O)

        # ---------------- text branch (2-layer LSTM + head) ------------------
        # Layer-0 input projection (the only big matmul, K=768) runs in bf16 on
        # the MXU with f32 accumulation.
        t_x = text_ref[...].reshape(BS, -1).astype(jnp.bfloat16)   # (B*S, 768)
        t_g0 = (jnp.dot(t_x, t_wih0_ref[...],
                        preferred_element_type=jnp.float32) + w("t_b0"))
        t_h0, _, _ = recur(t_g0.reshape(B, S, 4 * H), w("t_whh0"))
        t_h1, _, _ = recur(proj(t_h0, w("t_wih1"), w("t_b1")), w("t_whh1"))
        t_y = head(t_h1, "t")                                      # (B*S, O)

        # ------------- concat + top LSTM (1 layer) + head --------------------
        p_x = jnp.concatenate([a_y, t_y], axis=-1)                 # (B*S, 2*O)
        p_h, p_hn, p_cn = recur(proj(p_x, w("p_wih0"), w("p_b0")), w("p_whh0"))
        p_y = head(p_h, "p")                                       # (B*S, O)

        # Single full-block writes at kernel end.
        out_ref[...] = p_y.reshape(B, S, O)
        hn_ref[...] = p_hn
        cn_ref[...] = p_cn

    return kernel


# -----------------------------------------------------------------------------
# hir_fullModel forward (single fused pallas_call)
# -----------------------------------------------------------------------------
def build_hir_forward(offsets, hidden_dim=32, fc_dim=32, output_size=4):
    kernel = make_hir_kernel(offsets, hidden_dim, output_size)

    @jax.jit
    def forward(pack, t_wih0_bf16, audio, text):
        """audio (B,S,33), text (B,S,768) f32 -> (out (B*S,4), (h_n, c_n))."""
        B, S, _ = audio.shape
        out_bso, h_n, c_n = pl.pallas_call(
            kernel,
            out_shape=[
                jax.ShapeDtypeStruct((B, S, output_size), jnp.float32),
                jax.ShapeDtypeStruct((B, hidden_dim), jnp.float32),
                jax.ShapeDtypeStruct((B, hidden_dim), jnp.float32),
            ],
            in_specs=[pl.BlockSpec(memory_space=pltpu.MemorySpace.VMEM)] * 4,
            out_specs=[pl.BlockSpec(memory_space=pltpu.MemorySpace.VMEM)] * 3,
        )(audio, text, t_wih0_bf16, pack)
        out = out_bso.reshape(B * S, output_size)        # row order b*S + t == .view(-1,.)
        hidden = (h_n[None, :, :], c_n[None, :, :])      # top_lstm has n_layers=1
        return out, hidden

    return forward


# -----------------------------------------------------------------------------
# Pure-JAX f32 reference (correctness check only)
# -----------------------------------------------------------------------------
def _lstm_layer_ref(x_sbf, w_ih_t, w_hh_t, bias):
    H = w_hh_t.shape[0]
    B = x_sbf.shape[1]

    def step(carry, x_t):
        h, c = carry
        gates = x_t @ w_ih_t + h @ w_hh_t + bias
        i = jax.nn.sigmoid(gates[:, 0 * H:1 * H])
        f = jax.nn.sigmoid(gates[:, 1 * H:2 * H])
        g = jnp.tanh(gates[:, 2 * H:3 * H])
        o = jax.nn.sigmoid(gates[:, 3 * H:4 * H])
        c = f * c + i * g
        h = o * jnp.tanh(c)
        return (h, c), h

    init = (jnp.zeros((B, H)), jnp.zeros((B, H)))
    (h_fin, c_fin), hs = jax.lax.scan(step, init, x_sbf)
    return hs, (h_fin, c_fin)


def _lstm_model_ref(params, x_bsf):
    H = params["lstm"][0]["w_hh_t"].shape[0]
    h = jnp.transpose(x_bsf, (1, 0, 2))
    h_ns, c_ns = [], []
    for layer in params["lstm"]:
        h, (h_fin, c_fin) = _lstm_layer_ref(h, layer["w_ih_t"], layer["w_hh_t"],
                                            layer["bias"])
        h_ns.append(h_fin)
        c_ns.append(c_fin)
    flat = jnp.transpose(h, (1, 0, 2)).reshape(-1, H)
    y = jnp.maximum(flat, 0.0)
    y = jnp.maximum(y @ params["fc1_w_t"] + params["fc1_b"], 0.0)
    y = y @ params["fc2_w_t"] + params["fc2_b"]
    return y, (jnp.stack(h_ns), jnp.stack(c_ns))


def _hir_ref(params, audio, text):
    B = audio.shape[0]
    a, _ = _lstm_model_ref(params["audio_lstm"], audio)
    t, _ = _lstm_model_ref(params["text_lstm"], text)
    out = jnp.concatenate([a, t], axis=-1).reshape(B, -1, a.shape[-1] + t.shape[-1])
    return _lstm_model_ref(params["top_lstm"], out)


# -----------------------------------------------------------------------------
if __name__ == "__main__":
    B, S = 2, 8
    key = jax.random.PRNGKey(0)
    k_param, k_audio, k_text = jax.random.split(key, 3)

    params = init_hir_full_model(k_param, output_size=4, hidden_dim=32, fc_dim=32)
    audio = jax.random.normal(k_audio, (B, S, 33), jnp.float32)
    text = jax.random.normal(k_text, (B, S, 768), jnp.float32)

    pack, t_wih0_bf16, offsets = build_weight_pack(params)
    forward = build_hir_forward(offsets, hidden_dim=32, fc_dim=32, output_size=4)

    out, (h_n, c_n) = forward(pack, t_wih0_bf16, audio, text)
    jax.block_until_ready(out)
    jax.block_until_ready(h_n)
    jax.block_until_ready(c_n)

    assert out.shape == (B * S, 4), out.shape
    assert h_n.shape == (1, B, 32) and c_n.shape == (1, B, 32)

    ref_out, (ref_hn, ref_cn) = _hir_ref(params, audio, text)
    # Tolerance loosened vs the all-f32 version because the text layer-0
    # projection now runs in bf16 on the MXU (review suggestion).
    np.testing.assert_allclose(np.asarray(out), np.asarray(ref_out), rtol=3e-2, atol=3e-2)
    np.testing.assert_allclose(np.asarray(h_n), np.asarray(ref_hn), rtol=3e-2, atol=3e-2)
    np.testing.assert_allclose(np.asarray(c_n), np.asarray(ref_cn), rtol=3e-2, atol=3e-2)

    print("KERNEL_OK")
</pallas_src>

<mosaic_0001>
module attributes {stable_mosaic.version = 11 : i64} {
  func.func @kernel(%arg0: memref<2x8x33xf32, #tpu.memory_space<vmem>>, %arg1: memref<2x8x768xf32, #tpu.memory_space<vmem>>, %arg2: memref<768x128xbf16, #tpu.memory_space<vmem>>, %arg3: memref<552x128xf32, #tpu.memory_space<vmem>>, %arg4: memref<2x8x4xf32, #tpu.memory_space<vmem>>, %arg5: memref<2x32xf32, #tpu.memory_space<vmem>>, %arg6: memref<2x32xf32, #tpu.memory_space<vmem>>) attributes {dimension_semantics = [], scalar_prefetch = 0 : i64, scratch_operands = 0 : i64, tpu.core_type = #tpu.core_type<tc>} {
    %c0 = arith.constant 0 : index
    %c0_0 = arith.constant 0 : index
    %c0_1 = arith.constant 0 : index
    %0 = vector.load %arg0[%c0, %c0_0, %c0_1] : memref<2x8x33xf32, #tpu.memory_space<vmem>>, vector<2x8x33xf32>
    %1 = vector.shape_cast %0 : vector<2x8x33xf32> to vector<16x33xf32>
    %c0_2 = arith.constant 0 : index
    %c0_3 = arith.constant 0 : index
    %2 = vector.load %arg3[%c0_2, %c0_3] : memref<552x128xf32, #tpu.memory_space<vmem>>, vector<33x128xf32>
    %c72 = arith.constant 72 : index
    %c0_4 = arith.constant 0 : index
    %3 = vector.load %arg3[%c72, %c0_4] : memref<552x128xf32, #tpu.memory_space<vmem>>, vector<1x128xf32>
    %cst = arith.constant dense<0.000000e+00> : vector<16x128xf32>
    %4 = tpu.matmul %1, %2, %cst {dimension_numbers = #tpu.dot_dimension_numbers<[1], [0], [0], [1], [0, 0, 1, 1], [], []>} : vector<16x33xf32>, vector<33x128xf32>, vector<16x128xf32> -> vector<16x128xf32>
    %5 = vector.broadcast %3 : vector<1x128xf32> to vector<16x128xf32>
    %6 = arith.addf %4, %5 : vector<16x128xf32>
    %7 = vector.shape_cast %6 : vector<16x128xf32> to vector<2x8x128xf32>
    %c40 = arith.constant 40 : index
    %c0_5 = arith.constant 0 : index
    %8 = vector.load %arg3[%c40, %c0_5] : memref<552x128xf32, #tpu.memory_space<vmem>>, vector<32x128xf32>
    %cst_6 = arith.constant 0.000000e+00 : f32
    %9 = vector.broadcast %cst_6 : f32 to vector<2x32xf32>
    %cst_7 = arith.constant 0.000000e+00 : f32
    %10 = vector.broadcast %cst_7 : f32 to vector<2x32xf32>
    %11 = vector.extract_strided_slice %7 {offsets = [0, 0, 0], sizes = [2, 1, 128], strides = [1, 1, 1]} : vector<2x8x128xf32> to vector<2x1x128xf32>
    %12 = vector.shape_cast %11 : vector<2x1x128xf32> to vector<2x128xf32>
    %cst_8 = arith.constant dense<0.000000e+00> : vector<2x128xf32>
    %13 = tpu.matmul %9, %8, %cst_8 {dimension_numbers = #tpu.dot_dimension_numbers<[1], [0], [0], [1], [0, 0, 1, 1], [], []>} : vector<2x32xf32>, vector<32x128xf32>, vector<2x128xf32> -> vector<2x128xf32>
    %14 = arith.addf %12, %13 : vector<2x128xf32>
    %15 = arith.negf %14 : vector<2x128xf32>
    %16 = math.exp %15 : vector<2x128xf32>
    %cst_9 = arith.constant 1.000000e+00 : f32
    %17 = vector.broadcast %cst_9 : f32 to vector<2x128xf32>
    %18 = arith.addf %17, %16 : vector<2x128xf32>
    %19 = arith.divf %17, %18 : vector<2x128xf32>
    %20 = math.tanh %14 : vector<2x128xf32>
    %21 = vector.extract_strided_slice %19 {offsets = [0, 32], sizes = [2, 32], strides = [1, 1]} : vector<2x128xf32> to vector<2x32xf32>
    %22 = arith.mulf %21, %10 : vector<2x32xf32>
    %23 = vector.extract_strided_slice %19 {offsets = [0, 0], sizes = [2, 32], strides = [1, 1]} : vector<2x128xf32> to vector<2x32xf32>
    %24 = vector.extract_strided_slice %20 {offsets = [0, 64], sizes = [2, 32], strides = [1, 1]} : vector<2x128xf32> to vector<2x32xf32>
    %25 = arith.mulf %23, %24 : vector<2x32xf32>
    %26 = arith.addf %22, %25 : vector<2x32xf32>
    %27 = vector.extract_strided_slice %19 {offsets = [0, 96], sizes = [2, 32], strides = [1, 1]} : vector<2x128xf32> to vector<2x32xf32>
    %28 = math.tanh %26 : vector<2x32xf32>
    %29 = arith.mulf %27, %28 : vector<2x32xf32>
    %30 = vector.extract_strided_slice %7 {offsets = [0, 1, 0], sizes = [2, 1, 128], strides = [1, 1, 1]} : vector<2x8x128xf32> to vector<2x1x128xf32>
    %31 = vector.shape_cast %30 : vector<2x1x128xf32> to vector<2x128xf32>
    %cst_10 = arith.constant dense<0.000000e+00> : vector<2x128xf32>
    %32 = tpu.matmul %29, %8, %cst_10 {dimension_numbers = #tpu.dot_dimension_numbers<[1], [0], [0], [1], [0, 0, 1, 1], [], []>} : vector<2x32xf32>, vector<32x128xf32>, vector<2x128xf32> -> vector<2x128xf32>
    %33 = arith.addf %31, %32 : vector<2x128xf32>
    %34 = arith.negf %33 : vector<2x128xf32>
    %35 = math.exp %34 : vector<2x128xf32>
    %cst_11 = arith.constant 1.000000e+00 : f32
    %36 = vector.broadcast %cst_11 : f32 to vector<2x128xf32>
    %37 = arith.addf %36, %35 : vector<2x128xf32>
    %38 = arith.divf %36, %37 : vector<2x128xf32>
    %39 = math.tanh %33 : vector<2x128xf32>
    %40 = vector.extract_strided_slice %38 {offsets = [0, 32], sizes = [2, 32], strides = [1, 1]} : vector<2x128xf32> to vector<2x32xf32>
    %41 = arith.mulf %40, %26 : vector<2x32xf32>
    %42 = vector.extract_strided_slice %38 {offsets = [0, 0], sizes = [2, 32], strides = [1, 1]} : vector<2x128xf32> to vector<2x32xf32>
    %43 = vector.extract_strided_slice %39 {offsets = [0, 64], sizes = [2, 32], strides = [1, 1]} : vector<2x128xf32> to vector<2x32xf32>
    %44 = arith.mulf %42, %43 : vector<2x32xf32>
    %45 = arith.addf %41, %44 : vector<2x32xf32>
    %46 = vector.extract_strided_slice %38 {offsets = [0, 96], sizes = [2, 32], strides = [1, 1]} : vector<2x128xf32> to vector<2x32xf32>
    %47 = math.tanh %45 : vector<2x32xf32>
    %48 = arith.mulf %46, %47 : vector<2x32xf32>
    %49 = vector.extract_strided_slice %7 {offsets = [0, 2, 0], sizes = [2, 1, 128], strides = [1, 1, 1]} : vector<2x8x128xf32> to vector<2x1x128xf32>
    %50 = vector.shape_cast %49 : vector<2x1x128xf32> to vector<2x128xf32>
    %cst_12 = arith.constant dense<0.000000e+00> : vector<2x128xf32>
    %51 = tpu.matmul %48, %8, %cst_12 {dimension_numbers = #tpu.dot_dimension_numbers<[1], [0], [0], [1], [0, 0, 1, 1], [], []>} : vector<2x32xf32>, vector<32x128xf32>, vector<2x128xf32> -> vector<2x128xf32>
    %52 = arith.addf %50, %51 : vector<2x128xf32>
    %53 = arith.negf %52 : vector<2x128xf32>
    %54 = math.exp %53 : vector<2x128xf32>
    %cst_13 = arith.constant 1.000000e+00 : f32
    %55 = vector.broadcast %cst_13 : f32 to vector<2x128xf32>
    %56 = arith.addf %55, %54 : vector<2x128xf32>
    %57 = arith.divf %55, %56 : vector<2x128xf32>
    %58 = math.tanh %52 : vector<2x128xf32>
    %59 = vector.extract_strided_slice %57 {offsets = [0, 32], sizes = [2, 32], strides = [1, 1]} : vector<2x128xf32> to vector<2x32xf32>
    %60 = arith.mulf %59, %45 : vector<2x32xf32>
    %61 = vector.extract_strided_slice %57 {offsets = [0, 0], sizes = [2, 32], strides = [1, 1]} : vector<2x128xf32> to vector<2x32xf32>
    %62 = vector.extract_strided_slice %58 {offsets = [0, 64], sizes = [2, 32], strides = [1, 1]} : vector<2x128xf32> to vector<2x32xf32>
    %63 = arith.mulf %61, %62 : vector<2x32xf32>
    %64 = arith.addf %60, %63 : vector<2x32xf32>
    %65 = vector.extract_strided_slice %57 {offsets = [0, 96], sizes = [2, 32], strides = [1, 1]} : vector<2x128xf32> to vector<2x32xf32>
    %66 = math.tanh %64 : vector<2x32xf32>
    %67 = arith.mulf %65, %66 : vector<2x32xf32>
    %68 = vector.extract_strided_slice %7 {offsets = [0, 3, 0], sizes = [2, 1, 128], strides = [1, 1, 1]} : vector<2x8x128xf32> to vector<2x1x128xf32>
    %69 = vector.shape_cast %68 : vector<2x1x128xf32> to vector<2x128xf32>
    %cst_14 = arith.constant dense<0.000000e+00> : vector<2x128xf32>
    %70 = tpu.matmul %67, %8, %cst_14 {dimension_numbers = #tpu.dot_dimension_numbers<[1], [0], [0], [1], [0, 0, 1, 1], [], []>} : vector<2x32xf32>, vector<32x128xf32>, vector<2x128xf32> -> vector<2x128xf32>
    %71 = arith.addf %69, %70 : vector<2x128xf32>
    %72 = arith.negf %71 : vector<2x128xf32>
    %73 = math.exp %72 : vector<2x128xf32>
    %cst_15 = arith.constant 1.000000e+00 : f32
    %74 = vector.broadcast %cst_15 : f32 to vector<2x128xf32>
    %75 = arith.addf %74, %73 : vector<2x128xf32>
    %76 = arith.divf %74, %75 : vector<2x128xf32>
    %77 = math.tanh %71 : vector<2x128xf32>
    %78 = vector.extract_strided_slice %76 {offsets = [0, 32], sizes = [2, 32], strides = [1, 1]} : vector<2x128xf32> to vector<2x32xf32>
    %79 = arith.mulf %78, %64 : vector<2x32xf32>
    %80 = vector.extract_strided_slice %76 {offsets = [0, 0], sizes = [2, 32], strides = [1, 1]} : vector<2x128xf32> to vector<2x32xf32>
    %81 = vector.extract_strided_slice %77 {offsets = [0, 64], sizes = [2, 32], strides = [1, 1]} : vector<2x128xf32> to vector<2x32xf32>
    %82 = arith.mulf %80, %81 : vector<2x32xf32>
    %83 = arith.addf %79, %82 : vector<2x32xf32>
    %84 = vector.extract_strided_slice %76 {offsets = [0, 96], sizes = [2, 32], strides = [1, 1]} : vector<2x128xf32> to vector<2x32xf32>
    %85 = math.tanh %83 : vector<2x32xf32>
    %86 = arith.mulf %84, %85 : vector<2x32xf32>
    %87 = vector.extract_strided_slice %7 {offsets = [0, 4, 0], sizes = [2, 1, 128], strides = [1, 1, 1]} : vector<2x8x128xf32> to vector<2x1x128xf32>
    %88 = vector.shape_cast %87 : vector<2x1x128xf32> to vector<2x128xf32>
    %cst_16 = arith.constant dense<0.000000e+00> : vector<2x128xf32>
    %89 = tpu.matmul %86, %8, %cst_16 {dimension_numbers = #tpu.dot_dimension_numbers<[1], [0], [0], [1], [0, 0, 1, 1], [], []>} : vector<2x32xf32>, vector<32x128xf32>, vector<2x128xf32> -> vector<2x128xf32>
    %90 = arith.addf %88, %89 : vector<2x128xf32>
    %91 = arith.negf %90 : vector<2x128xf32>
    %92 = math.exp %91 : vector<2x128xf32>
    %cst_17 = arith.constant 1.000000e+00 : f32
    %93 = vector.broadcast %cst_17 : f32 to vector<2x128xf32>
    %94 = arith.addf %93, %92 : vector<2x128xf32>
    %95 = arith.divf %93, %94 : vector<2x128xf32>
    %96 = math.tanh %90 : vector<2x128xf32>
    %97 = vector.extract_strided_slice %95 {offsets = [0, 32], sizes = [2, 32], strides = [1, 1]} : vector<2x128xf32> to vector<2x32xf32>
    %98 = arith.mulf %97, %83 : vector<2x32xf32>
    %99 = vector.extract_strided_slice %95 {offsets = [0, 0], sizes = [2, 32], strides = [1, 1]} : vector<2x128xf32> to vector<2x32xf32>
    %100 = vector.extract_strided_slice %96 {offsets = [0, 64], sizes = [2, 32], strides = [1, 1]} : vector<2x128xf32> to vector<2x32xf32>
    %101 = arith.mulf %99, %100 : vector<2x32xf32>
    %102 = arith.addf %98, %101 : vector<2x32xf32>
    %103 = vector.extract_strided_slice %95 {offsets = [0, 96], sizes = [2, 32], strides = [1, 1]} : vector<2x128xf32> to vector<2x32xf32>
    %104 = math.tanh %102 : vector<2x32xf32>
    %105 = arith.mulf %103, %104 : vector<2x32xf32>
    %106 = vector.extract_strided_slice %7 {offsets = [0, 5, 0], sizes = [2, 1, 128], strides = [1, 1, 1]} : vector<2x8x128xf32> to vector<2x1x128xf32>
    %107 = vector.shape_cast %106 : vector<2x1x128xf32> to vector<2x128xf32>
    %cst_18 = arith.constant dense<0.000000e+00> : vector<2x128xf32>
    %108 = tpu.matmul %105, %8, %cst_18 {dimension_numbers = #tpu.dot_dimension_numbers<[1], [0], [0], [1], [0, 0, 1, 1], [], []>} : vector<2x32xf32>, vector<32x128xf32>, vector<2x128xf32> -> vector<2x128xf32>
    %109 = arith.addf %107, %108 : vector<2x128xf32>
    %110 = arith.negf %109 : vector<2x128xf32>
    %111 = math.exp %110 : vector<2x128xf32>
    %cst_19 = arith.constant 1.000000e+00 : f32
    %112 = vector.broadcast %cst_19 : f32 to vector<2x128xf32>
    %113 = arith.addf %112, %111 : vector<2x128xf32>
    %114 = arith.divf %112, %113 : vector<2x128xf32>
    %115 = math.tanh %109 : vector<2x128xf32>
    %116 = vector.extract_strided_slice %114 {offsets = [0, 32], sizes = [2, 32], strides = [1, 1]} : vector<2x128xf32> to vector<2x32xf32>
    %117 = arith.mulf %116, %102 : vector<2x32xf32>
    %118 = vector.extract_strided_slice %114 {offsets = [0, 0], sizes = [2, 32], strides = [1, 1]} : vector<2x128xf32> to vector<2x32xf32>
    %119 = vector.extract_strided_slice %115 {offsets = [0, 64], sizes = [2, 32], strides = [1, 1]} : vector<2x128xf32> to vector<2x32xf32>
    %120 = arith.mulf %118, %119 : vector<2x32xf32>
    %121 = arith.addf %117, %120 : vector<2x32xf32>
    %122 = vector.extract_strided_slice %114 {offsets = [0, 96], sizes = [2, 32], strides = [1, 1]} : vector<2x128xf32> to vector<2x32xf32>
    %123 = math.tanh %121 : vector<2x32xf32>
    %124 = arith.mulf %122, %123 : vector<2x32xf32>
    %125 = vector.extract_strided_slice %7 {offsets = [0, 6, 0], sizes = [2, 1, 128], strides = [1, 1, 1]} : vector<2x8x128xf32> to vector<2x1x128xf32>
    %126 = vector.shape_cast %125 : vector<2x1x128xf32> to vector<2x128xf32>
    %cst_20 = arith.constant dense<0.000000e+00> : vector<2x128xf32>
    %127 = tpu.matmul %124, %8, %cst_20 {dimension_numbers = #tpu.dot_dimension_numbers<[1], [0], [0], [1], [0, 0, 1, 1], [], []>} : vector<2x32xf32>, vector<32x128xf32>, vector<2x128xf32> -> vector<2x128xf32>
    %128 = arith.addf %126, %127 : vector<2x128xf32>
    %129 = arith.negf %128 : vector<2x128xf32>
    %130 = math.exp %129 : vector<2x128xf32>
    %cst_21 = arith.constant 1.000000e+00 : f32
    %131 = vector.broadcast %cst_21 : f32 to vector<2x128xf32>
    %132 = arith.addf %131, %130 : vector<2x128xf32>
    %133 = arith.divf %131, %132 : vector<2x128xf32>
    %134 = math.tanh %128 : vector<2x128xf32>
    %135 = vector.extract_strided_slice %133 {offsets = [0, 32], sizes = [2, 32], strides = [1, 1]} : vector<2x128xf32> to vector<2x32xf32>
    %136 = arith.mulf %135, %121 : vector<2x32xf32>
    %137 = vector.extract_strided_slice %133 {offsets = [0, 0], sizes = [2, 32], strides = [1, 1]} : vector<2x128xf32> to vector<2x32xf32>
    %138 = vector.extract_strided_slice %134 {offsets = [0, 64], sizes = [2, 32], strides = [1, 1]} : vector<2x128xf32> to vector<2x32xf32>
    %139 = arith.mulf %137, %138 : vector<2x32xf32>
    %140 = arith.addf %136, %139 : vector<2x32xf32>
    %141 = vector.extract_strided_slice %133 {offsets = [0, 96], sizes = [2, 32], strides = [1, 1]} : vector<2x128xf32> to vector<2x32xf32>
    %142 = math.tanh %140 : vector<2x32xf32>
    %143 = arith.mulf %141, %142 : vector<2x32xf32>
    %144 = vector.extract_strided_slice %7 {offsets = [0, 7, 0], sizes = [2, 1, 128], strides = [1, 1, 1]} : vector<2x8x128xf32> to vector<2x1x128xf32>
    %145 = vector.shape_cast %144 : vector<2x1x128xf32> to vector<2x128xf32>
    %cst_22 = arith.constant dense<0.000000e+00> : vector<2x128xf32>
    %146 = tpu.matmul %143, %8, %cst_22 {dimension_numbers = #tpu.dot_dimension_numbers<[1], [0], [0], [1], [0, 0, 1, 1], [], []>} : vector<2x32xf32>, vector<32x128xf32>, vector<2x128xf32> -> vector<2x128xf32>
    %147 = arith.addf %145, %146 : vector<2x128xf32>
    %148 = arith.negf %147 : vector<2x128xf32>
    %149 = math.exp %148 : vector<2x128xf32>
    %cst_23 = arith.constant 1.000000e+00 : f32
    %150 = vector.broadcast %cst_23 : f32 to vector<2x128xf32>
    %151 = arith.addf %150, %149 : vector<2x128xf32>
    %152 = arith.divf %150, %151 : vector<2x128xf32>
    %153 = math.tanh %147 : vector<2x128xf32>
    %154 = vector.extract_strided_slice %152 {offsets = [0, 32], sizes = [2, 32], strides = [1, 1]} : vector<2x128xf32> to vector<2x32xf32>
    %155 = arith.mulf %154, %140 : vector<2x32xf32>
    %156 = vector.extract_strided_slice %152 {offsets = [0, 0], sizes = [2, 32], strides = [1, 1]} : vector<2x128xf32> to vector<2x32xf32>
    %157 = vector.extract_strided_slice %153 {offsets = [0, 64], sizes = [2, 32], strides = [1, 1]} : vector<2x128xf32> to vector<2x32xf32>
    %158 = arith.mulf %156, %157 : vector<2x32xf32>
    %159 = arith.addf %155, %158 : vector<2x32xf32>
    %160 = vector.extract_strided_slice %152 {offsets = [0, 96], sizes = [2, 32], strides = [1, 1]} : vector<2x128xf32> to vector<2x32xf32>
    %161 = math.tanh %159 : vector<2x32xf32>
    %162 = arith.mulf %160, %161 : vector<2x32xf32>
    %163 = vector.shape_cast %29 : vector<2x32xf32> to vector<2x1x32xf32>
    %164 = vector.shape_cast %48 : vector<2x32xf32> to vector<2x1x32xf32>
    %165 = vector.shape_cast %67 : vector<2x32xf32> to vector<2x1x32xf32>
    %166 = vector.shape_cast %86 : vector<2x32xf32> to vector<2x1x32xf32>
    %167 = vector.shape_cast %105 : vector<2x32xf32> to vector<2x1x32xf32>
    %168 = vector.shape_cast %124 : vector<2x32xf32> to vector<2x1x32xf32>
    %169 = vector.shape_cast %143 : vector<2x32xf32> to vector<2x1x32xf32>
    %170 = vector.shape_cast %162 : vector<2x32xf32> to vector<2x1x32xf32>
    %171 = tpu.concatenate %163, %164, %165, %166, %167, %168, %169, %170 in 1 : vector<2x1x32xf32>, vector<2x1x32xf32>, vector<2x1x32xf32>, vector<2x1x32xf32>, vector<2x1x32xf32>, vector<2x1x32xf32>, vector<2x1x32xf32>, vector<2x1x32xf32> -> vector<2x8x32xf32>
    %172 = vector.shape_cast %171 : vector<2x8x32xf32> to vector<16x32xf32>
    %c80 = arith.constant 80 : index
    %c0_24 = arith.constant 0 : index
    %173 = vector.load %arg3[%c80, %c0_24] : memref<552x128xf32, #tpu.memory_space<vmem>>, vector<32x128xf32>
    %c144 = arith.constant 144 : index
    %c0_25 = arith.constant 0 : index
    %174 = vector.load %arg3[%c144, %c0_25] : memref<552x128xf32, #tpu.memory_space<vmem>>, vector<1x128xf32>
    %cst_26 = arith.constant dense<0.000000e+00> : vector<16x128xf32>
    %175 = tpu.matmul %172, %173, %cst_26 {dimension_numbers = #tpu.dot_dimension_numbers<[1], [0], [0], [1], [0, 0, 1, 1], [], []>} : vector<16x32xf32>, vector<32x128xf32>, vector<16x128xf32> -> vector<16x128xf32>
    %176 = vector.broadcast %174 : vector<1x128xf32> to vector<16x128xf32>
    %177 = arith.addf %175, %176 : vector<16x128xf32>
    %178 = vector.shape_cast %177 : vector<16x128xf32> to vector<2x8x128xf32>
    %c112 = arith.constant 112 : index
    %c0_27 = arith.constant 0 : index
    %179 = vector.load %arg3[%c112, %c0_27] : memref<552x128xf32, #tpu.memory_space<vmem>>, vector<32x128xf32>
    %cst_28 = arith.constant 0.000000e+00 : f32
    %180 = vector.broadcast %cst_28 : f32 to vector<2x32xf32>
    %cst_29 = arith.constant 0.000000e+00 : f32
    %181 = vector.broadcast %cst_29 : f32 to vector<2x32xf32>
    %182 = vector.extract_strided_slice %178 {offsets = [0, 0, 0], sizes = [2, 1, 128], strides = [1, 1, 1]} : vector<2x8x128xf32> to vector<2x1x128xf32>
    %183 = vector.shape_cast %182 : vector<2x1x128xf32> to vector<2x128xf32>
    %cst_30 = arith.constant dense<0.000000e+00> : vector<2x128xf32>
    %184 = tpu.matmul %180, %179, %cst_30 {dimension_numbers = #tpu.dot_dimension_numbers<[1], [0], [0], [1], [0, 0, 1, 1], [], []>} : vector<2x32xf32>, vector<32x128xf32>, vector<2x128xf32> -> vector<2x128xf32>
    %185 = arith.addf %183, %184 : vector<2x128xf32>
    %186 = arith.negf %185 : vector<2x128xf32>
    %187 = math.exp %186 : vector<2x128xf32>
    %cst_31 = arith.constant 1.000000e+00 : f32
    %188 = vector.broadcast %cst_31 : f32 to vector<2x128xf32>
    %189 = arith.addf %188, %187 : vector<2x128xf32>
    %190 = arith.divf %188, %189 : vector<2x128xf32>
    %191 = math.tanh %185 : vector<2x128xf32>
    %192 = vector.extract_strided_slice %190 {offsets = [0, 32], sizes = [2, 32], strides = [1, 1]} : vector<2x128xf32> to vector<2x32xf32>
    %193 = arith.mulf %192, %181 : vector<2x32xf32>
    %194 = vector.extract_strided_slice %190 {offsets = [0, 0], sizes = [2, 32], strides = [1, 1]} : vector<2x128xf32> to vector<2x32xf32>
    %195 = vector.extract_strided_slice %191 {offsets = [0, 64], sizes = [2, 32], strides = [1, 1]} : vector<2x128xf32> to vector<2x32xf32>
    %196 = arith.mulf %194, %195 : vector<2x32xf32>
    %197 = arith.addf %193, %196 : vector<2x32xf32>
    %198 = vector.extract_strided_slice %190 {offsets = [0, 96], sizes = [2, 32], strides = [1, 1]} : vector<2x128xf32> to vector<2x32xf32>
    %199 = math.tanh %197 : vector<2x32xf32>
    %200 = arith.mulf %198, %199 : vector<2x32xf32>
    %201 = vector.extract_strided_slice %178 {offsets = [0, 1, 0], sizes = [2, 1, 128], strides = [1, 1, 1]} : vector<2x8x128xf32> to vector<2x1x128xf32>
    %202 = vector.shape_cast %201 : vector<2x1x128xf32> to vector<2x128xf32>
    %cst_32 = arith.constant dense<0.000000e+00> : vector<2x128xf32>
    %203 = tpu.matmul %200, %179, %cst_32 {dimension_numbers = #tpu.dot_dimension_numbers<[1], [0], [0], [1], [0, 0, 1, 1], [], []>} : vector<2x32xf32>, vector<32x128xf32>, vector<2x128xf32> -> vector<2x128xf32>
    %204 = arith.addf %202, %203 : vector<2x128xf32>
    %205 = arith.negf %204 : vector<2x128xf32>
    %206 = math.exp %205 : vector<2x128xf32>
    %cst_33 = arith.constant 1.000000e+00 : f32
    %207 = vector.broadcast %cst_33 : f32 to vector<2x128xf32>
    %208 = arith.addf %207, %206 : vector<2x128xf32>
    %209 = arith.divf %207, %208 : vector<2x128xf32>
    %210 = math.tanh %204 : vector<2x128xf32>
    %211 = vector.extract_strided_slice %209 {offsets = [0, 32], sizes = [2, 32], strides = [1, 1]} : vector<2x128xf32> to vector<2x32xf32>
    %212 = arith.mulf %211, %197 : vector<2x32xf32>
    %213 = vector.extract_strided_slice %209 {offsets = [0, 0], sizes = [2, 32], strides = [1, 1]} : vector<2x128xf32> to vector<2x32xf32>
    %214 = vector.extract_strided_slice %210 {offsets = [0, 64], sizes = [2, 32], strides = [1, 1]} : vector<2x128xf32> to vector<2x32xf32>
    %215 = arith.mulf %213, %214 : vector<2x32xf32>
    %216 = arith.addf %212, %215 : vector<2x32xf32>
    %217 = vector.extract_strided_slice %209 {offsets = [0, 96], sizes = [2, 32], strides = [1, 1]} : vector<2x128xf32> to vector<2x32xf32>
    %218 = math.tanh %216 : vector<2x32xf32>
    %219 = arith.mulf %217, %218 : vector<2x32xf32>
    %220 = vector.extract_strided_slice %178 {offsets = [0, 2, 0], sizes = [2, 1, 128], strides = [1, 1, 1]} : vector<2x8x128xf32> to vector<2x1x128xf32>
    %221 = vector.shape_cast %220 : vector<2x1x128xf32> to vector<2x128xf32>
    %cst_34 = arith.constant dense<0.000000e+00> : vector<2x128xf32>
    %222 = tpu.matmul %219, %179, %cst_34 {dimension_numbers = #tpu.dot_dimension_numbers<[1], [0], [0], [1], [0, 0, 1, 1], [], []>} : vector<2x32xf32>, vector<32x128xf32>, vector<2x128xf32> -> vector<2x128xf32>
    %223 = arith.addf %221, %222 : vector<2x128xf32>
    %224 = arith.negf %223 : vector<2x128xf32>
    %225 = math.exp %224 : vector<2x128xf32>
    %cst_35 = arith.constant 1.000000e+00 : f32
    %226 = vector.broadcast %cst_35 : f32 to vector<2x128xf32>
    %227 = arith.addf %226, %225 : vector<2x128xf32>
    %228 = arith.divf %226, %227 : vector<2x128xf32>
    %229 = math.tanh %223 : vector<2x128xf32>
    %230 = vector.extract_strided_slice %228 {offsets = [0, 32], sizes = [2, 32], strides = [1, 1]} : vector<2x128xf32> to vector<2x32xf32>
    %231 = arith.mulf %230, %216 : vector<2x32xf32>
    %232 = vector.extract_strided_slice %228 {offsets = [0, 0], sizes = [2, 32], strides = [1, 1]} : vector<2x128xf32> to vector<2x32xf32>
    %233 = vector.extract_strided_slice %229 {offsets = [0, 64], sizes = [2, 32], strides = [1, 1]} : vector<2x128xf32> to vector<2x32xf32>
    %234 = arith.mulf %232, %233 : vector<2x32xf32>
    %235 = arith.addf %231, %234 : vector<2x32xf32>
    %236 = vector.extract_strided_slice %228 {offsets = [0, 96], sizes = [2, 32], strides = [1, 1]} : vector<2x128xf32> to vector<2x32xf32>
    %237 = math.tanh %235 : vector<2x32xf32>
    %238 = arith.mulf %236, %237 : vector<2x32xf32>
    %239 = vector.extract_strided_slice %178 {offsets = [0, 3, 0], sizes = [2, 1, 128], strides = [1, 1, 1]} : vector<2x8x128xf32> to vector<2x1x128xf32>
    %240 = vector.shape_cast %239 : vector<2x1x128xf32> to vector<2x128xf32>
    %cst_36 = arith.constant dense<0.000000e+00> : vector<2x128xf32>
    %241 = tpu.matmul %238, %179, %cst_36 {dimension_numbers = #tpu.dot_dimension_numbers<[1], [0], [0], [1], [0, 0, 1, 1], [], []>} : vector<2x32xf32>, vector<32x128xf32>, vector<2x128xf32> -> vector<2x128xf32>
    %242 = arith.addf %240, %241 : vector<2x128xf32>
    %243 = arith.negf %242 : vector<2x128xf32>
    %244 = math.exp %243 : vector<2x128xf32>
    %cst_37 = arith.constant 1.000000e+00 : f32
    %245 = vector.broadcast %cst_37 : f32 to vector<2x128xf32>
    %246 = arith.addf %245, %244 : vector<2x128xf32>
    %247 = arith.divf %245, %246 : vector<2x128xf32>
    %248 = math.tanh %242 : vector<2x128xf32>
    %249 = vector.extract_strided_slice %247 {offsets = [0, 32], sizes = [2, 32], strides = [1, 1]} : vector<2x128xf32> to vector<2x32xf32>
    %250 = arith.mulf %249, %235 : vector<2x32xf32>
    %251 = vector.extract_strided_slice %247 {offsets = [0, 0], sizes = [2, 32], strides = [1, 1]} : vector<2x128xf32> to vector<2x32xf32>
    %252 = vector.extract_strided_slice %248 {offsets = [0, 64], sizes = [2, 32], strides = [1, 1]} : vector<2x128xf32> to vector<2x32xf32>
    %253 = arith.mulf %251, %252 : vector<2x32xf32>
    %254 = arith.addf %250, %253 : vector<2x32xf32>
    %255 = vector.extract_strided_slice %247 {offsets = [0, 96], sizes = [2, 32], strides = [1, 1]} : vector<2x128xf32> to vector<2x32xf32>
    %256 = math.tanh %254 : vector<2x32xf32>
    %257 = arith.mulf %255, %256 : vector<2x32xf32>
    %258 = vector.extract_strided_slice %178 {offsets = [0, 4, 0], sizes = [2, 1, 128], strides = [1, 1, 1]} : vector<2x8x128xf32> to vector<2x1x128xf32>
    %259 = vector.shape_cast %258 : vector<2x1x128xf32> to vector<2x128xf32>
    %cst_38 = arith.constant dense<0.000000e+00> : vector<2x128xf32>
    %260 = tpu.matmul %257, %179, %cst_38 {dimension_numbers = #tpu.dot_dimension_numbers<[1], [0], [0], [1], [0, 0, 1, 1], [], []>} : vector<2x32xf32>, vector<32x128xf32>, vector<2x128xf32> -> vector<2x128xf32>
    %261 = arith.addf %259, %260 : vector<2x128xf32>
    %262 = arith.negf %261 : vector<2x128xf32>
    %263 = math.exp %262 : vector<2x128xf32>
    %cst_39 = arith.constant 1.000000e+00 : f32
    %264 = vector.broadcast %cst_39 : f32 to vector<2x128xf32>
    %265 = arith.addf %264, %263 : vector<2x128xf32>
    %266 = arith.divf %264, %265 : vector<2x128xf32>
    %267 = math.tanh %261 : vector<2x128xf32>
    %268 = vector.extract_strided_slice %266 {offsets = [0, 32], sizes = [2, 32], strides = [1, 1]} : vector<2x128xf32> to vector<2x32xf32>
    %269 = arith.mulf %268, %254 : vector<2x32xf32>
    %270 = vector.extract_strided_slice %266 {offsets = [0, 0], sizes = [2, 32], strides = [1, 1]} : vector<2x128xf32> to vector<2x32xf32>
    %271 = vector.extract_strided_slice %267 {offsets = [0, 64], sizes = [2, 32], strides = [1, 1]} : vector<2x128xf32> to vector<2x32xf32>
    %272 = arith.mulf %270, %271 : vector<2x32xf32>
    %273 = arith.addf %269, %272 : vector<2x32xf32>
    %274 = vector.extract_strided_slice %266 {offsets = [0, 96], sizes = [2, 32], strides = [1, 1]} : vector<2x128xf32> to vector<2x32xf32>
    %275 = math.tanh %273 : vector<2x32xf32>
    %276 = arith.mulf %274, %275 : vector<2x32xf32>
    %277 = vector.extract_strided_slice %178 {offsets = [0, 5, 0], sizes = [2, 1, 128], strides = [1, 1, 1]} : vector<2x8x128xf32> to vector<2x1x128xf32>
    %278 = vector.shape_cast %277 : vector<2x1x128xf32> to vector<2x128xf32>
    %cst_40 = arith.constant dense<0.000000e+00> : vector<2x128xf32>
    %279 = tpu.matmul %276, %179, %cst_40 {dimension_numbers = #tpu.dot_dimension_numbers<[1], [0], [0], [1], [0, 0, 1, 1], [], []>} : vector<2x32xf32>, vector<32x128xf32>, vector<2x128xf32> -> vector<2x128xf32>
    %280 = arith.addf %278, %279 : vector<2x128xf32>
    %281 = arith.negf %280 : vector<2x128xf32>
    %282 = math.exp %281 : vector<2x128xf32>
    %cst_41 = arith.constant 1.000000e+00 : f32
    %283 = vector.broadcast %cst_41 : f32 to vector<2x128xf32>
    %284 = arith.addf %283, %282 : vector<2x128xf32>
    %285 = arith.divf %283, %284 : vector<2x128xf32>
    %286 = math.tanh %280 : vector<2x128xf32>
    %287 = vector.extract_strided_slice %285 {offsets = [0, 32], sizes = [2, 32], strides = [1, 1]} : vector<2x128xf32> to vector<2x32xf32>
    %288 = arith.mulf %287, %273 : vector<2x32xf32>
    %289 = vector.extract_strided_slice %285 {offsets = [0, 0], sizes = [2, 32], strides = [1, 1]} : vector<2x128xf32> to vector<2x32xf32>
    %290 = vector.extract_strided_slice %286 {offsets = [0, 64], sizes = [2, 32], strides = [1, 1]} : vector<2x128xf32> to vector<2x32xf32>
    %291 = arith.mulf %289, %290 : vector<2x32xf32>
    %292 = arith.addf %288, %291 : vector<2x32xf32>
    %293 = vector.extract_strided_slice %285 {offsets = [0, 96], sizes = [2, 32], strides = [1, 1]} : vector<2x128xf32> to vector<2x32xf32>
    %294 = math.tanh %292 : vector<2x32xf32>
    %295 = arith.mulf %293, %294 : vector<2x32xf32>
    %296 = vector.extract_strided_slice %178 {offsets = [0, 6, 0], sizes = [2, 1, 128], strides = [1, 1, 1]} : vector<2x8x128xf32> to vector<2x1x128xf32>
    %297 = vector.shape_cast %296 : vector<2x1x128xf32> to vector<2x128xf32>
    %cst_42 = arith.constant dense<0.000000e+00> : vector<2x128xf32>
    %298 = tpu.matmul %295, %179, %cst_42 {dimension_numbers = #tpu.dot_dimension_numbers<[1], [0], [0], [1], [0, 0, 1, 1], [], []>} : vector<2x32xf32>, vector<32x128xf32>, vector<2x128xf32> -> vector<2x128xf32>
    %299 = arith.addf %297, %298 : vector<2x128xf32>
    %300 = arith.negf %299 : vector<2x128xf32>
    %301 = math.exp %300 : vector<2x128xf32>
    %cst_43 = arith.constant 1.000000e+00 : f32
    %302 = vector.broadcast %cst_43 : f32 to vector<2x128xf32>
    %303 = arith.addf %302, %301 : vector<2x128xf32>
    %304 = arith.divf %302, %303 : vector<2x128xf32>
    %305 = math.tanh %299 : vector<2x128xf32>
    %306 = vector.extract_strided_slice %304 {offsets = [0, 32], sizes = [2, 32], strides = [1, 1]} : vector<2x128xf32> to vector<2x32xf32>
    %307 = arith.mulf %306, %292 : vector<2x32xf32>
    %308 = vector.extract_strided_slice %304 {offsets = [0, 0], sizes = [2, 32], strides = [1, 1]} : vector<2x128xf32> to vector<2x32xf32>
    %309 = vector.extract_strided_slice %305 {offsets = [0, 64], sizes = [2, 32], strides = [1, 1]} : vector<2x128xf32> to vector<2x32xf32>
    %310 = arith.mulf %308, %309 : vector<2x32xf32>
    %311 = arith.addf %307, %310 : vector<2x32xf32>
    %312 = vector.extract_strided_slice %304 {offsets = [0, 96], sizes = [2, 32], strides = [1, 1]} : vector<2x128xf32> to vector<2x32xf32>
    %313 = math.tanh %311 : vector<2x32xf32>
    %314 = arith.mulf %312, %313 : vector<2x32xf32>
    %315 = vector.extract_strided_slice %178 {offsets = [0, 7, 0], sizes = [2, 1, 128], strides = [1, 1, 1]} : vector<2x8x128xf32> to vector<2x1x128xf32>
    %316 = vector.shape_cast %315 : vector<2x1x128xf32> to vector<2x128xf32>
    %cst_44 = arith.constant dense<0.000000e+00> : vector<2x128xf32>
    %317 = tpu.matmul %314, %179, %cst_44 {dimension_numbers = #tpu.dot_dimension_numbers<[1], [0], [0], [1], [0, 0, 1, 1], [], []>} : vector<2x32xf32>, vector<32x128xf32>, vector<2x128xf32> -> vector<2x128xf32>
    %318 = arith.addf %316, %317 : vector<2x128xf32>
    %319 = arith.negf %318 : vector<2x128xf32>
    %320 = math.exp %319 : vector<2x128xf32>
    %cst_45 = arith.constant 1.000000e+00 : f32
    %321 = vector.broadcast %cst_45 : f32 to vector<2x128xf32>
    %322 = arith.addf %321, %320 : vector<2x128xf32>
    %323 = arith.divf %321, %322 : vector<2x128xf32>
    %324 = math.tanh %318 : vector<2x128xf32>
    %325 = vector.extract_strided_slice %323 {offsets = [0, 32], sizes = [2, 32], strides = [1, 1]} : vector<2x128xf32> to vector<2x32xf32>
    %326 = arith.mulf %325, %311 : vector<2x32xf32>
    %327 = vector.extract_strided_slice %323 {offsets = [0, 0], sizes = [2, 32], strides = [1, 1]} : vector<2x128xf32> to vector<2x32xf32>
    %328 = vector.extract_strided_slice %324 {offsets = [0, 64], sizes = [2, 32], strides = [1, 1]} : vector<2x128xf32> to vector<2x32xf32>
    %329 = arith.mulf %327, %328 : vector<2x32xf32>
    %330 = arith.addf %326, %329 : vector<2x32xf32>
    %331 = vector.extract_strided_slice %323 {offsets = [0, 96], sizes = [2, 32], strides = [1, 1]} : vector<2x128xf32> to vector<2x32xf32>
    %332 = math.tanh %330 : vector<2x32xf32>
    %333 = arith.mulf %331, %332 : vector<2x32xf32>
    %334 = vector.shape_cast %200 : vector<2x32xf32> to vector<2x1x32xf32>
    %335 = vector.shape_cast %219 : vector<2x32xf32> to vector<2x1x32xf32>
    %336 = vector.shape_cast %238 : vector<2x32xf32> to vector<2x1x32xf32>
    %337 = vector.shape_cast %257 : vector<2x32xf32> to vector<2x1x32xf32>
    %338 = vector.shape_cast %276 : vector<2x32xf32> to vector<2x1x32xf32>
    %339 = vector.shape_cast %295 : vector<2x32xf32> to vector<2x1x32xf32>
    %340 = vector.shape_cast %314 : vector<2x32xf32> to vector<2x1x32xf32>
    %341 = vector.shape_cast %333 : vector<2x32xf32> to vector<2x1x32xf32>
    %342 = tpu.concatenate %334, %335, %336, %337, %338, %339, %340, %341 in 1 : vector<2x1x32xf32>, vector<2x1x32xf32>, vector<2x1x32xf32>, vector<2x1x32xf32>, vector<2x1x32xf32>, vector<2x1x32xf32>, vector<2x1x32xf32>, vector<2x1x32xf32> -> vector<2x8x32xf32>
    %343 = vector.shape_cast %342 : vector<2x8x32xf32> to vector<16x32xf32>
    %cst_46 = arith.constant 0.000000e+00 : f32
    %344 = vector.broadcast %cst_46 : f32 to vector<16x32xf32>
    %345 = arith.maximumf %343, %344 : vector<16x32xf32>
    %c152 = arith.constant 152 : index
    %c0_47 = arith.constant 0 : index
    %346 = vector.load %arg3[%c152, %c0_47] : memref<552x128xf32, #tpu.memory_space<vmem>>, vector<32x32xf32>
    %cst_48 = arith.constant dense<0.000000e+00> : vector<16x32xf32>
    %347 = tpu.matmul %345, %346, %cst_48 {dimension_numbers = #tpu.dot_dimension_numbers<[1], [0], [0], [1], [0, 0, 1, 1], [], []>} : vector<16x32xf32>, vector<32x32xf32>, vector<16x32xf32> -> vector<16x32xf32>
    %c184 = arith.constant 184 : index
    %c0_49 = arith.constant 0 : index
    %348 = vector.load %arg3[%c184, %c0_49] : memref<552x128xf32, #tpu.memory_space<vmem>>, vector<1x32xf32>
    %349 = vector.broadcast %348 : vector<1x32xf32> to vector<16x32xf32>
    %350 = arith.addf %347, %349 : vector<16x32xf32>
    %cst_50 = arith.constant 0.000000e+00 : f32
    %351 = vector.broadcast %cst_50 : f32 to vector<16x32xf32>
    %352 = arith.maximumf %350, %351 : vector<16x32xf32>
    %c192 = arith.constant 192 : index
    %c0_51 = arith.constant 0 : index
    %353 = vector.load %arg3[%c192, %c0_51] : memref<552x128xf32, #tpu.memory_space<vmem>>, vector<32x4xf32>
    %cst_52 = arith.constant dense<0.000000e+00> : vector<16x4xf32>
    %354 = tpu.matmul %352, %353, %cst_52 {dimension_numbers = #tpu.dot_dimension_numbers<[1], [0], [0], [1], [0, 0, 1, 1], [], []>} : vector<16x32xf32>, vector<32x4xf32>, vector<16x4xf32> -> vector<16x4xf32>
    %c224 = arith.constant 224 : index
    %c0_53 = arith.constant 0 : index
    %355 = vector.load %arg3[%c224, %c0_53] : memref<552x128xf32, #tpu.memory_space<vmem>>, vector<1x4xf32>
    %356 = vector.broadcast %355 : vector<1x4xf32> to vector<16x4xf32>
    %357 = arith.addf %354, %356 : vector<16x4xf32>
    %c0_54 = arith.constant 0 : index
    %c0_55 = arith.constant 0 : index
    %c0_56 = arith.constant 0 : index
    %358 = vector.load %arg1[%c0_54, %c0_55, %c0_56] : memref<2x8x768xf32, #tpu.memory_space<vmem>>, vector<2x8x768xf32>
    %359 = vector.shape_cast %358 : vector<2x8x768xf32> to vector<16x768xf32>
    %360 = arith.truncf %359 : vector<16x768xf32> to vector<16x768xbf16>
    %c0_57 = arith.constant 0 : index
    %c0_58 = arith.constant 0 : index
    %361 = vector.load %arg2[%c0_57, %c0_58] : memref<768x128xbf16, #tpu.memory_space<vmem>>, vector<768x128xbf16>
    %cst_59 = arith.constant dense<0.000000e+00> : vector<16x128xf32>
    %362 = tpu.matmul %360, %361, %cst_59 {dimension_numbers = #tpu.dot_dimension_numbers<[1], [0], [0], [1], [0, 0, 1, 1], [], []>} : vector<16x768xbf16>, vector<768x128xbf16>, vector<16x128xf32> -> vector<16x128xf32>
    %c264 = arith.constant 264 : index
    %c0_60 = arith.constant 0 : index
    %363 = vector.load %arg3[%c264, %c0_60] : memref<552x128xf32, #tpu.memory_space<vmem>>, vector<1x128xf32>
    %364 = vector.broadcast %363 : vector<1x128xf32> to vector<16x128xf32>
    %365 = arith.addf %362, %364 : vector<16x128xf32>
    %366 = vector.shape_cast %365 : vector<16x128xf32> to vector<2x8x128xf32>
    %c232 = arith.constant 232 : index
    %c0_61 = arith.constant 0 : index
    %367 = vector.load %arg3[%c232, %c0_61] : memref<552x128xf32, #tpu.memory_space<vmem>>, vector<32x128xf32>
    %cst_62 = arith.constant 0.000000e+00 : f32
    %368 = vector.broadcast %cst_62 : f32 to vector<2x32xf32>
    %cst_63 = arith.constant 0.000000e+00 : f32
    %369 = vector.broadcast %cst_63 : f32 to vector<2x32xf32>
    %370 = vector.extract_strided_slice %366 {offsets = [0, 0, 0], sizes = [2, 1, 128], strides = [1, 1, 1]} : vector<2x8x128xf32> to vector<2x1x128xf32>
    %371 = vector.shape_cast %370 : vector<2x1x128xf32> to vector<2x128xf32>
    %cst_64 = arith.constant dense<0.000000e+00> : vector<2x128xf32>
    %372 = tpu.matmul %368, %367, %cst_64 {dimension_numbers = #tpu.dot_dimension_numbers<[1], [0], [0], [1], [0, 0, 1, 1], [], []>} : vector<2x32xf32>, vector<32x128xf32>, vector<2x128xf32> -> vector<2x128xf32>
    %373 = arith.addf %371, %372 : vector<2x128xf32>
    %374 = arith.negf %373 : vector<2x128xf32>
    %375 = math.exp %374 : vector<2x128xf32>
    %cst_65 = arith.constant 1.000000e+00 : f32
    %376 = vector.broadcast %cst_65 : f32 to vector<2x128xf32>
    %377 = arith.addf %376, %375 : vector<2x128xf32>
    %378 = arith.divf %376, %377 : vector<2x128xf32>
    %379 = math.tanh %373 : vector<2x128xf32>
    %380 = vector.extract_strided_slice %378 {offsets = [0, 32], sizes = [2, 32], strides = [1, 1]} : vector<2x128xf32> to vector<2x32xf32>
    %381 = arith.mulf %380, %369 : vector<2x32xf32>
    %382 = vector.extract_strided_slice %378 {offsets = [0, 0], sizes = [2, 32], strides = [1, 1]} : vector<2x128xf32> to vector<2x32xf32>
    %383 = vector.extract_strided_slice %379 {offsets = [0, 64], sizes = [2, 32], strides = [1, 1]} : vector<2x128xf32> to vector<2x32xf32>
    %384 = arith.mulf %382, %383 : vector<2x32xf32>
    %385 = arith.addf %381, %384 : vector<2x32xf32>
    %386 = vector.extract_strided_slice %378 {offsets = [0, 96], sizes = [2, 32], strides = [1, 1]} : vector<2x128xf32> to vector<2x32xf32>
    %387 = math.tanh %385 : vector<2x32xf32>
    %388 = arith.mulf %386, %387 : vector<2x32xf32>
    %389 = vector.extract_strided_slice %366 {offsets = [0, 1, 0], sizes = [2, 1, 128], strides = [1, 1, 1]} : vector<2x8x128xf32> to vector<2x1x128xf32>
    %390 = vector.shape_cast %389 : vector<2x1x128xf32> to vector<2x128xf32>
    %cst_66 = arith.constant dense<0.000000e+00> : vector<2x128xf32>
    %391 = tpu.matmul %388, %367, %cst_66 {dimension_numbers = #tpu.dot_dimension_numbers<[1], [0], [0], [1], [0, 0, 1, 1], [], []>} : vector<2x32xf32>, vector<32x128xf32>, vector<2x128xf32> -> vector<2x128xf32>
    %392 = arith.addf %390, %391 : vector<2x128xf32>
    %393 = arith.negf %392 : vector<2x128xf32>
    %394 = math.exp %393 : vector<2x128xf32>
    %cst_67 = arith.constant 1.000000e+00 : f32
    %395 = vector.broadcast %cst_67 : f32 to vector<2x128xf32>
    %396 = arith.addf %395, %394 : vector<2x128xf32>
    %397 = arith.divf %395, %396 : vector<2x128xf32>
    %398 = math.tanh %392 : vector<2x128xf32>
    %399 = vector.extract_strided_slice %397 {offsets = [0, 32], sizes = [2, 32], strides = [1, 1]} : vector<2x128xf32> to vector<2x32xf32>
    %400 = arith.mulf %399, %385 : vector<2x32xf32>
    %401 = vector.extract_strided_slice %397 {offsets = [0, 0], sizes = [2, 32], strides = [1, 1]} : vector<2x128xf32> to vector<2x32xf32>
    %402 = vector.extract_strided_slice %398 {offsets = [0, 64], sizes = [2, 32], strides = [1, 1]} : vector<2x128xf32> to vector<2x32xf32>
    %403 = arith.mulf %401, %402 : vector<2x32xf32>
    %404 = arith.addf %400, %403 : vector<2x32xf32>
    %405 = vector.extract_strided_slice %397 {offsets = [0, 96], sizes = [2, 32], strides = [1, 1]} : vector<2x128xf32> to vector<2x32xf32>
    %406 = math.tanh %404 : vector<2x32xf32>
    %407 = arith.mulf %405, %406 : vector<2x32xf32>
    %408 = vector.extract_strided_slice %366 {offsets = [0, 2, 0], sizes = [2, 1, 128], strides = [1, 1, 1]} : vector<2x8x128xf32> to vector<2x1x128xf32>
    %409 = vector.shape_cast %408 : vector<2x1x128xf32> to vector<2x128xf32>
    %cst_68 = arith.constant dense<0.000000e+00> : vector<2x128xf32>
    %410 = tpu.matmul %407, %367, %cst_68 {dimension_numbers = #tpu.dot_dimension_numbers<[1], [0], [0], [1], [0, 0, 1, 1], [], []>} : vector<2x32xf32>, vector<32x128xf32>, vector<2x128xf32> -> vector<2x128xf32>
    %411 = arith.addf %409, %410 : vector<2x128xf32>
    %412 = arith.negf %411 : vector<2x128xf32>
    %413 = math.exp %412 : vector<2x128xf32>
    %cst_69 = arith.constant 1.000000e+00 : f32
    %414 = vector.broadcast %cst_69 : f32 to vector<2x128xf32>
    %415 = arith.addf %414, %413 : vector<2x128xf32>
    %416 = arith.divf %414, %415 : vector<2x128xf32>
    %417 = math.tanh %411 : vector<2x128xf32>
    %418 = vector.extract_strided_slice %416 {offsets = [0, 32], sizes = [2, 32], strides = [1, 1]} : vector<2x128xf32> to vector<2x32xf32>
    %419 = arith.mulf %418, %404 : vector<2x32xf32>
    %420 = vector.extract_strided_slice %416 {offsets = [0, 0], sizes = [2, 32], strides = [1, 1]} : vector<2x128xf32> to vector<2x32xf32>
    %421 = vector.extract_strided_slice %417 {offsets = [0, 64], sizes = [2, 32], strides = [1, 1]} : vector<2x128xf32> to vector<2x32xf32>
    %422 = arith.mulf %420, %421 : vector<2x32xf32>
    %423 = arith.addf %419, %422 : vector<2x32xf32>
    %424 = vector.extract_strided_slice %416 {offsets = [0, 96], sizes = [2, 32], strides = [1, 1]} : vector<2x128xf32> to vector<2x32xf32>
    %425 = math.tanh %423 : vector<2x32xf32>
    %426 = arith.mulf %424, %425 : vector<2x32xf32>
    %427 = vector.extract_strided_slice %366 {offsets = [0, 3, 0], sizes = [2, 1, 128], strides = [1, 1, 1]} : vector<2x8x128xf32> to vector<2x1x128xf32>
    %428 = vector.shape_cast %427 : vector<2x1x128xf32> to vector<2x128xf32>
    %cst_70 = arith.constant dense<0.000000e+00> : vector<2x128xf32>
    %429 = tpu.matmul %426, %367, %cst_70 {dimension_numbers = #tpu.dot_dimension_numbers<[1], [0], [0], [1], [0, 0, 1, 1], [], []>} : vector<2x32xf32>, vector<32x128xf32>, vector<2x128xf32> -> vector<2x128xf32>
    %430 = arith.addf %428, %429 : vector<2x128xf32>
    %431 = arith.negf %430 : vector<2x128xf32>
    %432 = math.exp %431 : vector<2x128xf32>
    %cst_71 = arith.constant 1.000000e+00 : f32
    %433 = vector.broadcast %cst_71 : f32 to vector<2x128xf32>
    %434 = arith.addf %433, %432 : vector<2x128xf32>
    %435 = arith.divf %433, %434 : vector<2x128xf32>
    %436 = math.tanh %430 : vector<2x128xf32>
    %437 = vector.extract_strided_slice %435 {offsets = [0, 32], sizes = [2, 32], strides = [1, 1]} : vector<2x128xf32> to vector<2x32xf32>
    %438 = arith.mulf %437, %423 : vector<2x32xf32>
    %439 = vector.extract_strided_slice %435 {offsets = [0, 0], sizes = [2, 32], strides = [1, 1]} : vector<2x128xf32> to vector<2x32xf32>
    %440 = vector.extract_strided_slice %436 {offsets = [0, 64], sizes = [2, 32], strides = [1, 1]} : vector<2x128xf32> to vector<2x32xf32>
    %441 = arith.mulf %439, %440 : vector<2x32xf32>
    %442 = arith.addf %438, %441 : vector<2x32xf32>
    %443 = vector.extract_strided_slice %435 {offsets = [0, 96], sizes = [2, 32], strides = [1, 1]} : vector<2x128xf32> to vector<2x32xf32>
    %444 = math.tanh %442 : vector<2x32xf32>
    %445 = arith.mulf %443, %444 : vector<2x32xf32>
    %446 = vector.extract_strided_slice %366 {offsets = [0, 4, 0], sizes = [2, 1, 128], strides = [1, 1, 1]} : vector<2x8x128xf32> to vector<2x1x128xf32>
    %447 = vector.shape_cast %446 : vector<2x1x128xf32> to vector<2x128xf32>
    %cst_72 = arith.constant dense<0.000000e+00> : vector<2x128xf32>
    %448 = tpu.matmul %445, %367, %cst_72 {dimension_numbers = #tpu.dot_dimension_numbers<[1], [0], [0], [1], [0, 0, 1, 1], [], []>} : vector<2x32xf32>, vector<32x128xf32>, vector<2x128xf32> -> vector<2x128xf32>
    %449 = arith.addf %447, %448 : vector<2x128xf32>
    %450 = arith.negf %449 : vector<2x128xf32>
    %451 = math.exp %450 : vector<2x128xf32>
    %cst_73 = arith.constant 1.000000e+00 : f32
    %452 = vector.broadcast %cst_73 : f32 to vector<2x128xf32>
    %453 = arith.addf %452, %451 : vector<2x128xf32>
    %454 = arith.divf %452, %453 : vector<2x128xf32>
    %455 = math.tanh %449 : vector<2x128xf32>
    %456 = vector.extract_strided_slice %454 {offsets = [0, 32], sizes = [2, 32], strides = [1, 1]} : vector<2x128xf32> to vector<2x32xf32>
    %457 = arith.mulf %456, %442 : vector<2x32xf32>
    %458 = vector.extract_strided_slice %454 {offsets = [0, 0], sizes = [2, 32], strides = [1, 1]} : vector<2x128xf32> to vector<2x32xf32>
    %459 = vector.extract_strided_slice %455 {offsets = [0, 64], sizes = [2, 32], strides = [1, 1]} : vector<2x128xf32> to vector<2x32xf32>
    %460 = arith.mulf %458, %459 : vector<2x32xf32>
    %461 = arith.addf %457, %460 : vector<2x32xf32>
    %462 = vector.extract_strided_slice %454 {offsets = [0, 96], sizes = [2, 32], strides = [1, 1]} : vector<2x128xf32> to vector<2x32xf32>
    %463 = math.tanh %461 : vector<2x32xf32>
    %464 = arith.mulf %462, %463 : vector<2x32xf32>
    %465 = vector.extract_strided_slice %366 {offsets = [0, 5, 0], sizes = [2, 1, 128], strides = [1, 1, 1]} : vector<2x8x128xf32> to vector<2x1x128xf32>
    %466 = vector.shape_cast %465 : vector<2x1x128xf32> to vector<2x128xf32>
    %cst_74 = arith.constant dense<0.000000e+00> : vector<2x128xf32>
    %467 = tpu.matmul %464, %367, %cst_74 {dimension_numbers = #tpu.dot_dimension_numbers<[1], [0], [0], [1], [0, 0, 1, 1], [], []>} : vector<2x32xf32>, vector<32x128xf32>, vector<2x128xf32> -> vector<2x128xf32>
    %468 = arith.addf %466, %467 : vector<2x128xf32>
    %469 = arith.negf %468 : vector<2x128xf32>
    %470 = math.exp %469 : vector<2x128xf32>
    %cst_75 = arith.constant 1.000000e+00 : f32
    %471 = vector.broadcast %cst_75 : f32 to vector<2x128xf32>
    %472 = arith.addf %471, %470 : vector<2x128xf32>
    %473 = arith.divf %471, %472 : vector<2x128xf32>
    %474 = math.tanh %468 : vector<2x128xf32>
    %475 = vector.extract_strided_slice %473 {offsets = [0, 32], sizes = [2, 32], strides = [1, 1]} : vector<2x128xf32> to vector<2x32xf32>
    %476 = arith.mulf %475, %461 : vector<2x32xf32>
    %477 = vector.extract_strided_slice %473 {offsets = [0, 0], sizes = [2, 32], strides = [1, 1]} : vector<2x128xf32> to vector<2x32xf32>
    %478 = vector.extract_strided_slice %474 {offsets = [0, 64], sizes = [2, 32], strides = [1, 1]} : vector<2x128xf32> to vector<2x32xf32>
    %479 = arith.mulf %477, %478 : vector<2x32xf32>
    %480 = arith.addf %476, %479 : vector<2x32xf32>
    %481 = vector.extract_strided_slice %473 {offsets = [0, 96], sizes = [2, 32], strides = [1, 1]} : vector<2x128xf32> to vector<2x32xf32>
    %482 = math.tanh %480 : vector<2x32xf32>
    %483 = arith.mulf %481, %482 : vector<2x32xf32>
    %484 = vector.extract_strided_slice %366 {offsets = [0, 6, 0], sizes = [2, 1, 128], strides = [1, 1, 1]} : vector<2x8x128xf32> to vector<2x1x128xf32>
    %485 = vector.shape_cast %484 : vector<2x1x128xf32> to vector<2x128xf32>
    %cst_76 = arith.constant dense<0.000000e+00> : vector<2x128xf32>
    %486 = tpu.matmul %483, %367, %cst_76 {dimension_numbers = #tpu.dot_dimension_numbers<[1], [0], [0], [1], [0, 0, 1, 1], [], []>} : vector<2x32xf32>, vector<32x128xf32>, vector<2x128xf32> -> vector<2x128xf32>
    %487 = arith.addf %485, %486 : vector<2x128xf32>
    %488 = arith.negf %487 : vector<2x128xf32>
    %489 = math.exp %488 : vector<2x128xf32>
    %cst_77 = arith.constant 1.000000e+00 : f32
    %490 = vector.broadcast %cst_77 : f32 to vector<2x128xf32>
    %491 = arith.addf %490, %489 : vector<2x128xf32>
    %492 = arith.divf %490, %491 : vector<2x128xf32>
    %493 = math.tanh %487 : vector<2x128xf32>
    %494 = vector.extract_strided_slice %492 {offsets = [0, 32], sizes = [2, 32], strides = [1, 1]} : vector<2x128xf32> to vector<2x32xf32>
    %495 = arith.mulf %494, %480 : vector<2x32xf32>
    %496 = vector.extract_strided_slice %492 {offsets = [0, 0], sizes = [2, 32], strides = [1, 1]} : vector<2x128xf32> to vector<2x32xf32>
    %497 = vector.extract_strided_slice %493 {offsets = [0, 64], sizes = [2, 32], strides = [1, 1]} : vector<2x128xf32> to vector<2x32xf32>
    %498 = arith.mulf %496, %497 : vector<2x32xf32>
    %499 = arith.addf %495, %498 : vector<2x32xf32>
    %500 = vector.extract_strided_slice %492 {offsets = [0, 96], sizes = [2, 32], strides = [1, 1]} : vector<2x128xf32> to vector<2x32xf32>
    %501 = math.tanh %499 : vector<2x32xf32>
    %502 = arith.mulf %500, %501 : vector<2x32xf32>
    %503 = vector.extract_strided_slice %366 {offsets = [0, 7, 0], sizes = [2, 1, 128], strides = [1, 1, 1]} : vector<2x8x128xf32> to vector<2x1x128xf32>
    %504 = vector.shape_cast %503 : vector<2x1x128xf32> to vector<2x128xf32>
    %cst_78 = arith.constant dense<0.000000e+00> : vector<2x128xf32>
    %505 = tpu.matmul %502, %367, %cst_78 {dimension_numbers = #tpu.dot_dimension_numbers<[1], [0], [0], [1], [0, 0, 1, 1], [], []>} : vector<2x32xf32>, vector<32x128xf32>, vector<2x128xf32> -> vector<2x128xf32>
    %506 = arith.addf %504, %505 : vector<2x128xf32>
    %507 = arith.negf %506 : vector<2x128xf32>
    %508 = math.exp %507 : vector<2x128xf32>
    %cst_79 = arith.constant 1.000000e+00 : f32
    %509 = vector.broadcast %cst_79 : f32 to vector<2x128xf32>
    %510 = arith.addf %509, %508 : vector<2x128xf32>
    %511 = arith.divf %509, %510 : vector<2x128xf32>
    %512 = math.tanh %506 : vector<2x128xf32>
    %513 = vector.extract_strided_slice %511 {offsets = [0, 32], sizes = [2, 32], strides = [1, 1]} : vector<2x128xf32> to vector<2x32xf32>
    %514 = arith.mulf %513, %499 : vector<2x32xf32>
    %515 = vector.extract_strided_slice %511 {offsets = [0, 0], sizes = [2, 32], strides = [1, 1]} : vector<2x128xf32> to vector<2x32xf32>
    %516 = vector.extract_strided_slice %512 {offsets = [0, 64], sizes = [2, 32], strides = [1, 1]} : vector<2x128xf32> to vector<2x32xf32>
    %517 = arith.mulf %515, %516 : vector<2x32xf32>
    %518 = arith.addf %514, %517 : vector<2x32xf32>
    %519 = vector.extract_strided_slice %511 {offsets = [0, 96], sizes = [2, 32], strides = [1, 1]} : vector<2x128xf32> to vector<2x32xf32>
    %520 = math.tanh %518 : vector<2x32xf32>
    %521 = arith.mulf %519, %520 : vector<2x32xf32>
    %522 = vector.shape_cast %388 : vector<2x32xf32> to vector<2x1x32xf32>
    %523 = vector.shape_cast %407 : vector<2x32xf32> to vector<2x1x32xf32>
    %524 = vector.shape_cast %426 : vector<2x32xf32> to vector<2x1x32xf32>
    %525 = vector.shape_cast %445 : vector<2x32xf32> to vector<2x1x32xf32>
    %526 = vector.shape_cast %464 : vector<2x32xf32> to vector<2x1x32xf32>
    %527 = vector.shape_cast %483 : vector<2x32xf32> to vector<2x1x32xf32>
    %528 = vector.shape_cast %502 : vector<2x32xf32> to vector<2x1x32xf32>
    %529 = vector.shape_cast %521 : vector<2x32xf32> to vector<2x1x32xf32>
    %530 = tpu.concatenate %522, %523, %524, %525, %526, %527, %528, %529 in 1 : vector<2x1x32xf32>, vector<2x1x32xf32>, vector<2x1x32xf32>, vector<2x1x32xf32>, vector<2x1x32xf32>, vector<2x1x32xf32>, vector<2x1x32xf32>, vector<2x1x32xf32> -> vector<2x8x32xf32>
    %531 = vector.shape_cast %530 : vector<2x8x32xf32> to vector<16x32xf32>
    %c272 = arith.constant 272 : index
    %c0_80 = arith.constant 0 : index
    %532 = vector.load %arg3[%c272, %c0_80] : memref<552x128xf32, #tpu.memory_space<vmem>>, vector<32x128xf32>
    %c336 = arith.constant 336 : index
    %c0_81 = arith.constant 0 : index
    %533 = vector.load %arg3[%c336, %c0_81] : memref<552x128xf32, #tpu.memory_space<vmem>>, vector<1x128xf32>
    %cst_82 = arith.constant dense<0.000000e+00> : vector<16x128xf32>
    %534 = tpu.matmul %531, %532, %cst_82 {dimension_numbers = #tpu.dot_dimension_numbers<[1], [0], [0], [1], [0, 0, 1, 1], [], []>} : vector<16x32xf32>, vector<32x128xf32>, vector<16x128xf32> -> vector<16x128xf32>
    %535 = vector.broadcast %533 : vector<1x128xf32> to vector<16x128xf32>
    %536 = arith.addf %534, %535 : vector<16x128xf32>
    %537 = vector.shape_cast %536 : vector<16x128xf32> to vector<2x8x128xf32>
    %c304 = arith.constant 304 : index
    %c0_83 = arith.constant 0 : index
    %538 = vector.load %arg3[%c304, %c0_83] : memref<552x128xf32, #tpu.memory_space<vmem>>, vector<32x128xf32>
    %cst_84 = arith.constant 0.000000e+00 : f32
    %539 = vector.broadcast %cst_84 : f32 to vector<2x32xf32>
    %cst_85 = arith.constant 0.000000e+00 : f32
    %540 = vector.broadcast %cst_85 : f32 to vector<2x32xf32>
    %541 = vector.extract_strided_slice %537 {offsets = [0, 0, 0], sizes = [2, 1, 128], strides = [1, 1, 1]} : vector<2x8x128xf32> to vector<2x1x128xf32>
    %542 = vector.shape_cast %541 : vector<2x1x128xf32> to vector<2x128xf32>
    %cst_86 = arith.constant dense<0.000000e+00> : vector<2x128xf32>
    %543 = tpu.matmul %539, %538, %cst_86 {dimension_numbers = #tpu.dot_dimension_numbers<[1], [0], [0], [1], [0, 0, 1, 1], [], []>} : vector<2x32xf32>, vector<32x128xf32>, vector<2x128xf32> -> vector<2x128xf32>
    %544 = arith.addf %542, %543 : vector<2x128xf32>
    %545 = arith.negf %544 : vector<2x128xf32>
    %546 = math.exp %545 : vector<2x128xf32>
    %cst_87 = arith.constant 1.000000e+00 : f32
    %547 = vector.broadcast %cst_87 : f32 to vector<2x128xf32>
    %548 = arith.addf %547, %546 : vector<2x128xf32>
    %549 = arith.divf %547, %548 : vector<2x128xf32>
    %550 = math.tanh %544 : vector<2x128xf32>
    %551 = vector.extract_strided_slice %549 {offsets = [0, 32], sizes = [2, 32], strides = [1, 1]} : vector<2x128xf32> to vector<2x32xf32>
    %552 = arith.mulf %551, %540 : vector<2x32xf32>
    %553 = vector.extract_strided_slice %549 {offsets = [0, 0], sizes = [2, 32], strides = [1, 1]} : vector<2x128xf32> to vector<2x32xf32>
    %554 = vector.extract_strided_slice %550 {offsets = [0, 64], sizes = [2, 32], strides = [1, 1]} : vector<2x128xf32> to vector<2x32xf32>
    %555 = arith.mulf %553, %554 : vector<2x32xf32>
    %556 = arith.addf %552, %555 : vector<2x32xf32>
    %557 = vector.extract_strided_slice %549 {offsets = [0, 96], sizes = [2, 32], strides = [1, 1]} : vector<2x128xf32> to vector<2x32xf32>
    %558 = math.tanh %556 : vector<2x32xf32>
    %559 = arith.mulf %557, %558 : vector<2x32xf32>
    %560 = vector.extract_strided_slice %537 {offsets = [0, 1, 0], sizes = [2, 1, 128], strides = [1, 1, 1]} : vector<2x8x128xf32> to vector<2x1x128xf32>
    %561 = vector.shape_cast %560 : vector<2x1x128xf32> to vector<2x128xf32>
    %cst_88 = arith.constant dense<0.000000e+00> : vector<2x128xf32>
    %562 = tpu.matmul %559, %538, %cst_88 {dimension_numbers = #tpu.dot_dimension_numbers<[1], [0], [0], [1], [0, 0, 1, 1], [], []>} : vector<2x32xf32>, vector<32x128xf32>, vector<2x128xf32> -> vector<2x128xf32>
    %563 = arith.addf %561, %562 : vector<2x128xf32>
    %564 = arith.negf %563 : vector<2x128xf32>
    %565 = math.exp %564 : vector<2x128xf32>
    %cst_89 = arith.constant 1.000000e+00 : f32
    %566 = vector.broadcast %cst_89 : f32 to vector<2x128xf32>
    %567 = arith.addf %566, %565 : vector<2x128xf32>
    %568 = arith.divf %566, %567 : vector<2x128xf32>
    %569 = math.tanh %563 : vector<2x128xf32>
    %570 = vector.extract_strided_slice %568 {offsets = [0, 32], sizes = [2, 32], strides = [1, 1]} : vector<2x128xf32> to vector<2x32xf32>
    %571 = arith.mulf %570, %556 : vector<2x32xf32>
    %572 = vector.extract_strided_slice %568 {offsets = [0, 0], sizes = [2, 32], strides = [1, 1]} : vector<2x128xf32> to vector<2x32xf32>
    %573 = vector.extract_strided_slice %569 {offsets = [0, 64], sizes = [2, 32], strides = [1, 1]} : vector<2x128xf32> to vector<2x32xf32>
    %574 = arith.mulf %572, %573 : vector<2x32xf32>
    %575 = arith.addf %571, %574 : vector<2x32xf32>
    %576 = vector.extract_strided_slice %568 {offsets = [0, 96], sizes = [2, 32], strides = [1, 1]} : vector<2x128xf32> to vector<2x32xf32>
    %577 = math.tanh %575 : vector<2x32xf32>
    %578 = arith.mulf %576, %577 : vector<2x32xf32>
    %579 = vector.extract_strided_slice %537 {offsets = [0, 2, 0], sizes = [2, 1, 128], strides = [1, 1, 1]} : vector<2x8x128xf32> to vector<2x1x128xf32>
    %580 = vector.shape_cast %579 : vector<2x1x128xf32> to vector<2x128xf32>
    %cst_90 = arith.constant dense<0.000000e+00> : vector<2x128xf32>
    %581 = tpu.matmul %578, %538, %cst_90 {dimension_numbers = #tpu.dot_dimension_numbers<[1], [0], [0], [1], [0, 0, 1, 1], [], []>} : vector<2x32xf32>, vector<32x128xf32>, vector<2x128xf32> -> vector<2x128xf32>
    %582 = arith.addf %580, %581 : vector<2x128xf32>
    %583 = arith.negf %582 : vector<2x128xf32>
    %584 = math.exp %583 : vector<2x128xf32>
    %cst_91 = arith.constant 1.000000e+00 : f32
    %585 = vector.broadcast %cst_91 : f32 to vector<2x128xf32>
    %586 = arith.addf %585, %584 : vector<2x128xf32>
    %587 = arith.divf %585, %586 : vector<2x128xf32>
    %588 = math.tanh %582 : vector<2x128xf32>
    %589 = vector.extract_strided_slice %587 {offsets = [0, 32], sizes = [2, 32], strides = [1, 1]} : vector<2x128xf32> to vector<2x32xf32>
    %590 = arith.mulf %589, %575 : vector<2x32xf32>
    %591 = vector.extract_strided_slice %587 {offsets = [0, 0], sizes = [2, 32], strides = [1, 1]} : vector<2x128xf32> to vector<2x32xf32>
    %592 = vector.extract_strided_slice %588 {offsets = [0, 64], sizes = [2, 32], strides = [1, 1]} : vector<2x128xf32> to vector<2x32xf32>
    %593 = arith.mulf %591, %592 : vector<2x32xf32>
    %594 = arith.addf %590, %593 : vector<2x32xf32>
    %595 = vector.extract_strided_slice %587 {offsets = [0, 96], sizes = [2, 32], strides = [1, 1]} : vector<2x128xf32> to vector<2x32xf32>
    %596 = math.tanh %594 : vector<2x32xf32>
    %597 = arith.mulf %595, %596 : vector<2x32xf32>
    %598 = vector.extract_strided_slice %537 {offsets = [0, 3, 0], sizes = [2, 1, 128], strides = [1, 1, 1]} : vector<2x8x128xf32> to vector<2x1x128xf32>
    %599 = vector.shape_cast %598 : vector<2x1x128xf32> to vector<2x128xf32>
    %cst_92 = arith.constant dense<0.000000e+00> : vector<2x128xf32>
    %600 = tpu.matmul %597, %538, %cst_92 {dimension_numbers = #tpu.dot_dimension_numbers<[1], [0], [0], [1], [0, 0, 1, 1], [], []>} : vector<2x32xf32>, vector<32x128xf32>, vector<2x128xf32> -> vector<2x128xf32>
    %601 = arith.addf %599, %600 : vector<2x128xf32>
    %602 = arith.negf %601 : vector<2x128xf32>
    %603 = math.exp %602 : vector<2x128xf32>
    %cst_93 = arith.constant 1.000000e+00 : f32
    %604 = vector.broadcast %cst_93 : f32 to vector<2x128xf32>
    %605 = arith.addf %604, %603 : vector<2x128xf32>
    %606 = arith.divf %604, %605 : vector<2x128xf32>
    %607 = math.tanh %601 : vector<2x128xf32>
    %608 = vector.extract_strided_slice %606 {offsets = [0, 32], sizes = [2, 32], strides = [1, 1]} : vector<2x128xf32> to vector<2x32xf32>
    %609 = arith.mulf %608, %594 : vector<2x32xf32>
    %610 = vector.extract_strided_slice %606 {offsets = [0, 0], sizes = [2, 32], strides = [1, 1]} : vector<2x128xf32> to vector<2x32xf32>
    %611 = vector.extract_strided_slice %607 {offsets = [0, 64], sizes = [2, 32], strides = [1, 1]} : vector<2x128xf32> to vector<2x32xf32>
    %612 = arith.mulf %610, %611 : vector<2x32xf32>
    %613 = arith.addf %609, %612 : vector<2x32xf32>
    %614 = vector.extract_strided_slice %606 {offsets = [0, 96], sizes = [2, 32], strides = [1, 1]} : vector<2x128xf32> to vector<2x32xf32>
    %615 = math.tanh %613 : vector<2x32xf32>
    %616 = arith.mulf %614, %615 : vector<2x32xf32>
    %617 = vector.extract_strided_slice %537 {offsets = [0, 4, 0], sizes = [2, 1, 128], strides = [1, 1, 1]} : vector<2x8x128xf32> to vector<2x1x128xf32>
    %618 = vector.shape_cast %617 : vector<2x1x128xf32> to vector<2x128xf32>
    %cst_94 = arith.constant dense<0.000000e+00> : vector<2x128xf32>
    %619 = tpu.matmul %616, %538, %cst_94 {dimension_numbers = #tpu.dot_dimension_numbers<[1], [0], [0], [1], [0, 0, 1, 1], [], []>} : vector<2x32xf32>, vector<32x128xf32>, vector<2x128xf32> -> vector<2x128xf32>
    %620 = arith.addf %618, %619 : vector<2x128xf32>
    %621 = arith.negf %620 : vector<2x128xf32>
    %622 = math.exp %621 : vector<2x128xf32>
    %cst_95 = arith.constant 1.000000e+00 : f32
    %623 = vector.broadcast %cst_95 : f32 to vector<2x128xf32>
    %624 = arith.addf %623, %622 : vector<2x128xf32>
    %625 = arith.divf %623, %624 : vector<2x128xf32>
    %626 = math.tanh %620 : vector<2x128xf32>
    %627 = vector.extract_strided_slice %625 {offsets = [0, 32], sizes = [2, 32], strides = [1, 1]} : vector<2x128xf32> to vector<2x32xf32>
    %628 = arith.mulf %627, %613 : vector<2x32xf32>
    %629 = vector.extract_strided_slice %625 {offsets = [0, 0], sizes = [2, 32], strides = [1, 1]} : vector<2x128xf32> to vector<2x32xf32>
    %630 = vector.extract_strided_slice %626 {offsets = [0, 64], sizes = [2, 32], strides = [1, 1]} : vector<2x128xf32> to vector<2x32xf32>
    %631 = arith.mulf %629, %630 : vector<2x32xf32>
    %632 = arith.addf %628, %631 : vector<2x32xf32>
    %633 = vector.extract_strided_slice %625 {offsets = [0, 96], sizes = [2, 32], strides = [1, 1]} : vector<2x128xf32> to vector<2x32xf32>
    %634 = math.tanh %632 : vector<2x32xf32>
    %635 = arith.mulf %633, %634 : vector<2x32xf32>
    %636 = vector.extract_strided_slice %537 {offsets = [0, 5, 0], sizes = [2, 1, 128], strides = [1, 1, 1]} : vector<2x8x128xf32> to vector<2x1x128xf32>
    %637 = vector.shape_cast %636 : vector<2x1x128xf32> to vector<2x128xf32>
    %cst_96 = arith.constant dense<0.000000e+00> : vector<2x128xf32>
    %638 = tpu.matmul %635, %538, %cst_96 {dimension_numbers = #tpu.dot_dimension_numbers<[1], [0], [0], [1], [0, 0, 1, 1], [], []>} : vector<2x32xf32>, vector<32x128xf32>, vector<2x128xf32> -> vector<2x128xf32>
    %639 = arith.addf %637, %638 : vector<2x128xf32>
    %640 = arith.negf %639 : vector<2x128xf32>
    %641 = math.exp %640 : vector<2x128xf32>
    %cst_97 = arith.constant 1.000000e+00 : f32
    %642 = vector.broadcast %cst_97 : f32 to vector<2x128xf32>
    %643 = arith.addf %642, %641 : vector<2x128xf32>
    %644 = arith.divf %642, %643 : vector<2x128xf32>
    %645 = math.tanh %639 : vector<2x128xf32>
    %646 = vector.extract_strided_slice %644 {offsets = [0, 32], sizes = [2, 32], strides = [1, 1]} : vector<2x128xf32> to vector<2x32xf32>
    %647 = arith.mulf %646, %632 : vector<2x32xf32>
    %648 = vector.extract_strided_slice %644 {offsets = [0, 0], sizes = [2, 32], strides = [1, 1]} : vector<2x128xf32> to vector<2x32xf32>
    %649 = vector.extract_strided_slice %645 {offsets = [0, 64], sizes = [2, 32], strides = [1, 1]} : vector<2x128xf32> to vector<2x32xf32>
    %650 = arith.mulf %648, %649 : vector<2x32xf32>
    %651 = arith.addf %647, %650 : vector<2x32xf32>
    %652 = vector.extract_strided_slice %644 {offsets = [0, 96], sizes = [2, 32], strides = [1, 1]} : vector<2x128xf32> to vector<2x32xf32>
    %653 = math.tanh %651 : vector<2x32xf32>
    %654 = arith.mulf %652, %653 : vector<2x32xf32>
    %655 = vector.extract_strided_slice %537 {offsets = [0, 6, 0], sizes = [2, 1, 128], strides = [1, 1, 1]} : vector<2x8x128xf32> to vector<2x1x128xf32>
    %656 = vector.shape_cast %655 : vector<2x1x128xf32> to vector<2x128xf32>
    %cst_98 = arith.constant dense<0.000000e+00> : vector<2x128xf32>
    %657 = tpu.matmul %654, %538, %cst_98 {dimension_numbers = #tpu.dot_dimension_numbers<[1], [0], [0], [1], [0, 0, 1, 1], [], []>} : vector<2x32xf32>, vector<32x128xf32>, vector<2x128xf32> -> vector<2x128xf32>
    %658 = arith.addf %656, %657 : vector<2x128xf32>
    %659 = arith.negf %658 : vector<2x128xf32>
    %660 = math.exp %659 : vector<2x128xf32>
    %cst_99 = arith.constant 1.000000e+00 : f32
    %661 = vector.broadcast %cst_99 : f32 to vector<2x128xf32>
    %662 = arith.addf %661, %660 : vector<2x128xf32>
    %663 = arith.divf %661, %662 : vector<2x128xf32>
    %664 = math.tanh %658 : vector<2x128xf32>
    %665 = vector.extract_strided_slice %663 {offsets = [0, 32], sizes = [2, 32], strides = [1, 1]} : vector<2x128xf32> to vector<2x32xf32>
    %666 = arith.mulf %665, %651 : vector<2x32xf32>
    %667 = vector.extract_strided_slice %663 {offsets = [0, 0], sizes = [2, 32], strides = [1, 1]} : vector<2x128xf32> to vector<2x32xf32>
    %668 = vector.extract_strided_slice %664 {offsets = [0, 64], sizes = [2, 32], strides = [1, 1]} : vector<2x128xf32> to vector<2x32xf32>
    %669 = arith.mulf %667, %668 : vector<2x32xf32>
    %670 = arith.addf %666, %669 : vector<2x32xf32>
    %671 = vector.extract_strided_slice %663 {offsets = [0, 96], sizes = [2, 32], strides = [1, 1]} : vector<2x128xf32> to vector<2x32xf32>
    %672 = math.tanh %670 : vector<2x32xf32>
    %673 = arith.mulf %671, %672 : vector<2x32xf32>
    %674 = vector.extract_strided_slice %537 {offsets = [0, 7, 0], sizes = [2, 1, 128], strides = [1, 1, 1]} : vector<2x8x128xf32> to vector<2x1x128xf32>
    %675 = vector.shape_cast %674 : vector<2x1x128xf32> to vector<2x128xf32>
    %cst_100 = arith.constant dense<0.000000e+00> : vector<2x128xf32>
    %676 = tpu.matmul %673, %538, %cst_100 {dimension_numbers = #tpu.dot_dimension_numbers<[1], [0], [0], [1], [0, 0, 1, 1], [], []>} : vector<2x32xf32>, vector<32x128xf32>, vector<2x128xf32> -> vector<2x128xf32>
    %677 = arith.addf %675, %676 : vector<2x128xf32>
    %678 = arith.negf %677 : vector<2x128xf32>
    %679 = math.exp %678 : vector<2x128xf32>
    %cst_101 = arith.constant 1.000000e+00 : f32
    %680 = vector.broadcast %cst_101 : f32 to vector<2x128xf32>
    %681 = arith.addf %680, %679 : vector<2x128xf32>
    %682 = arith.divf %680, %681 : vector<2x128xf32>
    %683 = math.tanh %677 : vector<2x128xf32>
    %684 = vector.extract_strided_slice %682 {offsets = [0, 32], sizes = [2, 32], strides = [1, 1]} : vector<2x128xf32> to vector<2x32xf32>
    %685 = arith.mulf %684, %670 : vector<2x32xf32>
    %686 = vector.extract_strided_slice %682 {offsets = [0, 0], sizes = [2, 32], strides = [1, 1]} : vector<2x128xf32> to vector<2x32xf32>
    %687 = vector.extract_strided_slice %683 {offsets = [0, 64], sizes = [2, 32], strides = [1, 1]} : vector<2x128xf32> to vector<2x32xf32>
    %688 = arith.mulf %686, %687 : vector<2x32xf32>
    %689 = arith.addf %685, %688 : vector<2x32xf32>
    %690 = vector.extract_strided_slice %682 {offsets = [0, 96], sizes = [2, 32], strides = [1, 1]} : vector<2x128xf32> to vector<2x32xf32>
    %691 = math.tanh %689 : vector<2x32xf32>
    %692 = arith.mulf %690, %691 : vector<2x32xf32>
    %693 = vector.shape_cast %559 : vector<2x32xf32> to vector<2x1x32xf32>
    %694 = vector.shape_cast %578 : vector<2x32xf32> to vector<2x1x32xf32>
    %695 = vector.shape_cast %597 : vector<2x32xf32> to vector<2x1x32xf32>
    %696 = vector.shape_cast %616 : vector<2x32xf32> to vector<2x1x32xf32>
    %697 = vector.shape_cast %635 : vector<2x32xf32> to vector<2x1x32xf32>
    %698 = vector.shape_cast %654 : vector<2x32xf32> to vector<2x1x32xf32>
    %699 = vector.shape_cast %673 : vector<2x32xf32> to vector<2x1x32xf32>
    %700 = vector.shape_cast %692 : vector<2x32xf32> to vector<2x1x32xf32>
    %701 = tpu.concatenate %693, %694, %695, %696, %697, %698, %699, %700 in 1 : vector<2x1x32xf32>, vector<2x1x32xf32>, vector<2x1x32xf32>, vector<2x1x32xf32>, vector<2x1x32xf32>, vector<2x1x32xf32>, vector<2x1x32xf32>, vector<2x1x32xf32> -> vector<2x8x32xf32>
    %702 = vector.shape_cast %701 : vector<2x8x32xf32> to vector<16x32xf32>
    %cst_102 = arith.constant 0.000000e+00 : f32
    %703 = vector.broadcast %cst_102 : f32 to vector<16x32xf32>
    %704 = arith.maximumf %702, %703 : vector<16x32xf32>
    %c344 = arith.constant 344 : index
    %c0_103 = arith.constant 0 : index
    %705 = vector.load %arg3[%c344, %c0_103] : memref<552x128xf32, #tpu.memory_space<vmem>>, vector<32x32xf32>
    %cst_104 = arith.constant dense<0.000000e+00> : vector<16x32xf32>
    %706 = tpu.matmul %704, %705, %cst_104 {dimension_numbers = #tpu.dot_dimension_numbers<[1], [0], [0], [1], [0, 0, 1, 1], [], []>} : vector<16x32xf32>, vector<32x32xf32>, vector<16x32xf32> -> vector<16x32xf32>
    %c376 = arith.constant 376 : index
    %c0_105 = arith.constant 0 : index
    %707 = vector.load %arg3[%c376, %c0_105] : memref<552x128xf32, #tpu.memory_space<vmem>>, vector<1x32xf32>
    %708 = vector.broadcast %707 : vector<1x32xf32> to vector<16x32xf32>
    %709 = arith.addf %706, %708 : vector<16x32xf32>
    %cst_106 = arith.constant 0.000000e+00 : f32
    %710 = vector.broadcast %cst_106 : f32 to vector<16x32xf32>
    %711 = arith.maximumf %709, %710 : vector<16x32xf32>
    %c384 = arith.constant 384 : index
    %c0_107 = arith.constant 0 : index
    %712 = vector.load %arg3[%c384, %c0_107] : memref<552x128xf32, #tpu.memory_space<vmem>>, vector<32x4xf32>
    %cst_108 = arith.constant dense<0.000000e+00> : vector<16x4xf32>
    %713 = tpu.matmul %711, %712, %cst_108 {dimension_numbers = #tpu.dot_dimension_numbers<[1], [0], [0], [1], [0, 0, 1, 1], [], []>} : vector<16x32xf32>, vector<32x4xf32>, vector<16x4xf32> -> vector<16x4xf32>
    %c416 = arith.constant 416 : index
    %c0_109 = arith.constant 0 : index
    %714 = vector.load %arg3[%c416, %c0_109] : memref<552x128xf32, #tpu.memory_space<vmem>>, vector<1x4xf32>
    %715 = vector.broadcast %714 : vector<1x4xf32> to vector<16x4xf32>
    %716 = arith.addf %713, %715 : vector<16x4xf32>
    %717 = tpu.concatenate %357, %716 in 1 : vector<16x4xf32>, vector<16x4xf32> -> vector<16x8xf32>
    %c424 = arith.constant 424 : index
    %c0_110 = arith.constant 0 : index
    %718 = vector.load %arg3[%c424, %c0_110] : memref<552x128xf32, #tpu.memory_space<vmem>>, vector<8x128xf32>
    %c464 = arith.constant 464 : index
    %c0_111 = arith.constant 0 : index
    %719 = vector.load %arg3[%c464, %c0_111] : memref<552x128xf32, #tpu.memory_space<vmem>>, vector<1x128xf32>
    %cst_112 = arith.constant dense<0.000000e+00> : vector<16x128xf32>
    %720 = tpu.matmul %717, %718, %cst_112 {dimension_numbers = #tpu.dot_dimension_numbers<[1], [0], [0], [1], [0, 0, 1, 1], [], []>} : vector<16x8xf32>, vector<8x128xf32>, vector<16x128xf32> -> vector<16x128xf32>
    %721 = vector.broadcast %719 : vector<1x128xf32> to vector<16x128xf32>
    %722 = arith.addf %720, %721 : vector<16x128xf32>
    %723 = vector.shape_cast %722 : vector<16x128xf32> to vector<2x8x128xf32>
    %c432 = arith.constant 432 : index
    %c0_113 = arith.constant 0 : index
    %724 = vector.load %arg3[%c432, %c0_113] : memref<552x128xf32, #tpu.memory_space<vmem>>, vector<32x128xf32>
    %cst_114 = arith.constant 0.000000e+00 : f32
    %725 = vector.broadcast %cst_114 : f32 to vector<2x32xf32>
    %cst_115 = arith.constant 0.000000e+00 : f32
    %726 = vector.broadcast %cst_115 : f32 to vector<2x32xf32>
    %727 = vector.extract_strided_slice %723 {offsets = [0, 0, 0], sizes = [2, 1, 128], strides = [1, 1, 1]} : vector<2x8x128xf32> to vector<2x1x128xf32>
    %728 = vector.shape_cast %727 : vector<2x1x128xf32> to vector<2x128xf32>
    %cst_116 = arith.constant dense<0.000000e+00> : vector<2x128xf32>
    %729 = tpu.matmul %725, %724, %cst_116 {dimension_numbers = #tpu.dot_dimension_numbers<[1], [0], [0], [1], [0, 0, 1, 1], [], []>} : vector<2x32xf32>, vector<32x128xf32>, vector<2x128xf32> -> vector<2x128xf32>
    %730 = arith.addf %728, %729 : vector<2x128xf32>
    %731 = arith.negf %730 : vector<2x128xf32>
    %732 = math.exp %731 : vector<2x128xf32>
    %cst_117 = arith.constant 1.000000e+00 : f32
    %733 = vector.broadcast %cst_117 : f32 to vector<2x128xf32>
    %734 = arith.addf %733, %732 : vector<2x128xf32>
    %735 = arith.divf %733, %734 : vector<2x128xf32>
    %736 = math.tanh %730 : vector<2x128xf32>
    %737 = vector.extract_strided_slice %735 {offsets = [0, 32], sizes = [2, 32], strides = [1, 1]} : vector<2x128xf32> to vector<2x32xf32>
    %738 = arith.mulf %737, %726 : vector<2x32xf32>
    %739 = vector.extract_strided_slice %735 {offsets = [0, 0], sizes = [2, 32], strides = [1, 1]} : vector<2x128xf32> to vector<2x32xf32>
    %740 = vector.extract_strided_slice %736 {offsets = [0, 64], sizes = [2, 32], strides = [1, 1]} : vector<2x128xf32> to vector<2x32xf32>
    %741 = arith.mulf %739, %740 : vector<2x32xf32>
    %742 = arith.addf %738, %741 : vector<2x32xf32>
    %743 = vector.extract_strided_slice %735 {offsets = [0, 96], sizes = [2, 32], strides = [1, 1]} : vector<2x128xf32> to vector<2x32xf32>
    %744 = math.tanh %742 : vector<2x32xf32>
    %745 = arith.mulf %743, %744 : vector<2x32xf32>
    %746 = vector.extract_strided_slice %723 {offsets = [0, 1, 0], sizes = [2, 1, 128], strides = [1, 1, 1]} : vector<2x8x128xf32> to vector<2x1x128xf32>
    %747 = vector.shape_cast %746 : vector<2x1x128xf32> to vector<2x128xf32>
    %cst_118 = arith.constant dense<0.000000e+00> : vector<2x128xf32>
    %748 = tpu.matmul %745, %724, %cst_118 {dimension_numbers = #tpu.dot_dimension_numbers<[1], [0], [0], [1], [0, 0, 1, 1], [], []>} : vector<2x32xf32>, vector<32x128xf32>, vector<2x128xf32> -> vector<2x128xf32>
    %749 = arith.addf %747, %748 : vector<2x128xf32>
    %750 = arith.negf %749 : vector<2x128xf32>
    %751 = math.exp %750 : vector<2x128xf32>
    %cst_119 = arith.constant 1.000000e+00 : f32
    %752 = vector.broadcast %cst_119 : f32 to vector<2x128xf32>
    %753 = arith.addf %752, %751 : vector<2x128xf32>
    %754 = arith.divf %752, %753 : vector<2x128xf32>
    %755 = math.tanh %749 : vector<2x128xf32>
    %756 = vector.extract_strided_slice %754 {offsets = [0, 32], sizes = [2, 32], strides = [1, 1]} : vector<2x128xf32> to vector<2x32xf32>
    %757 = arith.mulf %756, %742 : vector<2x32xf32>
    %758 = vector.extract_strided_slice %754 {offsets = [0, 0], sizes = [2, 32], strides = [1, 1]} : vector<2x128xf32> to vector<2x32xf32>
    %759 = vector.extract_strided_slice %755 {offsets = [0, 64], sizes = [2, 32], strides = [1, 1]} : vector<2x128xf32> to vector<2x32xf32>
    %760 = arith.mulf %758, %759 : vector<2x32xf32>
    %761 = arith.addf %757, %760 : vector<2x32xf32>
    %762 = vector.extract_strided_slice %754 {offsets = [0, 96], sizes = [2, 32], strides = [1, 1]} : vector<2x128xf32> to vector<2x32xf32>
    %763 = math.tanh %761 : vector<2x32xf32>
    %764 = arith.mulf %762, %763 : vector<2x32xf32>
    %765 = vector.extract_strided_slice %723 {offsets = [0, 2, 0], sizes = [2, 1, 128], strides = [1, 1, 1]} : vector<2x8x128xf32> to vector<2x1x128xf32>
    %766 = vector.shape_cast %765 : vector<2x1x128xf32> to vector<2x128xf32>
    %cst_120 = arith.constant dense<0.000000e+00> : vector<2x128xf32>
    %767 = tpu.matmul %764, %724, %cst_120 {dimension_numbers = #tpu.dot_dimension_numbers<[1], [0], [0], [1], [0, 0, 1, 1], [], []>} : vector<2x32xf32>, vector<32x128xf32>, vector<2x128xf32> -> vector<2x128xf32>
    %768 = arith.addf %766, %767 : vector<2x128xf32>
    %769 = arith.negf %768 : vector<2x128xf32>
    %770 = math.exp %769 : vector<2x128xf32>
    %cst_121 = arith.constant 1.000000e+00 : f32
    %771 = vector.broadcast %cst_121 : f32 to vector<2x128xf32>
    %772 = arith.addf %771, %770 : vector<2x128xf32>
    %773 = arith.divf %771, %772 : vector<2x128xf32>
    %774 = math.tanh %768 : vector<2x128xf32>
    %775 = vector.extract_strided_slice %773 {offsets = [0, 32], sizes = [2, 32], strides = [1, 1]} : vector<2x128xf32> to vector<2x32xf32>
    %776 = arith.mulf %775, %761 : vector<2x32xf32>
    %777 = vector.extract_strided_slice %773 {offsets = [0, 0], sizes = [2, 32], strides = [1, 1]} : vector<2x128xf32> to vector<2x32xf32>
    %778 = vector.extract_strided_slice %774 {offsets = [0, 64], sizes = [2, 32], strides = [1, 1]} : vector<2x128xf32> to vector<2x32xf32>
    %779 = arith.mulf %777, %778 : vector<2x32xf32>
    %780 = arith.addf %776, %779 : vector<2x32xf32>
    %781 = vector.extract_strided_slice %773 {offsets = [0, 96], sizes = [2, 32], strides = [1, 1]} : vector<2x128xf32> to vector<2x32xf32>
    %782 = math.tanh %780 : vector<2x32xf32>
    %783 = arith.mulf %781, %782 : vector<2x32xf32>
    %784 = vector.extract_strided_slice %723 {offsets = [0, 3, 0], sizes = [2, 1, 128], strides = [1, 1, 1]} : vector<2x8x128xf32> to vector<2x1x128xf32>
    %785 = vector.shape_cast %784 : vector<2x1x128xf32> to vector<2x128xf32>
    %cst_122 = arith.constant dense<0.000000e+00> : vector<2x128xf32>
    %786 = tpu.matmul %783, %724, %cst_122 {dimension_numbers = #tpu.dot_dimension_numbers<[1], [0], [0], [1], [0, 0, 1, 1], [], []>} : vector<2x32xf32>, vector<32x128xf32>, vector<2x128xf32> -> vector<2x128xf32>
    %787 = arith.addf %785, %786 : vector<2x128xf32>
    %788 = arith.negf %787 : vector<2x128xf32>
    %789 = math.exp %788 : vector<2x128xf32>
    %cst_123 = arith.constant 1.000000e+00 : f32
    %790 = vector.broadcast %cst_123 : f32 to vector<2x128xf32>
    %791 = arith.addf %790, %789 : vector<2x128xf32>
    %792 = arith.divf %790, %791 : vector<2x128xf32>
    %793 = math.tanh %787 : vector<2x128xf32>
    %794 = vector.extract_strided_slice %792 {offsets = [0, 32], sizes = [2, 32], strides = [1, 1]} : vector<2x128xf32> to vector<2x32xf32>
    %795 = arith.mulf %794, %780 : vector<2x32xf32>
    %796 = vector.extract_strided_slice %792 {offsets = [0, 0], sizes = [2, 32], strides = [1, 1]} : vector<2x128xf32> to vector<2x32xf32>
    %797 = vector.extract_strided_slice %793 {offsets = [0, 64], sizes = [2, 32], strides = [1, 1]} : vector<2x128xf32> to vector<2x32xf32>
    %798 = arith.mulf %796, %797 : vector<2x32xf32>
    %799 = arith.addf %795, %798 : vector<2x32xf32>
    %800 = vector.extract_strided_slice %792 {offsets = [0, 96], sizes = [2, 32], strides = [1, 1]} : vector<2x128xf32> to vector<2x32xf32>
    %801 = math.tanh %799 : vector<2x32xf32>
    %802 = arith.mulf %800, %801 : vector<2x32xf32>
    %803 = vector.extract_strided_slice %723 {offsets = [0, 4, 0], sizes = [2, 1, 128], strides = [1, 1, 1]} : vector<2x8x128xf32> to vector<2x1x128xf32>
    %804 = vector.shape_cast %803 : vector<2x1x128xf32> to vector<2x128xf32>
    %cst_124 = arith.constant dense<0.000000e+00> : vector<2x128xf32>
    %805 = tpu.matmul %802, %724, %cst_124 {dimension_numbers = #tpu.dot_dimension_numbers<[1], [0], [0], [1], [0, 0, 1, 1], [], []>} : vector<2x32xf32>, vector<32x128xf32>, vector<2x128xf32> -> vector<2x128xf32>
    %806 = arith.addf %804, %805 : vector<2x128xf32>
    %807 = arith.negf %806 : vector<2x128xf32>
    %808 = math.exp %807 : vector<2x128xf32>
    %cst_125 = arith.constant 1.000000e+00 : f32
    %809 = vector.broadcast %cst_125 : f32 to vector<2x128xf32>
    %810 = arith.addf %809, %808 : vector<2x128xf32>
    %811 = arith.divf %809, %810 : vector<2x128xf32>
    %812 = math.tanh %806 : vector<2x128xf32>
    %813 = vector.extract_strided_slice %811 {offsets = [0, 32], sizes = [2, 32], strides = [1, 1]} : vector<2x128xf32> to vector<2x32xf32>
    %814 = arith.mulf %813, %799 : vector<2x32xf32>
    %815 = vector.extract_strided_slice %811 {offsets = [0, 0], sizes = [2, 32], strides = [1, 1]} : vector<2x128xf32> to vector<2x32xf32>
    %816 = vector.extract_strided_slice %812 {offsets = [0, 64], sizes = [2, 32], strides = [1, 1]} : vector<2x128xf32> to vector<2x32xf32>
    %817 = arith.mulf %815, %816 : vector<2x32xf32>
    %818 = arith.addf %814, %817 : vector<2x32xf32>
    %819 = vector.extract_strided_slice %811 {offsets = [0, 96], sizes = [2, 32], strides = [1, 1]} : vector<2x128xf32> to vector<2x32xf32>
    %820 = math.tanh %818 : vector<2x32xf32>
    %821 = arith.mulf %819, %820 : vector<2x32xf32>
    %822 = vector.extract_strided_slice %723 {offsets = [0, 5, 0], sizes = [2, 1, 128], strides = [1, 1, 1]} : vector<2x8x128xf32> to vector<2x1x128xf32>
    %823 = vector.shape_cast %822 : vector<2x1x128xf32> to vector<2x128xf32>
    %cst_126 = arith.constant dense<0.000000e+00> : vector<2x128xf32>
    %824 = tpu.matmul %821, %724, %cst_126 {dimension_numbers = #tpu.dot_dimension_numbers<[1], [0], [0], [1], [0, 0, 1, 1], [], []>} : vector<2x32xf32>, vector<32x128xf32>, vector<2x128xf32> -> vector<2x128xf32>
    %825 = arith.addf %823, %824 : vector<2x128xf32>
    %826 = arith.negf %825 : vector<2x128xf32>
    %827 = math.exp %826 : vector<2x128xf32>
    %cst_127 = arith.constant 1.000000e+00 : f32
    %828 = vector.broadcast %cst_127 : f32 to vector<2x128xf32>
    %829 = arith.addf %828, %827 : vector<2x128xf32>
    %830 = arith.divf %828, %829 : vector<2x128xf32>
    %831 = math.tanh %825 : vector<2x128xf32>
    %832 = vector.extract_strided_slice %830 {offsets = [0, 32], sizes = [2, 32], strides = [1, 1]} : vector<2x128xf32> to vector<2x32xf32>
    %833 = arith.mulf %832, %818 : vector<2x32xf32>
    %834 = vector.extract_strided_slice %830 {offsets = [0, 0], sizes = [2, 32], strides = [1, 1]} : vector<2x128xf32> to vector<2x32xf32>
    %835 = vector.extract_strided_slice %831 {offsets = [0, 64], sizes = [2, 32], strides = [1, 1]} : vector<2x128xf32> to vector<2x32xf32>
    %836 = arith.mulf %834, %835 : vector<2x32xf32>
    %837 = arith.addf %833, %836 : vector<2x32xf32>
    %838 = vector.extract_strided_slice %830 {offsets = [0, 96], sizes = [2, 32], strides = [1, 1]} : vector<2x128xf32> to vector<2x32xf32>
    %839 = math.tanh %837 : vector<2x32xf32>
    %840 = arith.mulf %838, %839 : vector<2x32xf32>
    %841 = vector.extract_strided_slice %723 {offsets = [0, 6, 0], sizes = [2, 1, 128], strides = [1, 1, 1]} : vector<2x8x128xf32> to vector<2x1x128xf32>
    %842 = vector.shape_cast %841 : vector<2x1x128xf32> to vector<2x128xf32>
    %cst_128 = arith.constant dense<0.000000e+00> : vector<2x128xf32>
    %843 = tpu.matmul %840, %724, %cst_128 {dimension_numbers = #tpu.dot_dimension_numbers<[1], [0], [0], [1], [0, 0, 1, 1], [], []>} : vector<2x32xf32>, vector<32x128xf32>, vector<2x128xf32> -> vector<2x128xf32>
    %844 = arith.addf %842, %843 : vector<2x128xf32>
    %845 = arith.negf %844 : vector<2x128xf32>
    %846 = math.exp %845 : vector<2x128xf32>
    %cst_129 = arith.constant 1.000000e+00 : f32
    %847 = vector.broadcast %cst_129 : f32 to vector<2x128xf32>
    %848 = arith.addf %847, %846 : vector<2x128xf32>
    %849 = arith.divf %847, %848 : vector<2x128xf32>
    %850 = math.tanh %844 : vector<2x128xf32>
    %851 = vector.extract_strided_slice %849 {offsets = [0, 32], sizes = [2, 32], strides = [1, 1]} : vector<2x128xf32> to vector<2x32xf32>
    %852 = arith.mulf %851, %837 : vector<2x32xf32>
    %853 = vector.extract_strided_slice %849 {offsets = [0, 0], sizes = [2, 32], strides = [1, 1]} : vector<2x128xf32> to vector<2x32xf32>
    %854 = vector.extract_strided_slice %850 {offsets = [0, 64], sizes = [2, 32], strides = [1, 1]} : vector<2x128xf32> to vector<2x32xf32>
    %855 = arith.mulf %853, %854 : vector<2x32xf32>
    %856 = arith.addf %852, %855 : vector<2x32xf32>
    %857 = vector.extract_strided_slice %849 {offsets = [0, 96], sizes = [2, 32], strides = [1, 1]} : vector<2x128xf32> to vector<2x32xf32>
    %858 = math.tanh %856 : vector<2x32xf32>
    %859 = arith.mulf %857, %858 : vector<2x32xf32>
    %860 = vector.extract_strided_slice %723 {offsets = [0, 7, 0], sizes = [2, 1, 128], strides = [1, 1, 1]} : vector<2x8x128xf32> to vector<2x1x128xf32>
    %861 = vector.shape_cast %860 : vector<2x1x128xf32> to vector<2x128xf32>
    %cst_130 = arith.constant dense<0.000000e+00> : vector<2x128xf32>
    %862 = tpu.matmul %859, %724, %cst_130 {dimension_numbers = #tpu.dot_dimension_numbers<[1], [0], [0], [1], [0, 0, 1, 1], [], []>} : vector<2x32xf32>, vector<32x128xf32>, vector<2x128xf32> -> vector<2x128xf32>
    %863 = arith.addf %861, %862 : vector<2x128xf32>
    %864 = arith.negf %863 : vector<2x128xf32>
    %865 = math.exp %864 : vector<2x128xf32>
    %cst_131 = arith.constant 1.000000e+00 : f32
    %866 = vector.broadcast %cst_131 : f32 to vector<2x128xf32>
    %867 = arith.addf %866, %865 : vector<2x128xf32>
    %868 = arith.divf %866, %867 : vector<2x128xf32>
    %869 = math.tanh %863 : vector<2x128xf32>
    %870 = vector.extract_strided_slice %868 {offsets = [0, 32], sizes = [2, 32], strides = [1, 1]} : vector<2x128xf32> to vector<2x32xf32>
    %871 = arith.mulf %870, %856 : vector<2x32xf32>
    %872 = vector.extract_strided_slice %868 {offsets = [0, 0], sizes = [2, 32], strides = [1, 1]} : vector<2x128xf32> to vector<2x32xf32>
    %873 = vector.extract_strided_slice %869 {offsets = [0, 64], sizes = [2, 32], strides = [1, 1]} : vector<2x128xf32> to vector<2x32xf32>
    %874 = arith.mulf %872, %873 : vector<2x32xf32>
    %875 = arith.addf %871, %874 : vector<2x32xf32>
    %876 = vector.extract_strided_slice %868 {offsets = [0, 96], sizes = [2, 32], strides = [1, 1]} : vector<2x128xf32> to vector<2x32xf32>
    %877 = math.tanh %875 : vector<2x32xf32>
    %878 = arith.mulf %876, %877 : vector<2x32xf32>
    %879 = vector.shape_cast %745 : vector<2x32xf32> to vector<2x1x32xf32>
    %880 = vector.shape_cast %764 : vector<2x32xf32> to vector<2x1x32xf32>
    %881 = vector.shape_cast %783 : vector<2x32xf32> to vector<2x1x32xf32>
    %882 = vector.shape_cast %802 : vector<2x32xf32> to vector<2x1x32xf32>
    %883 = vector.shape_cast %821 : vector<2x32xf32> to vector<2x1x32xf32>
    %884 = vector.shape_cast %840 : vector<2x32xf32> to vector<2x1x32xf32>
    %885 = vector.shape_cast %859 : vector<2x32xf32> to vector<2x1x32xf32>
    %886 = vector.shape_cast %878 : vector<2x32xf32> to vector<2x1x32xf32>
    %887 = tpu.concatenate %879, %880, %881, %882, %883, %884, %885, %886 in 1 : vector<2x1x32xf32>, vector<2x1x32xf32>, vector<2x1x32xf32>, vector<2x1x32xf32>, vector<2x1x32xf32>, vector<2x1x32xf32>, vector<2x1x32xf32>, vector<2x1x32xf32> -> vector<2x8x32xf32>
    %888 = vector.shape_cast %887 : vector<2x8x32xf32> to vector<16x32xf32>
    %cst_132 = arith.constant 0.000000e+00 : f32
    %889 = vector.broadcast %cst_132 : f32 to vector<16x32xf32>
    %890 = arith.maximumf %888, %889 : vector<16x32xf32>
    %c472 = arith.constant 472 : index
    %c0_133 = arith.constant 0 : index
    %891 = vector.load %arg3[%c472, %c0_133] : memref<552x128xf32, #tpu.memory_space<vmem>>, vector<32x32xf32>
    %cst_134 = arith.constant dense<0.000000e+00> : vector<16x32xf32>
    %892 = tpu.matmul %890, %891, %cst_134 {dimension_numbers = #tpu.dot_dimension_numbers<[1], [0], [0], [1], [0, 0, 1, 1], [], []>} : vector<16x32xf32>, vector<32x32xf32>, vector<16x32xf32> -> vector<16x32xf32>
    %c504 = arith.constant 504 : index
    %c0_135 = arith.constant 0 : index
    %893 = vector.load %arg3[%c504, %c0_135] : memref<552x128xf32, #tpu.memory_space<vmem>>, vector<1x32xf32>
    %894 = vector.broadcast %893 : vector<1x32xf32> to vector<16x32xf32>
    %895 = arith.addf %892, %894 : vector<16x32xf32>
    %cst_136 = arith.constant 0.000000e+00 : f32
    %896 = vector.broadcast %cst_136 : f32 to vector<16x32xf32>
    %897 = arith.maximumf %895, %896 : vector<16x32xf32>
    %c512 = arith.constant 512 : index
    %c0_137 = arith.constant 0 : index
    %898 = vector.load %arg3[%c512, %c0_137] : memref<552x128xf32, #tpu.memory_space<vmem>>, vector<32x4xf32>
    %cst_138 = arith.constant dense<0.000000e+00> : vector<16x4xf32>
    %899 = tpu.matmul %897, %898, %cst_138 {dimension_numbers = #tpu.dot_dimension_numbers<[1], [0], [0], [1], [0, 0, 1, 1], [], []>} : vector<16x32xf32>, vector<32x4xf32>, vector<16x4xf32> -> vector<16x4xf32>
    %c544 = arith.constant 544 : index
    %c0_139 = arith.constant 0 : index
    %900 = vector.load %arg3[%c544, %c0_139] : memref<552x128xf32, #tpu.memory_space<vmem>>, vector<1x4xf32>
    %901 = vector.broadcast %900 : vector<1x4xf32> to vector<16x4xf32>
    %902 = arith.addf %899, %901 : vector<16x4xf32>
    %903 = vector.shape_cast %902 : vector<16x4xf32> to vector<2x8x4xf32>
    %c0_140 = arith.constant 0 : index
    %c0_141 = arith.constant 0 : index
    %c0_142 = arith.constant 0 : index
    %904 = vector.load %arg4[%c0_140, %c0_141, %c0_142] : memref<2x8x4xf32, #tpu.memory_space<vmem>>, vector<2x8x4xf32>
    tpu.vector_store %arg4[%c0_140, %c0_141, %c0_142], %903 {strides = array<i32>} : memref<2x8x4xf32, #tpu.memory_space<vmem>>, vector<2x8x4xf32>,
    %c0_143 = arith.constant 0 : index
    %c0_144 = arith.constant 0 : index
    %905 = vector.load %arg5[%c0_143, %c0_144] : memref<2x32xf32, #tpu.memory_space<vmem>>, vector<2x32xf32>
    tpu.vector_store %arg5[%c0_143, %c0_144], %878 {strides = array<i32>} : memref<2x32xf32, #tpu.memory_space<vmem>>, vector<2x32xf32>,
    %c0_145 = arith.constant 0 : index
    %c0_146 = arith.constant 0 : index
    %906 = vector.load %arg6[%c0_145, %c0_146] : memref<2x32xf32, #tpu.memory_space<vmem>>, vector<2x32xf32>
    tpu.vector_store %arg6[%c0_145, %c0_146], %875 {strides = array<i32>} : memref<2x32xf32, #tpu.memory_space<vmem>>, vector<2x32xf32>,
    return
  }
}

</mosaic_0001>

<bundles_post_ra>
// kernel: forward.1
= control target key start
LH: loop header
LB: loop body
LE: loop exit
PB: predicated region body
PF: predicated region fallthrough
CT: control target
= control target key end

     0   :  { %12 = vsyncpa [#allocation3], 0  ;;  %s8111_s0 = inlined_call_operand.hbm [shape: f32[2,8,33], index: 0, kind: input, shape index: {}]   ;;  %s8112_s1 = inlined_call_operand.hbm [shape: f32[2,8,768], index: 1, kind: input, shape index: {}]   ;;  %s8113_s2 = inlined_call_operand.hbm [shape: bf16[768,128], index: 2, kind: input, shape index: {}]   ;;  %s8114_s3 = inlined_call_operand.hbm [shape: f32[552,128], index: 3, kind: input, shape index: {}]   ;;  %s8115_s4 = inlined_call_operand.vmem [shape: f32[2,8,4], index: 4, kind: output, shape index: {0}]   ;;  %s8116_s5 = inlined_call_operand.hbm [shape: f32[2,32], index: 5, kind: output, shape index: {1}]   ;;  %s8117_s6 = inlined_call_operand.hbm [shape: f32[2,32], index: 6, kind: output, shape index: {2}]  }
   0x1   :  { %13 = vsyncpa [#allocation6], 0 }
   0x2   :  { %14 = vsyncpa [#allocation9], 0 }
   0x3   :  { %15 = vsyncpa [#allocation4], 0  ;;  %s34_s23 = sshll.u32 %s8112_s1, 4  ;;  %s35_s23 = int_to_ptr.hbm [resolvable:$true] %s34_s23 }
   0x4   :  { %16 = vsyncpa [#allocation12], 0  ;;  %s6879_s24 = smov [#allocation5]   ;;  %s21_s28 = sshll.u32 %s8111_s0, 4  ;;  %s22_s28 = int_to_ptr.hbm [resolvable:$true] %s21_s28 }
   0x5   :  { %s36_s25 = sshll.u32 %s6879_s24, 4  ;;  %s6880_s29 = smov 768   ;;  %s37_s25 = int_to_ptr.vmem [resolvable:$true] %s36_s25 }
   0x6   :  { %s6881_s30 = smov 48   ;;  %s6882_s7 = smov [#allocation2]  }
   0x7   :  { %42 = dma.hbm_to_vmem [thread:$0]  %s35_s23, 1536, %s37_s25, [#allocation6], %s6880_s29, %s6880_s29, %s6881_s30  }
   0x8   :  { %s23_s8 = sshll.u32 %s6882_s7, 4  ;;  %s6883_s9 = smov 128   ;;  %s24_s8 = int_to_ptr.vmem [resolvable:$true] %s23_s8 }
   0x9   :  { %s6884_s10 = smov 8   ;;  %s47_s12 = sshll.u32 %s8113_s2, 4  ;;  %s48_s12 = int_to_ptr.hbm [resolvable:$true] %s47_s12 }
   0xa   :  { %29 = dma.hbm_to_vmem [thread:$0]  %s22_s28, 256, %s24_s8, [#allocation3], %s6883_s9, %s6883_s9, %s6884_s10  }
   0xb   :  { %s6885_s13 = smov [#allocation7]   ;;  %s60_s16 = sshll.u32 %s8114_s3, 4  ;;  %s61_s16 = int_to_ptr.hbm [resolvable:$true] %s60_s16 }
   0xc   :  { %s49_s14 = sshll.u32 %s6885_s13, 4  ;;  %s6886_s17 = smov 64   ;;  %s50_s14 = int_to_ptr.vmem [resolvable:$true] %s49_s14 }
   0xd   :  { %s6887_s18 = smov 4   ;;  %s6888_s19 = smov [#allocation8]  }
   0xe   :  { %55 = dma.hbm_to_vmem [thread:$0]  %s48_s12, 6144, %s50_s14, [#allocation6], %s6886_s17, %s6886_s17, %s6887_s18  }
   0xf   :  { %s62_s20 = sshll.u32 %s6888_s19, 4  ;;  %s63_s20 = int_to_ptr.vmem [resolvable:$true] %s62_s20 }
  0x10   :  { %68 = dma.hbm_to_vmem [thread:$0]  %s61_s16, 8832, %s63_s20, [#allocation9], %s6883_s9, %s6883_s9, %s6884_s10  }
  0x11   :  { %6869 = dma.done.wait [#allocation3], 256  }
  0x12   :  { %6870 = vsyncadd [#allocation3], 4294967040 }
  0x13   :  { %6871 = dma.done.wait [#allocation6], 7680  }
  0x14   :  { %6872 = vsyncadd [#allocation6], 4294959616 }
  0x15   :  { %6873 = dma.done.wait [#allocation9], 8832  }
  0x16   :  { %6874 = vsyncadd [#allocation9], 4294958464  ;;  %vm101_vm0 = vcmask 1040384   ;;  %v91_v0 = vld [vmem:[#allocation8 + $0x20] sm:$0x1]  ;;  %v90_v1 = vld [vmem:[#allocation8 + $0x18] sm:$0xff] }
  0x17   :  { %5683 = vmatpush.msk.msra.mxu0 %vm101_vm0, %v91_v0  ;;  %v6945_v2 = vld [vmem:[#allocation8 + $0x40] sm:$0xff]  ;;  %v6947_v3 = vld [vmem:[#allocation8 + $0x38] sm:$0xff]  ;;  %v89_v4 = vld [vmem:[#allocation8 + $0x10] sm:$0xff]  ;;  %vm94_vm1 = vcmask 269312   ;;  %v6889_v10 = vmov 0.0   ;;  %s6890_s2 = smov 32  }
  0x18   :  { %148 = vmatpush.msra.mxu1 %v6945_v2  ;;  %257 = vmatpush.msra.mxu2 %v6945_v2  ;;  %v88_v5 = vld [vmem:[#allocation8 + $0x8] sm:$0xff]  ;;  %v6951_v6 = vld [vmem:[#allocation8 + $0x30] sm:$0xff]  ;;  %v87_v7 = vld [vmem:[#allocation8] sm:$0xff]  ;;  %vm239_vm10 = vcmask 1041409   ;;  %vm132_vm11 = vcmask 261120   ;;  %s6891_s3 = smov 96  }
  0x19   :  { %117 = vmatpush.msra.mxu0 %v90_v1  ;;  %371 = vmatpush.msra.mxu3 %v6945_v2  ;;  %v6955_v8 = vld [vmem:[#allocation8 + $0x28] sm:$0xff]  ;;  %v85_v9 = vld [vmem:[#allocation2] sm:$0xff]  ;;  %v86_v11 = vld [vmem:[#allocation2 + $0x8] sm:$0xff]  ;;  %s6892_s21 = smov [#allocation10]   ;;  %s5653_s25 = sshll.u32 %s8116_s5, 4  ;;  %s5654_s25 = int_to_ptr.hbm [resolvable:$true] %s5653_s25 }
  0x1a   :  { %149 = vmatpush.msra.mxu1 %v6947_v3  ;;  %258 = vmatpush.msra.mxu2 %v6947_v3  ;;  %v6074_v14 = vld [vmem:[#allocation8 + $0x48] ss:$0 sm:$0xff]  ;;  %s5651_s22 = sshll.u32 %s6892_s21, 4  ;;  %s6893_s26 = smov [#allocation11]   ;;  %s5652_s22 = int_to_ptr.vmem [resolvable:$true] %s5651_s22 }
  0x1b   :  { %118 = vmatpush.msra.mxu0 %v89_v4  ;;  %372 = vmatpush.msra.mxu3 %v6947_v3  ;;  %s5662_s27 = sshll.u32 %s6893_s26, 4  ;;  %s5664_s30 = sshll.u32 %s8117_s6, 4  ;;  %s5663_s27 = int_to_ptr.vmem [resolvable:$true] %s5662_s27  ;;  %s5665_s30 = int_to_ptr.hbm [resolvable:$true] %s5664_s30 }
  0x1c   :  { %150 = vmatpush.msra.mxu1 %v6951_v6  ;;  %259 = vmatpush.msra.mxu2 %v6951_v6 }
  0x1d   :  { %119 = vmatpush.msra.mxu0 %v88_v5  ;;  %373 = vmatpush.msra.mxu3 %v6951_v6 }
  0x1e   :  { %151 = vmatpush.msra.mxu1 %v6955_v8  ;;  %260 = vmatpush.msra.mxu2 %v6955_v8 }
  0x1f   :  { %120 = vmatpush.msra.mxu0 %v87_v7  ;;  %152 = vmatmul.f32.vlgmr.msra.gmra.mxu1 %v6889_v10 }
  0x20   :  { %5684 = vmatmul.msk.f32.vlgmr.msra.gmra.mxu0 %vm94_vm1, %v85_v9  ;;  %374 = vmatpush.msra.mxu3 %v6955_v8 }
  0x21   :  { %487 = vmatpush.msrb.mxu1 %v6945_v2  ;;  %603 = vmatpush.msrb.mxu2 %v6945_v2 }
  0x22   :  { %719 = vmatpush.msrb.mxu3 %v6945_v2 }
  0x23   :  { %488 = vmatpush.msrb.mxu1 %v6947_v3  ;;  %604 = vmatpush.msrb.mxu2 %v6947_v3 }
  0x24   :  { %720 = vmatpush.msrb.mxu3 %v6947_v3 }
  0x25   :  { %489 = vmatpush.msrb.mxu1 %v6951_v6  ;;  %605 = vmatpush.msrb.mxu2 %v6951_v6 }
  0x26   :  { %721 = vmatpush.msrb.mxu3 %v6951_v6 }
  0x27   :  { %490 = vmatpush.msrb.mxu1 %v6955_v8  ;;  %606 = vmatpush.msrb.mxu2 %v6955_v8 }
  0x28   :  { %5685 = vmatmul.msk.f32.gmra.mxu0 %vm94_vm1, %v86_v11  ;;  %722 = vmatpush.msrb.mxu3 %v6955_v8 }
  0x29   :  { %835 = vmatpush.msra.mxu1 %v6945_v2 }
  0x2b   :  { %836 = vmatpush.msra.mxu1 %v6947_v3 }
  0x2d   :  { %837 = vmatpush.msra.mxu1 %v6951_v6 }
  0x2f   :  { %838 = vmatpush.msra.mxu1 %v6955_v8 }
  0x9c   :  { %v153_v13 = vpop.f32.mrf.mxu1 }
  0x9d   :  { %v122_v12 = vpop.f32.mrf.mxu0  ;;  %v157_v15 = vrot.slane %v153_v13, 1 }
  0x9e   :  { %v6987_v19 = vadd.f32 %v6074_v14, %v122_v12 }
  0xa0   :  { %v160_v20 = vadd.f32 %v153_v13, %v6987_v19 }
  0xa2   :  { %v5686_v24 = vmul.f32 -1.442695, %v160_v20 }
  0xa5   :  { %v125_v16 = vpop.f32.mrf.mxu0 }
  0xa6   :  { %v6984_v17 = vadd.f32 %v6074_v14, %v125_v16 }
  0xa8   :  { %v161_v18 = vadd.f32 %v157_v15, %v6984_v17 }
  0xaa   :  { %6085 = vtanh.f32 %v161_v18  ;;  %v5687_v23 = vmul.f32 -1.442695, %v161_v18 }
  0xab   :  { %6087 = vtanh.f32 %v160_v20 }
  0xac   :  { %6089 = vpow2.f32 %v5687_v23 }
  0xad   :  { %6091 = vpow2.f32 %v5686_v24 }
  0xb0   :  { %v6086_v21 = vpop.eup %6085 }
  0xb1   :  { %208 = vrot.lane.b32.xlu0 %v6086_v21, %s6886_s17  ;;  %v6088_v22 = vpop.eup %6087 }
  0xb2   :  { %v6090_v25 = vpop.eup %6089 }
  0xb3   :  { %v169_v26 = vadd.f32 1.0, %v6090_v25  ;;  %v6092_v27 = vpop.eup %6091 }
  0xb4   :  { %v168_v28 = vadd.f32 1.0, %v6092_v27 }
  0xb5   :  { %6093 = vrcp.f32 %v169_v26  ;;  %v196_v37 = vand.u32 2147483648, %v169_v26  ;;  %vm190_vm3 = vweird.f32 %v169_v26  ;;  %v194_v38 = vand.u32 2147483647, %v169_v26 }
  0xb6   :  { %6095 = vrcp.f32 %v168_v28  ;;  %v181_v46 = vand.u32 2147483648, %v168_v28  ;;  %vm175_vm7 = vweird.f32 %v168_v28  ;;  %v179_v47 = vand.u32 2147483647, %v168_v28 }
  0xb7   :  { %v197_v41 = vor.u32 1.1754944e-38, %v196_v37  ;;  %vm195_vm5 = vcmp.eq.f32.partialorder %v194_v38, 8.507059e+37 }
  0xb8   :  { %v182_v49 = vor.u32 1.1754944e-38, %v181_v46  ;;  %vm180_vm9 = vcmp.eq.f32.partialorder %v179_v47, 8.507059e+37 }
  0xb9   :  { %206 = vrot.lane.b32.xlu0 %v6088_v22, %s6886_s17 }
  0xbb   :  { %v6094_v29 = vpop.eup %6093 }
  0xbc   :  { %v186_v30 = vmul.f32 %v6094_v29, %v169_v26  ;;  %v6096_v32 = vpop.eup %6095  ;;  %vm191_vm2 = vweird.f32 %v6094_v29 }
  0xbd   :  { %v171_v34 = vmul.f32 %v6096_v32, %v168_v28  ;;  %vm192_vm4 = vmor %vm190_vm3, %vm191_vm2  ;;  %vm176_vm6 = vweird.f32 %v6096_v32 }
  0xbe   :  { %v187_v31 = vsub.f32 1.0, %v186_v30  ;;  %vm177_vm8 = vmor %vm175_vm7, %vm176_vm6 }
  0xbf   :  { %v172_v36 = vsub.f32 1.0, %v171_v34 }
  0xc0   :  { %v188_v33 = vmul.f32 %v6094_v29, %v187_v31 }
  0xc1   :  { %v173_v40 = vmul.f32 %v6096_v32, %v172_v36 }
  0xc2   :  { %v189_v35 = vadd.f32 %v6094_v29, %v188_v33 }
  0xc3   :  { %v174_v45 = vadd.f32 %v6096_v32, %v173_v40 }
  0xc4   :  { %v193_v39 = vsel %vm192_vm4, %v6094_v29, %v189_v35 }
  0xc5   :  { %v198_v43 = vsel %vm195_vm5, %v197_v41, %v193_v39  ;;  %v178_v48 = vsel %vm177_vm8, %v6096_v32, %v174_v45 }
  0xc6   :  { %v183_v51 = vsel %vm180_vm9, %v182_v49, %v178_v48  ;;  %v203_v53 = vmul.f32 0.0, %v198_v43 }
  0xc7   :  { %v202_v56 = vmul.f32 0.0, %v183_v51 }
 0x123   :  { %v209_v42 = vpop.permute.xlu0 %208 }
 0x124   :  { %v213_v44 = vmul.f32 %v209_v42, %v198_v43 }
 0x126   :  { %218 = vrot.lane.b32.xlu1 %v213_v44, %s6890_s2 }
 0x12b   :  { %v207_v50 = vpop.permute.xlu0 %206 }
 0x12c   :  { %v212_v52 = vmul.f32 %v207_v50, %v183_v51 }
 0x12e   :  { %216 = vrot.lane.b32.xlu1 %v212_v52, %s6890_s2 }
 0x198   :  { %v219_v54 = vpop.permute.xlu1 %218 }
 0x199   :  { %v6994_v55 = vadd.f32 %v219_v54, %v203_v53 }
 0x19b   :  { %6097 = vtanh.f32 %v6994_v55 }
 0x1a0   :  { %v217_v57 = vpop.permute.xlu1 %216 }
 0x1a1   :  { %v6098_v58 = vpop.eup %6097  ;;  %v6997_v59 = vadd.f32 %v217_v57, %v202_v56 }
 0x1a2   :  { %230 = vrot.lane.b32.xlu2 %v6098_v58, %s6886_s17 }
 0x1a3   :  { %6099 = vtanh.f32 %v6997_v59  ;;  %v313_v48 = vrot.slane %v6997_v59, 7 }
 0x1a9   :  { %v6100_v60 = vpop.eup %6099 }
 0x1aa   :  { %228 = vrot.lane.b32.xlu2 %v6100_v60, %s6886_s17 }
 0x1fc   :  { %v231_v61 = vpop.permute.xlu2 %230 }
 0x1fd   :  { %v7002_v62 = vmul.f32 %v231_v61, %v198_v43  ;;  %v314_v43 = vrot.slane %v6994_v55, 7 }
 0x1ff   :  { %v238_v0 = vrot.slane %v7002_v62, 7 }
 0x204   :  { %v229_v63 = vpop.permute.xlu2 %228 }
 0x205   :  { %v7005_v1 = vmul.f32 %v229_v63, %v183_v51 }
 0x207   :  { %v240_v4 = vsel %vm239_vm10, %v238_v0, %v7005_v1 }
 0x208   :  { %241 = vrot.lane.b32.xlu0 %v240_v4, %s6890_s2 }
 0x27a   :  { %v242_v5 = vpop.permute.xlu0 %241 }
 0x27b   :  { %5688 = vmatmul.msk.f32.vlgmr.msra.gmra.mxu2 %vm132_vm11, %v242_v5 }
 0x27c   :  { %951 = vmatpush.msra.mxu2 %v6945_v2 }
 0x27e   :  { %952 = vmatpush.msra.mxu2 %v6947_v3 }
 0x280   :  { %953 = vmatpush.msra.mxu2 %v6951_v6 }
 0x282   :  { %954 = vmatpush.msra.mxu2 %v6955_v8 }
 0x2fe   :  { %v262_v7 = vpop.f32.mrf.mxu2 }
 0x2ff   :  { %v266_v9 = vrot.slane %v262_v7, 7  ;;  %v270_v11 = vadd.f32 %v262_v7, %v6984_v17 }
 0x301   :  { %v269_v12 = vadd.f32 %v266_v9, %v6987_v19  ;;  %6101 = vtanh.f32 %v270_v11  ;;  %v5690_v2 = vmul.f32 -1.442695, %v270_v11 }
 0x303   :  { %6103 = vtanh.f32 %v269_v12  ;;  %v5689_v16 = vmul.f32 -1.442695, %v269_v12 }
 0x304   :  { %6105 = vpow2.f32 %v5690_v2 }
 0x307   :  { %v6102_v13 = vpop.eup %6101 }
 0x308   :  { %323 = vrot.lane.b32.xlu2 %v6102_v13, %s6886_s17 }
 0x309   :  { %v6104_v14 = vpop.eup %6103 }
 0x30a   :  { %321 = vrot.lane.b32.xlu1 %v6104_v14, %s6886_s17  ;;  %v6106_v3 = vpop.eup %6105 }
 0x30b   :  { %v278_v6 = vadd.f32 1.0, %v6106_v3 }
 0x30d   :  { %6107 = vrcp.f32 %v278_v6  ;;  %v305_v23 = vand.u32 2147483648, %v278_v6  ;;  %vm299_vm13 = vweird.f32 %v278_v6  ;;  %v303_v25 = vand.u32 2147483647, %v278_v6 }
 0x30e   :  { %6109 = vpow2.f32 %v5689_v16 }
 0x30f   :  { %v306_v27 = vor.u32 1.1754944e-38, %v305_v23  ;;  %vm304_vm15 = vcmp.eq.f32.partialorder %v303_v25, 8.507059e+37 }
 0x313   :  { %v6108_v8 = vpop.eup %6107 }
 0x314   :  { %v295_v15 = vmul.f32 %v6108_v8, %v278_v6  ;;  %v6110_v21 = vpop.eup %6109  ;;  %vm300_vm12 = vweird.f32 %v6108_v8 }
 0x315   :  { %v277_v24 = vadd.f32 1.0, %v6110_v21  ;;  %vm301_vm14 = vmor %vm299_vm13, %vm300_vm12 }
 0x316   :  { %v296_v18 = vsub.f32 1.0, %v295_v15 }
 0x317   :  { %6111 = vrcp.f32 %v277_v24  ;;  %v290_v36 = vand.u32 2147483648, %v277_v24  ;;  %vm284_vm2 = vweird.f32 %v277_v24  ;;  %v288_v37 = vand.u32 2147483647, %v277_v24 }
 0x318   :  { %v297_v20 = vmul.f32 %v6108_v8, %v296_v18 }
 0x319   :  { %v291_v39 = vor.u32 1.1754944e-38, %v290_v36  ;;  %vm289_vm4 = vcmp.eq.f32.partialorder %v288_v37, 8.507059e+37 }
 0x31a   :  { %v298_v22 = vadd.f32 %v6108_v8, %v297_v20 }
 0x31c   :  { %v302_v26 = vsel %vm301_vm14, %v6108_v8, %v298_v22 }
 0x31d   :  { %v307_v29 = vsel %vm304_vm15, %v306_v27, %v302_v26  ;;  %v6112_v31 = vpop.eup %6111  ;;  %vm1048_vm15 = vcmask 1041408  }
 0x31e   :  { %v280_v32 = vmul.f32 %v6112_v31, %v277_v24  ;;  %vm285_vm1 = vweird.f32 %v6112_v31  ;;  %v318_v44 = vmul.f32 %v314_v43, %v307_v29 }
 0x31f   :  { %vm286_vm3 = vmor %vm284_vm2, %vm285_vm1 }
 0x320   :  { %v281_v33 = vsub.f32 1.0, %v280_v32 }
 0x322   :  { %v282_v34 = vmul.f32 %v6112_v31, %v281_v33 }
 0x324   :  { %v283_v35 = vadd.f32 %v6112_v31, %v282_v34 }
 0x326   :  { %v287_v38 = vsel %vm286_vm3, %v6112_v31, %v283_v35 }
 0x327   :  { %v292_v41 = vsel %vm289_vm4, %v291_v39, %v287_v38 }
 0x328   :  { %v317_v49 = vmul.f32 %v313_v48, %v292_v41 }
 0x362   :  { %v324_v28 = vpop.permute.xlu2 %323 }
 0x363   :  { %v328_v30 = vmul.f32 %v324_v28, %v307_v29 }
 0x365   :  { %333 = vrot.lane.b32.xlu1 %v328_v30, %s6890_s2 }
 0x37c   :  { %v322_v40 = vpop.permute.xlu1 %321 }
 0x37d   :  { %v327_v42 = vmul.f32 %v322_v40, %v292_v41 }
 0x37f   :  { %331 = vrot.lane.b32.xlu0 %v327_v42, %s6890_s2 }
 0x3d7   :  { %v334_v45 = vpop.permute.xlu1 %333 }
 0x3d8   :  { %v7022_v46 = vadd.f32 %v334_v45, %v318_v44 }
 0x3da   :  { %6113 = vtanh.f32 %v7022_v46  ;;  %v429_v39 = vrot.slane %v7022_v46, 7 }
 0x3e0   :  { %v6114_v47 = vpop.eup %6113 }
 0x3e1   :  { %345 = vrot.lane.b32.xlu0 %v6114_v47, %s6886_s17 }
 0x3f1   :  { %v332_v50 = vpop.permute.xlu0 %331 }
 0x3f2   :  { %v7027_v51 = vadd.f32 %v332_v50, %v317_v49 }
 0x3f4   :  { %6115 = vtanh.f32 %v7027_v51  ;;  %v428_v38 = vrot.slane %v7027_v51, 7 }
 0x3fa   :  { %v6116_v52 = vpop.eup %6115 }
 0x3fb   :  { %343 = vrot.lane.b32.xlu2 %v6116_v52, %s6886_s17 }
 0x453   :  { %v346_v53 = vpop.permute.xlu0 %345 }
 0x454   :  { %v7033_v56 = vmul.f32 %v346_v53, %v307_v29 }
 0x455   :  { %v344_v54 = vpop.permute.xlu2 %343 }
 0x456   :  { %v7031_v55 = vmul.f32 %v344_v54, %v292_v41  ;;  %v1047_v53 = vsel %vm101_vm0, %v7002_v62, %v7033_v56 }
 0x458   :  { %v353_v57 = vrot.slane %v7031_v55, 1  ;;  %v1046_v51 = vsel %vm101_vm0, %v7005_v1, %v7031_v55 }
 0x45a   :  { %v354_v58 = vsel %vm239_vm10, %v7033_v56, %v353_v57 }
 0x45b   :  { %355 = vrot.lane.b32.xlu1 %v354_v58, %s6890_s2 }
 0x4cd   :  { %v356_v59 = vpop.permute.xlu1 %355 }
 0x4ce   :  { %5691 = vmatmul.msk.f32.vlgmr.msra.gmra.mxu3 %vm132_vm11, %v356_v59 }
 0x551   :  { %v376_v60 = vpop.f32.mrf.mxu3 }
 0x552   :  { %v380_v61 = vrot.slane %v376_v60, 6  ;;  %v381_v63 = vrot.slane %v376_v60, 7 }
 0x554   :  { %v384_v0 = vadd.f32 %v380_v61, %v6987_v19  ;;  %v385_v4 = vadd.f32 %v381_v63, %v6984_v17 }
 0x556   :  { %6117 = vtanh.f32 %v384_v0  ;;  %v5692_v9 = vmul.f32 -1.442695, %v384_v0  ;;  %v5693_v14 = vmul.f32 -1.442695, %v385_v4 }
 0x557   :  { %6119 = vtanh.f32 %v385_v4 }
 0x558   :  { %6121 = vpow2.f32 %v5692_v9 }
 0x55c   :  { %v6118_v5 = vpop.eup %6117 }
 0x55d   :  { %v6120_v7 = vpop.eup %6119  ;;  %436 = vrot.lane.b32.xlu2 %v6118_v5, %s6886_s17 }
 0x55e   :  { %438 = vrot.lane.b32.xlu0 %v6120_v7, %s6886_s17  ;;  %v6122_v11 = vpop.eup %6121 }
 0x55f   :  { %v392_v12 = vadd.f32 1.0, %v6122_v11 }
 0x561   :  { %6123 = vrcp.f32 %v392_v12  ;;  %v405_v18 = vand.u32 2147483648, %v392_v12  ;;  %vm399_vm6 = vweird.f32 %v392_v12  ;;  %v403_v20 = vand.u32 2147483647, %v392_v12 }
 0x562   :  { %6125 = vpow2.f32 %v5693_v14 }
 0x563   :  { %v406_v22 = vor.u32 1.1754944e-38, %v405_v18  ;;  %vm404_vm8 = vcmp.eq.f32.partialorder %v403_v20, 8.507059e+37 }
 0x567   :  { %v6124_v13 = vpop.eup %6123 }
 0x568   :  { %v395_v2 = vmul.f32 %v6124_v13, %v392_v12  ;;  %v6126_v8 = vpop.eup %6125  ;;  %vm400_vm5 = vweird.f32 %v6124_v13 }
 0x569   :  { %v393_v15 = vadd.f32 1.0, %v6126_v8  ;;  %vm401_vm7 = vmor %vm399_vm6, %vm400_vm5 }
 0x56a   :  { %v396_v3 = vsub.f32 1.0, %v395_v2 }
 0x56b   :  { %6127 = vrcp.f32 %v393_v15  ;;  %v420_v31 = vand.u32 2147483648, %v393_v15  ;;  %vm414_vm12 = vweird.f32 %v393_v15  ;;  %v418_v32 = vand.u32 2147483647, %v393_v15 }
 0x56c   :  { %v397_v6 = vmul.f32 %v6124_v13, %v396_v3 }
 0x56d   :  { %v421_v34 = vor.u32 1.1754944e-38, %v420_v31  ;;  %vm419_vm14 = vcmp.eq.f32.partialorder %v418_v32, 8.507059e+37 }
 0x56e   :  { %v398_v16 = vadd.f32 %v6124_v13, %v397_v6 }
 0x570   :  { %v402_v21 = vsel %vm401_vm7, %v6124_v13, %v398_v16 }
 0x571   :  { %v407_v24 = vsel %vm404_vm8, %v406_v22, %v402_v21  ;;  %v6128_v26 = vpop.eup %6127 }
 0x572   :  { %v410_v27 = vmul.f32 %v6128_v26, %v393_v15  ;;  %vm415_vm9 = vweird.f32 %v6128_v26  ;;  %v432_v40 = vmul.f32 %v428_v38, %v407_v24 }
 0x573   :  { %vm416_vm13 = vmor %vm414_vm12, %vm415_vm9  ;;  %vm1051_vm9 = vcmask 1042432  }
 0x574   :  { %v411_v28 = vsub.f32 1.0, %v410_v27 }
 0x576   :  { %v412_v29 = vmul.f32 %v6128_v26, %v411_v28 }
 0x578   :  { %v413_v30 = vadd.f32 %v6128_v26, %v412_v29 }
 0x57a   :  { %v417_v33 = vsel %vm416_vm13, %v6128_v26, %v413_v30 }
 0x57b   :  { %v422_v36 = vsel %vm419_vm14, %v421_v34, %v417_v33 }
 0x57c   :  { %v433_v41 = vmul.f32 %v429_v39, %v422_v36 }
 0x5b7   :  { %v437_v23 = vpop.permute.xlu2 %436 }
 0x5b8   :  { %v442_v25 = vmul.f32 %v437_v23, %v407_v24 }
 0x5ba   :  { %446 = vrot.lane.b32.xlu1 %v442_v25, %s6890_s2 }
 0x5d0   :  { %v439_v35 = vpop.permute.xlu0 %438 }
 0x5d1   :  { %v443_v37 = vmul.f32 %v439_v35, %v422_v36 }
 0x5d3   :  { %448 = vrot.lane.b32.xlu2 %v443_v37, %s6890_s2 }
 0x62c   :  { %v447_v42 = vpop.permute.xlu1 %446 }
 0x62d   :  { %v449_v43 = vpop.permute.xlu2 %448  ;;  %v7048_v44 = vadd.f32 %v447_v42, %v432_v40 }
 0x62e   :  { %v7050_v45 = vadd.f32 %v449_v43, %v433_v41 }
 0x62f   :  { %6129 = vtanh.f32 %v7048_v44 }
 0x630   :  { %6131 = vtanh.f32 %v7050_v45  ;;  %v545_v41 = vrot.slane %v7050_v45, 7 }
 0x635   :  { %v6130_v47 = vpop.eup %6129 }
 0x636   :  { %v6132_v48 = vpop.eup %6131  ;;  %458 = vrot.lane.b32.xlu0 %v6130_v47, %s6886_s17 }
 0x637   :  { %460 = vrot.lane.b32.xlu1 %v6132_v48, %s6886_s17 }
 0x6a8   :  { %v459_v46 = vpop.permute.xlu0 %458 }
 0x6a9   :  { %v461_v49 = vpop.permute.xlu1 %460  ;;  %v464_v50 = vmul.f32 %v459_v46, %v407_v24 }
 0x6aa   :  { %v465_v52 = vmul.f32 %v461_v49, %v422_v36  ;;  %v544_v36 = vrot.slane %v7048_v44, 7 }
 0x6ab   :  { %v468_v54 = vrot.slane %v464_v50, 2  ;;  %v7063_v57 = vsel %vm1048_vm15, %v1046_v51, %v464_v50 }
 0x6ac   :  { %v469_v58 = vrot.slane %v465_v52, 1  ;;  %v7066_v59 = vsel %vm1048_vm15, %v1047_v53, %v465_v52 }
 0x6ae   :  { %v470_v60 = vsel %vm239_vm10, %v469_v58, %v468_v54 }
 0x6af   :  { %471 = vrot.lane.b32.xlu2 %v470_v60, %s6890_s2 }
 0x709   :  { %v472_v61 = vpop.permute.xlu2 %471 }
 0x70a   :  { %5694 = vmatmul.msk.f32.vlgmr.msrb.gmra.mxu1 %vm132_vm11, %v472_v61 }
 0x787   :  { %v492_v1 = vpop.f32.mrf.mxu1 }
 0x788   :  { %v496_v55 = vrot.slane %v492_v1, 5  ;;  %v497_v63 = vrot.slane %v492_v1, 6 }
 0x78a   :  { %v500_v62 = vadd.f32 %v496_v55, %v6987_v19  ;;  %v501_v56 = vadd.f32 %v497_v63, %v6984_v17 }
 0x78c   :  { %6133 = vtanh.f32 %v500_v62  ;;  %v5695_v5 = vmul.f32 -1.442695, %v500_v62  ;;  %v5696_v7 = vmul.f32 -1.442695, %v501_v56 }
 0x78d   :  { %6135 = vtanh.f32 %v501_v56 }
 0x78e   :  { %6137 = vpow2.f32 %v5695_v5 }
 0x78f   :  { %6139 = vpow2.f32 %v5696_v7 }
 0x792   :  { %v6134_v0 = vpop.eup %6133 }
 0x793   :  { %v6136_v4 = vpop.eup %6135  ;;  %552 = vrot.lane.b32.xlu0 %v6134_v0, %s6886_s17 }
 0x794   :  { %554 = vrot.lane.b32.xlu1 %v6136_v4, %s6886_s17  ;;  %v6138_v9 = vpop.eup %6137 }
 0x795   :  { %v6140_v11 = vpop.eup %6139  ;;  %v508_v12 = vadd.f32 1.0, %v6138_v9 }
 0x796   :  { %v509_v13 = vadd.f32 1.0, %v6140_v11 }
 0x797   :  { %6141 = vrcp.f32 %v508_v12  ;;  %v521_v22 = vand.u32 2147483648, %v508_v12  ;;  %vm515_vm3 = vweird.f32 %v508_v12  ;;  %v519_v24 = vand.u32 2147483647, %v508_v12 }
 0x798   :  { %6143 = vrcp.f32 %v509_v13  ;;  %v536_v23 = vand.u32 2147483648, %v509_v13  ;;  %vm530_vm4 = vweird.f32 %v509_v13  ;;  %v534_v25 = vand.u32 2147483647, %v509_v13 }
 0x799   :  { %v522_v28 = vor.u32 1.1754944e-38, %v521_v22  ;;  %vm520_vm7 = vcmp.eq.f32.partialorder %v519_v24, 8.507059e+37 }
 0x79a   :  { %v537_v29 = vor.u32 1.1754944e-38, %v536_v23  ;;  %vm535_vm8 = vcmp.eq.f32.partialorder %v534_v25, 8.507059e+37 }
 0x79d   :  { %v6142_v14 = vpop.eup %6141 }
 0x79e   :  { %v6144_v2 = vpop.eup %6143  ;;  %v511_v3 = vmul.f32 %v6142_v14, %v508_v12  ;;  %vm516_vm1 = vweird.f32 %v6142_v14 }
 0x79f   :  { %v526_v6 = vmul.f32 %v6144_v2, %v509_v13  ;;  %vm531_vm2 = vweird.f32 %v6144_v2  ;;  %vm517_vm5 = vmor %vm515_vm3, %vm516_vm1 }
 0x7a0   :  { %v512_v8 = vsub.f32 1.0, %v511_v3  ;;  %vm532_vm6 = vmor %vm530_vm4, %vm531_vm2 }
 0x7a1   :  { %v527_v15 = vsub.f32 1.0, %v526_v6 }
 0x7a2   :  { %v513_v16 = vmul.f32 %v6142_v14, %v512_v8 }
 0x7a3   :  { %v528_v18 = vmul.f32 %v6144_v2, %v527_v15 }
 0x7a4   :  { %v514_v20 = vadd.f32 %v6142_v14, %v513_v16 }
 0x7a5   :  { %v529_v21 = vadd.f32 %v6144_v2, %v528_v18 }
 0x7a6   :  { %v518_v26 = vsel %vm517_vm5, %v6142_v14, %v514_v20 }
 0x7a7   :  { %v533_v27 = vsel %vm532_vm6, %v6144_v2, %v529_v21  ;;  %v523_v31 = vsel %vm520_vm7, %v522_v28, %v518_v26  ;;  %vm1054_vm6 = vcmask 1043456  }
 0x7a8   :  { %v538_v33 = vsel %vm535_vm8, %v537_v29, %v533_v27  ;;  %v548_v37 = vmul.f32 %v544_v36, %v523_v31 }
 0x7a9   :  { %v549_v42 = vmul.f32 %v545_v41, %v538_v33 }
 0x805   :  { %v553_v30 = vpop.permute.xlu0 %552 }
 0x806   :  { %v555_v32 = vpop.permute.xlu1 %554  ;;  %v558_v34 = vmul.f32 %v553_v30, %v523_v31 }
 0x807   :  { %v559_v35 = vmul.f32 %v555_v32, %v538_v33 }
 0x808   :  { %562 = vrot.lane.b32.xlu2 %v558_v34, %s6890_s2 }
 0x809   :  { %564 = vrot.lane.b32.xlu0 %v559_v35, %s6890_s2 }
 0x862   :  { %v563_v38 = vpop.permute.xlu2 %562 }
 0x863   :  { %v7078_v39 = vadd.f32 %v563_v38, %v548_v37 }
 0x865   :  { %6145 = vtanh.f32 %v7078_v39  ;;  %v660_v37 = vrot.slane %v7078_v39, 7 }
 0x86b   :  { %v6146_v40 = vpop.eup %6145 }
 0x86c   :  { %574 = vrot.lane.b32.xlu1 %v6146_v40, %s6886_s17 }
 0x87b   :  { %v565_v43 = vpop.permute.xlu0 %564 }
 0x87c   :  { %v7083_v47 = vadd.f32 %v565_v43, %v549_v42 }
 0x87e   :  { %6147 = vtanh.f32 %v7083_v47  ;;  %v661_v32 = vrot.slane %v7083_v47, 7 }
 0x884   :  { %v6148_v48 = vpop.eup %6147 }
 0x885   :  { %576 = vrot.lane.b32.xlu2 %v6148_v48, %s6886_s17 }
 0x8de   :  { %v575_v44 = vpop.permute.xlu1 %574 }
 0x8df   :  { %v577_v46 = vpop.permute.xlu2 %576  ;;  %v580_v49 = vmul.f32 %v575_v44, %v523_v31 }
 0x8e0   :  { %v581_v50 = vmul.f32 %v577_v46, %v538_v33 }
 0x8e1   :  { %v584_v51 = vrot.slane %v580_v49, 3  ;;  %v7089_v52 = vsel %vm1051_vm9, %v7063_v57, %v580_v49 }
 0x8e2   :  { %v585_v45 = vrot.slane %v581_v50, 2  ;;  %v7093_v53 = vsel %vm1051_vm9, %v7066_v59, %v581_v50 }
 0x8e4   :  { %v586_v54 = vsel %vm239_vm10, %v585_v45, %v584_v51 }
 0x8e5   :  { %587 = vrot.lane.b32.xlu0 %v586_v54, %s6890_s2 }
 0x957   :  { %v588_v58 = vpop.permute.xlu0 %587 }
 0x958   :  { %5697 = vmatmul.msk.f32.vlgmr.msrb.gmra.mxu2 %vm132_vm11, %v588_v58 }
 0x9db   :  { %v608_v60 = vpop.f32.mrf.mxu2 }
 0x9dc   :  { %v612_v61 = vrot.slane %v608_v60, 4  ;;  %v613_v1 = vrot.slane %v608_v60, 5 }
 0x9de   :  { %v616_v55 = vadd.f32 %v612_v61, %v6987_v19  ;;  %v617_v57 = vadd.f32 %v613_v1, %v6984_v17 }
 0x9e0   :  { %6149 = vtanh.f32 %v616_v55  ;;  %v5699_v59 = vmul.f32 -1.442695, %v617_v57  ;;  %v5698_v5 = vmul.f32 -1.442695, %v616_v55 }
 0x9e1   :  { %6151 = vtanh.f32 %v617_v57 }
 0x9e2   :  { %6153 = vpow2.f32 %v5699_v59 }
 0x9e6   :  { %v6150_v63 = vpop.eup %6149 }
 0x9e7   :  { %v6152_v62 = vpop.eup %6151  ;;  %668 = vrot.lane.b32.xlu1 %v6150_v63, %s6886_s17 }
 0x9e8   :  { %670 = vrot.lane.b32.xlu2 %v6152_v62, %s6886_s17  ;;  %v6154_v56 = vpop.eup %6153 }
 0x9e9   :  { %v625_v0 = vadd.f32 1.0, %v6154_v56 }
 0x9eb   :  { %6155 = vrcp.f32 %v625_v0  ;;  %v652_v2 = vand.u32 2147483648, %v625_v0  ;;  %vm646_vm13 = vweird.f32 %v625_v0  ;;  %v650_v3 = vand.u32 2147483647, %v625_v0 }
 0x9ec   :  { %6157 = vpow2.f32 %v5698_v5 }
 0x9ed   :  { %v653_v8 = vor.u32 1.1754944e-38, %v652_v2  ;;  %vm651_vm1 = vcmp.eq.f32.partialorder %v650_v3, 8.507059e+37 }
 0x9f1   :  { %v6156_v4 = vpop.eup %6155 }
 0x9f2   :  { %v642_v7 = vmul.f32 %v6156_v4, %v625_v0  ;;  %v6158_v11 = vpop.eup %6157  ;;  %vm647_vm12 = vweird.f32 %v6156_v4 }
 0x9f3   :  { %v624_v13 = vadd.f32 1.0, %v6158_v11  ;;  %vm648_vm14 = vmor %vm646_vm13, %vm647_vm12 }
 0x9f4   :  { %v643_v9 = vsub.f32 1.0, %v642_v7 }
 0x9f5   :  { %6159 = vrcp.f32 %v624_v13  ;;  %v637_v25 = vand.u32 2147483648, %v624_v13  ;;  %vm631_vm3 = vweird.f32 %v624_v13  ;;  %v635_v26 = vand.u32 2147483647, %v624_v13 }
 0x9f6   :  { %v644_v12 = vmul.f32 %v6156_v4, %v643_v9 }
 0x9f7   :  { %v638_v28 = vor.u32 1.1754944e-38, %v637_v25  ;;  %vm636_vm5 = vcmp.eq.f32.partialorder %v635_v26, 8.507059e+37 }
 0x9f8   :  { %v645_v14 = vadd.f32 %v6156_v4, %v644_v12 }
 0x9fa   :  { %v649_v6 = vsel %vm648_vm14, %v6156_v4, %v645_v14 }
 0x9fb   :  { %v654_v16 = vsel %vm651_vm1, %v653_v8, %v649_v6  ;;  %v6160_v18 = vpop.eup %6159 }
 0x9fc   :  { %v627_v21 = vmul.f32 %v6160_v18, %v624_v13  ;;  %vm632_vm2 = vweird.f32 %v6160_v18  ;;  %v665_v33 = vmul.f32 %v661_v32, %v654_v16 }
 0x9fd   :  { %vm633_vm4 = vmor %vm631_vm3, %vm632_vm2 }
 0x9fe   :  { %v628_v22 = vsub.f32 1.0, %v627_v21 }
 0xa00   :  { %v629_v23 = vmul.f32 %v6160_v18, %v628_v22 }
 0xa02   :  { %v630_v24 = vadd.f32 %v6160_v18, %v629_v23 }
 0xa04   :  { %v634_v27 = vsel %vm633_vm4, %v6160_v18, %v630_v24  ;;  %vm1057_vm4 = vcmask 1044480  }
 0xa05   :  { %v639_v30 = vsel %vm636_vm5, %v638_v28, %v634_v27 }
 0xa06   :  { %v664_v38 = vmul.f32 %v660_v37, %v639_v30 }
 0xa42   :  { %v671_v15 = vpop.permute.xlu2 %670 }
 0xa43   :  { %v675_v20 = vmul.f32 %v671_v15, %v654_v16 }
 0xa45   :  { %680 = vrot.lane.b32.xlu1 %v675_v20, %s6890_s2 }
 0xa59   :  { %v669_v29 = vpop.permute.xlu1 %668 }
 0xa5a   :  { %v674_v31 = vmul.f32 %v669_v29, %v639_v30 }
 0xa5c   :  { %678 = vrot.lane.b32.xlu0 %v674_v31, %s6890_s2 }
 0xab7   :  { %v681_v34 = vpop.permute.xlu1 %680 }
 0xab8   :  { %v7105_v35 = vadd.f32 %v681_v34, %v665_v33 }
 0xaba   :  { %6161 = vtanh.f32 %v7105_v35  ;;  %v777_v29 = vrot.slane %v7105_v35, 7 }
 0xac0   :  { %v6162_v36 = vpop.eup %6161 }
 0xac1   :  { %692 = vrot.lane.b32.xlu0 %v6162_v36, %s6886_s17 }
 0xace   :  { %v679_v40 = vpop.permute.xlu0 %678 }
 0xacf   :  { %v7110_v41 = vadd.f32 %v679_v40, %v664_v38 }
 0xad1   :  { %6163 = vtanh.f32 %v7110_v41  ;;  %v776_v28 = vrot.slane %v7110_v41, 7 }
 0xad7   :  { %v6164_v42 = vpop.eup %6163 }
 0xad8   :  { %690 = vrot.lane.b32.xlu2 %v6164_v42, %s6886_s17 }
 0xb32   :  { %v691_v43 = vpop.permute.xlu2 %690 }
 0xb33   :  { %v693_v47 = vpop.permute.xlu0 %692  ;;  %v696_v48 = vmul.f32 %v691_v43, %v639_v30 }
 0xb34   :  { %v697_v44 = vmul.f32 %v693_v47, %v654_v16 }
 0xb35   :  { %v700_v46 = vrot.slane %v696_v48, 4  ;;  %v7116_v49 = vsel %vm1054_vm6, %v7089_v52, %v696_v48 }
 0xb36   :  { %v701_v39 = vrot.slane %v697_v44, 3  ;;  %v7120_v50 = vsel %vm1054_vm6, %v7093_v53, %v697_v44 }
 0xb38   :  { %v702_v51 = vsel %vm239_vm10, %v701_v39, %v700_v46 }
 0xb39   :  { %703 = vrot.lane.b32.xlu1 %v702_v51, %s6890_s2 }
 0xbab   :  { %v704_v45 = vpop.permute.xlu1 %703 }
 0xbac   :  { %5700 = vmatmul.msk.f32.vlgmr.msrb.gmra.mxu3 %vm132_vm11, %v704_v45 }
 0xc2f   :  { %v724_v54 = vpop.f32.mrf.mxu3 }
 0xc30   :  { %v728_v58 = vrot.slane %v724_v54, 3  ;;  %v729_v60 = vrot.slane %v724_v54, 4 }
 0xc32   :  { %v732_v61 = vadd.f32 %v728_v58, %v6987_v19  ;;  %v733_v52 = vadd.f32 %v729_v60, %v6984_v17 }
 0xc34   :  { %6165 = vtanh.f32 %v732_v61  ;;  %v5701_v53 = vmul.f32 -1.442695, %v732_v61  ;;  %v5702_v59 = vmul.f32 -1.442695, %v733_v52 }
 0xc35   :  { %6167 = vtanh.f32 %v733_v52 }
 0xc36   :  { %6169 = vpow2.f32 %v5701_v53 }
 0xc3a   :  { %v6166_v1 = vpop.eup %6165 }
 0xc3b   :  { %v6168_v55 = vpop.eup %6167  ;;  %784 = vrot.lane.b32.xlu2 %v6166_v1, %s6886_s17 }
 0xc3c   :  { %786 = vrot.lane.b32.xlu0 %v6168_v55, %s6886_s17  ;;  %v6170_v57 = vpop.eup %6169 }
 0xc3d   :  { %v740_v63 = vadd.f32 1.0, %v6170_v57 }
 0xc3f   :  { %6171 = vrcp.f32 %v740_v63  ;;  %v753_v11 = vand.u32 2147483648, %v740_v63  ;;  %vm747_vm8 = vweird.f32 %v740_v63  ;;  %v751_v12 = vand.u32 2147483647, %v740_v63 }
 0xc40   :  { %6173 = vpow2.f32 %v5702_v59 }
 0xc41   :  { %v754_v14 = vor.u32 1.1754944e-38, %v753_v11  ;;  %vm752_vm13 = vcmp.eq.f32.partialorder %v751_v12, 8.507059e+37 }
 0xc45   :  { %v6172_v62 = vpop.eup %6171 }
 0xc46   :  { %v743_v56 = vmul.f32 %v6172_v62, %v740_v63  ;;  %v6174_v5 = vpop.eup %6173  ;;  %vm748_vm7 = vweird.f32 %v6172_v62 }
 0xc47   :  { %v741_v7 = vadd.f32 1.0, %v6174_v5  ;;  %vm749_vm12 = vmor %vm747_vm8, %vm748_vm7 }
 0xc48   :  { %v744_v0 = vsub.f32 1.0, %v743_v56 }
 0xc49   :  { %6175 = vrcp.f32 %v741_v7  ;;  %v768_v21 = vand.u32 2147483648, %v741_v7  ;;  %vm762_vm1 = vweird.f32 %v741_v7  ;;  %v766_v22 = vand.u32 2147483647, %v741_v7 }
 0xc4a   :  { %v745_v4 = vmul.f32 %v6172_v62, %v744_v0 }
 0xc4b   :  { %v769_v24 = vor.u32 1.1754944e-38, %v768_v21  ;;  %vm767_vm3 = vcmp.eq.f32.partialorder %v766_v22, 8.507059e+37 }
 0xc4c   :  { %v746_v9 = vadd.f32 %v6172_v62, %v745_v4 }
 0xc4e   :  { %v750_v13 = vsel %vm749_vm12, %v6172_v62, %v746_v9 }
 0xc4f   :  { %v755_v3 = vsel %vm752_vm13, %v754_v14, %v750_v13  ;;  %v6176_v8 = vpop.eup %6175 }
 0xc50   :  { %v758_v15 = vmul.f32 %v6176_v8, %v741_v7  ;;  %vm763_vm14 = vweird.f32 %v6176_v8  ;;  %v780_v30 = vmul.f32 %v776_v28, %v755_v3 }
 0xc51   :  { %vm764_vm2 = vmor %vm762_vm1, %vm763_vm14 }
 0xc52   :  { %v759_v16 = vsub.f32 1.0, %v758_v15 }
 0xc54   :  { %v760_v18 = vmul.f32 %v6176_v8, %v759_v16 }
 0xc56   :  { %v761_v20 = vadd.f32 %v6176_v8, %v760_v18 }
 0xc58   :  { %v765_v23 = vsel %vm764_vm2, %v6176_v8, %v761_v20 }
 0xc59   :  { %v770_v26 = vsel %vm767_vm3, %v769_v24, %v765_v23  ;;  %vm1060_vm3 = vcmask 1045504  }
 0xc5a   :  { %v781_v31 = vmul.f32 %v777_v29, %v770_v26 }
 0xc95   :  { %v785_v2 = vpop.permute.xlu2 %784 }
 0xc96   :  { %v790_v6 = vmul.f32 %v785_v2, %v755_v3 }
 0xc98   :  { %794 = vrot.lane.b32.xlu1 %v790_v6, %s6890_s2 }
 0xcae   :  { %v787_v25 = vpop.permute.xlu0 %786 }
 0xcaf   :  { %v791_v27 = vmul.f32 %v787_v25, %v770_v26 }
 0xcb1   :  { %796 = vrot.lane.b32.xlu2 %v791_v27, %s6890_s2 }
 0xd0a   :  { %v795_v32 = vpop.permute.xlu1 %794 }
 0xd0b   :  { %v797_v33 = vpop.permute.xlu2 %796  ;;  %v7133_v34 = vadd.f32 %v795_v32, %v780_v30 }
 0xd0c   :  { %v7135_v36 = vadd.f32 %v797_v33, %v781_v31 }
 0xd0d   :  { %6177 = vtanh.f32 %v7133_v34  ;;  %v892_v24 = vrot.slane %v7133_v34, 7 }
 0xd0e   :  { %6179 = vtanh.f32 %v7135_v36  ;;  %v893_v29 = vrot.slane %v7135_v36, 7 }
 0xd13   :  { %v6178_v37 = vpop.eup %6177 }
 0xd14   :  { %v6180_v38 = vpop.eup %6179  ;;  %806 = vrot.lane.b32.xlu0 %v6178_v37, %s6886_s17 }
 0xd15   :  { %808 = vrot.lane.b32.xlu1 %v6180_v38, %s6886_s17 }
 0xd86   :  { %v807_v40 = vpop.permute.xlu0 %806 }
 0xd87   :  { %v809_v35 = vpop.permute.xlu1 %808  ;;  %v812_v41 = vmul.f32 %v807_v40, %v755_v3 }
 0xd88   :  { %v813_v42 = vmul.f32 %v809_v35, %v770_v26 }
 0xd89   :  { %v816_v43 = vrot.slane %v812_v41, 5  ;;  %v7143_v47 = vsel %vm1057_vm4, %v7116_v49, %v812_v41 }
 0xd8a   :  { %v817_v48 = vrot.slane %v813_v42, 4  ;;  %v7147_v44 = vsel %vm1057_vm4, %v7120_v50, %v813_v42 }
 0xd8c   :  { %v818_v46 = vsel %vm239_vm10, %v817_v48, %v816_v43 }
 0xd8d   :  { %819 = vrot.lane.b32.xlu2 %v818_v46, %s6890_s2 }
 0xde7   :  { %v820_v39 = vpop.permute.xlu2 %819 }
 0xde8   :  { %5703 = vmatmul.msk.f32.vlgmr.msra.gmra.mxu1 %vm132_vm11, %v820_v39 }
 0xe65   :  { %v840_v51 = vpop.f32.mrf.mxu1 }
 0xe66   :  { %v844_v45 = vrot.slane %v840_v51, 2  ;;  %v845_v54 = vrot.slane %v840_v51, 3 }
 0xe68   :  { %v848_v58 = vadd.f32 %v844_v45, %v6987_v19  ;;  %v849_v49 = vadd.f32 %v845_v54, %v6984_v17 }
 0xe6a   :  { %6181 = vtanh.f32 %v848_v58  ;;  %v5704_v50 = vmul.f32 -1.442695, %v848_v58  ;;  %v5705_v52 = vmul.f32 -1.442695, %v849_v49 }
 0xe6b   :  { %6183 = vtanh.f32 %v849_v49 }
 0xe6c   :  { %6185 = vpow2.f32 %v5704_v50 }
 0xe6d   :  { %6187 = vpow2.f32 %v5705_v52 }
 0xe70   :  { %v6182_v60 = vpop.eup %6181 }
 0xe71   :  { %v6184_v61 = vpop.eup %6183  ;;  %900 = vrot.lane.b32.xlu0 %v6182_v60, %s6886_s17 }
 0xe72   :  { %902 = vrot.lane.b32.xlu1 %v6184_v61, %s6886_s17  ;;  %v6186_v1 = vpop.eup %6185 }
 0xe73   :  { %v6188_v55 = vpop.eup %6187  ;;  %v856_v53 = vadd.f32 1.0, %v6186_v1 }
 0xe74   :  { %v857_v57 = vadd.f32 1.0, %v6188_v55 }
 0xe75   :  { %6189 = vrcp.f32 %v856_v53  ;;  %v869_v12 = vand.u32 2147483648, %v856_v53  ;;  %vm863_vm8 = vweird.f32 %v856_v53  ;;  %v867_v14 = vand.u32 2147483647, %v856_v53 }
 0xe76   :  { %6191 = vrcp.f32 %v857_v57  ;;  %v884_v13 = vand.u32 2147483648, %v857_v57  ;;  %vm878_vm12 = vweird.f32 %v857_v57  ;;  %v882_v2 = vand.u32 2147483647, %v857_v57 }
 0xe77   :  { %v870_v8 = vor.u32 1.1754944e-38, %v869_v12  ;;  %vm868_vm1 = vcmp.eq.f32.partialorder %v867_v14, 8.507059e+37 }
 0xe78   :  { %v885_v15 = vor.u32 1.1754944e-38, %v884_v13  ;;  %vm883_vm2 = vcmp.eq.f32.partialorder %v882_v2, 8.507059e+37 }
 0xe7b   :  { %v6190_v63 = vpop.eup %6189 }
 0xe7c   :  { %v6192_v62 = vpop.eup %6191  ;;  %v859_v59 = vmul.f32 %v6190_v63, %v856_v53  ;;  %vm864_vm5 = vweird.f32 %v6190_v63 }
 0xe7d   :  { %v874_v56 = vmul.f32 %v6192_v62, %v857_v57  ;;  %vm879_vm7 = vweird.f32 %v6192_v62  ;;  %vm865_vm13 = vmor %vm863_vm8, %vm864_vm5 }
 0xe7e   :  { %v860_v0 = vsub.f32 1.0, %v859_v59  ;;  %vm880_vm14 = vmor %vm878_vm12, %vm879_vm7 }
 0xe7f   :  { %v875_v4 = vsub.f32 1.0, %v874_v56 }
 0xe80   :  { %v861_v5 = vmul.f32 %v6190_v63, %v860_v0 }
 0xe81   :  { %v876_v7 = vmul.f32 %v6192_v62, %v875_v4 }
 0xe82   :  { %v862_v9 = vadd.f32 %v6190_v63, %v861_v5 }
 0xe83   :  { %v877_v11 = vadd.f32 %v6192_v62, %v876_v7 }
 0xe84   :  { %v866_v3 = vsel %vm865_vm13, %v6190_v63, %v862_v9 }
 0xe85   :  { %v881_v6 = vsel %vm880_vm14, %v6192_v62, %v877_v11  ;;  %v871_v18 = vsel %vm868_vm1, %v870_v8, %v866_v3 }
 0xe86   :  { %v886_v21 = vsel %vm883_vm2, %v885_v15, %v881_v6  ;;  %v896_v25 = vmul.f32 %v892_v24, %v871_v18 }
 0xe87   :  { %v897_v30 = vmul.f32 %v893_v29, %v886_v21 }
 0xee3   :  { %v901_v16 = vpop.permute.xlu0 %900 }
 0xee4   :  { %v903_v20 = vpop.permute.xlu1 %902  ;;  %v906_v22 = vmul.f32 %v901_v16, %v871_v18 }
 0xee5   :  { %v907_v23 = vmul.f32 %v903_v20, %v886_v21 }
 0xee6   :  { %910 = vrot.lane.b32.xlu2 %v906_v22, %s6890_s2 }
 0xee7   :  { %912 = vrot.lane.b32.xlu0 %v907_v23, %s6890_s2 }
 0xf40   :  { %v911_v26 = vpop.permute.xlu2 %910 }
 0xf41   :  { %v7159_v27 = vadd.f32 %v911_v26, %v896_v25 }
 0xf43   :  { %6193 = vtanh.f32 %v7159_v27  ;;  %v1008_v23 = vrot.slane %v7159_v27, 7  ;;  %v1069_v27 = vld [vmem:[#allocation8 + $0x68] sm:$0xff] }
 0xf44   :  { %1094 = vmatpush.msra.mxu3 %v1069_v27 }
 0xf49   :  { %v6194_v28 = vpop.eup %6193 }
 0xf4a   :  { %922 = vrot.lane.b32.xlu1 %v6194_v28, %s6886_s17 }
 0xf59   :  { %v913_v31 = vpop.permute.xlu0 %912 }
 0xf5a   :  { %v7164_v32 = vadd.f32 %v913_v31, %v897_v30 }
 0xf5c   :  { %6195 = vtanh.f32 %v7164_v32  ;;  %v1009_v16 = vrot.slane %v7164_v32, 7 }
 0xf62   :  { %v6196_v33 = vpop.eup %6195 }
 0xf63   :  { %924 = vrot.lane.b32.xlu2 %v6196_v33, %s6886_s17 }
 0xfbc   :  { %v923_v34 = vpop.permute.xlu1 %922 }
 0xfbd   :  { %v925_v37 = vpop.permute.xlu2 %924  ;;  %v928_v38 = vmul.f32 %v923_v34, %v871_v18 }
 0xfbe   :  { %v929_v40 = vmul.f32 %v925_v37, %v886_v21  ;;  %v1068_v37 = vld [vmem:[#allocation8 + $0x60] sm:$0xff] }
 0xfbf   :  { %v932_v35 = vrot.slane %v928_v38, 6  ;;  %v7170_v41 = vsel %vm1060_vm3, %v7143_v47, %v928_v38  ;;  %v1067_v38 = vld [vmem:[#allocation8 + $0x58] sm:$0xff]  ;;  %1095 = vmatpush.msra.mxu3 %v1068_v37 }
 0xfc0   :  { %v933_v36 = vrot.slane %v929_v40, 5  ;;  %v7174_v42 = vsel %vm1060_vm3, %v7147_v44, %v929_v40  ;;  %v1066_v40 = vld [vmem:[#allocation8 + $0x50] sm:$0xff] }
 0xfc1   :  { %1096 = vmatpush.msra.mxu3 %v1067_v38 }
 0xfc2   :  { %v934_v43 = vsel %vm239_vm10, %v933_v36, %v932_v35  ;;  %v1108_v35 = vld [vmem:[#allocation8 + $0x88] sm:$0xff]  ;;  %v1107_v36 = vld [vmem:[#allocation8 + $0x80] sm:$0xff] }
 0xfc3   :  { %935 = vrot.lane.b32.xlu0 %v934_v43, %s6890_s2  ;;  %1097 = vmatpush.msra.mxu3 %v1066_v40 }
 0xfc4   :  { %1121 = vmatpush.msrb.mxu1 %v1108_v35  ;;  %1343 = vmatpush.msrb.mxu2 %v1108_v35 }
 0xfc5   :  { %1459 = vmatpush.msrb.mxu0 %v1108_v35  ;;  %1807 = vmatpush.msrb.mxu3 %v1108_v35 }
 0xfc6   :  { %1122 = vmatpush.msrb.mxu1 %v1107_v36  ;;  %1344 = vmatpush.msrb.mxu2 %v1107_v36 }
 0xfc7   :  { %1460 = vmatpush.msrb.mxu0 %v1107_v36  ;;  %1808 = vmatpush.msrb.mxu3 %v1107_v36 }
0x1035   :  { %v936_v48 = vpop.permute.xlu0 %935 }
0x1036   :  { %5706 = vmatmul.msk.f32.vlgmr.msra.gmra.mxu2 %vm132_vm11, %v936_v48 }
0x10b9   :  { %v956_v46 = vpop.f32.mrf.mxu2 }
0x10ba   :  { %v960_v39 = vrot.slane %v956_v46, 1  ;;  %v961_v51 = vrot.slane %v956_v46, 2  ;;  %v6075_v46 = vld [vmem:[#allocation8 + $0x90] ss:$0 sm:$0xff] }
0x10bc   :  { %v964_v45 = vadd.f32 %v960_v39, %v6987_v19  ;;  %v965_v47 = vadd.f32 %v961_v51, %v6984_v17 }
0x10be   :  { %6197 = vtanh.f32 %v964_v45  ;;  %v5708_v44 = vmul.f32 -1.442695, %v965_v47  ;;  %v5707_v50 = vmul.f32 -1.442695, %v964_v45 }
0x10bf   :  { %6199 = vtanh.f32 %v965_v47 }
0x10c0   :  { %6201 = vpow2.f32 %v5708_v44 }
0x10c4   :  { %v6198_v54 = vpop.eup %6197 }
0x10c5   :  { %v6200_v58 = vpop.eup %6199  ;;  %1016 = vrot.lane.b32.xlu1 %v6198_v54, %s6886_s17 }
0x10c6   :  { %1018 = vrot.lane.b32.xlu2 %v6200_v58, %s6886_s17  ;;  %v6202_v49 = vpop.eup %6201 }
0x10c7   :  { %v973_v60 = vadd.f32 1.0, %v6202_v49 }
0x10c9   :  { %6203 = vrcp.f32 %v973_v60  ;;  %v1000_v57 = vand.u32 2147483648, %v973_v60  ;;  %vm994_vm7 = vweird.f32 %v973_v60  ;;  %v998_v63 = vand.u32 2147483647, %v973_v60 }
0x10ca   :  { %6205 = vpow2.f32 %v5707_v50 }
0x10cb   :  { %v1001_v59 = vor.u32 1.1754944e-38, %v1000_v57  ;;  %vm999_vm12 = vcmp.eq.f32.partialorder %v998_v63, 8.507059e+37 }
0x10cf   :  { %v6204_v61 = vpop.eup %6203 }
0x10d0   :  { %v990_v52 = vmul.f32 %v6204_v61, %v973_v60  ;;  %v6206_v1 = vpop.eup %6205  ;;  %vm995_vm5 = vweird.f32 %v6204_v61 }
0x10d1   :  { %v972_v55 = vadd.f32 1.0, %v6206_v1  ;;  %vm996_vm8 = vmor %vm994_vm7, %vm995_vm5  ;;  %vm8118_vm5 = vcmask 1046528  }
0x10d2   :  { %v991_v19 = vsub.f32 1.0, %v990_v52 }
0x10d3   :  { %6207 = vrcp.f32 %v972_v55  ;;  %v985_v13 = vand.u32 2147483648, %v972_v55  ;;  %vm979_vm14 = vweird.f32 %v972_v55  ;;  %v983_v14 = vand.u32 2147483647, %v972_v55 }
0x10d4   :  { %v992_v17 = vmul.f32 %v6204_v61, %v991_v19 }
0x10d5   :  { %v986_v3 = vor.u32 1.1754944e-38, %v985_v13  ;;  %vm984_vm2 = vcmp.eq.f32.partialorder %v983_v14, 8.507059e+37 }
0x10d6   :  { %v993_v53 = vadd.f32 %v6204_v61, %v992_v17 }
0x10d8   :  { %v997_v62 = vsel %vm996_vm8, %v6204_v61, %v993_v53 }
0x10d9   :  { %v1002_v0 = vsel %vm999_vm12, %v1001_v59, %v997_v62  ;;  %v6208_v4 = vpop.eup %6207 }
0x10da   :  { %v975_v7 = vmul.f32 %v6208_v4, %v972_v55  ;;  %vm980_vm13 = vweird.f32 %v6208_v4  ;;  %v1013_v18 = vmul.f32 %v1009_v16, %v1002_v0 }
0x10db   :  { %vm981_vm1 = vmor %vm979_vm14, %vm980_vm13 }
0x10dc   :  { %v976_v9 = vsub.f32 1.0, %v975_v7 }
0x10de   :  { %v977_v11 = vmul.f32 %v6208_v4, %v976_v9 }
0x10e0   :  { %v978_v12 = vadd.f32 %v6208_v4, %v977_v11 }
0x10e2   :  { %v982_v2 = vsel %vm981_vm1, %v6208_v4, %v978_v12 }
0x10e3   :  { %v987_v8 = vsel %vm984_vm2, %v986_v3, %v982_v2 }
0x10e4   :  { %v1012_v24 = vmul.f32 %v1008_v23, %v987_v8 }
0x1120   :  { %v1019_v56 = vpop.permute.xlu2 %1018 }
0x1121   :  { %v1023_v5 = vmul.f32 %v1019_v56, %v1002_v0 }
0x1123   :  { %1028 = vrot.lane.b32.xlu1 %v1023_v5, %s6890_s2 }
0x1137   :  { %v1017_v6 = vpop.permute.xlu1 %1016 }
0x1138   :  { %v1022_v15 = vmul.f32 %v1017_v6, %v987_v8 }
0x113a   :  { %1026 = vrot.lane.b32.xlu0 %v1022_v15, %s6890_s2 }
0x1195   :  { %v1029_v20 = vpop.permute.xlu1 %1028 }
0x1196   :  { %v1033_v21 = vadd.f32 %v1029_v20, %v1013_v18 }
0x1198   :  { %6209 = vtanh.f32 %v1033_v21 }
0x119e   :  { %v6210_v22 = vpop.eup %6209 }
0x119f   :  { %1040 = vrot.lane.b32.xlu0 %v6210_v22, %s6886_s17 }
0x11ac   :  { %v1027_v25 = vpop.permute.xlu0 %1026 }
0x11ad   :  { %v1032_v26 = vadd.f32 %v1027_v25, %v1012_v24 }
0x11af   :  { %6211 = vtanh.f32 %v1032_v26 }
0x11b5   :  { %v6212_v28 = vpop.eup %6211 }
0x11b6   :  { %1038 = vrot.lane.b32.xlu2 %v6212_v28, %s6886_s17 }
0x1210   :  { %v1039_v29 = vpop.permute.xlu2 %1038 }
0x1211   :  { %v1041_v30 = vpop.permute.xlu0 %1040  ;;  %v1044_v31 = vmul.f32 %v1039_v29, %v987_v8 }
0x1212   :  { %v1045_v32 = vmul.f32 %v1041_v30, %v1002_v0 }
0x1213   :  { %v1064_v33 = vsel %vm8118_vm5, %v7170_v41, %v1044_v31  ;;  %v1106_v41 = vld [vmem:[#allocation8 + $0x78] sm:$0xff] }
0x1214   :  { %v1065_v34 = vsel %vm8118_vm5, %v7174_v42, %v1045_v32  ;;  %1074 = vrot.lane.b32.xlu1 %v1064_v33, %s6890_s2  ;;  %v1105_v42 = vld [vmem:[#allocation8 + $0x70] sm:$0xff]  ;;  %1123 = vmatpush.msrb.mxu1 %v1106_v41 }
0x1215   :  { %1076 = vrot.lane.b32.xlu2 %v1065_v34, %s6890_s2  ;;  %1345 = vmatpush.msrb.mxu2 %v1106_v41 }
0x1216   :  { %1461 = vmatpush.msrb.mxu0 %v1106_v41  ;;  %1809 = vmatpush.msrb.mxu3 %v1106_v41 }
0x1217   :  { %1124 = vmatpush.msrb.mxu1 %v1105_v42  ;;  %1346 = vmatpush.msrb.mxu2 %v1105_v42 }
0x1218   :  { %1125 = vmatmul.f32.vlgmr.msrb.gmra.mxu1 %v6889_v10  ;;  %1462 = vmatpush.msrb.mxu0 %v1105_v42 }
0x1219   :  { %1229 = vmatpush.msra.mxu1 %v1108_v35  ;;  %1691 = vmatpush.msra.mxu2 %v1108_v35 }
0x121a   :  { %1810 = vmatpush.msrb.mxu3 %v1105_v42  ;;  %1923 = vmatpush.msra.mxu0 %v1108_v35 }
0x121b   :  { %1230 = vmatpush.msra.mxu1 %v1107_v36  ;;  %1692 = vmatpush.msra.mxu2 %v1107_v36 }
0x121c   :  { %1924 = vmatpush.msra.mxu0 %v1107_v36 }
0x121d   :  { %1231 = vmatpush.msra.mxu1 %v1106_v41  ;;  %1693 = vmatpush.msra.mxu2 %v1106_v41 }
0x121e   :  { %1925 = vmatpush.msra.mxu0 %v1106_v41 }
0x121f   :  { %1232 = vmatpush.msra.mxu1 %v1105_v42  ;;  %1694 = vmatpush.msra.mxu2 %v1105_v42 }
0x1220   :  { %1926 = vmatpush.msra.mxu0 %v1105_v42 }
0x1221   :  { %1575 = vmatpush.msrb.mxu1 %v1108_v35 }
0x1223   :  { %1576 = vmatpush.msrb.mxu1 %v1107_v36 }
0x1225   :  { %1577 = vmatpush.msrb.mxu1 %v1106_v41 }
0x1227   :  { %1578 = vmatpush.msrb.mxu1 %v1105_v42 }
0x126f   :  { %v1077_v48 = vpop.permute.xlu2 %1076 }
0x1286   :  { %v1075_v43 = vpop.permute.xlu1 %1074 }
0x1287   :  { %5709 = vmatmul.msk.f32.vlgmr.msra.gmra.mxu3 %vm132_vm11, %v1075_v43 }
0x128f   :  { %5710 = vmatmul.msk.f32.gmra.mxu3 %vm132_vm11, %v1077_v48 }
0x1295   :  { %v1126_v51 = vpop.f32.mrf.mxu1 }
0x1296   :  { %v1130_v54 = vrot.slane %v1126_v51, 1 }
0x130a   :  { %v1099_v39 = vpop.f32.mrf.mxu3 }
0x130b   :  { %v7198_v45 = vadd.f32 %v6075_v46, %v1099_v39 }
0x130d   :  { %v1133_v47 = vadd.f32 %v1126_v51, %v7198_v45 }
0x130f   :  { %6213 = vtanh.f32 %v1133_v47  ;;  %v5711_v50 = vmul.f32 -1.442695, %v1133_v47 }
0x1312   :  { %v1102_v58 = vpop.f32.mrf.mxu3 }
0x1313   :  { %v7201_v44 = vadd.f32 %v6075_v46, %v1102_v58 }
0x1315   :  { %v6214_v49 = vpop.eup %6213  ;;  %v1134_v60 = vadd.f32 %v1130_v54, %v7201_v44 }
0x1316   :  { %1179 = vrot.lane.b32.xlu1 %v6214_v49, %s6886_s17 }
0x1317   :  { %6215 = vtanh.f32 %v1134_v60  ;;  %v5712_v52 = vmul.f32 -1.442695, %v1134_v60 }
0x1318   :  { %6217 = vpow2.f32 %v5711_v50 }
0x1319   :  { %6219 = vpow2.f32 %v5712_v52 }
0x131d   :  { %v6216_v61 = vpop.eup %6215 }
0x131e   :  { %1181 = vrot.lane.b32.xlu0 %v6216_v61, %s6886_s17  ;;  %v6218_v19 = vpop.eup %6217 }
0x131f   :  { %v1141_v1 = vadd.f32 1.0, %v6218_v19  ;;  %v6220_v17 = vpop.eup %6219 }
0x1320   :  { %v1142_v55 = vadd.f32 1.0, %v6220_v17 }
0x1321   :  { %6221 = vrcp.f32 %v1141_v1  ;;  %v1154_v5 = vand.u32 2147483648, %v1141_v1  ;;  %vm1148_vm8 = vweird.f32 %v1141_v1  ;;  %v1152_v7 = vand.u32 2147483647, %v1141_v1 }
0x1322   :  { %6223 = vrcp.f32 %v1142_v55  ;;  %v1169_v6 = vand.u32 2147483648, %v1142_v55  ;;  %vm1163_vm1 = vweird.f32 %v1142_v55  ;;  %v1167_v8 = vand.u32 2147483647, %v1142_v55 }
0x1323   :  { %v1155_v12 = vor.u32 1.1754944e-38, %v1154_v5  ;;  %vm1153_vm13 = vcmp.eq.f32.partialorder %v1152_v7, 8.507059e+37 }
0x1324   :  { %v1170_v16 = vor.u32 1.1754944e-38, %v1169_v6  ;;  %vm1168_vm5 = vcmp.eq.f32.partialorder %v1167_v8, 8.507059e+37 }
0x1327   :  { %v6222_v53 = vpop.eup %6221 }
0x1328   :  { %v1144_v57 = vmul.f32 %v6222_v53, %v1141_v1  ;;  %v6224_v62 = vpop.eup %6223  ;;  %vm1149_vm7 = vweird.f32 %v6222_v53 }
0x1329   :  { %v1159_v56 = vmul.f32 %v6224_v62, %v1142_v55  ;;  %vm1150_vm12 = vmor %vm1148_vm8, %vm1149_vm7  ;;  %vm1164_vm14 = vweird.f32 %v6224_v62 }
0x132a   :  { %v1145_v63 = vsub.f32 1.0, %v1144_v57  ;;  %vm1165_vm2 = vmor %vm1163_vm1, %vm1164_vm14 }
0x132b   :  { %v1160_v4 = vsub.f32 1.0, %v1159_v56 }
0x132c   :  { %v1146_v59 = vmul.f32 %v6222_v53, %v1145_v63 }
0x132d   :  { %v1161_v11 = vmul.f32 %v6224_v62, %v1160_v4 }
0x132e   :  { %v1147_v0 = vadd.f32 %v6222_v53, %v1146_v59 }
0x132f   :  { %v1162_v3 = vadd.f32 %v6224_v62, %v1161_v11 }
0x1330   :  { %v1151_v9 = vsel %vm1150_vm12, %v6222_v53, %v1147_v0 }
0x1331   :  { %v1156_v14 = vsel %vm1153_vm13, %v1155_v12, %v1151_v9  ;;  %v1166_v15 = vsel %vm1165_vm2, %v6224_v62, %v1162_v3 }
0x1332   :  { %v1171_v20 = vsel %vm1168_vm5, %v1170_v16, %v1166_v15  ;;  %v1175_v26 = vmul.f32 0.0, %v1156_v14 }
0x1333   :  { %v1176_v22 = vmul.f32 0.0, %v1171_v20 }
0x1388   :  { %v1180_v13 = vpop.permute.xlu1 %1179 }
0x1389   :  { %v1185_v2 = vmul.f32 %v1180_v13, %v1156_v14 }
0x138b   :  { %1189 = vrot.lane.b32.xlu0 %v1185_v2, %s6890_s2 }
0x1390   :  { %v1182_v18 = vpop.permute.xlu0 %1181 }
0x1391   :  { %v1186_v21 = vmul.f32 %v1182_v18, %v1171_v20 }
0x1393   :  { %1191 = vrot.lane.b32.xlu2 %v1186_v21, %s6890_s2 }
0x13ed   :  { %v1192_v23 = vpop.permute.xlu2 %1191 }
0x13ee   :  { %v7208_v24 = vadd.f32 %v1192_v23, %v1176_v22 }
0x13f0   :  { %6225 = vtanh.f32 %v7208_v24 }
0x13f6   :  { %v6226_v25 = vpop.eup %6225 }
0x13f7   :  { %1203 = vrot.lane.b32.xlu1 %v6226_v25, %s6886_s17 }
0x13fd   :  { %v1190_v28 = vpop.permute.xlu0 %1189 }
0x13fe   :  { %v7212_v29 = vadd.f32 %v1190_v28, %v1175_v26 }
0x1400   :  { %6227 = vtanh.f32 %v7212_v29  ;;  %v1285_v15 = vrot.slane %v7212_v29, 7 }
0x1406   :  { %v6228_v30 = vpop.eup %6227 }
0x1407   :  { %1201 = vrot.lane.b32.xlu2 %v6228_v30, %s6886_s17 }
0x1461   :  { %v1202_v31 = vpop.permute.xlu2 %1201 }
0x1462   :  { %v7218_v34 = vmul.f32 %v1202_v31, %v1156_v14  ;;  %v1286_v14 = vrot.slane %v7208_v24, 7 }
0x1469   :  { %v1204_v32 = vpop.permute.xlu1 %1203 }
0x146a   :  { %v7216_v33 = vmul.f32 %v1204_v32, %v1171_v20 }
0x146c   :  { %v1211_v27 = vrot.slane %v7216_v33, 7 }
0x146e   :  { %v1212_v37 = vsel %vm239_vm10, %v1211_v27, %v7218_v34 }
0x146f   :  { %1213 = vrot.lane.b32.xlu0 %v1212_v37, %s6890_s2 }
0x14e1   :  { %v1214_v38 = vpop.permute.xlu0 %1213 }
0x14e2   :  { %5713 = vmatmul.msk.f32.vlgmr.msra.gmra.mxu1 %vm132_vm11, %v1214_v38 }
0x155f   :  { %v1234_v40 = vpop.f32.mrf.mxu1 }
0x1560   :  { %v1238_v35 = vrot.slane %v1234_v40, 7  ;;  %v1242_v36 = vadd.f32 %v1234_v40, %v7201_v44 }
0x1562   :  { %v1241_v41 = vadd.f32 %v1238_v35, %v7198_v45  ;;  %6229 = vtanh.f32 %v1242_v36  ;;  %v5715_v48 = vmul.f32 -1.442695, %v1242_v36 }
0x1564   :  { %6231 = vtanh.f32 %v1241_v41  ;;  %v5714_v54 = vmul.f32 -1.442695, %v1241_v41 }
0x1565   :  { %6233 = vpow2.f32 %v5715_v48 }
0x1568   :  { %v6230_v42 = vpop.eup %6229 }
0x1569   :  { %1295 = vrot.lane.b32.xlu2 %v6230_v42, %s6886_s17 }
0x156a   :  { %v6232_v43 = vpop.eup %6231 }
0x156b   :  { %1293 = vrot.lane.b32.xlu1 %v6232_v43, %s6886_s17  ;;  %v6234_v46 = vpop.eup %6233 }
0x156c   :  { %v1250_v39 = vadd.f32 1.0, %v6234_v46 }
0x156e   :  { %6235 = vrcp.f32 %v1250_v39  ;;  %v1277_v50 = vand.u32 2147483648, %v1250_v39  ;;  %vm1271_vm7 = vweird.f32 %v1250_v39  ;;  %v1275_v19 = vand.u32 2147483647, %v1250_v39 }
0x156f   :  { %6237 = vpow2.f32 %v5714_v54 }
0x1570   :  { %v1278_v17 = vor.u32 1.1754944e-38, %v1277_v50  ;;  %vm1276_vm12 = vcmp.eq.f32.partialorder %v1275_v19, 8.507059e+37 }
0x1574   :  { %v6236_v51 = vpop.eup %6235 }
0x1575   :  { %v1267_v47 = vmul.f32 %v6236_v51, %v1250_v39  ;;  %v6238_v60 = vpop.eup %6237  ;;  %vm1272_vm5 = vweird.f32 %v6236_v51 }
0x1576   :  { %v1249_v52 = vadd.f32 1.0, %v6238_v60  ;;  %vm1273_vm8 = vmor %vm1271_vm7, %vm1272_vm5 }
0x1577   :  { %v1268_v58 = vsub.f32 1.0, %v1267_v47 }
0x1578   :  { %6239 = vrcp.f32 %v1249_v52  ;;  %v1262_v4 = vand.u32 2147483648, %v1249_v52  ;;  %vm1256_vm14 = vweird.f32 %v1249_v52  ;;  %v1260_v5 = vand.u32 2147483647, %v1249_v52 }
0x1579   :  { %v1269_v49 = vmul.f32 %v6236_v51, %v1268_v58 }
0x157a   :  { %v1263_v9 = vor.u32 1.1754944e-38, %v1262_v4  ;;  %vm1261_vm2 = vcmp.eq.f32.partialorder %v1260_v5, 8.507059e+37 }
0x157b   :  { %v1270_v61 = vadd.f32 %v6236_v51, %v1269_v49 }
0x157d   :  { %v1274_v1 = vsel %vm1273_vm8, %v6236_v51, %v1270_v61 }
0x157e   :  { %v1279_v53 = vsel %vm1276_vm12, %v1278_v17, %v1274_v1  ;;  %v6240_v63 = vpop.eup %6239 }
0x157f   :  { %v1252_v62 = vmul.f32 %v6240_v63, %v1249_v52  ;;  %vm1257_vm13 = vweird.f32 %v6240_v63  ;;  %v1290_v2 = vmul.f32 %v1286_v14, %v1279_v53 }
0x1580   :  { %vm1258_vm1 = vmor %vm1256_vm14, %vm1257_vm13 }
0x1581   :  { %v1253_v59 = vsub.f32 1.0, %v1252_v62 }
0x1583   :  { %v1254_v56 = vmul.f32 %v6240_v63, %v1253_v59 }
0x1585   :  { %v1255_v0 = vadd.f32 %v6240_v63, %v1254_v56 }
0x1587   :  { %v1259_v7 = vsel %vm1258_vm1, %v6240_v63, %v1255_v0 }
0x1588   :  { %v1264_v12 = vsel %vm1261_vm2, %v1263_v9, %v1259_v7 }
0x1589   :  { %v1289_v16 = vmul.f32 %v1285_v15, %v1264_v12 }
0x15c3   :  { %v1296_v55 = vpop.permute.xlu2 %1295 }
0x15c4   :  { %v1300_v57 = vmul.f32 %v1296_v55, %v1279_v53 }
0x15c6   :  { %1305 = vrot.lane.b32.xlu1 %v1300_v57, %s6890_s2 }
0x15dd   :  { %v1294_v11 = vpop.permute.xlu1 %1293 }
0x15de   :  { %v1299_v13 = vmul.f32 %v1294_v11, %v1264_v12 }
0x15e0   :  { %1303 = vrot.lane.b32.xlu0 %v1299_v13, %s6890_s2 }
0x1638   :  { %v1306_v3 = vpop.permute.xlu1 %1305 }
0x1639   :  { %v7232_v6 = vadd.f32 %v1306_v3, %v1290_v2 }
0x163b   :  { %6241 = vtanh.f32 %v7232_v6  ;;  %v1401_v9 = vrot.slane %v7232_v6, 7 }
0x1641   :  { %v6242_v8 = vpop.eup %6241 }
0x1642   :  { %1317 = vrot.lane.b32.xlu0 %v6242_v8, %s6886_s17 }
0x1652   :  { %v1304_v18 = vpop.permute.xlu0 %1303 }
0x1653   :  { %v7237_v20 = vadd.f32 %v1304_v18, %v1289_v16 }
0x1655   :  { %6243 = vtanh.f32 %v7237_v20  ;;  %v1400_v7 = vrot.slane %v7237_v20, 7 }
0x165b   :  { %v6244_v21 = vpop.eup %6243 }
0x165c   :  { %1315 = vrot.lane.b32.xlu2 %v6244_v21, %s6886_s17 }
0x16b4   :  { %v1318_v22 = vpop.permute.xlu0 %1317 }
0x16b5   :  { %v7243_v25 = vmul.f32 %v1318_v22, %v1279_v53 }
0x16b6   :  { %v1316_v23 = vpop.permute.xlu2 %1315 }
0x16b7   :  { %v7241_v24 = vmul.f32 %v1316_v23, %v1264_v12  ;;  %v2019_v22 = vsel %vm101_vm0, %v7216_v33, %v7243_v25 }
0x16b9   :  { %v1325_v26 = vrot.slane %v7241_v24, 1  ;;  %v2018_v20 = vsel %vm101_vm0, %v7218_v34, %v7241_v24 }
0x16bb   :  { %v1326_v28 = vsel %vm239_vm10, %v7243_v25, %v1325_v26 }
0x16bc   :  { %1327 = vrot.lane.b32.xlu1 %v1326_v28, %s6890_s2 }
0x172e   :  { %v1328_v29 = vpop.permute.xlu1 %1327 }
0x172f   :  { %5716 = vmatmul.msk.f32.vlgmr.msrb.gmra.mxu2 %vm132_vm11, %v1328_v29 }
0x17b2   :  { %v1348_v30 = vpop.f32.mrf.mxu2 }
0x17b3   :  { %v1352_v31 = vrot.slane %v1348_v30, 6  ;;  %v1353_v32 = vrot.slane %v1348_v30, 7 }
0x17b5   :  { %v1356_v27 = vadd.f32 %v1352_v31, %v7198_v45  ;;  %v1357_v37 = vadd.f32 %v1353_v32, %v7201_v44 }
0x17b7   :  { %6245 = vtanh.f32 %v1356_v27  ;;  %v5717_v35 = vmul.f32 -1.442695, %v1356_v27  ;;  %v5718_v43 = vmul.f32 -1.442695, %v1357_v37 }
0x17b8   :  { %6247 = vtanh.f32 %v1357_v37 }
0x17b9   :  { %6249 = vpow2.f32 %v5717_v35 }
0x17bd   :  { %v6246_v38 = vpop.eup %6245 }
0x17be   :  { %v6248_v40 = vpop.eup %6247  ;;  %1408 = vrot.lane.b32.xlu2 %v6246_v38, %s6886_s17 }
0x17bf   :  { %1410 = vrot.lane.b32.xlu0 %v6248_v40, %s6886_s17  ;;  %v6250_v36 = vpop.eup %6249 }
0x17c0   :  { %v1364_v41 = vadd.f32 1.0, %v6250_v36 }
0x17c2   :  { %6251 = vrcp.f32 %v1364_v41  ;;  %v1377_v58 = vand.u32 2147483648, %v1364_v41  ;;  %vm1371_vm7 = vweird.f32 %v1364_v41  ;;  %v1375_v49 = vand.u32 2147483647, %v1364_v41 }
0x17c3   :  { %6253 = vpow2.f32 %v5718_v43 }
0x17c4   :  { %v1378_v61 = vor.u32 1.1754944e-38, %v1377_v58  ;;  %vm1376_vm12 = vcmp.eq.f32.partialorder %v1375_v49, 8.507059e+37 }
0x17c8   :  { %v6252_v42 = vpop.eup %6251 }
0x17c9   :  { %v1367_v48 = vmul.f32 %v6252_v42, %v1364_v41  ;;  %v6254_v51 = vpop.eup %6253  ;;  %vm1372_vm5 = vweird.f32 %v6252_v42 }
0x17ca   :  { %v1365_v47 = vadd.f32 1.0, %v6254_v51  ;;  %vm1373_vm8 = vmor %vm1371_vm7, %vm1372_vm5 }
0x17cb   :  { %v1368_v46 = vsub.f32 1.0, %v1367_v48 }
0x17cc   :  { %6255 = vrcp.f32 %v1365_v47  ;;  %v1392_v63 = vand.u32 2147483648, %v1365_v47  ;;  %vm1386_vm14 = vweird.f32 %v1365_v47  ;;  %v1390_v62 = vand.u32 2147483647, %v1365_v47 }
0x17cd   :  { %v1369_v39 = vmul.f32 %v6252_v42, %v1368_v46 }
0x17ce   :  { %v1393_v56 = vor.u32 1.1754944e-38, %v1392_v63  ;;  %vm1391_vm2 = vcmp.eq.f32.partialorder %v1390_v62, 8.507059e+37 }
0x17cf   :  { %v1370_v54 = vadd.f32 %v6252_v42, %v1369_v39 }
0x17d1   :  { %v1374_v60 = vsel %vm1373_vm8, %v6252_v42, %v1370_v54 }
0x17d2   :  { %v1379_v52 = vsel %vm1376_vm12, %v1378_v61, %v1374_v60  ;;  %v6256_v1 = vpop.eup %6255 }
0x17d3   :  { %v1382_v17 = vmul.f32 %v6256_v1, %v1365_v47  ;;  %vm1387_vm13 = vweird.f32 %v6256_v1  ;;  %v1404_v11 = vmul.f32 %v1400_v7, %v1379_v52 }
0x17d4   :  { %vm1388_vm1 = vmor %vm1386_vm14, %vm1387_vm13 }
0x17d5   :  { %v1383_v55 = vsub.f32 1.0, %v1382_v17 }
0x17d7   :  { %v1384_v53 = vmul.f32 %v6256_v1, %v1383_v55 }
0x17d9   :  { %v1385_v57 = vadd.f32 %v6256_v1, %v1384_v53 }
0x17db   :  { %v1389_v59 = vsel %vm1388_vm1, %v6256_v1, %v1385_v57 }
0x17dc   :  { %v1394_v4 = vsel %vm1391_vm2, %v1393_v56, %v1389_v59 }
0x17dd   :  { %v1405_v12 = vmul.f32 %v1401_v9, %v1394_v4 }
0x1818   :  { %v1409_v50 = vpop.permute.xlu2 %1408 }
0x1819   :  { %v1414_v19 = vmul.f32 %v1409_v50, %v1379_v52 }
0x181b   :  { %1418 = vrot.lane.b32.xlu1 %v1414_v19, %s6890_s2 }
0x1831   :  { %v1411_v0 = vpop.permute.xlu0 %1410 }
0x1832   :  { %v1415_v5 = vmul.f32 %v1411_v0, %v1394_v4 }
0x1834   :  { %1420 = vrot.lane.b32.xlu2 %v1415_v5, %s6890_s2 }
0x188d   :  { %v1419_v13 = vpop.permute.xlu1 %1418 }
0x188e   :  { %v1421_v14 = vpop.permute.xlu2 %1420  ;;  %v7258_v2 = vadd.f32 %v1419_v13, %v1404_v11 }
0x188f   :  { %v7260_v3 = vadd.f32 %v1421_v14, %v1405_v12 }
0x1890   :  { %6257 = vtanh.f32 %v7258_v2 }
0x1891   :  { %6259 = vtanh.f32 %v7260_v3  ;;  %v1517_v12 = vrot.slane %v7260_v3, 7 }
0x1896   :  { %v6258_v8 = vpop.eup %6257 }
0x1897   :  { %v6260_v15 = vpop.eup %6259  ;;  %1430 = vrot.lane.b32.xlu0 %v6258_v8, %s6886_s17 }
0x1898   :  { %1432 = vrot.lane.b32.xlu1 %v6260_v15, %s6886_s17 }
0x1909   :  { %v1431_v16 = vpop.permute.xlu0 %1430 }
0x190a   :  { %v1433_v6 = vpop.permute.xlu1 %1432  ;;  %v1436_v18 = vmul.f32 %v1431_v16, %v1379_v52 }
0x190b   :  { %v1437_v21 = vmul.f32 %v1433_v6, %v1394_v4  ;;  %v1516_v4 = vrot.slane %v7258_v2, 7 }
0x190c   :  { %v1440_v23 = vrot.slane %v1436_v18, 2  ;;  %v7273_v26 = vsel %vm1048_vm15, %v2018_v20, %v1436_v18 }
0x190d   :  { %v1441_v28 = vrot.slane %v1437_v21, 1  ;;  %v7276_v29 = vsel %vm1048_vm15, %v2019_v22, %v1437_v21 }
0x190f   :  { %v1442_v30 = vsel %vm239_vm10, %v1441_v28, %v1440_v23 }
0x1910   :  { %1443 = vrot.lane.b32.xlu2 %v1442_v30, %s6890_s2 }
0x196a   :  { %v1444_v31 = vpop.permute.xlu2 %1443 }
0x196b   :  { %5719 = vmatmul.msk.f32.vlgmr.msrb.gmra.mxu0 %vm132_vm11, %v1444_v31 }
0x19e8   :  { %v1464_v34 = vpop.f32.mrf.mxu0 }
0x19e9   :  { %v1468_v24 = vrot.slane %v1464_v34, 5  ;;  %v1469_v32 = vrot.slane %v1464_v34, 6 }
0x19eb   :  { %v1472_v33 = vadd.f32 %v1468_v24, %v7198_v45  ;;  %v1473_v25 = vadd.f32 %v1469_v32, %v7201_v44 }
0x19ed   :  { %6261 = vtanh.f32 %v1472_v33  ;;  %v5720_v38 = vmul.f32 -1.442695, %v1472_v33  ;;  %v5721_v40 = vmul.f32 -1.442695, %v1473_v25 }
0x19ee   :  { %6263 = vtanh.f32 %v1473_v25 }
0x19ef   :  { %6265 = vpow2.f32 %v5720_v38 }
0x19f0   :  { %6267 = vpow2.f32 %v5721_v40 }
0x19f3   :  { %v6262_v27 = vpop.eup %6261 }
0x19f4   :  { %v6264_v37 = vpop.eup %6263  ;;  %1524 = vrot.lane.b32.xlu0 %v6262_v27, %s6886_s17 }
0x19f5   :  { %1526 = vrot.lane.b32.xlu1 %v6264_v37, %s6886_s17  ;;  %v6266_v35 = vpop.eup %6265 }
0x19f6   :  { %v6268_v36 = vpop.eup %6267  ;;  %v1480_v41 = vadd.f32 1.0, %v6266_v35 }
0x19f7   :  { %v1481_v42 = vadd.f32 1.0, %v6268_v36 }
0x19f8   :  { %6269 = vrcp.f32 %v1480_v41  ;;  %v1493_v61 = vand.u32 2147483648, %v1480_v41  ;;  %vm1487_vm8 = vweird.f32 %v1480_v41  ;;  %v1491_v52 = vand.u32 2147483647, %v1480_v41 }
0x19f9   :  { %6271 = vrcp.f32 %v1481_v42  ;;  %v1508_v50 = vand.u32 2147483648, %v1481_v42  ;;  %vm1502_vm12 = vweird.f32 %v1481_v42  ;;  %v1506_v19 = vand.u32 2147483647, %v1481_v42 }
0x19fa   :  { %v1494_v55 = vor.u32 1.1754944e-38, %v1493_v61  ;;  %vm1492_vm1 = vcmp.eq.f32.partialorder %v1491_v52, 8.507059e+37 }
0x19fb   :  { %v1509_v53 = vor.u32 1.1754944e-38, %v1508_v50  ;;  %vm1507_vm2 = vcmp.eq.f32.partialorder %v1506_v19, 8.507059e+37 }
0x19fe   :  { %v6270_v43 = vpop.eup %6269 }
0x19ff   :  { %v6272_v48 = vpop.eup %6271  ;;  %v1483_v46 = vmul.f32 %v6270_v43, %v1480_v41  ;;  %vm1488_vm5 = vweird.f32 %v6270_v43 }
0x1a00   :  { %v1498_v39 = vmul.f32 %v6272_v48, %v1481_v42  ;;  %vm1503_vm7 = vweird.f32 %v6272_v48  ;;  %vm1489_vm13 = vmor %vm1487_vm8, %vm1488_vm5 }
0x1a01   :  { %v1484_v51 = vsub.f32 1.0, %v1483_v46  ;;  %vm1504_vm14 = vmor %vm1502_vm12, %vm1503_vm7 }
0x1a02   :  { %v1499_v47 = vsub.f32 1.0, %v1498_v39 }
0x1a03   :  { %v1485_v54 = vmul.f32 %v6270_v43, %v1484_v51 }
0x1a04   :  { %v1500_v58 = vmul.f32 %v6272_v48, %v1499_v47 }
0x1a05   :  { %v1486_v49 = vadd.f32 %v6270_v43, %v1485_v54 }
0x1a06   :  { %v1501_v60 = vadd.f32 %v6272_v48, %v1500_v58 }
0x1a07   :  { %v1490_v1 = vsel %vm1489_vm13, %v6270_v43, %v1486_v49 }
0x1a08   :  { %v1505_v17 = vsel %vm1504_vm14, %v6272_v48, %v1501_v60  ;;  %v1495_v63 = vsel %vm1492_vm1, %v1494_v55, %v1490_v1 }
0x1a09   :  { %v1510_v59 = vsel %vm1507_vm2, %v1509_v53, %v1505_v17  ;;  %v1520_v5 = vmul.f32 %v1516_v4, %v1495_v63 }
0x1a0a   :  { %v1521_v13 = vmul.f32 %v1517_v12, %v1510_v59 }
0x1a66   :  { %v1525_v57 = vpop.permute.xlu0 %1524 }
0x1a67   :  { %v1527_v62 = vpop.permute.xlu1 %1526  ;;  %v1530_v56 = vmul.f32 %v1525_v57, %v1495_v63 }
0x1a68   :  { %v1531_v0 = vmul.f32 %v1527_v62, %v1510_v59 }
0x1a69   :  { %1534 = vrot.lane.b32.xlu2 %v1530_v56, %s6890_s2 }
0x1a6a   :  { %1536 = vrot.lane.b32.xlu0 %v1531_v0, %s6890_s2 }
0x1ac3   :  { %v1535_v7 = vpop.permute.xlu2 %1534 }
0x1ac4   :  { %v7288_v9 = vadd.f32 %v1535_v7, %v1520_v5 }
0x1ac6   :  { %6273 = vtanh.f32 %v7288_v9  ;;  %v1632_v5 = vrot.slane %v7288_v9, 7 }
0x1acc   :  { %v6274_v11 = vpop.eup %6273 }
0x1acd   :  { %1546 = vrot.lane.b32.xlu1 %v6274_v11, %s6886_s17 }
0x1adc   :  { %v1537_v14 = vpop.permute.xlu0 %1536 }
0x1add   :  { %v7293_v8 = vadd.f32 %v1537_v14, %v1521_v13 }
0x1adf   :  { %6275 = vtanh.f32 %v7293_v8  ;;  %v1633_v62 = vrot.slane %v7293_v8, 7 }
0x1ae5   :  { %v6276_v15 = vpop.eup %6275 }
0x1ae6   :  { %1548 = vrot.lane.b32.xlu2 %v6276_v15, %s6886_s17 }
0x1b3f   :  { %v1547_v2 = vpop.permute.xlu1 %1546 }
0x1b40   :  { %v1549_v16 = vpop.permute.xlu2 %1548  ;;  %v1552_v6 = vmul.f32 %v1547_v2, %v1495_v63 }
0x1b41   :  { %v1553_v18 = vmul.f32 %v1549_v16, %v1510_v59 }
0x1b42   :  { %v1556_v20 = vrot.slane %v1552_v6, 3  ;;  %v7299_v21 = vsel %vm1051_vm9, %v7273_v26, %v1552_v6 }
0x1b43   :  { %v1557_v22 = vrot.slane %v1553_v18, 2  ;;  %v7303_v3 = vsel %vm1051_vm9, %v7276_v29, %v1553_v18 }
0x1b45   :  { %v1558_v23 = vsel %vm239_vm10, %v1557_v22, %v1556_v20 }
0x1b46   :  { %1559 = vrot.lane.b32.xlu0 %v1558_v23, %s6890_s2 }
0x1bb8   :  { %v1560_v28 = vpop.permute.xlu0 %1559 }
0x1bb9   :  { %5722 = vmatmul.msk.f32.vlgmr.msrb.gmra.mxu1 %vm132_vm11, %v1560_v28 }
0x1c36   :  { %v1580_v30 = vpop.f32.mrf.mxu1 }
0x1c37   :  { %v1584_v31 = vrot.slane %v1580_v30, 4  ;;  %v1585_v34 = vrot.slane %v1580_v30, 5 }
0x1c39   :  { %v1588_v24 = vadd.f32 %v1584_v31, %v7198_v45  ;;  %v1589_v26 = vadd.f32 %v1585_v34, %v7201_v44 }
0x1c3b   :  { %6277 = vtanh.f32 %v1588_v24  ;;  %v5724_v29 = vmul.f32 -1.442695, %v1589_v26  ;;  %v5723_v38 = vmul.f32 -1.442695, %v1588_v24 }
0x1c3c   :  { %6279 = vtanh.f32 %v1589_v26 }
0x1c3d   :  { %6281 = vpow2.f32 %v5724_v29 }
0x1c41   :  { %v6278_v32 = vpop.eup %6277 }
0x1c42   :  { %v6280_v33 = vpop.eup %6279  ;;  %1640 = vrot.lane.b32.xlu1 %v6278_v32, %s6886_s17 }
0x1c43   :  { %1642 = vrot.lane.b32.xlu2 %v6280_v33, %s6886_s17  ;;  %v6282_v25 = vpop.eup %6281 }
0x1c44   :  { %v1597_v27 = vadd.f32 1.0, %v6282_v25 }
0x1c46   :  { %6283 = vrcp.f32 %v1597_v27  ;;  %v1624_v48 = vand.u32 2147483648, %v1597_v27  ;;  %vm1618_vm7 = vweird.f32 %v1597_v27  ;;  %v1622_v46 = vand.u32 2147483647, %v1597_v27 }
0x1c47   :  { %6285 = vpow2.f32 %v5723_v38 }
0x1c48   :  { %v1625_v51 = vor.u32 1.1754944e-38, %v1624_v48  ;;  %vm1623_vm12 = vcmp.eq.f32.partialorder %v1622_v46, 8.507059e+37 }
0x1c4c   :  { %v6284_v37 = vpop.eup %6283 }
0x1c4d   :  { %v1614_v40 = vmul.f32 %v6284_v37, %v1597_v27  ;;  %v6286_v36 = vpop.eup %6285  ;;  %vm1619_vm5 = vweird.f32 %v6284_v37 }
0x1c4e   :  { %v1596_v42 = vadd.f32 1.0, %v6286_v36  ;;  %vm1620_vm8 = vmor %vm1618_vm7, %vm1619_vm5 }
0x1c4f   :  { %v1615_v35 = vsub.f32 1.0, %v1614_v40 }
0x1c50   :  { %6287 = vrcp.f32 %v1596_v42  ;;  %v1609_v19 = vand.u32 2147483648, %v1596_v42  ;;  %vm1603_vm14 = vweird.f32 %v1596_v42  ;;  %v1607_v1 = vand.u32 2147483647, %v1596_v42 }
0x1c51   :  { %v1616_v41 = vmul.f32 %v6284_v37, %v1615_v35 }
0x1c52   :  { %v1610_v55 = vor.u32 1.1754944e-38, %v1609_v19  ;;  %vm1608_vm2 = vcmp.eq.f32.partialorder %v1607_v1, 8.507059e+37 }
0x1c53   :  { %v1617_v43 = vadd.f32 %v6284_v37, %v1616_v41 }
0x1c55   :  { %v1621_v39 = vsel %vm1620_vm8, %v6284_v37, %v1617_v43 }
0x1c56   :  { %v1626_v54 = vsel %vm1623_vm12, %v1625_v51, %v1621_v39  ;;  %v6288_v58 = vpop.eup %6287 }
0x1c57   :  { %v1599_v60 = vmul.f32 %v6288_v58, %v1596_v42  ;;  %vm1604_vm13 = vweird.f32 %v6288_v58  ;;  %v1637_v59 = vmul.f32 %v1633_v62, %v1626_v54 }
0x1c58   :  { %vm1605_vm1 = vmor %vm1603_vm14, %vm1604_vm13 }
0x1c59   :  { %v1600_v61 = vsub.f32 1.0, %v1599_v60 }
0x1c5b   :  { %v1601_v50 = vmul.f32 %v6288_v58, %v1600_v61 }
0x1c5d   :  { %v1602_v52 = vadd.f32 %v6288_v58, %v1601_v50 }
0x1c5f   :  { %v1606_v17 = vsel %vm1605_vm1, %v6288_v58, %v1602_v52 }
0x1c60   :  { %v1611_v57 = vsel %vm1608_vm2, %v1610_v55, %v1606_v17 }
0x1c61   :  { %v1636_v7 = vmul.f32 %v1632_v5, %v1611_v57 }
0x1c9d   :  { %v1643_v47 = vpop.permute.xlu2 %1642 }
0x1c9e   :  { %v1647_v49 = vmul.f32 %v1643_v47, %v1626_v54 }
0x1ca0   :  { %1652 = vrot.lane.b32.xlu1 %v1647_v49, %s6890_s2 }
0x1cb4   :  { %v1641_v53 = vpop.permute.xlu1 %1640 }
0x1cb5   :  { %v1646_v63 = vmul.f32 %v1641_v53, %v1611_v57 }
0x1cb7   :  { %1650 = vrot.lane.b32.xlu0 %v1646_v63, %s6890_s2 }
0x1d12   :  { %v1653_v56 = vpop.permute.xlu1 %1652 }
0x1d13   :  { %v7315_v0 = vadd.f32 %v1653_v56, %v1637_v59 }
0x1d15   :  { %6289 = vtanh.f32 %v7315_v0  ;;  %v1749_v53 = vrot.slane %v7315_v0, 7 }
0x1d1b   :  { %v6290_v4 = vpop.eup %6289 }
0x1d1c   :  { %1664 = vrot.lane.b32.xlu0 %v6290_v4, %s6886_s17 }
0x1d29   :  { %v1651_v11 = vpop.permute.xlu0 %1650 }
0x1d2a   :  { %v7320_v12 = vadd.f32 %v1651_v11, %v1636_v7 }
0x1d2c   :  { %6291 = vtanh.f32 %v7320_v12  ;;  %v1748_v55 = vrot.slane %v7320_v12, 7 }
0x1d32   :  { %v6292_v13 = vpop.eup %6291 }
0x1d33   :  { %1662 = vrot.lane.b32.xlu2 %v6292_v13, %s6886_s17 }
0x1d8d   :  { %v1663_v14 = vpop.permute.xlu2 %1662 }
0x1d8e   :  { %v1665_v8 = vpop.permute.xlu0 %1664  ;;  %v1668_v15 = vmul.f32 %v1663_v14, %v1611_v57 }
0x1d8f   :  { %v1669_v2 = vmul.f32 %v1665_v8, %v1626_v54 }
0x1d90   :  { %v1672_v16 = vrot.slane %v1668_v15, 4  ;;  %v7326_v6 = vsel %vm1054_vm6, %v7299_v21, %v1668_v15 }
0x1d91   :  { %v1673_v18 = vrot.slane %v1669_v2, 3  ;;  %v7330_v9 = vsel %vm1054_vm6, %v7303_v3, %v1669_v2 }
0x1d93   :  { %v1674_v20 = vsel %vm239_vm10, %v1673_v18, %v1672_v16 }
0x1d94   :  { %1675 = vrot.lane.b32.xlu1 %v1674_v20, %s6890_s2 }
0x1e06   :  { %v1676_v22 = vpop.permute.xlu1 %1675 }
0x1e07   :  { %5725 = vmatmul.msk.f32.vlgmr.msra.gmra.mxu2 %vm132_vm11, %v1676_v22 }
0x1e8a   :  { %v1696_v23 = vpop.f32.mrf.mxu2 }
0x1e8b   :  { %v1700_v28 = vrot.slane %v1696_v23, 3  ;;  %v1701_v30 = vrot.slane %v1696_v23, 4 }
0x1e8d   :  { %v1704_v31 = vadd.f32 %v1700_v28, %v7198_v45  ;;  %v1705_v21 = vadd.f32 %v1701_v30, %v7201_v44 }
0x1e8f   :  { %6293 = vtanh.f32 %v1704_v31  ;;  %v5726_v3 = vmul.f32 -1.442695, %v1704_v31  ;;  %v5727_v29 = vmul.f32 -1.442695, %v1705_v21 }
0x1e90   :  { %6295 = vtanh.f32 %v1705_v21 }
0x1e91   :  { %6297 = vpow2.f32 %v5726_v3 }
0x1e95   :  { %v6294_v34 = vpop.eup %6293 }
0x1e96   :  { %v6296_v24 = vpop.eup %6295  ;;  %1756 = vrot.lane.b32.xlu2 %v6294_v34, %s6886_s17 }
0x1e97   :  { %1758 = vrot.lane.b32.xlu0 %v6296_v24, %s6886_s17  ;;  %v6298_v26 = vpop.eup %6297 }
0x1e98   :  { %v1712_v32 = vadd.f32 1.0, %v6298_v26 }
0x1e9a   :  { %6299 = vrcp.f32 %v1712_v32  ;;  %v1725_v36 = vand.u32 2147483648, %v1712_v32  ;;  %vm1719_vm7 = vweird.f32 %v1712_v32  ;;  %v1723_v41 = vand.u32 2147483647, %v1712_v32 }
0x1e9b   :  { %6301 = vpow2.f32 %v5727_v29 }
0x1e9c   :  { %v1726_v43 = vor.u32 1.1754944e-38, %v1725_v36  ;;  %vm1724_vm12 = vcmp.eq.f32.partialorder %v1723_v41, 8.507059e+37 }
0x1ea0   :  { %v6300_v33 = vpop.eup %6299 }
0x1ea1   :  { %v1715_v25 = vmul.f32 %v6300_v33, %v1712_v32  ;;  %v6302_v38 = vpop.eup %6301  ;;  %vm1720_vm5 = vweird.f32 %v6300_v33 }
0x1ea2   :  { %v1713_v40 = vadd.f32 1.0, %v6302_v38  ;;  %vm1721_vm8 = vmor %vm1719_vm7, %vm1720_vm5 }
0x1ea3   :  { %v1716_v27 = vsub.f32 1.0, %v1715_v25 }
0x1ea4   :  { %6303 = vrcp.f32 %v1713_v40  ;;  %v1740_v60 = vand.u32 2147483648, %v1713_v40  ;;  %vm1734_vm14 = vweird.f32 %v1713_v40  ;;  %v1738_v61 = vand.u32 2147483647, %v1713_v40 }
0x1ea5   :  { %v1717_v37 = vmul.f32 %v6300_v33, %v1716_v27 }
0x1ea6   :  { %v1741_v52 = vor.u32 1.1754944e-38, %v1740_v60  ;;  %vm1739_vm2 = vcmp.eq.f32.partialorder %v1738_v61, 8.507059e+37 }
0x1ea7   :  { %v1718_v35 = vadd.f32 %v6300_v33, %v1717_v37 }
0x1ea9   :  { %v1722_v42 = vsel %vm1721_vm8, %v6300_v33, %v1718_v35 }
0x1eaa   :  { %v1727_v46 = vsel %vm1724_vm12, %v1726_v43, %v1722_v42  ;;  %v6304_v51 = vpop.eup %6303 }
0x1eab   :  { %v1730_v47 = vmul.f32 %v6304_v51, %v1713_v40  ;;  %vm1735_vm13 = vweird.f32 %v6304_v51  ;;  %v1752_v57 = vmul.f32 %v1748_v55, %v1727_v46 }
0x1eac   :  { %vm1736_vm1 = vmor %vm1734_vm14, %vm1735_vm13 }
0x1ead   :  { %v1731_v54 = vsub.f32 1.0, %v1730_v47 }
0x1eaf   :  { %v1732_v58 = vmul.f32 %v6304_v51, %v1731_v54 }
0x1eb1   :  { %v1733_v49 = vadd.f32 %v6304_v51, %v1732_v58 }
0x1eb3   :  { %v1737_v50 = vsel %vm1736_vm1, %v6304_v51, %v1733_v49 }
0x1eb4   :  { %v1742_v1 = vsel %vm1739_vm2, %v1741_v52, %v1737_v50 }
0x1eb5   :  { %v1753_v63 = vmul.f32 %v1749_v53, %v1742_v1 }
0x1ef0   :  { %v1757_v48 = vpop.permute.xlu2 %1756 }
0x1ef1   :  { %v1762_v39 = vmul.f32 %v1757_v48, %v1727_v46 }
0x1ef3   :  { %1766 = vrot.lane.b32.xlu1 %v1762_v39, %s6890_s2 }
0x1f09   :  { %v1759_v19 = vpop.permute.xlu0 %1758 }
0x1f0a   :  { %v1763_v17 = vmul.f32 %v1759_v19, %v1742_v1 }
0x1f0c   :  { %1768 = vrot.lane.b32.xlu2 %v1763_v17, %s6890_s2 }
0x1f65   :  { %v1767_v62 = vpop.permute.xlu1 %1766 }
0x1f66   :  { %v1769_v59 = vpop.permute.xlu2 %1768  ;;  %v7343_v56 = vadd.f32 %v1767_v62, %v1752_v57 }
0x1f67   :  { %v7345_v4 = vadd.f32 %v1769_v59, %v1753_v63 }
0x1f68   :  { %6305 = vtanh.f32 %v7343_v56  ;;  %v1864_v52 = vrot.slane %v7343_v56, 7 }
0x1f69   :  { %6307 = vtanh.f32 %v7345_v4  ;;  %v1865_v53 = vrot.slane %v7345_v4, 7 }
0x1f6e   :  { %v6306_v5 = vpop.eup %6305 }
0x1f6f   :  { %v6308_v7 = vpop.eup %6307  ;;  %1778 = vrot.lane.b32.xlu0 %v6306_v5, %s6886_s17 }
0x1f70   :  { %1780 = vrot.lane.b32.xlu1 %v6308_v7, %s6886_s17 }
0x1fe1   :  { %v1779_v11 = vpop.permute.xlu0 %1778 }
0x1fe2   :  { %v1781_v0 = vpop.permute.xlu1 %1780  ;;  %v1784_v12 = vmul.f32 %v1779_v11, %v1727_v46 }
0x1fe3   :  { %v1785_v13 = vmul.f32 %v1781_v0, %v1742_v1 }
0x1fe4   :  { %v1788_v14 = vrot.slane %v1784_v12, 5  ;;  %v7353_v8 = vsel %vm1057_vm4, %v7326_v6, %v1784_v12 }
0x1fe5   :  { %v1789_v15 = vrot.slane %v1785_v13, 4  ;;  %v7357_v2 = vsel %vm1057_vm4, %v7330_v9, %v1785_v13 }
0x1fe7   :  { %v1790_v16 = vsel %vm239_vm10, %v1789_v15, %v1788_v14 }
0x1fe8   :  { %1791 = vrot.lane.b32.xlu2 %v1790_v16, %s6890_s2 }
0x2042   :  { %v1792_v18 = vpop.permute.xlu2 %1791 }
0x2043   :  { %5728 = vmatmul.msk.f32.vlgmr.msrb.gmra.mxu3 %vm132_vm11, %v1792_v18 }
0x20c6   :  { %v1812_v20 = vpop.f32.mrf.mxu3 }
0x20c7   :  { %v1816_v22 = vrot.slane %v1812_v20, 2  ;;  %v1817_v23 = vrot.slane %v1812_v20, 3 }
0x20c9   :  { %v1820_v28 = vadd.f32 %v1816_v22, %v7198_v45  ;;  %v1821_v6 = vadd.f32 %v1817_v23, %v7201_v44 }
0x20cb   :  { %6309 = vtanh.f32 %v1820_v28  ;;  %v5729_v9 = vmul.f32 -1.442695, %v1820_v28  ;;  %v5730_v21 = vmul.f32 -1.442695, %v1821_v6 }
0x20cc   :  { %6311 = vtanh.f32 %v1821_v6 }
0x20cd   :  { %6313 = vpow2.f32 %v5729_v9 }
0x20ce   :  { %6315 = vpow2.f32 %v5730_v21 }
0x20d1   :  { %v6310_v30 = vpop.eup %6309 }
0x20d2   :  { %v6312_v31 = vpop.eup %6311  ;;  %1872 = vrot.lane.b32.xlu0 %v6310_v30, %s6886_s17 }
0x20d3   :  { %1874 = vrot.lane.b32.xlu1 %v6312_v31, %s6886_s17  ;;  %v6314_v34 = vpop.eup %6313 }
0x20d4   :  { %v6316_v24 = vpop.eup %6315  ;;  %v1828_v3 = vadd.f32 1.0, %v6314_v34 }
0x20d5   :  { %v1829_v26 = vadd.f32 1.0, %v6316_v24 }
0x20d6   :  { %6317 = vrcp.f32 %v1828_v3  ;;  %v1841_v41 = vand.u32 2147483648, %v1828_v3  ;;  %vm1835_vm8 = vweird.f32 %v1828_v3  ;;  %v1839_v43 = vand.u32 2147483647, %v1828_v3 }
0x20d7   :  { %6319 = vrcp.f32 %v1829_v26  ;;  %v1856_v42 = vand.u32 2147483648, %v1829_v26  ;;  %vm1850_vm12 = vweird.f32 %v1829_v26  ;;  %v1854_v48 = vand.u32 2147483647, %v1829_v26 }
0x20d8   :  { %v1842_v51 = vor.u32 1.1754944e-38, %v1841_v41  ;;  %vm1840_vm1 = vcmp.eq.f32.partialorder %v1839_v43, 8.507059e+37 }
0x20d9   :  { %v1857_v47 = vor.u32 1.1754944e-38, %v1856_v42  ;;  %vm1855_vm2 = vcmp.eq.f32.partialorder %v1854_v48, 8.507059e+37 }
0x20dc   :  { %v6318_v32 = vpop.eup %6317 }
0x20dd   :  { %v6320_v33 = vpop.eup %6319  ;;  %v1831_v29 = vmul.f32 %v6318_v32, %v1828_v3  ;;  %vm1836_vm5 = vweird.f32 %v6318_v32 }
0x20de   :  { %v1846_v25 = vmul.f32 %v6320_v33, %v1829_v26  ;;  %vm1851_vm7 = vweird.f32 %v6320_v33  ;;  %vm1837_vm13 = vmor %vm1835_vm8, %vm1836_vm5 }
0x20df   :  { %v1832_v27 = vsub.f32 1.0, %v1831_v29  ;;  %vm1852_vm14 = vmor %vm1850_vm12, %vm1851_vm7 }
0x20e0   :  { %v1847_v37 = vsub.f32 1.0, %v1846_v25 }
0x20e1   :  { %v1833_v38 = vmul.f32 %v6318_v32, %v1832_v27 }
0x20e2   :  { %v1848_v40 = vmul.f32 %v6320_v33, %v1847_v37 }
0x20e3   :  { %v1834_v35 = vadd.f32 %v6318_v32, %v1833_v38 }
0x20e4   :  { %v1849_v36 = vadd.f32 %v6320_v33, %v1848_v40 }
0x20e5   :  { %v1838_v46 = vsel %vm1837_vm13, %v6318_v32, %v1834_v35 }
0x20e6   :  { %v1853_v39 = vsel %vm1852_vm14, %v6320_v33, %v1849_v36  ;;  %v1843_v58 = vsel %vm1840_vm1, %v1842_v51, %v1838_v46 }
0x20e7   :  { %v1858_v60 = vsel %vm1855_vm2, %v1857_v47, %v1853_v39  ;;  %v1868_v19 = vmul.f32 %v1864_v52, %v1843_v58 }
0x20e8   :  { %v1869_v57 = vmul.f32 %v1865_v53, %v1858_v60 }
0x2144   :  { %v1873_v54 = vpop.permute.xlu0 %1872 }
0x2145   :  { %v1875_v49 = vpop.permute.xlu1 %1874  ;;  %v1878_v61 = vmul.f32 %v1873_v54, %v1843_v58 }
0x2146   :  { %v1879_v50 = vmul.f32 %v1875_v49, %v1858_v60 }
0x2147   :  { %1882 = vrot.lane.b32.xlu2 %v1878_v61, %s6890_s2 }
0x2148   :  { %1884 = vrot.lane.b32.xlu0 %v1879_v50, %s6890_s2 }
0x21a1   :  { %v1883_v1 = vpop.permute.xlu2 %1882 }
0x21a2   :  { %v7369_v17 = vadd.f32 %v1883_v1, %v1868_v19 }
0x21a4   :  { %6321 = vtanh.f32 %v7369_v17  ;;  %v1980_v50 = vrot.slane %v7369_v17, 7  ;;  %v2037_v17 = vld [vmem:[#allocation8 + $0xb0] sm:$0xff] }
0x21a5   :  { %2062 = vmatpush.msra.mxu1 %v2037_v17  ;;  %v6036_v17 = vld [vmem:[#allocation7 + $0xc8] sm:$0xff] }
0x21aa   :  { %v6322_v55 = vpop.eup %6321 }
0x21ab   :  { %1894 = vrot.lane.b32.xlu1 %v6322_v55, %s6886_s17 }
0x21ba   :  { %v1885_v63 = vpop.permute.xlu0 %1884 }
0x21bb   :  { %v7374_v62 = vadd.f32 %v1885_v63, %v1869_v57 }
0x21bd   :  { %6323 = vtanh.f32 %v7374_v62  ;;  %v1981_v54 = vrot.slane %v7374_v62, 7 }
0x21c3   :  { %v6324_v59 = vpop.eup %6323 }
0x21c4   :  { %1896 = vrot.lane.b32.xlu2 %v6324_v59, %s6886_s17 }
0x221d   :  { %v1895_v56 = vpop.permute.xlu1 %1894 }
0x221e   :  { %v1897_v5 = vpop.permute.xlu2 %1896  ;;  %v1900_v7 = vmul.f32 %v1895_v56, %v1843_v58 }
0x221f   :  { %v1901_v11 = vmul.f32 %v1897_v5, %v1858_v60 }
0x2220   :  { %v1904_v0 = vrot.slane %v1900_v7, 6  ;;  %v7380_v12 = vsel %vm1060_vm3, %v7353_v8, %v1900_v7 }
0x2221   :  { %v1905_v13 = vrot.slane %v1901_v11, 5  ;;  %v7384_v4 = vsel %vm1060_vm3, %v7357_v2, %v1901_v11  ;;  %v2036_v11 = vld [vmem:[#allocation8 + $0xa8] sm:$0xff] }
0x2222   :  { %2063 = vmatpush.msra.mxu1 %v2036_v11  ;;  %v2114_v11 = vld [vmem:[#allocation5 + $0x20] sm:$0xff] }
0x2223   :  { %v1906_v14 = vsel %vm239_vm10, %v1905_v13, %v1904_v0  ;;  %v2035_v0 = vld [vmem:[#allocation8 + $0xa0] sm:$0xff]  ;;  %v2034_v13 = vld [vmem:[#allocation8 + $0x98] sm:$0xff] }
0x2224   :  { %1907 = vrot.lane.b32.xlu0 %v1906_v14, %s6890_s2  ;;  %2064 = vmatpush.msra.mxu1 %v2035_v0  ;;  %v6018_v14 = vld [vmem:[#allocation7 + $0x38] sm:$0xff]  ;;  %v2120_v0 = vld [vmem:[#allocation5 + $0x50] sm:$0xff] }
0x2225   :  { %2514 = vmatpush.bf16.msra.mxu3 %v6018_v14  ;;  %v6052_v14 = vld [vmem:[#allocation7 + $0x148] sm:$0xff] }
0x2226   :  { %2065 = vmatpush.msra.mxu1 %v2034_v13  ;;  %v2126_v13 = vpack.c.bf16 %v2120_v0, %v2114_v11 }
0x2296   :  { %v1908_v15 = vpop.permute.xlu0 %1907 }
0x2297   :  { %5731 = vmatmul.msk.f32.vlgmr.msra.gmra.mxu0 %vm132_vm11, %v1908_v15  ;;  %v6026_v15 = vld [vmem:[#allocation7 + $0x78] sm:$0xff] }
0x2298   :  { %2528 = vmatpush.bf16.msrb.mxu0 %v6026_v15  ;;  %v6035_v15 = vld [vmem:[#allocation7 + $0xc0] sm:$0xff] }
0x2314   :  { %v1928_v16 = vpop.f32.mrf.mxu0 }
0x2315   :  { %v1932_v18 = vrot.slane %v1928_v16, 1  ;;  %v1933_v20 = vrot.slane %v1928_v16, 2  ;;  %v6034_v16 = vld [vmem:[#allocation7 + $0xb8] sm:$0xff] }
0x2316   :  { %2542 = vmatpush.bf16.msrb.mxu1 %v6034_v16  ;;  %v2121_v16 = vld [vmem:[#allocation5 + $0x58] sm:$0xff] }
0x2317   :  { %v1936_v22 = vadd.f32 %v1932_v18, %v7198_v45  ;;  %v1937_v8 = vadd.f32 %v1933_v20, %v7201_v44  ;;  %v2078_v18 = vld [vmem:[#allocation8 + $0xd8] sm:$0xff]  ;;  %v6033_v20 = vld [vmem:[#allocation7 + $0xb0] sm:$0xff] }
0x2318   :  { %2099 = vmatpush.msrb.mxu2 %v2078_v18  ;;  %v7407_v18 = vld [vmem:[#allocation8 + $0x100] sm:$0xff] }
0x2319   :  { %6325 = vtanh.f32 %v1936_v22  ;;  %v5733_v2 = vmul.f32 -1.442695, %v1937_v8  ;;  %v5732_v9 = vmul.f32 -1.442695, %v1936_v22  ;;  %v6016_v22 = vld [vmem:[#allocation7 + $0x28] sm:$0xff] }
0x231a   :  { %6327 = vtanh.f32 %v1937_v8  ;;  %v2077_v8 = vld [vmem:[#allocation8 + $0xd0] sm:$0xff]  ;;  %2543 = vmatpush.bf16.msrb.mxu1 %v6033_v20 }
0x231b   :  { %6329 = vpow2.f32 %v5733_v2  ;;  %2100 = vmatpush.msrb.mxu2 %v2077_v8  ;;  %v2075_v2 = vld [vmem:[#allocation8 + $0xc0] sm:$0xff]  ;;  %v7412_v8 = vld [vmem:[#allocation8 + $0xf0] sm:$0xff] }
0x231f   :  { %v6326_v23 = vpop.eup %6325 }
0x2320   :  { %v6328_v28 = vpop.eup %6327  ;;  %1988 = vrot.lane.b32.xlu1 %v6326_v23, %s6886_s17  ;;  %v2076_v23 = vld [vmem:[#allocation8 + $0xc8] sm:$0xff] }
0x2321   :  { %1990 = vrot.lane.b32.xlu2 %v6328_v28, %s6886_s17  ;;  %v6330_v6 = vpop.eup %6329  ;;  %v6024_v28 = vld [vmem:[#allocation7 + $0x68] sm:$0xff]  ;;  %2101 = vmatpush.msrb.mxu2 %v2076_v23 }
0x2322   :  { %v1945_v30 = vadd.f32 1.0, %v6330_v6  ;;  %v6042_v6 = vld [vmem:[#allocation7 + $0xf8] sm:$0xff]  ;;  %v7415_v23 = vld [vmem:[#allocation8 + $0xe8] sm:$0xff] }
0x2323   :  { %2102 = vmatpush.msrb.mxu2 %v2075_v2 }
0x2324   :  { %6331 = vrcp.f32 %v1945_v30  ;;  %v1972_v26 = vand.u32 2147483648, %v1945_v30  ;;  %vm1966_vm7 = vweird.f32 %v1945_v30  ;;  %v1970_v32 = vand.u32 2147483647, %v1945_v30 }
0x2325   :  { %6333 = vpow2.f32 %v5732_v9  ;;  %v6023_v9 = vld [vmem:[#allocation7 + $0x60] sm:$0xff]  ;;  %2556 = vmatpush.bf16.msra.mxu2 %v6042_v6 }
0x2326   :  { %v1973_v29 = vor.u32 1.1754944e-38, %v1972_v26  ;;  %vm1971_vm12 = vcmp.eq.f32.partialorder %v1970_v32, 8.507059e+37  ;;  %v6013_v26 = vld [vmem:[#allocation7 + $0x10] sm:$0xff] }
0x2327   :  { %v6021_v32 = vld [vmem:[#allocation7 + $0x50] sm:$0xff] }
0x232a   :  { %v6332_v31 = vpop.eup %6331 }
0x232b   :  { %v1962_v21 = vmul.f32 %v6332_v31, %v1945_v30  ;;  %v6334_v34 = vpop.eup %6333  ;;  %vm1967_vm5 = vweird.f32 %v6332_v31  ;;  %v6032_v30 = vld [vmem:[#allocation7 + $0xa8] sm:$0xff] }
0x232c   :  { %v1944_v24 = vadd.f32 1.0, %v6334_v34  ;;  %vm1968_vm8 = vmor %vm1966_vm7, %vm1967_vm5  ;;  %vm8120_vm5 = vcmask 1046528   ;;  %2544 = vmatpush.bf16.msrb.mxu1 %v6032_v30  ;;  %v6014_v34 = vld [vmem:[#allocation7 + $0x18] sm:$0xff] }
0x232d   :  { %v1963_v45 = vsub.f32 1.0, %v1962_v21  ;;  %vm8121_vm7 = vmmov %vm8120_vm5  ;;  %v6041_v21 = vld [vmem:[#allocation7 + $0xf0] sm:$0xff] }
0x232e   :  { %6335 = vrcp.f32 %v1944_v24  ;;  %v1957_v42 = vand.u32 2147483648, %v1944_v24  ;;  %vm1951_vm14 = vweird.f32 %v1944_v24  ;;  %v1955_v43 = vand.u32 2147483647, %v1944_v24  ;;  %2557 = vmatpush.bf16.msra.mxu2 %v6041_v21 }
0x232f   :  { %v1964_v44 = vmul.f32 %v6332_v31, %v1963_v45  ;;  %v6031_v45 = vld [vmem:[#allocation7 + $0xa0] sm:$0xff] }
0x2330   :  { %v1958_v46 = vor.u32 1.1754944e-38, %v1957_v42  ;;  %vm1956_vm2 = vcmp.eq.f32.partialorder %v1955_v43, 8.507059e+37  ;;  %2545 = vmatpush.bf16.msrb.mxu1 %v6031_v45  ;;  %v2113_v45 = vld [vmem:[#allocation5 + $0x18] sm:$0xff] }
0x2331   :  { %v1965_v3 = vadd.f32 %v6332_v31, %v1964_v44  ;;  %v6022_v44 = vld [vmem:[#allocation7 + $0x58] sm:$0xff] }
0x2333   :  { %v1969_v33 = vsel %vm1968_vm8, %v6332_v31, %v1965_v3  ;;  %v6015_v31 = vld [vmem:[#allocation7 + $0x20] sm:$0xff]  ;;  %v6030_v3 = vld [vmem:[#allocation7 + $0x98] sm:$0xff] }
0x2334   :  { %v1974_v27 = vsel %vm1971_vm12, %v1973_v29, %v1969_v33  ;;  %v6336_v37 = vpop.eup %6335  ;;  %2546 = vmatpush.bf16.msrb.mxu1 %v6030_v3  ;;  %v6029_v33 = vld [vmem:[#allocation7 + $0x90] sm:$0xff]  ;;  %v6012_v29 = vld [vmem:[#allocation7 + $0x8] sm:$0xff] }
0x2335   :  { %v1947_v40 = vmul.f32 %v6336_v37, %v1944_v24  ;;  %vm1952_vm13 = vweird.f32 %v6336_v37  ;;  %v1985_v58 = vmul.f32 %v1981_v54, %v1974_v27  ;;  %v6040_v24 = vld [vmem:[#allocation7 + $0xe8] sm:$0xff] }
0x2336   :  { %vm1953_vm1 = vmor %vm1951_vm14, %vm1952_vm13  ;;  %2558 = vmatpush.bf16.msra.mxu2 %v6040_v24  ;;  %v6056_v54 = vld [vmem:[#allocation7 + $0x168] sm:$0xff] }
0x2337   :  { %v1948_v35 = vsub.f32 1.0, %v1947_v40  ;;  %v2116_v40 = vld [vmem:[#allocation5 + $0x30] sm:$0xff] }
0x2338   :  { %2547 = vmatpush.bf16.msrb.mxu1 %v6029_v33  ;;  %v6077_v33 = vld [vmem:[#allocation8 + $0x108] ss:$0 sm:$0xff] }
0x2339   :  { %v1949_v36 = vmul.f32 %v6336_v37, %v1948_v35  ;;  %v6050_v35 = vld [vmem:[#allocation7 + $0x138] sm:$0xff] }
0x233b   :  { %v1950_v41 = vadd.f32 %v6336_v37, %v1949_v36  ;;  %v6019_v36 = vld [vmem:[#allocation7 + $0x40] sm:$0xff] }
0x233d   :  { %v1954_v48 = vsel %vm1953_vm1, %v6336_v37, %v1950_v41  ;;  %v6011_v37 = vld [vmem:[#allocation7] sm:$0xff]  ;;  %v6058_v41 = vld [vmem:[#allocation7 + $0x178] sm:$0xff] }
0x233e   :  { %v1959_v51 = vsel %vm1956_vm2, %v1958_v46, %v1954_v48  ;;  %v6049_v48 = vld [vmem:[#allocation7 + $0x130] sm:$0xff] }
0x233f   :  { %v1984_v52 = vmul.f32 %v1980_v50, %v1959_v51  ;;  %v6057_v46 = vld [vmem:[#allocation7 + $0x170] sm:$0xff]  ;;  %v6027_v50 = vld [vmem:[#allocation7 + $0x80] sm:$0xff] }
0x237b   :  { %v1991_v25 = vpop.permute.xlu2 %1990 }
0x237c   :  { %v1995_v38 = vmul.f32 %v1991_v25, %v1974_v27 }
0x237e   :  { %2000 = vrot.lane.b32.xlu1 %v1995_v38, %s6890_s2  ;;  %v2110_v38 = vld [vmem:[#allocation5] sm:$0xff] }
0x237f   :  { %v2122_v42 = vpack.c.bf16 %v2116_v40, %v2110_v38 }
0x2392   :  { %v1989_v39 = vpop.permute.xlu1 %1988 }
0x2393   :  { %v1994_v47 = vmul.f32 %v1989_v39, %v1959_v51  ;;  %v6048_v39 = vld [vmem:[#allocation7 + $0x128] sm:$0xff] }
0x2395   :  { %1998 = vrot.lane.b32.xlu0 %v1994_v47, %s6890_s2  ;;  %v6046_v47 = vld [vmem:[#allocation7 + $0x118] sm:$0xff] }
0x23f0   :  { %v2001_v49 = vpop.permute.xlu1 %2000 }
0x23f1   :  { %v2005_v60 = vadd.f32 %v2001_v49, %v1985_v58  ;;  %v6028_v58 = vld [vmem:[#allocation7 + $0x88] sm:$0xff]  ;;  %v6039_v49 = vld [vmem:[#allocation7 + $0xe0] sm:$0xff] }
0x23f2   :  { %2548 = vmatpush.bf16.msrb.mxu1 %v6028_v58  ;;  %2559 = vmatpush.bf16.msra.mxu2 %v6039_v49 }
0x23f3   :  { %6337 = vtanh.f32 %v2005_v60  ;;  %v6045_v60 = vld [vmem:[#allocation7 + $0x110] sm:$0xff] }
0x23f6   :  { %2549 = vmatpush.bf16.msrb.mxu1 %v6027_v50 }
0x23f9   :  { %v6338_v61 = vpop.eup %6337 }
0x23fa   :  { %2012 = vrot.lane.b32.xlu0 %v6338_v61, %s6886_s17  ;;  %v6055_v61 = vld [vmem:[#allocation7 + $0x160] sm:$0xff] }
0x2407   :  { %v1999_v19 = vpop.permute.xlu0 %1998 }
0x2408   :  { %v2004_v1 = vadd.f32 %v1999_v19, %v1984_v52  ;;  %v6038_v52 = vld [vmem:[#allocation7 + $0xd8] sm:$0xff]  ;;  %v2111_v19 = vld [vmem:[#allocation5 + $0x8] sm:$0xff] }
0x2409   :  { %2560 = vmatpush.bf16.msra.mxu2 %v6038_v52 }
0x240a   :  { %6339 = vtanh.f32 %v2004_v1  ;;  %v2117_v1 = vld [vmem:[#allocation5 + $0x38] sm:$0xff] }
0x2410   :  { %v6340_v55 = vpop.eup %6339 }
0x2411   :  { %2010 = vrot.lane.b32.xlu2 %v6340_v55, %s6886_s17  ;;  %v2123_v55 = vpack.c.bf16 %v2117_v1, %v2111_v19 }
0x246b   :  { %v2011_v53 = vpop.permute.xlu2 %2010 }
0x246c   :  { %v2013_v57 = vpop.permute.xlu0 %2012  ;;  %v2016_v63 = vmul.f32 %v2011_v53, %v1959_v51  ;;  %v6047_v51 = vld [vmem:[#allocation7 + $0x120] sm:$0xff]  ;;  %v6044_v53 = vld [vmem:[#allocation7 + $0x108] sm:$0xff] }
0x246d   :  { %v2017_v62 = vmul.f32 %v2013_v57, %v1974_v27  ;;  %v6020_v27 = vld [vmem:[#allocation7 + $0x48] sm:$0xff]  ;;  %v6054_v57 = vld [vmem:[#allocation7 + $0x158] sm:$0xff] }
0x246e   :  { %v2030_v59 = vsel %vm8120_vm5, %v7380_v12, %v2016_v63  ;;  %v6017_v12 = vld [vmem:[#allocation7 + $0x30] sm:$0xff] }
0x246f   :  { %v2031_v56 = vsel %vm8121_vm7, %v7384_v4, %v2017_v62  ;;  %v2032_v5 = vmax.f32 %v2030_v59, 0.0  ;;  %v6025_v4 = vld [vmem:[#allocation7 + $0x70] sm:$0xff]  ;;  %2515 = vmatpush.bf16.msra.mxu3 %v6017_v12  ;;  %v2118_v62 = vld [vmem:[#allocation5 + $0x40] sm:$0xff] }
0x2470   :  { %v2033_v7 = vmax.f32 %v2031_v56, 0.0  ;;  %2529 = vmatpush.bf16.msrb.mxu0 %v6025_v4  ;;  %v2112_v63 = vld [vmem:[#allocation5 + $0x10] sm:$0xff]  ;;  %v6051_v12 = vld [vmem:[#allocation7 + $0x140] sm:$0xff]  ;;  %v2115_v4 = vld [vmem:[#allocation5 + $0x28] sm:$0xff] }
0x2471   :  { %2042 = vrot.lane.b32.xlu1 %v2032_v5, %s6890_s2  ;;  %v2124_v59 = vpack.c.bf16 %v2118_v62, %v2112_v63  ;;  %v6037_v56 = vld [vmem:[#allocation7 + $0xd0] sm:$0xff]  ;;  %v6043_v5 = vld [vmem:[#allocation7 + $0x100] sm:$0xff]  ;;  %v2127_v20 = vpack.c.bf16 %v2121_v16, %v2115_v4 }
0x2472   :  { %2044 = vrot.lane.b32.xlu2 %v2033_v7, %s6890_s2  ;;  %2561 = vmatpush.bf16.msra.mxu2 %v6037_v56  ;;  %v6053_v7 = vld [vmem:[#allocation7 + $0x150] sm:$0xff] }
0x2473   :  { %2516 = vmatpush.bf16.msra.mxu3 %v6016_v22  ;;  %v7410_v22 = vld [vmem:[#allocation8 + $0xf8] sm:$0xff] }
0x2474   :  { %2530 = vmatpush.bf16.msrb.mxu0 %v6024_v28  ;;  %v6076_v28 = vld [vmem:[#allocation8 + $0xb8] ss:$0 sm:$0xff] }
0x2476   :  { %2562 = vmatpush.bf16.msra.mxu2 %v6036_v17 }
0x2477   :  { %2517 = vmatpush.bf16.msra.mxu3 %v6015_v31 }
0x2478   :  { %2531 = vmatpush.bf16.msrb.mxu0 %v6023_v9 }
0x247a   :  { %2563 = vmatpush.bf16.msra.mxu2 %v6035_v15 }
0x247b   :  { %2518 = vmatpush.bf16.msra.mxu3 %v6014_v34  ;;  %v2119_v34 = vld [vmem:[#allocation5 + $0x48] sm:$0xff] }
0x247c   :  { %2532 = vmatpush.bf16.msrb.mxu0 %v6022_v44  ;;  %v2125_v44 = vpack.c.bf16 %v2119_v34, %v2113_v45 }
0x247f   :  { %2519 = vmatpush.bf16.msra.mxu3 %v6013_v26 }
0x2480   :  { %2533 = vmatpush.bf16.msrb.mxu0 %v6021_v32 }
0x2483   :  { %2520 = vmatpush.bf16.msra.mxu3 %v6012_v29 }
0x2484   :  { %2534 = vmatpush.bf16.msrb.mxu0 %v6020_v27 }
0x2487   :  { %2521 = vmatpush.bf16.msra.mxu3 %v6011_v37 }
0x2488   :  { %2535 = vmatpush.bf16.msrb.mxu0 %v6019_v36 }
0x248a   :  { %2522 = vmatmul.bf16.vlgmr.msra.gmra.mxu3 %v2122_v42 }
0x248b   :  { %2570 = vmatpush.bf16.msrb.mxu3 %v6050_v35  ;;  %2536 = vmatmul.bf16.vlgmr.msrb.gmra.mxu0 %v2123_v55 }
0x248c   :  { %2584 = vmatpush.bf16.msra.mxu0 %v6058_v41 }
0x248f   :  { %2571 = vmatpush.bf16.msrb.mxu3 %v6049_v48 }
0x2490   :  { %2585 = vmatpush.bf16.msra.mxu0 %v6057_v46 }
0x2493   :  { %2572 = vmatpush.bf16.msrb.mxu3 %v6048_v39 }
0x2494   :  { %2586 = vmatpush.bf16.msra.mxu0 %v6056_v54 }
0x2497   :  { %2573 = vmatpush.bf16.msrb.mxu3 %v6047_v51 }
0x2498   :  { %2587 = vmatpush.bf16.msra.mxu0 %v6055_v61 }
0x249b   :  { %2574 = vmatpush.bf16.msrb.mxu3 %v6046_v47 }
0x249c   :  { %2588 = vmatpush.bf16.msra.mxu0 %v6054_v57 }
0x249f   :  { %2575 = vmatpush.bf16.msrb.mxu3 %v6045_v60 }
0x24a0   :  { %2589 = vmatpush.bf16.msra.mxu0 %v6053_v7 }
0x24a3   :  { %2576 = vmatpush.bf16.msrb.mxu3 %v6044_v53 }
0x24a4   :  { %2590 = vmatpush.bf16.msra.mxu0 %v6052_v14 }
0x24a7   :  { %2577 = vmatpush.bf16.msrb.mxu3 %v6043_v5 }
0x24a8   :  { %2591 = vmatpush.bf16.msra.mxu0 %v6051_v12 }
0x24aa   :  { %2578 = vmatmul.bf16.vlgmr.msrb.gmra.mxu3 %v2126_v13 }
0x24ab   :  { %2592 = vmatmul.bf16.vlgmr.msra.gmra.mxu0 %v2127_v20 }
0x24cc   :  { %v2045_v43 = vpop.permute.xlu2 %2044 }
0x24e3   :  { %v2043_v25 = vpop.permute.xlu1 %2042 }
0x24e4   :  { %5734 = vmatmul.msk.f32.vlgmr.msra.gmra.mxu1 %vm132_vm11, %v2043_v25 }
0x24e5   :  { %2614 = vmatpush.msra.mxu1 %v7407_v18 }
0x24e7   :  { %2615 = vmatpush.msra.mxu1 %v7410_v22 }
0x24e9   :  { %2616 = vmatpush.msra.mxu1 %v7412_v8 }
0x24eb   :  { %2617 = vmatpush.msra.mxu1 %v7415_v23 }
0x24ec   :  { %5735 = vmatmul.msk.f32.gmra.mxu1 %vm132_vm11, %v2045_v43 }
0x24f4   :  { %2550 = vmatmul.bf16.vlgmr.msrb.gmra.mxu1 %v2124_v59 }
0x24f5   :  { %2836 = vmatpush.msrb.mxu1 %v7407_v18 }
0x24f7   :  { %2837 = vmatpush.msrb.mxu1 %v7410_v22 }
0x24f9   :  { %2838 = vmatpush.msrb.mxu1 %v7412_v8 }
0x24fb   :  { %2839 = vmatpush.msrb.mxu1 %v7415_v23 }
0x2504   :  { %2618 = vmatmul.f32.vlgmr.msra.gmra.mxu1 %v6889_v10 }
0x2505   :  { %3068 = vmatpush.msra.mxu1 %v7407_v18 }
0x2507   :  { %3069 = vmatpush.msra.mxu1 %v7410_v22 }
0x2508   :  { %v2537_v3 = vpop.f32.mrf.mxu0 }
0x2509   :  { %3070 = vmatpush.msra.mxu1 %v7412_v8 }
0x250b   :  { %3071 = vmatpush.msra.mxu1 %v7415_v23 }
0x250d   :  { %v2523_v24 = vpop.f32.mrf.mxu3 }
0x250e   :  { %v2524_v25 = vadd.f32 %v6077_v33, %v2523_v24 }
0x2510   :  { %v2539_v27 = vpop.f32.mrf.mxu0  ;;  %v2538_v38 = vadd.f32 %v2537_v3, %v2524_v25 }
0x2515   :  { %v2525_v29 = vpop.f32.mrf.mxu3 }
0x2516   :  { %v2526_v36 = vadd.f32 %v6077_v33, %v2525_v29 }
0x2518   :  { %v2540_v46 = vadd.f32 %v2539_v27, %v2526_v36 }
0x2528   :  { %v2593_v48 = vpop.f32.mrf.mxu0 }
0x252d   :  { %v2579_v41 = vpop.f32.mrf.mxu3 }
0x2530   :  { %v2595_v19 = vpop.f32.mrf.mxu0 }
0x2535   :  { %v2581_v61 = vpop.f32.mrf.mxu3 }
0x2561   :  { %v2067_v2 = vpop.f32.mrf.mxu1 }
0x2562   :  { %v2068_v6 = vadd.f32 %v6076_v28, %v2067_v2 }
0x2564   :  { %v2073_v30 = vmax.f32 %v2068_v6, 0.0 }
0x2566   :  { %5736 = vmatmul.msk.f32.vlgmr.msrb.gmra.mxu2 %vm132_vm11, %v2073_v30 }
0x2567   :  { %2722 = vmatpush.msrb.mxu2 %v7407_v18 }
0x2569   :  { %v2070_v31 = vpop.f32.mrf.mxu1  ;;  %2723 = vmatpush.msrb.mxu2 %v7410_v22 }
0x256a   :  { %v2071_v9 = vadd.f32 %v6076_v28, %v2070_v31 }
0x256b   :  { %2724 = vmatpush.msrb.mxu2 %v7412_v8 }
0x256c   :  { %v2074_v21 = vmax.f32 %v2071_v9, 0.0 }
0x256d   :  { %2725 = vmatpush.msrb.mxu2 %v7415_v23 }
0x256e   :  { %5737 = vmatmul.msk.f32.gmra.mxu2 %vm132_vm11, %v2074_v21 }
0x2571   :  { %v2551_v32 = vpop.f32.mrf.mxu1 }
0x2572   :  { %v2552_v35 = vadd.f32 %v2551_v32, %v2538_v38 }
0x2576   :  { %2564 = vmatmul.bf16.vlgmr.msra.gmra.mxu2 %v2125_v44 }
0x2577   :  { %2952 = vmatpush.msra.mxu2 %v7407_v18 }
0x2579   :  { %2953 = vmatpush.msra.mxu2 %v7410_v22  ;;  %v2553_v40 = vpop.f32.mrf.mxu1 }
0x257a   :  { %v2554_v54 = vadd.f32 %v2553_v40, %v2540_v46 }
0x257b   :  { %2954 = vmatpush.msra.mxu2 %v7412_v8 }
0x257d   :  { %2955 = vmatpush.msra.mxu2 %v7415_v23 }
0x2581   :  { %v2619_v51 = vpop.f32.mrf.mxu1 }
0x2582   :  { %v2623_v50 = vrot.slane %v2619_v51, 1 }
0x25e9   :  { %v7438_v26 = vpop.f32.mrf.mxu2 }
0x25f1   :  { %v7440_v37 = vpop.f32.mrf.mxu2 }
0x25f9   :  { %v2565_v42 = vpop.f32.mrf.mxu2 }
0x25fa   :  { %v2566_v43 = vadd.f32 %v2565_v42, %v2552_v35 }
0x25fc   :  { %v2580_v39 = vadd.f32 %v2579_v41, %v2566_v43 }
0x25fe   :  { %v7442_v47 = vadd.f32 %v2593_v48, %v2580_v39 }
0x2600   :  { %v2626_v58 = vadd.f32 %v2619_v51, %v7442_v47 }
0x2601   :  { %v2567_v49 = vpop.f32.mrf.mxu2 }
0x2602   :  { %6341 = vtanh.f32 %v2626_v58  ;;  %v2568_v60 = vadd.f32 %v2567_v49, %v2554_v54  ;;  %v5930_v63 = vmul.f32 -1.442695, %v2626_v58 }
0x2604   :  { %v2582_v52 = vadd.f32 %v2581_v61, %v2568_v60 }
0x2606   :  { %v7445_v1 = vadd.f32 %v2595_v19, %v2582_v52 }
0x2608   :  { %v6342_v55 = vpop.eup %6341  ;;  %v2627_v53 = vadd.f32 %v2623_v50, %v7445_v1 }
0x2609   :  { %2672 = vrot.lane.b32.xlu1 %v6342_v55, %s6886_s17 }
0x260a   :  { %6343 = vtanh.f32 %v2627_v53  ;;  %v5931_v62 = vmul.f32 -1.442695, %v2627_v53 }
0x260b   :  { %6345 = vpow2.f32 %v5930_v63 }
0x260c   :  { %6347 = vpow2.f32 %v5931_v62 }
0x2610   :  { %v6344_v57 = vpop.eup %6343 }
0x2611   :  { %2674 = vrot.lane.b32.xlu0 %v6344_v57, %s6886_s17  ;;  %v6346_v59 = vpop.eup %6345 }
0x2612   :  { %v2634_v56 = vadd.f32 1.0, %v6346_v59  ;;  %v6348_v5 = vpop.eup %6347 }
0x2613   :  { %v2635_v7 = vadd.f32 1.0, %v6348_v5 }
0x2614   :  { %6349 = vrcp.f32 %v2634_v56  ;;  %v2647_v16 = vand.u32 2147483648, %v2634_v56  ;;  %vm2641_vm12 = vweird.f32 %v2634_v56  ;;  %v2645_v20 = vand.u32 2147483647, %v2634_v56 }
0x2615   :  { %6351 = vrcp.f32 %v2635_v7  ;;  %v2662_v45 = vand.u32 2147483648, %v2635_v7  ;;  %vm2656_vm2 = vweird.f32 %v2635_v7  ;;  %v2660_v34 = vand.u32 2147483647, %v2635_v7 }
0x2616   :  { %v2648_v6 = vor.u32 1.1754944e-38, %v2647_v16  ;;  %vm2646_vm14 = vcmp.eq.f32.partialorder %v2645_v20, 8.507059e+37 }
0x2617   :  { %v2663_v24 = vor.u32 1.1754944e-38, %v2662_v45  ;;  %vm2661_vm7 = vcmp.eq.f32.partialorder %v2660_v34, 8.507059e+37 }
0x261a   :  { %v6350_v17 = vpop.eup %6349 }
0x261b   :  { %v2637_v11 = vmul.f32 %v6350_v17, %v2634_v56  ;;  %v6352_v13 = vpop.eup %6351  ;;  %vm2642_vm8 = vweird.f32 %v6350_v17 }
0x261c   :  { %v2652_v15 = vmul.f32 %v6352_v13, %v2635_v7  ;;  %vm2643_vm13 = vmor %vm2641_vm12, %vm2642_vm8  ;;  %vm2657_vm1 = vweird.f32 %v6352_v13 }
0x261d   :  { %v2638_v0 = vsub.f32 1.0, %v2637_v11  ;;  %vm2658_vm5 = vmor %vm2656_vm2, %vm2657_vm1 }
0x261e   :  { %v2653_v4 = vsub.f32 1.0, %v2652_v15 }
0x261f   :  { %v2639_v14 = vmul.f32 %v6350_v17, %v2638_v0 }
0x2620   :  { %v2654_v2 = vmul.f32 %v6352_v13, %v2653_v4 }
0x2621   :  { %v2640_v12 = vadd.f32 %v6350_v17, %v2639_v14 }
0x2622   :  { %v2655_v21 = vadd.f32 %v6352_v13, %v2654_v2 }
0x2623   :  { %v2644_v28 = vsel %vm2643_vm13, %v6350_v17, %v2640_v12 }
0x2624   :  { %v2649_v31 = vsel %vm2646_vm14, %v2648_v6, %v2644_v28  ;;  %v2659_v44 = vsel %vm2658_vm5, %v6352_v13, %v2655_v21 }
0x2625   :  { %v2664_v32 = vsel %vm2661_vm7, %v2663_v24, %v2659_v44  ;;  %v2668_v40 = vmul.f32 0.0, %v2649_v31 }
0x2626   :  { %v2669_v29 = vmul.f32 0.0, %v2664_v32 }
0x267b   :  { %v2673_v30 = vpop.permute.xlu1 %2672 }
0x267c   :  { %v2678_v9 = vmul.f32 %v2673_v30, %v2649_v31 }
0x267e   :  { %2682 = vrot.lane.b32.xlu0 %v2678_v9, %s6890_s2 }
0x2683   :  { %v2675_v3 = vpop.permute.xlu0 %2674 }
0x2684   :  { %v2679_v33 = vmul.f32 %v2675_v3, %v2664_v32 }
0x2686   :  { %2684 = vrot.lane.b32.xlu2 %v2679_v33, %s6890_s2 }
0x26e0   :  { %v2685_v25 = vpop.permute.xlu2 %2684 }
0x26e1   :  { %v7452_v27 = vadd.f32 %v2685_v25, %v2669_v29 }
0x26e3   :  { %6353 = vtanh.f32 %v7452_v27  ;;  %v2779_v24 = vrot.slane %v7452_v27, 7 }
0x26e9   :  { %v6354_v38 = vpop.eup %6353 }
0x26ea   :  { %2696 = vrot.lane.b32.xlu1 %v6354_v38, %s6886_s17 }
0x26f0   :  { %v2683_v35 = vpop.permute.xlu0 %2682 }
0x26f1   :  { %v7456_v36 = vadd.f32 %v2683_v35, %v2668_v40 }
0x26f3   :  { %6355 = vtanh.f32 %v7456_v36  ;;  %v2778_v25 = vrot.slane %v7456_v36, 7 }
0x26f9   :  { %v6356_v41 = vpop.eup %6355 }
0x26fa   :  { %2694 = vrot.lane.b32.xlu2 %v6356_v41, %s6886_s17 }
0x2754   :  { %v2695_v42 = vpop.permute.xlu2 %2694 }
0x2755   :  { %v7462_v46 = vmul.f32 %v2695_v42, %v2649_v31 }
0x275c   :  { %v2697_v43 = vpop.permute.xlu1 %2696 }
0x275d   :  { %v7460_v48 = vmul.f32 %v2697_v43, %v2664_v32 }
0x275f   :  { %v2704_v39 = vrot.slane %v7460_v48, 7 }
0x2761   :  { %v2705_v51 = vsel %vm239_vm10, %v2704_v39, %v7462_v46 }
0x2762   :  { %2706 = vrot.lane.b32.xlu0 %v2705_v51, %s6890_s2 }
0x27d4   :  { %v2707_v54 = vpop.permute.xlu0 %2706 }
0x27d5   :  { %5932 = vmatmul.msk.f32.vlgmr.msrb.gmra.mxu2 %vm132_vm11, %v2707_v54 }
0x27d6   :  { %3184 = vmatpush.msrb.mxu2 %v7407_v18 }
0x27d8   :  { %3185 = vmatpush.msrb.mxu2 %v7410_v22 }
0x27da   :  { %3186 = vmatpush.msrb.mxu2 %v7412_v8 }
0x27dc   :  { %3187 = vmatpush.msrb.mxu2 %v7415_v23 }
0x2858   :  { %v2727_v58 = vpop.f32.mrf.mxu2 }
0x2859   :  { %v2731_v49 = vrot.slane %v2727_v58, 7  ;;  %v2735_v60 = vadd.f32 %v2727_v58, %v7445_v1 }
0x285b   :  { %v2734_v61 = vadd.f32 %v2731_v49, %v7442_v47  ;;  %6357 = vtanh.f32 %v2735_v60  ;;  %v5934_v19 = vmul.f32 -1.442695, %v2735_v60 }
0x285d   :  { %6359 = vtanh.f32 %v2734_v61  ;;  %v5933_v62 = vmul.f32 -1.442695, %v2734_v61 }
0x285e   :  { %6361 = vpow2.f32 %v5934_v19 }
0x2861   :  { %v6358_v50 = vpop.eup %6357 }
0x2862   :  { %2788 = vrot.lane.b32.xlu2 %v6358_v50, %s6886_s17 }
0x2863   :  { %v6360_v52 = vpop.eup %6359 }
0x2864   :  { %2786 = vrot.lane.b32.xlu1 %v6360_v52, %s6886_s17  ;;  %v6362_v55 = vpop.eup %6361 }
0x2865   :  { %v2743_v53 = vadd.f32 1.0, %v6362_v55 }
0x2867   :  { %6363 = vrcp.f32 %v2743_v53  ;;  %v2770_v17 = vand.u32 2147483648, %v2743_v53  ;;  %vm2764_vm12 = vweird.f32 %v2743_v53  ;;  %v2768_v0 = vand.u32 2147483647, %v2743_v53 }
0x2868   :  { %6365 = vpow2.f32 %v5933_v62 }
0x2869   :  { %v2771_v14 = vor.u32 1.1754944e-38, %v2770_v17  ;;  %vm2769_vm14 = vcmp.eq.f32.partialorder %v2768_v0, 8.507059e+37 }
0x286d   :  { %v6364_v57 = vpop.eup %6363 }
0x286e   :  { %v2760_v63 = vmul.f32 %v6364_v57, %v2743_v53  ;;  %v6366_v5 = vpop.eup %6365  ;;  %vm2765_vm8 = vweird.f32 %v6364_v57 }
0x286f   :  { %v2742_v11 = vadd.f32 1.0, %v6366_v5  ;;  %vm2766_vm13 = vmor %vm2764_vm12, %vm2765_vm8 }
0x2870   :  { %v2761_v59 = vsub.f32 1.0, %v2760_v63 }
0x2871   :  { %6367 = vrcp.f32 %v2742_v11  ;;  %v2755_v30 = vand.u32 2147483648, %v2742_v11  ;;  %vm2749_vm2 = vweird.f32 %v2742_v11  ;;  %v2753_v31 = vand.u32 2147483647, %v2742_v11 }
0x2872   :  { %v2762_v56 = vmul.f32 %v6364_v57, %v2761_v59 }
0x2873   :  { %v2756_v21 = vor.u32 1.1754944e-38, %v2755_v30  ;;  %vm2754_vm7 = vcmp.eq.f32.partialorder %v2753_v31, 8.507059e+37 }
0x2874   :  { %v2763_v7 = vadd.f32 %v6364_v57, %v2762_v56 }
0x2876   :  { %v2767_v13 = vsel %vm2766_vm13, %v6364_v57, %v2763_v7 }
0x2877   :  { %v2772_v12 = vsel %vm2769_vm14, %v2771_v14, %v2767_v13  ;;  %v6368_v16 = vpop.eup %6367 }
0x2878   :  { %v2745_v20 = vmul.f32 %v6368_v16, %v2742_v11  ;;  %vm2750_vm1 = vweird.f32 %v6368_v16  ;;  %v2783_v3 = vmul.f32 %v2779_v24, %v2772_v12 }
0x2879   :  { %vm2751_vm5 = vmor %vm2749_vm2, %vm2750_vm1 }
0x287a   :  { %v2746_v28 = vsub.f32 1.0, %v2745_v20 }
0x287c   :  { %v2747_v2 = vmul.f32 %v6368_v16, %v2746_v28 }
0x287e   :  { %v2748_v6 = vadd.f32 %v6368_v16, %v2747_v2 }
0x2880   :  { %v2752_v9 = vsel %vm2751_vm5, %v6368_v16, %v2748_v6 }
0x2881   :  { %v2757_v34 = vsel %vm2754_vm7, %v2756_v21, %v2752_v9 }
0x2882   :  { %v2782_v38 = vmul.f32 %v2778_v25, %v2757_v34 }
0x28bc   :  { %v2789_v15 = vpop.permute.xlu2 %2788 }
0x28bd   :  { %v2793_v4 = vmul.f32 %v2789_v15, %v2772_v12 }
0x28bf   :  { %2798 = vrot.lane.b32.xlu1 %v2793_v4, %s6890_s2 }
0x28d6   :  { %v2787_v45 = vpop.permute.xlu1 %2786 }
0x28d7   :  { %v2792_v44 = vmul.f32 %v2787_v45, %v2757_v34 }
0x28d9   :  { %2796 = vrot.lane.b32.xlu0 %v2792_v44, %s6890_s2 }
0x2931   :  { %v2799_v32 = vpop.permute.xlu1 %2798 }
0x2932   :  { %v7480_v33 = vadd.f32 %v2799_v32, %v2783_v3 }
0x2934   :  { %6369 = vtanh.f32 %v7480_v33  ;;  %v2894_v32 = vrot.slane %v7480_v33, 7 }
0x293a   :  { %v6370_v29 = vpop.eup %6369 }
0x293b   :  { %2810 = vrot.lane.b32.xlu0 %v6370_v29, %s6886_s17 }
0x294b   :  { %v2797_v40 = vpop.permute.xlu0 %2796 }
0x294c   :  { %v7485_v35 = vadd.f32 %v2797_v40, %v2782_v38 }
0x294e   :  { %6371 = vtanh.f32 %v7485_v35  ;;  %v2893_v3 = vrot.slane %v7485_v35, 7 }
0x2954   :  { %v6372_v41 = vpop.eup %6371 }
0x2955   :  { %2808 = vrot.lane.b32.xlu2 %v6372_v41, %s6886_s17 }
0x29ad   :  { %v2811_v27 = vpop.permute.xlu0 %2810 }
0x29ae   :  { %v7491_v39 = vmul.f32 %v2811_v27, %v2772_v12 }
0x29af   :  { %v2809_v42 = vpop.permute.xlu2 %2808 }
0x29b0   :  { %v7489_v43 = vmul.f32 %v2809_v42, %v2757_v34 }
0x29b2   :  { %v2818_v51 = vrot.slane %v7489_v43, 1 }
0x29b4   :  { %v2819_v36 = vsel %vm239_vm10, %v7491_v39, %v2818_v51 }
0x29b5   :  { %2820 = vrot.lane.b32.xlu1 %v2819_v36, %s6890_s2 }
0x2a27   :  { %v2821_v54 = vpop.permute.xlu1 %2820 }
0x2a28   :  { %5935 = vmatmul.msk.f32.vlgmr.msrb.gmra.mxu1 %vm132_vm11, %v2821_v54  ;;  %v3511_v54 = vsel %vm101_vm0, %v7462_v46, %v7489_v43 }
0x2a29   :  { %3300 = vmatpush.msrb.mxu1 %v7407_v18 }
0x2a2b   :  { %3301 = vmatpush.msrb.mxu1 %v7410_v22 }
0x2a2d   :  { %3302 = vmatpush.msrb.mxu1 %v7412_v8 }
0x2a2f   :  { %3303 = vmatpush.msrb.mxu1 %v7415_v23 }
0x2aa5   :  { %v2841_v58 = vpop.f32.mrf.mxu1 }
0x2aa6   :  { %v2845_v49 = vrot.slane %v2841_v58, 6  ;;  %v2846_v60 = vrot.slane %v2841_v58, 7 }
0x2aa8   :  { %v2849_v61 = vadd.f32 %v2845_v49, %v7442_v47  ;;  %v2850_v50 = vadd.f32 %v2846_v60, %v7445_v1  ;;  %v3512_v49 = vsel %vm101_vm0, %v7460_v48, %v7491_v39 }
0x2aaa   :  { %6373 = vtanh.f32 %v2849_v61  ;;  %v5936_v55 = vmul.f32 -1.442695, %v2849_v61  ;;  %v5937_v62 = vmul.f32 -1.442695, %v2850_v50 }
0x2aab   :  { %6375 = vtanh.f32 %v2850_v50 }
0x2aac   :  { %6377 = vpow2.f32 %v5936_v55 }
0x2ab0   :  { %v6374_v52 = vpop.eup %6373 }
0x2ab1   :  { %v6376_v19 = vpop.eup %6375  ;;  %2901 = vrot.lane.b32.xlu2 %v6374_v52, %s6886_s17 }
0x2ab2   :  { %2903 = vrot.lane.b32.xlu0 %v6376_v19, %s6886_s17  ;;  %v6378_v53 = vpop.eup %6377 }
0x2ab3   :  { %v2857_v57 = vadd.f32 1.0, %v6378_v53 }
0x2ab5   :  { %6379 = vrcp.f32 %v2857_v57  ;;  %v2870_v0 = vand.u32 2147483648, %v2857_v57  ;;  %vm2864_vm12 = vweird.f32 %v2857_v57  ;;  %v2868_v13 = vand.u32 2147483647, %v2857_v57 }
0x2ab6   :  { %6381 = vpow2.f32 %v5937_v62 }
0x2ab7   :  { %v2871_v15 = vor.u32 1.1754944e-38, %v2870_v0  ;;  %vm2869_vm14 = vcmp.eq.f32.partialorder %v2868_v13, 8.507059e+37 }
0x2abb   :  { %v6380_v63 = vpop.eup %6379 }
0x2abc   :  { %v2860_v59 = vmul.f32 %v6380_v63, %v2857_v57  ;;  %v6382_v7 = vpop.eup %6381  ;;  %vm2865_vm8 = vweird.f32 %v6380_v63 }
0x2abd   :  { %v2858_v17 = vadd.f32 1.0, %v6382_v7  ;;  %vm2866_vm13 = vmor %vm2864_vm12, %vm2865_vm8 }
0x2abe   :  { %v2861_v56 = vsub.f32 1.0, %v2860_v59 }
0x2abf   :  { %6383 = vrcp.f32 %v2858_v17  ;;  %v2885_v31 = vand.u32 2147483648, %v2858_v17  ;;  %vm2879_vm2 = vweird.f32 %v2858_v17  ;;  %v2883_v9 = vand.u32 2147483647, %v2858_v17 }
0x2ac0   :  { %v2862_v5 = vmul.f32 %v6380_v63, %v2861_v56 }
0x2ac1   :  { %v2886_v45 = vor.u32 1.1754944e-38, %v2885_v31  ;;  %vm2884_vm7 = vcmp.eq.f32.partialorder %v2883_v9, 8.507059e+37 }
0x2ac2   :  { %v2863_v11 = vadd.f32 %v6380_v63, %v2862_v5 }
0x2ac4   :  { %v2867_v14 = vsel %vm2866_vm13, %v6380_v63, %v2863_v11 }
0x2ac5   :  { %v2872_v4 = vsel %vm2869_vm14, %v2871_v15, %v2867_v14  ;;  %v6384_v20 = vpop.eup %6383 }
0x2ac6   :  { %v2875_v28 = vmul.f32 %v6384_v20, %v2858_v17  ;;  %vm2880_vm1 = vweird.f32 %v6384_v20  ;;  %v2897_v29 = vmul.f32 %v2893_v3, %v2872_v4 }
0x2ac7   :  { %vm2881_vm5 = vmor %vm2879_vm2, %vm2880_vm1 }
0x2ac8   :  { %v2876_v2 = vsub.f32 1.0, %v2875_v28 }
0x2aca   :  { %v2877_v6 = vmul.f32 %v6384_v20, %v2876_v2 }
0x2acc   :  { %v2878_v30 = vadd.f32 %v6384_v20, %v2877_v6 }
0x2ace   :  { %v2882_v21 = vsel %vm2881_vm5, %v6384_v20, %v2878_v30 }
0x2acf   :  { %v2887_v44 = vsel %vm2884_vm7, %v2886_v45, %v2882_v21 }
0x2ad0   :  { %v2898_v25 = vmul.f32 %v2894_v32, %v2887_v44 }
0x2b0b   :  { %v2902_v12 = vpop.permute.xlu2 %2901 }
0x2b0c   :  { %v2907_v16 = vmul.f32 %v2902_v12, %v2872_v4 }
0x2b0e   :  { %2911 = vrot.lane.b32.xlu1 %v2907_v16, %s6890_s2 }
0x2b24   :  { %v2904_v34 = vpop.permute.xlu0 %2903 }
0x2b25   :  { %v2908_v24 = vmul.f32 %v2904_v34, %v2887_v44 }
0x2b27   :  { %2913 = vrot.lane.b32.xlu2 %v2908_v24, %s6890_s2 }
0x2b80   :  { %v2912_v38 = vpop.permute.xlu1 %2911 }
0x2b81   :  { %v2914_v40 = vpop.permute.xlu2 %2913  ;;  %v7510_v41 = vadd.f32 %v2912_v38, %v2897_v29 }
0x2b82   :  { %v7512_v27 = vadd.f32 %v2914_v40, %v2898_v25 }
0x2b83   :  { %6385 = vtanh.f32 %v7510_v41  ;;  %v3009_v3 = vrot.slane %v7510_v41, 7 }
0x2b84   :  { %6387 = vtanh.f32 %v7512_v27  ;;  %v3010_v40 = vrot.slane %v7512_v27, 7 }
0x2b89   :  { %v6386_v42 = vpop.eup %6385 }
0x2b8a   :  { %v6388_v51 = vpop.eup %6387  ;;  %2923 = vrot.lane.b32.xlu0 %v6386_v42, %s6886_s17 }
0x2b8b   :  { %2925 = vrot.lane.b32.xlu1 %v6388_v51, %s6886_s17 }
0x2bfc   :  { %v2924_v35 = vpop.permute.xlu0 %2923 }
0x2bfd   :  { %v2926_v33 = vpop.permute.xlu1 %2925  ;;  %v2929_v36 = vmul.f32 %v2924_v35, %v2872_v4 }
0x2bfe   :  { %v2930_v58 = vmul.f32 %v2926_v33, %v2887_v44 }
0x2bff   :  { %v2933_v60 = vrot.slane %v2929_v36, 2  ;;  %v7525_v61 = vsel %vm1048_vm15, %v3511_v54, %v2929_v36 }
0x2c00   :  { %v2934_v50 = vrot.slane %v2930_v58, 1  ;;  %v7528_v52 = vsel %vm1048_vm15, %v3512_v49, %v2930_v58 }
0x2c02   :  { %v2935_v19 = vsel %vm239_vm10, %v2934_v50, %v2933_v60 }
0x2c03   :  { %2936 = vrot.lane.b32.xlu2 %v2935_v19, %s6890_s2 }
0x2c5d   :  { %v2937_v55 = vpop.permute.xlu2 %2936 }
0x2c5e   :  { %5938 = vmatmul.msk.f32.vlgmr.msra.gmra.mxu2 %vm132_vm11, %v2937_v55 }
0x2c5f   :  { %3416 = vmatpush.msra.mxu2 %v7407_v18 }
0x2c61   :  { %3417 = vmatpush.msra.mxu2 %v7410_v22 }
0x2c63   :  { %3418 = vmatpush.msra.mxu2 %v7412_v8 }
0x2c65   :  { %3419 = vmatpush.msra.mxu2 %v7415_v23 }
0x2ce1   :  { %v2957_v48 = vpop.f32.mrf.mxu2 }
0x2ce2   :  { %v2961_v46 = vrot.slane %v2957_v48, 5  ;;  %v2962_v43 = vrot.slane %v2957_v48, 6 }
0x2ce4   :  { %v2965_v39 = vadd.f32 %v2961_v46, %v7442_v47  ;;  %v2966_v53 = vadd.f32 %v2962_v43, %v7445_v1 }
0x2ce6   :  { %6389 = vtanh.f32 %v2965_v39  ;;  %v5939_v18 = vmul.f32 -1.442695, %v2965_v39  ;;  %v5940_v22 = vmul.f32 -1.442695, %v2966_v53 }
0x2ce7   :  { %6391 = vtanh.f32 %v2966_v53 }
0x2ce8   :  { %6393 = vpow2.f32 %v5939_v18 }
0x2ce9   :  { %6395 = vpow2.f32 %v5940_v22 }
0x2cec   :  { %v6390_v57 = vpop.eup %6389 }
0x2ced   :  { %v6392_v63 = vpop.eup %6391  ;;  %3017 = vrot.lane.b32.xlu0 %v6390_v57, %s6886_s17 }
0x2cee   :  { %3019 = vrot.lane.b32.xlu1 %v6392_v63, %s6886_s17  ;;  %v6394_v8 = vpop.eup %6393 }
0x2cef   :  { %v6396_v23 = vpop.eup %6395  ;;  %v2973_v62 = vadd.f32 1.0, %v6394_v8 }
0x2cf0   :  { %v2974_v59 = vadd.f32 1.0, %v6396_v23 }
0x2cf1   :  { %6397 = vrcp.f32 %v2973_v62  ;;  %v2986_v4 = vand.u32 2147483648, %v2973_v62  ;;  %vm2980_vm13 = vweird.f32 %v2973_v62  ;;  %v2984_v20 = vand.u32 2147483647, %v2973_v62 }
0x2cf2   :  { %6399 = vrcp.f32 %v2974_v59  ;;  %v3001_v16 = vand.u32 2147483648, %v2974_v59  ;;  %vm2995_vm14 = vweird.f32 %v2974_v59  ;;  %v2999_v28 = vand.u32 2147483647, %v2974_v59 }
0x2cf3   :  { %v2987_v30 = vor.u32 1.1754944e-38, %v2986_v4  ;;  %vm2985_vm5 = vcmp.eq.f32.partialorder %v2984_v20, 8.507059e+37 }
0x2cf4   :  { %v3002_v31 = vor.u32 1.1754944e-38, %v3001_v16  ;;  %vm3000_vm7 = vcmp.eq.f32.partialorder %v2999_v28, 8.507059e+37 }
0x2cf7   :  { %v6398_v56 = vpop.eup %6397 }
0x2cf8   :  { %v6400_v5 = vpop.eup %6399  ;;  %v2976_v7 = vmul.f32 %v6398_v56, %v2973_v62  ;;  %vm2981_vm8 = vweird.f32 %v6398_v56 }
0x2cf9   :  { %v2991_v17 = vmul.f32 %v6400_v5, %v2974_v59  ;;  %vm2996_vm12 = vweird.f32 %v6400_v5  ;;  %vm2982_vm1 = vmor %vm2980_vm13, %vm2981_vm8 }
0x2cfa   :  { %v2977_v11 = vsub.f32 1.0, %v2976_v7  ;;  %vm2997_vm2 = vmor %vm2995_vm14, %vm2996_vm12 }
0x2cfb   :  { %v2992_v0 = vsub.f32 1.0, %v2991_v17 }
0x2cfc   :  { %v2978_v13 = vmul.f32 %v6398_v56, %v2977_v11 }
0x2cfd   :  { %v2993_v14 = vmul.f32 %v6400_v5, %v2992_v0 }
0x2cfe   :  { %v2979_v15 = vadd.f32 %v6398_v56, %v2978_v13 }
0x2cff   :  { %v2994_v12 = vadd.f32 %v6400_v5, %v2993_v14 }
0x2d00   :  { %v2983_v2 = vsel %vm2982_vm1, %v6398_v56, %v2979_v15 }
0x2d01   :  { %v2998_v6 = vsel %vm2997_vm2, %v6400_v5, %v2994_v12  ;;  %v2988_v21 = vsel %vm2985_vm5, %v2987_v30, %v2983_v2 }
0x2d02   :  { %v3003_v34 = vsel %vm3000_vm7, %v3002_v31, %v2998_v6  ;;  %v3013_v32 = vmul.f32 %v3009_v3, %v2988_v21 }
0x2d03   :  { %v3014_v42 = vmul.f32 %v3010_v40, %v3003_v34 }
0x2d5f   :  { %v3018_v9 = vpop.permute.xlu0 %3017 }
0x2d60   :  { %v3020_v45 = vpop.permute.xlu1 %3019  ;;  %v3023_v44 = vmul.f32 %v3018_v9, %v2988_v21 }
0x2d61   :  { %v3024_v24 = vmul.f32 %v3020_v45, %v3003_v34 }
0x2d62   :  { %3027 = vrot.lane.b32.xlu2 %v3023_v44, %s6890_s2 }
0x2d63   :  { %3029 = vrot.lane.b32.xlu0 %v3024_v24, %s6890_s2 }
0x2dbc   :  { %v3028_v29 = vpop.permute.xlu2 %3027 }
0x2dbd   :  { %v7544_v25 = vadd.f32 %v3028_v29, %v3013_v32 }
0x2dbf   :  { %6401 = vtanh.f32 %v7544_v25 }
0x2dc5   :  { %v6402_v38 = vpop.eup %6401 }
0x2dc6   :  { %3039 = vrot.lane.b32.xlu1 %v6402_v38, %s6886_s17  ;;  %v3125_v38 = vrot.slane %v7544_v25, 7 }
0x2dd5   :  { %v3030_v51 = vpop.permute.xlu0 %3029 }
0x2dd6   :  { %v7549_v35 = vadd.f32 %v3030_v51, %v3014_v42 }
0x2dd8   :  { %6403 = vtanh.f32 %v7549_v35  ;;  %v3126_v44 = vrot.slane %v7549_v35, 7 }
0x2dde   :  { %v6404_v33 = vpop.eup %6403 }
0x2ddf   :  { %3041 = vrot.lane.b32.xlu2 %v6404_v33, %s6886_s17 }
0x2e38   :  { %v3040_v41 = vpop.permute.xlu1 %3039 }
0x2e39   :  { %v3042_v36 = vpop.permute.xlu2 %3041  ;;  %v3045_v54 = vmul.f32 %v3040_v41, %v2988_v21 }
0x2e3a   :  { %v3046_v58 = vmul.f32 %v3042_v36, %v3003_v34 }
0x2e3b   :  { %v3049_v49 = vrot.slane %v3045_v54, 3  ;;  %v7555_v60 = vsel %vm1051_vm9, %v7525_v61, %v3045_v54 }
0x2e3c   :  { %v3050_v50 = vrot.slane %v3046_v58, 2  ;;  %v7559_v27 = vsel %vm1051_vm9, %v7528_v52, %v3046_v58 }
0x2e3e   :  { %v3051_v19 = vsel %vm239_vm10, %v3050_v50, %v3049_v49 }
0x2e3f   :  { %3052 = vrot.lane.b32.xlu0 %v3051_v19, %s6890_s2 }
0x2eb1   :  { %v3053_v55 = vpop.permute.xlu0 %3052 }
0x2eb2   :  { %5941 = vmatmul.msk.f32.vlgmr.msra.gmra.mxu1 %vm132_vm11, %v3053_v55 }
0x2f2f   :  { %v3073_v48 = vpop.f32.mrf.mxu1 }
0x2f30   :  { %v3077_v46 = vrot.slane %v3073_v48, 4  ;;  %v3078_v43 = vrot.slane %v3073_v48, 5 }
0x2f32   :  { %v3081_v39 = vadd.f32 %v3077_v46, %v7442_v47  ;;  %v3082_v61 = vadd.f32 %v3078_v43, %v7445_v1 }
0x2f34   :  { %6405 = vtanh.f32 %v3081_v39  ;;  %v5943_v52 = vmul.f32 -1.442695, %v3082_v61  ;;  %v5942_v8 = vmul.f32 -1.442695, %v3081_v39 }
0x2f35   :  { %6407 = vtanh.f32 %v3082_v61 }
0x2f36   :  { %6409 = vpow2.f32 %v5943_v52 }
0x2f3a   :  { %v6406_v53 = vpop.eup %6405 }
0x2f3b   :  { %v6408_v57 = vpop.eup %6407  ;;  %3133 = vrot.lane.b32.xlu1 %v6406_v53, %s6886_s17 }
0x2f3c   :  { %3135 = vrot.lane.b32.xlu2 %v6408_v57, %s6886_s17  ;;  %v6410_v63 = vpop.eup %6409 }
0x2f3d   :  { %v3090_v18 = vadd.f32 1.0, %v6410_v63 }
0x2f3f   :  { %6411 = vrcp.f32 %v3090_v18  ;;  %v3117_v17 = vand.u32 2147483648, %v3090_v18  ;;  %vm3111_vm12 = vweird.f32 %v3090_v18  ;;  %v3115_v11 = vand.u32 2147483647, %v3090_v18 }
0x2f40   :  { %6413 = vpow2.f32 %v5942_v8 }
0x2f41   :  { %v3118_v13 = vor.u32 1.1754944e-38, %v3117_v17  ;;  %vm3116_vm14 = vcmp.eq.f32.partialorder %v3115_v11, 8.507059e+37 }
0x2f45   :  { %v6412_v22 = vpop.eup %6411 }
0x2f46   :  { %v3107_v23 = vmul.f32 %v6412_v22, %v3090_v18  ;;  %v6414_v59 = vpop.eup %6413  ;;  %vm3112_vm8 = vweird.f32 %v6412_v22 }
0x2f47   :  { %v3089_v5 = vadd.f32 1.0, %v6414_v59  ;;  %vm3113_vm13 = vmor %vm3111_vm12, %vm3112_vm8 }
0x2f48   :  { %v3108_v62 = vsub.f32 1.0, %v3107_v23 }
0x2f49   :  { %6415 = vrcp.f32 %v3089_v5  ;;  %v3102_v6 = vand.u32 2147483648, %v3089_v5  ;;  %vm3096_vm2 = vweird.f32 %v3089_v5  ;;  %v3100_v30 = vand.u32 2147483647, %v3089_v5 }
0x2f4a   :  { %v3109_v56 = vmul.f32 %v6412_v22, %v3108_v62 }
0x2f4b   :  { %v3103_v9 = vor.u32 1.1754944e-38, %v3102_v6  ;;  %vm3101_vm7 = vcmp.eq.f32.partialorder %v3100_v30, 8.507059e+37 }
0x2f4c   :  { %v3110_v7 = vadd.f32 %v6412_v22, %v3109_v56 }
0x2f4e   :  { %v3114_v0 = vsel %vm3113_vm13, %v6412_v22, %v3110_v7 }
0x2f4f   :  { %v3119_v15 = vsel %vm3116_vm14, %v3118_v13, %v3114_v0  ;;  %v6416_v12 = vpop.eup %6415 }
0x2f50   :  { %v3092_v16 = vmul.f32 %v6416_v12, %v3089_v5  ;;  %vm3097_vm1 = vweird.f32 %v6416_v12  ;;  %v3130_v24 = vmul.f32 %v3126_v44, %v3119_v15 }
0x2f51   :  { %vm3098_vm5 = vmor %vm3096_vm2, %vm3097_vm1 }
0x2f52   :  { %v3093_v20 = vsub.f32 1.0, %v3092_v16 }
0x2f54   :  { %v3094_v28 = vmul.f32 %v6416_v12, %v3093_v20 }
0x2f56   :  { %v3095_v2 = vadd.f32 %v6416_v12, %v3094_v28 }
0x2f58   :  { %v3099_v31 = vsel %vm3098_vm5, %v6416_v12, %v3095_v2 }
0x2f59   :  { %v3104_v45 = vsel %vm3101_vm7, %v3103_v9, %v3099_v31 }
0x2f5a   :  { %v3129_v40 = vmul.f32 %v3125_v38, %v3104_v45 }
0x2f96   :  { %v3136_v14 = vpop.permute.xlu2 %3135 }
0x2f97   :  { %v3140_v4 = vmul.f32 %v3136_v14, %v3119_v15 }
0x2f99   :  { %3145 = vrot.lane.b32.xlu1 %v3140_v4, %s6890_s2 }
0x2fad   :  { %v3134_v21 = vpop.permute.xlu1 %3133 }
0x2fae   :  { %v3139_v34 = vmul.f32 %v3134_v21, %v3104_v45 }
0x2fb0   :  { %3143 = vrot.lane.b32.xlu0 %v3139_v34, %s6890_s2 }
0x300b   :  { %v3146_v3 = vpop.permute.xlu1 %3145 }
0x300c   :  { %v7571_v32 = vadd.f32 %v3146_v3, %v3130_v24 }
0x300e   :  { %6417 = vtanh.f32 %v7571_v32  ;;  %v3242_v34 = vrot.slane %v7571_v32, 7 }
0x3014   :  { %v6418_v29 = vpop.eup %6417 }
0x3015   :  { %3157 = vrot.lane.b32.xlu0 %v6418_v29, %s6886_s17 }
0x3022   :  { %v3144_v42 = vpop.permute.xlu0 %3143 }
0x3023   :  { %v7576_v51 = vadd.f32 %v3144_v42, %v3129_v40 }
0x3025   :  { %6419 = vtanh.f32 %v7576_v51 }
0x302b   :  { %v6420_v33 = vpop.eup %6419 }
0x302c   :  { %3155 = vrot.lane.b32.xlu2 %v6420_v33, %s6886_s17 }
0x3086   :  { %v3156_v35 = vpop.permute.xlu2 %3155 }
0x3087   :  { %v3158_v41 = vpop.permute.xlu0 %3157  ;;  %v3161_v36 = vmul.f32 %v3156_v35, %v3104_v45  ;;  %v3241_v45 = vrot.slane %v7576_v51, 7 }
0x3088   :  { %v3162_v54 = vmul.f32 %v3158_v41, %v3119_v15 }
0x3089   :  { %v3165_v58 = vrot.slane %v3161_v36, 4  ;;  %v7582_v49 = vsel %vm1054_vm6, %v7555_v60, %v3161_v36 }
0x308a   :  { %v3166_v50 = vrot.slane %v3162_v54, 3  ;;  %v7586_v25 = vsel %vm1054_vm6, %v7559_v27, %v3162_v54 }
0x308c   :  { %v3167_v19 = vsel %vm239_vm10, %v3166_v50, %v3165_v58 }
0x308d   :  { %3168 = vrot.lane.b32.xlu1 %v3167_v19, %s6890_s2 }
0x30ff   :  { %v3169_v55 = vpop.permute.xlu1 %3168 }
0x3100   :  { %5944 = vmatmul.msk.f32.vlgmr.msrb.gmra.mxu2 %vm132_vm11, %v3169_v55 }
0x3183   :  { %v3189_v48 = vpop.f32.mrf.mxu2 }
0x3184   :  { %v3193_v46 = vrot.slane %v3189_v48, 3  ;;  %v3194_v43 = vrot.slane %v3189_v48, 4 }
0x3186   :  { %v3197_v39 = vadd.f32 %v3193_v46, %v7442_v47  ;;  %v3198_v60 = vadd.f32 %v3194_v43, %v7445_v1 }
0x3188   :  { %6421 = vtanh.f32 %v3197_v39  ;;  %v5945_v27 = vmul.f32 -1.442695, %v3197_v39  ;;  %v5946_v18 = vmul.f32 -1.442695, %v3198_v60 }
0x3189   :  { %6423 = vtanh.f32 %v3198_v60 }
0x318a   :  { %6425 = vpow2.f32 %v5945_v27 }
0x318e   :  { %v6422_v61 = vpop.eup %6421 }
0x318f   :  { %v6424_v53 = vpop.eup %6423  ;;  %3249 = vrot.lane.b32.xlu2 %v6422_v61, %s6886_s17 }
0x3190   :  { %3251 = vrot.lane.b32.xlu0 %v6424_v53, %s6886_s17  ;;  %v6426_v57 = vpop.eup %6425 }
0x3191   :  { %v3205_v52 = vadd.f32 1.0, %v6426_v57 }
0x3193   :  { %6427 = vrcp.f32 %v3205_v52  ;;  %v3218_v5 = vand.u32 2147483648, %v3205_v52  ;;  %vm3212_vm12 = vweird.f32 %v3205_v52  ;;  %v3216_v7 = vand.u32 2147483647, %v3205_v52 }
0x3194   :  { %6429 = vpow2.f32 %v5946_v18 }
0x3195   :  { %v3219_v11 = vor.u32 1.1754944e-38, %v3218_v5  ;;  %vm3217_vm14 = vcmp.eq.f32.partialorder %v3216_v7, 8.507059e+37 }
0x3199   :  { %v6428_v63 = vpop.eup %6427 }
0x319a   :  { %v3208_v22 = vmul.f32 %v6428_v63, %v3205_v52  ;;  %v6430_v62 = vpop.eup %6429  ;;  %vm3213_vm8 = vweird.f32 %v6428_v63 }
0x319b   :  { %v3206_v59 = vadd.f32 1.0, %v6430_v62  ;;  %vm3214_vm13 = vmor %vm3212_vm12, %vm3213_vm8 }
0x319c   :  { %v3209_v8 = vsub.f32 1.0, %v3208_v22 }
0x319d   :  { %6431 = vrcp.f32 %v3206_v59  ;;  %v3233_v28 = vand.u32 2147483648, %v3206_v59  ;;  %vm3227_vm2 = vweird.f32 %v3206_v59  ;;  %v3231_v2 = vand.u32 2147483647, %v3206_v59 }
0x319e   :  { %v3210_v23 = vmul.f32 %v6428_v63, %v3209_v8 }
0x319f   :  { %v3234_v30 = vor.u32 1.1754944e-38, %v3233_v28  ;;  %vm3232_vm7 = vcmp.eq.f32.partialorder %v3231_v2, 8.507059e+37 }
0x31a0   :  { %v3211_v56 = vadd.f32 %v6428_v63, %v3210_v23 }
0x31a2   :  { %v3215_v17 = vsel %vm3214_vm13, %v6428_v63, %v3211_v56 }
0x31a3   :  { %v3220_v13 = vsel %vm3217_vm14, %v3219_v11, %v3215_v17  ;;  %v6432_v15 = vpop.eup %6431 }
0x31a4   :  { %v3223_v12 = vmul.f32 %v6432_v15, %v3206_v59  ;;  %vm3228_vm1 = vweird.f32 %v6432_v15  ;;  %v3245_v44 = vmul.f32 %v3241_v45, %v3220_v13 }
0x31a5   :  { %vm3229_vm5 = vmor %vm3227_vm2, %vm3228_vm1 }
0x31a6   :  { %v3224_v4 = vsub.f32 1.0, %v3223_v12 }
0x31a8   :  { %v3225_v16 = vmul.f32 %v6432_v15, %v3224_v4 }
0x31aa   :  { %v3226_v20 = vadd.f32 %v6432_v15, %v3225_v16 }
0x31ac   :  { %v3230_v6 = vsel %vm3229_vm5, %v6432_v15, %v3226_v20 }
0x31ad   :  { %v3235_v9 = vsel %vm3232_vm7, %v3234_v30, %v3230_v6 }
0x31ae   :  { %v3246_v24 = vmul.f32 %v3242_v34, %v3235_v9 }
0x31e9   :  { %v3250_v0 = vpop.permute.xlu2 %3249 }
0x31ea   :  { %v3255_v14 = vmul.f32 %v3250_v0, %v3220_v13 }
0x31ec   :  { %3259 = vrot.lane.b32.xlu1 %v3255_v14, %s6890_s2 }
0x3202   :  { %v3252_v31 = vpop.permute.xlu0 %3251 }
0x3203   :  { %v3256_v21 = vmul.f32 %v3252_v31, %v3235_v9 }
0x3205   :  { %3261 = vrot.lane.b32.xlu2 %v3256_v21, %s6890_s2 }
0x325e   :  { %v3260_v3 = vpop.permute.xlu1 %3259 }
0x325f   :  { %v3262_v29 = vpop.permute.xlu2 %3261  ;;  %v7599_v38 = vadd.f32 %v3260_v3, %v3245_v44 }
0x3260   :  { %v7601_v40 = vadd.f32 %v3262_v29, %v3246_v24 }
0x3261   :  { %6433 = vtanh.f32 %v7599_v38 }
0x3262   :  { %6435 = vtanh.f32 %v7601_v40  ;;  %v3358_v24 = vrot.slane %v7601_v40, 7 }
0x3267   :  { %v6434_v42 = vpop.eup %6433 }
0x3268   :  { %v6436_v33 = vpop.eup %6435  ;;  %3271 = vrot.lane.b32.xlu0 %v6434_v42, %s6886_s17 }
0x3269   :  { %3273 = vrot.lane.b32.xlu1 %v6436_v33, %s6886_s17 }
0x32da   :  { %v3272_v51 = vpop.permute.xlu0 %3271 }
0x32db   :  { %v3274_v32 = vpop.permute.xlu1 %3273  ;;  %v3277_v35 = vmul.f32 %v3272_v51, %v3220_v13 }
0x32dc   :  { %v3278_v41 = vmul.f32 %v3274_v32, %v3235_v9  ;;  %v3357_v9 = vrot.slane %v7599_v38, 7 }
0x32dd   :  { %v3281_v36 = vrot.slane %v3277_v35, 5  ;;  %v7609_v54 = vsel %vm1057_vm4, %v7582_v49, %v3277_v35 }
0x32de   :  { %v3282_v58 = vrot.slane %v3278_v41, 4  ;;  %v7613_v50 = vsel %vm1057_vm4, %v7586_v25, %v3278_v41 }
0x32e0   :  { %v3283_v19 = vsel %vm239_vm10, %v3282_v58, %v3281_v36 }
0x32e1   :  { %3284 = vrot.lane.b32.xlu2 %v3283_v19, %s6890_s2 }
0x333b   :  { %v3285_v55 = vpop.permute.xlu2 %3284 }
0x333c   :  { %5947 = vmatmul.msk.f32.vlgmr.msrb.gmra.mxu1 %vm132_vm11, %v3285_v55 }
0x33b9   :  { %v3305_v48 = vpop.f32.mrf.mxu1 }
0x33ba   :  { %v3309_v46 = vrot.slane %v3305_v48, 2  ;;  %v3310_v43 = vrot.slane %v3305_v48, 3 }
0x33bc   :  { %v3313_v39 = vadd.f32 %v3309_v46, %v7442_v47  ;;  %v3314_v49 = vadd.f32 %v3310_v43, %v7445_v1 }
0x33be   :  { %6437 = vtanh.f32 %v3313_v39  ;;  %v5948_v25 = vmul.f32 -1.442695, %v3313_v39  ;;  %v5949_v53 = vmul.f32 -1.442695, %v3314_v49 }
0x33bf   :  { %6439 = vtanh.f32 %v3314_v49 }
0x33c0   :  { %6441 = vpow2.f32 %v5948_v25 }
0x33c1   :  { %6443 = vpow2.f32 %v5949_v53 }
0x33c4   :  { %v6438_v60 = vpop.eup %6437 }
0x33c5   :  { %v6440_v61 = vpop.eup %6439  ;;  %3365 = vrot.lane.b32.xlu0 %v6438_v60, %s6886_s17 }
0x33c6   :  { %3367 = vrot.lane.b32.xlu1 %v6440_v61, %s6886_s17  ;;  %v6442_v27 = vpop.eup %6441 }
0x33c7   :  { %v6444_v57 = vpop.eup %6443  ;;  %v3321_v52 = vadd.f32 1.0, %v6442_v27 }
0x33c8   :  { %v3322_v63 = vadd.f32 1.0, %v6444_v57 }
0x33c9   :  { %6445 = vrcp.f32 %v3321_v52  ;;  %v3334_v11 = vand.u32 2147483648, %v3321_v52  ;;  %vm3328_vm13 = vweird.f32 %v3321_v52  ;;  %v3332_v13 = vand.u32 2147483647, %v3321_v52 }
0x33ca   :  { %6447 = vrcp.f32 %v3322_v63  ;;  %v3349_v0 = vand.u32 2147483648, %v3322_v63  ;;  %vm3343_vm14 = vweird.f32 %v3322_v63  ;;  %v3347_v14 = vand.u32 2147483647, %v3322_v63 }
0x33cb   :  { %v3335_v4 = vor.u32 1.1754944e-38, %v3334_v11  ;;  %vm3333_vm5 = vcmp.eq.f32.partialorder %v3332_v13, 8.507059e+37 }
0x33cc   :  { %v3350_v16 = vor.u32 1.1754944e-38, %v3349_v0  ;;  %vm3348_vm7 = vcmp.eq.f32.partialorder %v3347_v14, 8.507059e+37 }
0x33cf   :  { %v6446_v18 = vpop.eup %6445 }
0x33d0   :  { %v6448_v22 = vpop.eup %6447  ;;  %v3324_v8 = vmul.f32 %v6446_v18, %v3321_v52  ;;  %vm3329_vm8 = vweird.f32 %v6446_v18 }
0x33d1   :  { %v3339_v23 = vmul.f32 %v6448_v22, %v3322_v63  ;;  %vm3344_vm12 = vweird.f32 %v6448_v22  ;;  %vm3330_vm1 = vmor %vm3328_vm13, %vm3329_vm8 }
0x33d2   :  { %v3325_v62 = vsub.f32 1.0, %v3324_v8  ;;  %vm3345_vm2 = vmor %vm3343_vm14, %vm3344_vm12 }
0x33d3   :  { %v3340_v59 = vsub.f32 1.0, %v3339_v23 }
0x33d4   :  { %v3326_v56 = vmul.f32 %v6446_v18, %v3325_v62 }
0x33d5   :  { %v3341_v5 = vmul.f32 %v6448_v22, %v3340_v59 }
0x33d6   :  { %v3327_v7 = vadd.f32 %v6446_v18, %v3326_v56 }
0x33d7   :  { %v3342_v17 = vadd.f32 %v6448_v22, %v3341_v5 }
0x33d8   :  { %v3331_v15 = vsel %vm3330_vm1, %v6446_v18, %v3327_v7 }
0x33d9   :  { %v3346_v12 = vsel %vm3345_vm2, %v6448_v22, %v3342_v17  ;;  %v3336_v28 = vsel %vm3333_vm5, %v3335_v4, %v3331_v15 }
0x33da   :  { %v3351_v6 = vsel %vm3348_vm7, %v3350_v16, %v3346_v12  ;;  %v3361_v21 = vmul.f32 %v3357_v9, %v3336_v28 }
0x33db   :  { %v3362_v3 = vmul.f32 %v3358_v24, %v3351_v6 }
0x3437   :  { %v3366_v20 = vpop.permute.xlu0 %3365 }
0x3438   :  { %v3368_v2 = vpop.permute.xlu1 %3367  ;;  %v3371_v30 = vmul.f32 %v3366_v20, %v3336_v28 }
0x3439   :  { %v3372_v31 = vmul.f32 %v3368_v2, %v3351_v6 }
0x343a   :  { %3375 = vrot.lane.b32.xlu2 %v3371_v30, %s6890_s2 }
0x343b   :  { %3377 = vrot.lane.b32.xlu0 %v3372_v31, %s6890_s2 }
0x3494   :  { %v3376_v45 = vpop.permute.xlu2 %3375 }
0x3495   :  { %v7625_v34 = vadd.f32 %v3376_v45, %v3361_v21 }
0x3497   :  { %6449 = vtanh.f32 %v7625_v34  ;;  %v3473_v21 = vrot.slane %v7625_v34, 7  ;;  %v3528_v34 = vld [vmem:[#allocation8 + $0x128] sm:$0xff] }
0x3498   :  { %3553 = vmatpush.msra.mxu3 %v3528_v34 }
0x349d   :  { %v6450_v44 = vpop.eup %6449 }
0x349e   :  { %3387 = vrot.lane.b32.xlu1 %v6450_v44, %s6886_s17 }
0x34ad   :  { %v3378_v29 = vpop.permute.xlu0 %3377 }
0x34ae   :  { %v7630_v42 = vadd.f32 %v3378_v29, %v3362_v3 }
0x34b0   :  { %6451 = vtanh.f32 %v7630_v42  ;;  %v3474_v2 = vrot.slane %v7630_v42, 7 }
0x34b6   :  { %v6452_v33 = vpop.eup %6451 }
0x34b7   :  { %3389 = vrot.lane.b32.xlu2 %v6452_v33, %s6886_s17 }
0x3510   :  { %v3388_v38 = vpop.permute.xlu1 %3387 }
0x3511   :  { %v3390_v51 = vpop.permute.xlu2 %3389  ;;  %v3393_v32 = vmul.f32 %v3388_v38, %v3336_v28 }
0x3512   :  { %v3394_v35 = vmul.f32 %v3390_v51, %v3351_v6 }
0x3513   :  { %v3397_v41 = vrot.slane %v3393_v32, 6  ;;  %v7636_v36 = vsel %vm1060_vm3, %v7609_v54, %v3393_v32 }
0x3514   :  { %v3398_v58 = vrot.slane %v3394_v35, 5  ;;  %v7640_v40 = vsel %vm1060_vm3, %v7613_v50, %v3394_v35  ;;  %v3527_v35 = vld [vmem:[#allocation8 + $0x120] sm:$0xff] }
0x3515   :  { %3554 = vmatpush.msra.mxu3 %v3527_v35 }
0x3516   :  { %v3399_v19 = vsel %vm239_vm10, %v3398_v58, %v3397_v41  ;;  %v3567_v41 = vld [vmem:[#allocation8 + $0x148] sm:$0xff]  ;;  %v3526_v58 = vld [vmem:[#allocation8 + $0x118] sm:$0xff] }
0x3517   :  { %3400 = vrot.lane.b32.xlu0 %v3399_v19, %s6890_s2  ;;  %3580 = vmatpush.msrb.mxu0 %v3567_v41  ;;  %v3525_v19 = vld [vmem:[#allocation8 + $0x110] sm:$0xff] }
0x3518   :  { %3688 = vmatpush.msra.mxu1 %v3567_v41  ;;  %3802 = vmatpush.msrb.mxu2 %v3567_v41 }
0x3519   :  { %3555 = vmatpush.msra.mxu3 %v3526_v58 }
0x351b   :  { %3556 = vmatpush.msra.mxu3 %v3525_v19 }
0x351d   :  { %4266 = vmatpush.msrb.mxu3 %v3567_v41 }
0x3589   :  { %v3401_v55 = vpop.permute.xlu0 %3400 }
0x358a   :  { %5950 = vmatmul.msk.f32.vlgmr.msra.gmra.mxu2 %vm132_vm11, %v3401_v55  ;;  %v3565_v55 = vld [vmem:[#allocation8 + $0x138] sm:$0xff] }
0x360d   :  { %v3421_v48 = vpop.f32.mrf.mxu2 }
0x360e   :  { %v3425_v46 = vrot.slane %v3421_v48, 1  ;;  %v3426_v43 = vrot.slane %v3421_v48, 2 }
0x3610   :  { %v3429_v39 = vadd.f32 %v3425_v46, %v7442_v47  ;;  %v3430_v54 = vadd.f32 %v3426_v43, %v7445_v1  ;;  %v6079_v43 = vld [vmem:[#allocation8 + $0x150] ss:$0 sm:$0xff] }
0x3612   :  { %6453 = vtanh.f32 %v3429_v39  ;;  %v5952_v50 = vmul.f32 -1.442695, %v3430_v54  ;;  %v5951_v27 = vmul.f32 -1.442695, %v3429_v39 }
0x3613   :  { %6455 = vtanh.f32 %v3430_v54 }
0x3614   :  { %6457 = vpow2.f32 %v5952_v50 }
0x3618   :  { %v6454_v49 = vpop.eup %6453 }
0x3619   :  { %v6456_v60 = vpop.eup %6455  ;;  %3481 = vrot.lane.b32.xlu1 %v6454_v49, %s6886_s17 }
0x361a   :  { %3483 = vrot.lane.b32.xlu2 %v6456_v60, %s6886_s17  ;;  %v6458_v61 = vpop.eup %6457 }
0x361b   :  { %v3438_v25 = vadd.f32 1.0, %v6458_v61 }
0x361d   :  { %6459 = vrcp.f32 %v3438_v25  ;;  %v3465_v22 = vand.u32 2147483648, %v3438_v25  ;;  %vm3459_vm12 = vweird.f32 %v3438_v25  ;;  %v3463_v8 = vand.u32 2147483647, %v3438_v25 }
0x361e   :  { %6461 = vpow2.f32 %v5951_v27 }
0x361f   :  { %v3466_v62 = vor.u32 1.1754944e-38, %v3465_v22  ;;  %vm3464_vm14 = vcmp.eq.f32.partialorder %v3463_v8, 8.507059e+37 }
0x3623   :  { %v6460_v53 = vpop.eup %6459 }
0x3624   :  { %v3455_v57 = vmul.f32 %v6460_v53, %v3438_v25  ;;  %v6462_v52 = vpop.eup %6461  ;;  %vm3460_vm8 = vweird.f32 %v6460_v53 }
0x3625   :  { %v3437_v63 = vadd.f32 1.0, %v6462_v52  ;;  %vm3461_vm13 = vmor %vm3459_vm12, %vm3460_vm8  ;;  %vm8122_vm8 = vcmask 1046528  }
0x3626   :  { %v3456_v47 = vsub.f32 1.0, %v3455_v57  ;;  %vm8123_vm12 = vmmov %vm8122_vm8 }
0x3627   :  { %6463 = vrcp.f32 %v3437_v63  ;;  %v3450_v14 = vand.u32 2147483648, %v3437_v63  ;;  %vm3444_vm2 = vweird.f32 %v3437_v63  ;;  %v3448_v15 = vand.u32 2147483647, %v3437_v63 }
0x3628   :  { %v3457_v1 = vmul.f32 %v6460_v53, %v3456_v47 }
0x3629   :  { %v3451_v4 = vor.u32 1.1754944e-38, %v3450_v14  ;;  %vm3449_vm7 = vcmp.eq.f32.partialorder %v3448_v15, 8.507059e+37 }
0x362a   :  { %v3458_v18 = vadd.f32 %v6460_v53, %v3457_v1 }
0x362c   :  { %v3462_v23 = vsel %vm3461_vm13, %v6460_v53, %v3458_v18 }
0x362d   :  { %v3467_v56 = vsel %vm3464_vm14, %v3466_v62, %v3462_v23  ;;  %v6464_v5 = vpop.eup %6463 }
0x362e   :  { %v3440_v17 = vmul.f32 %v6464_v5, %v3437_v63  ;;  %vm3445_vm1 = vweird.f32 %v6464_v5  ;;  %v3478_v6 = vmul.f32 %v3474_v2, %v3467_v56 }
0x362f   :  { %vm3446_vm5 = vmor %vm3444_vm2, %vm3445_vm1 }
0x3630   :  { %v3441_v11 = vsub.f32 1.0, %v3440_v17 }
0x3632   :  { %v3442_v0 = vmul.f32 %v6464_v5, %v3441_v11 }
0x3634   :  { %v3443_v13 = vadd.f32 %v6464_v5, %v3442_v0 }
0x3636   :  { %v3447_v12 = vsel %vm3446_vm5, %v6464_v5, %v3443_v13 }
0x3637   :  { %v3452_v20 = vsel %vm3449_vm7, %v3451_v4, %v3447_v12 }
0x3638   :  { %v3477_v45 = vmul.f32 %v3473_v21, %v3452_v20 }
0x3674   :  { %v3484_v59 = vpop.permute.xlu2 %3483 }
0x3675   :  { %v3488_v7 = vmul.f32 %v3484_v59, %v3467_v56 }
0x3677   :  { %3493 = vrot.lane.b32.xlu1 %v3488_v7, %s6890_s2 }
0x368b   :  { %v3482_v16 = vpop.permute.xlu1 %3481 }
0x368c   :  { %v3487_v28 = vmul.f32 %v3482_v16, %v3452_v20 }
0x368e   :  { %3491 = vrot.lane.b32.xlu0 %v3487_v28, %s6890_s2 }
0x36e9   :  { %v3494_v30 = vpop.permute.xlu1 %3493 }
0x36ea   :  { %v3498_v31 = vadd.f32 %v3494_v30, %v3478_v6 }
0x36ec   :  { %6465 = vtanh.f32 %v3498_v31 }
0x36f2   :  { %v6466_v9 = vpop.eup %6465 }
0x36f3   :  { %3505 = vrot.lane.b32.xlu0 %v6466_v9, %s6886_s17 }
0x3700   :  { %v3492_v44 = vpop.permute.xlu0 %3491 }
0x3701   :  { %v3497_v24 = vadd.f32 %v3492_v44, %v3477_v45 }
0x3703   :  { %6467 = vtanh.f32 %v3497_v24 }
0x3709   :  { %v6468_v3 = vpop.eup %6467 }
0x370a   :  { %3503 = vrot.lane.b32.xlu2 %v6468_v3, %s6886_s17 }
0x3764   :  { %v3504_v29 = vpop.permute.xlu2 %3503 }
0x3765   :  { %v3506_v33 = vpop.permute.xlu0 %3505  ;;  %v3509_v38 = vmul.f32 %v3504_v29, %v3452_v20 }
0x3766   :  { %v3510_v42 = vmul.f32 %v3506_v33, %v3467_v56 }
0x3767   :  { %v3523_v51 = vsel %vm8122_vm8, %v7636_v36, %v3509_v38  ;;  %v3566_v36 = vld [vmem:[#allocation8 + $0x140] sm:$0xff] }
0x3768   :  { %v3524_v32 = vsel %vm8123_vm12, %v7640_v40, %v3510_v42  ;;  %3533 = vrot.lane.b32.xlu1 %v3523_v51, %s6890_s2  ;;  %3581 = vmatpush.msrb.mxu0 %v3566_v36  ;;  %v3564_v40 = vld [vmem:[#allocation8 + $0x130] sm:$0xff] }
0x3769   :  { %3535 = vrot.lane.b32.xlu2 %v3524_v32, %s6890_s2  ;;  %3689 = vmatpush.msra.mxu1 %v3566_v36 }
0x376a   :  { %3803 = vmatpush.msrb.mxu2 %v3566_v36  ;;  %4267 = vmatpush.msrb.mxu3 %v3566_v36 }
0x376b   :  { %3582 = vmatpush.msrb.mxu0 %v3565_v55  ;;  %3690 = vmatpush.msra.mxu1 %v3565_v55 }
0x376c   :  { %3804 = vmatpush.msrb.mxu2 %v3565_v55  ;;  %4268 = vmatpush.msrb.mxu3 %v3565_v55 }
0x376d   :  { %3583 = vmatpush.msrb.mxu0 %v3564_v40  ;;  %3691 = vmatpush.msra.mxu1 %v3564_v40 }
0x376e   :  { %3584 = vmatmul.f32.vlgmr.msrb.gmra.mxu0 %v6889_v10  ;;  %3805 = vmatpush.msrb.mxu2 %v3564_v40 }
0x376f   :  { %3918 = vmatpush.msra.mxu0 %v3567_v41  ;;  %4034 = vmatpush.msrb.mxu1 %v3567_v41 }
0x3770   :  { %4150 = vmatpush.msra.mxu2 %v3567_v41  ;;  %4269 = vmatpush.msrb.mxu3 %v3564_v40 }
0x3771   :  { %3919 = vmatpush.msra.mxu0 %v3566_v36  ;;  %4035 = vmatpush.msrb.mxu1 %v3566_v36 }
0x3772   :  { %4151 = vmatpush.msra.mxu2 %v3566_v36 }
0x3773   :  { %3920 = vmatpush.msra.mxu0 %v3565_v55  ;;  %4036 = vmatpush.msrb.mxu1 %v3565_v55 }
0x3774   :  { %4152 = vmatpush.msra.mxu2 %v3565_v55 }
0x3775   :  { %3921 = vmatpush.msra.mxu0 %v3564_v40  ;;  %4037 = vmatpush.msrb.mxu1 %v3564_v40 }
0x3776   :  { %4153 = vmatpush.msra.mxu2 %v3564_v40 }
0x3777   :  { %4382 = vmatpush.msrb.mxu0 %v3567_v41 }
0x3779   :  { %4383 = vmatpush.msrb.mxu0 %v3566_v36 }
0x377b   :  { %4384 = vmatpush.msrb.mxu0 %v3565_v55 }
0x377d   :  { %4385 = vmatpush.msrb.mxu0 %v3564_v40 }
0x37c3   :  { %v3536_v46 = vpop.permute.xlu2 %3535 }
0x37da   :  { %v3534_v48 = vpop.permute.xlu1 %3533 }
0x37db   :  { %5953 = vmatmul.msk.f32.vlgmr.msra.gmra.mxu3 %vm132_vm11, %v3534_v48 }
0x37e3   :  { %5954 = vmatmul.msk.f32.gmra.mxu3 %vm132_vm11, %v3536_v46 }
0x37eb   :  { %v3585_v54 = vpop.f32.mrf.mxu0 }
0x37ec   :  { %v3589_v50 = vrot.slane %v3585_v54, 1 }
0x385e   :  { %v3558_v39 = vpop.f32.mrf.mxu3 }
0x385f   :  { %v7664_v49 = vadd.f32 %v6079_v43, %v3558_v39 }
0x3861   :  { %v3592_v60 = vadd.f32 %v3585_v54, %v7664_v49 }
0x3863   :  { %6469 = vtanh.f32 %v3592_v60  ;;  %v5955_v47 = vmul.f32 -1.442695, %v3592_v60 }
0x3866   :  { %v3561_v61 = vpop.f32.mrf.mxu3 }
0x3867   :  { %v7667_v25 = vadd.f32 %v6079_v43, %v3561_v61 }
0x3869   :  { %v6470_v53 = vpop.eup %6469  ;;  %v3593_v27 = vadd.f32 %v3589_v50, %v7667_v25 }
0x386a   :  { %3638 = vrot.lane.b32.xlu1 %v6470_v53, %s6886_s17 }
0x386b   :  { %6471 = vtanh.f32 %v3593_v27  ;;  %v5956_v52 = vmul.f32 -1.442695, %v3593_v27 }
0x386c   :  { %6473 = vpow2.f32 %v5955_v47 }
0x386d   :  { %6475 = vpow2.f32 %v5956_v52 }
0x3871   :  { %v6472_v57 = vpop.eup %6471 }
0x3872   :  { %3640 = vrot.lane.b32.xlu0 %v6472_v57, %s6886_s17  ;;  %v6474_v1 = vpop.eup %6473 }
0x3873   :  { %v3600_v63 = vadd.f32 1.0, %v6474_v1  ;;  %v6476_v18 = vpop.eup %6475 }
0x3874   :  { %v3601_v22 = vadd.f32 1.0, %v6476_v18 }
0x3875   :  { %6477 = vrcp.f32 %v3600_v63  ;;  %v3613_v11 = vand.u32 2147483648, %v3600_v63  ;;  %vm3607_vm14 = vweird.f32 %v3600_v63  ;;  %v3611_v0 = vand.u32 2147483647, %v3600_v63 }
0x3876   :  { %6479 = vrcp.f32 %v3601_v22  ;;  %v3628_v28 = vand.u32 2147483648, %v3601_v22  ;;  %vm3622_vm7 = vweird.f32 %v3601_v22  ;;  %v3626_v2 = vand.u32 2147483647, %v3601_v22 }
0x3877   :  { %v3614_v15 = vor.u32 1.1754944e-38, %v3613_v11  ;;  %vm3612_vm2 = vcmp.eq.f32.partialorder %v3611_v0, 8.507059e+37 }
0x3878   :  { %v3629_v30 = vor.u32 1.1754944e-38, %v3628_v28  ;;  %vm3627_vm12 = vcmp.eq.f32.partialorder %v3626_v2, 8.507059e+37 }
0x387b   :  { %v6478_v8 = vpop.eup %6477 }
0x387c   :  { %v3603_v23 = vmul.f32 %v6478_v8, %v3600_v63  ;;  %v6480_v59 = vpop.eup %6479  ;;  %vm3608_vm13 = vweird.f32 %v6478_v8 }
0x387d   :  { %v3618_v5 = vmul.f32 %v6480_v59, %v3601_v22  ;;  %vm3609_vm1 = vmor %vm3607_vm14, %vm3608_vm13  ;;  %vm3623_vm5 = vweird.f32 %v6480_v59 }
0x387e   :  { %v3604_v62 = vsub.f32 1.0, %v3603_v23  ;;  %vm3624_vm8 = vmor %vm3622_vm7, %vm3623_vm5 }
0x387f   :  { %v3619_v17 = vsub.f32 1.0, %v3618_v5 }
0x3880   :  { %v3605_v56 = vmul.f32 %v6478_v8, %v3604_v62 }
0x3881   :  { %v3620_v14 = vmul.f32 %v6480_v59, %v3619_v17 }
0x3882   :  { %v3606_v7 = vadd.f32 %v6478_v8, %v3605_v56 }
0x3883   :  { %v3621_v20 = vadd.f32 %v6480_v59, %v3620_v14 }
0x3884   :  { %v3610_v13 = vsel %vm3609_vm1, %v6478_v8, %v3606_v7 }
0x3885   :  { %v3615_v4 = vsel %vm3612_vm2, %v3614_v15, %v3610_v13  ;;  %v3625_v6 = vsel %vm3624_vm8, %v6480_v59, %v3621_v20 }
0x3886   :  { %v3630_v9 = vsel %vm3627_vm12, %v3629_v30, %v3625_v6  ;;  %v3634_v29 = vmul.f32 0.0, %v3615_v4 }
0x3887   :  { %v3635_v45 = vmul.f32 0.0, %v3630_v9 }
0x38dc   :  { %v3639_v12 = vpop.permute.xlu1 %3638 }
0x38dd   :  { %v3644_v16 = vmul.f32 %v3639_v12, %v3615_v4 }
0x38df   :  { %3648 = vrot.lane.b32.xlu0 %v3644_v16, %s6890_s2 }
0x38e4   :  { %v3641_v31 = vpop.permute.xlu0 %3640 }
0x38e5   :  { %v3645_v21 = vmul.f32 %v3641_v31, %v3630_v9 }
0x38e7   :  { %3650 = vrot.lane.b32.xlu2 %v3645_v21, %s6890_s2 }
0x3941   :  { %v3651_v44 = vpop.permute.xlu2 %3650 }
0x3942   :  { %v7674_v24 = vadd.f32 %v3651_v44, %v3635_v45 }
0x3944   :  { %6481 = vtanh.f32 %v7674_v24  ;;  %v3745_v20 = vrot.slane %v7674_v24, 7 }
0x394a   :  { %v6482_v3 = vpop.eup %6481 }
0x394b   :  { %3662 = vrot.lane.b32.xlu1 %v6482_v3, %s6886_s17 }
0x3951   :  { %v3649_v33 = vpop.permute.xlu0 %3648 }
0x3952   :  { %v7678_v38 = vadd.f32 %v3649_v33, %v3634_v29 }
0x3954   :  { %6483 = vtanh.f32 %v7678_v38  ;;  %v3744_v31 = vrot.slane %v7678_v38, 7 }
0x395a   :  { %v6484_v42 = vpop.eup %6483 }
0x395b   :  { %3660 = vrot.lane.b32.xlu2 %v6484_v42, %s6886_s17 }
0x39b5   :  { %v3661_v51 = vpop.permute.xlu2 %3660 }
0x39b6   :  { %v7684_v35 = vmul.f32 %v3661_v51, %v3615_v4 }
0x39bd   :  { %v3663_v32 = vpop.permute.xlu1 %3662 }
0x39be   :  { %v7682_v34 = vmul.f32 %v3663_v32, %v3630_v9 }
0x39c0   :  { %v3670_v41 = vrot.slane %v7682_v34, 7 }
0x39c2   :  { %v3671_v58 = vsel %vm239_vm10, %v3670_v41, %v7684_v35 }
0x39c3   :  { %3672 = vrot.lane.b32.xlu0 %v3671_v58, %s6890_s2 }
0x3a35   :  { %v3673_v19 = vpop.permute.xlu0 %3672 }
0x3a36   :  { %5957 = vmatmul.msk.f32.vlgmr.msra.gmra.mxu1 %vm132_vm11, %v3673_v19 }
0x3ab3   :  { %v3693_v36 = vpop.f32.mrf.mxu1 }
0x3ab4   :  { %v3697_v55 = vrot.slane %v3693_v36, 7  ;;  %v3701_v40 = vadd.f32 %v3693_v36, %v7667_v25 }
0x3ab6   :  { %v3700_v48 = vadd.f32 %v3697_v55, %v7664_v49  ;;  %6485 = vtanh.f32 %v3701_v40  ;;  %v5959_v39 = vmul.f32 -1.442695, %v3701_v40 }
0x3ab8   :  { %6487 = vtanh.f32 %v3700_v48  ;;  %v5958_v53 = vmul.f32 -1.442695, %v3700_v48 }
0x3ab9   :  { %6489 = vpow2.f32 %v5959_v39 }
0x3abc   :  { %v6486_v46 = vpop.eup %6485 }
0x3abd   :  { %3754 = vrot.lane.b32.xlu2 %v6486_v46, %s6886_s17 }
0x3abe   :  { %v6488_v43 = vpop.eup %6487 }
0x3abf   :  { %3752 = vrot.lane.b32.xlu1 %v6488_v43, %s6886_s17  ;;  %v6490_v54 = vpop.eup %6489 }
0x3ac0   :  { %v3709_v60 = vadd.f32 1.0, %v6490_v54 }
0x3ac2   :  { %6491 = vrcp.f32 %v3709_v60  ;;  %v3736_v1 = vand.u32 2147483648, %v3709_v60  ;;  %vm3730_vm14 = vweird.f32 %v3709_v60  ;;  %v3734_v18 = vand.u32 2147483647, %v3709_v60 }
0x3ac3   :  { %6493 = vpow2.f32 %v5958_v53 }
0x3ac4   :  { %v3737_v8 = vor.u32 1.1754944e-38, %v3736_v1  ;;  %vm3735_vm2 = vcmp.eq.f32.partialorder %v3734_v18, 8.507059e+37 }
0x3ac8   :  { %v6492_v50 = vpop.eup %6491 }
0x3ac9   :  { %v3726_v61 = vmul.f32 %v6492_v50, %v3709_v60  ;;  %v6494_v47 = vpop.eup %6493  ;;  %vm3731_vm13 = vweird.f32 %v6492_v50 }
0x3aca   :  { %v3708_v63 = vadd.f32 1.0, %v6494_v47  ;;  %vm3732_vm1 = vmor %vm3730_vm14, %vm3731_vm13 }
0x3acb   :  { %v3727_v27 = vsub.f32 1.0, %v3726_v61 }
0x3acc   :  { %6495 = vrcp.f32 %v3708_v63  ;;  %v3721_v0 = vand.u32 2147483648, %v3708_v63  ;;  %vm3715_vm7 = vweird.f32 %v3708_v63  ;;  %v3719_v13 = vand.u32 2147483647, %v3708_v63 }
0x3acd   :  { %v3728_v57 = vmul.f32 %v6492_v50, %v3727_v27 }
0x3ace   :  { %v3722_v15 = vor.u32 1.1754944e-38, %v3721_v0  ;;  %vm3720_vm12 = vcmp.eq.f32.partialorder %v3719_v13, 8.507059e+37 }
0x3acf   :  { %v3729_v52 = vadd.f32 %v6492_v50, %v3728_v57 }
0x3ad1   :  { %v3733_v22 = vsel %vm3732_vm1, %v6492_v50, %v3729_v52 }
0x3ad2   :  { %v3738_v62 = vsel %vm3735_vm2, %v3737_v8, %v3733_v22  ;;  %v6496_v56 = vpop.eup %6495 }
0x3ad3   :  { %v3711_v5 = vmul.f32 %v6496_v56, %v3708_v63  ;;  %vm3716_vm5 = vweird.f32 %v6496_v56  ;;  %v3749_v28 = vmul.f32 %v3745_v20, %v3738_v62 }
0x3ad4   :  { %vm3717_vm8 = vmor %vm3715_vm7, %vm3716_vm5 }
0x3ad5   :  { %v3712_v7 = vsub.f32 1.0, %v3711_v5 }
0x3ad7   :  { %v3713_v17 = vmul.f32 %v6496_v56, %v3712_v7 }
0x3ad9   :  { %v3714_v11 = vadd.f32 %v6496_v56, %v3713_v17 }
0x3adb   :  { %v3718_v14 = vsel %vm3717_vm8, %v6496_v56, %v3714_v11 }
0x3adc   :  { %v3723_v4 = vsel %vm3720_vm12, %v3722_v15, %v3718_v14 }
0x3add   :  { %v3748_v9 = vmul.f32 %v3744_v31, %v3723_v4 }
0x3b17   :  { %v3755_v23 = vpop.permute.xlu2 %3754 }
0x3b18   :  { %v3759_v59 = vmul.f32 %v3755_v23, %v3738_v62 }
0x3b1a   :  { %3764 = vrot.lane.b32.xlu1 %v3759_v59, %s6890_s2 }
0x3b31   :  { %v3753_v12 = vpop.permute.xlu1 %3752 }
0x3b32   :  { %v3758_v16 = vmul.f32 %v3753_v12, %v3723_v4 }
0x3b34   :  { %3762 = vrot.lane.b32.xlu0 %v3758_v16, %s6890_s2 }
0x3b8c   :  { %v3765_v2 = vpop.permute.xlu1 %3764 }
0x3b8d   :  { %v7698_v6 = vadd.f32 %v3765_v2, %v3749_v28 }
0x3b8f   :  { %6497 = vtanh.f32 %v7698_v6 }
0x3b95   :  { %v6498_v30 = vpop.eup %6497 }
0x3b96   :  { %3776 = vrot.lane.b32.xlu0 %v6498_v30, %s6886_s17 }
0x3ba6   :  { %v3763_v21 = vpop.permute.xlu0 %3762 }
0x3ba7   :  { %v7703_v45 = vadd.f32 %v3763_v21, %v3748_v9 }
0x3ba9   :  { %6499 = vtanh.f32 %v7703_v45  ;;  %v3859_v12 = vrot.slane %v7703_v45, 7 }
0x3baf   :  { %v6500_v44 = vpop.eup %6499 }
0x3bb0   :  { %3774 = vrot.lane.b32.xlu2 %v6500_v44, %s6886_s17 }
0x3c08   :  { %v3777_v24 = vpop.permute.xlu0 %3776 }
0x3c09   :  { %v7709_v33 = vmul.f32 %v3777_v24, %v3738_v62 }
0x3c0a   :  { %v3775_v3 = vpop.permute.xlu2 %3774 }
0x3c0b   :  { %v7707_v29 = vmul.f32 %v3775_v3, %v3723_v4  ;;  %v3860_v4 = vrot.slane %v7698_v6, 7 }
0x3c0d   :  { %v3784_v42 = vrot.slane %v7707_v29, 1  ;;  %v4477_v24 = vsel %vm101_vm0, %v7684_v35, %v7707_v29 }
0x3c0f   :  { %v3785_v38 = vsel %vm239_vm10, %v7709_v33, %v3784_v42  ;;  %v4478_v42 = vsel %vm101_vm0, %v7682_v34, %v7709_v33 }
0x3c10   :  { %3786 = vrot.lane.b32.xlu1 %v3785_v38, %s6890_s2 }
0x3c82   :  { %v3787_v51 = vpop.permute.xlu1 %3786 }
0x3c83   :  { %5960 = vmatmul.msk.f32.vlgmr.msrb.gmra.mxu2 %vm132_vm11, %v3787_v51 }
0x3d06   :  { %v3807_v32 = vpop.f32.mrf.mxu2 }
0x3d07   :  { %v3811_v41 = vrot.slane %v3807_v32, 6  ;;  %v3812_v58 = vrot.slane %v3807_v32, 7 }
0x3d09   :  { %v3815_v19 = vadd.f32 %v3811_v41, %v7664_v49  ;;  %v3816_v36 = vadd.f32 %v3812_v58, %v7667_v25 }
0x3d0b   :  { %6501 = vtanh.f32 %v3815_v19  ;;  %v5961_v48 = vmul.f32 -1.442695, %v3815_v19  ;;  %v5962_v54 = vmul.f32 -1.442695, %v3816_v36 }
0x3d0c   :  { %6503 = vtanh.f32 %v3816_v36 }
0x3d0d   :  { %6505 = vpow2.f32 %v5961_v48 }
0x3d11   :  { %v6502_v55 = vpop.eup %6501 }
0x3d12   :  { %v6504_v40 = vpop.eup %6503  ;;  %3867 = vrot.lane.b32.xlu2 %v6502_v55, %s6886_s17 }
0x3d13   :  { %3869 = vrot.lane.b32.xlu0 %v6504_v40, %s6886_s17  ;;  %v6506_v46 = vpop.eup %6505 }
0x3d14   :  { %v3823_v43 = vadd.f32 1.0, %v6506_v46 }
0x3d16   :  { %6507 = vrcp.f32 %v3823_v43  ;;  %v3836_v47 = vand.u32 2147483648, %v3823_v43  ;;  %vm3830_vm14 = vweird.f32 %v3823_v43  ;;  %v3834_v52 = vand.u32 2147483647, %v3823_v43 }
0x3d17   :  { %6509 = vpow2.f32 %v5962_v54 }
0x3d18   :  { %v3837_v63 = vor.u32 1.1754944e-38, %v3836_v47  ;;  %vm3835_vm2 = vcmp.eq.f32.partialorder %v3834_v52, 8.507059e+37 }
0x3d1c   :  { %v6508_v39 = vpop.eup %6507 }
0x3d1d   :  { %v3826_v60 = vmul.f32 %v6508_v39, %v3823_v43  ;;  %v6510_v53 = vpop.eup %6509  ;;  %vm3831_vm13 = vweird.f32 %v6508_v39 }
0x3d1e   :  { %v3824_v27 = vadd.f32 1.0, %v6510_v53  ;;  %vm3832_vm1 = vmor %vm3830_vm14, %vm3831_vm13 }
0x3d1f   :  { %v3827_v50 = vsub.f32 1.0, %v3826_v60 }
0x3d20   :  { %6511 = vrcp.f32 %v3824_v27  ;;  %v3851_v7 = vand.u32 2147483648, %v3824_v27  ;;  %vm3845_vm7 = vweird.f32 %v3824_v27  ;;  %v3849_v17 = vand.u32 2147483647, %v3824_v27 }
0x3d21   :  { %v3828_v61 = vmul.f32 %v6508_v39, %v3827_v50 }
0x3d22   :  { %v3852_v0 = vor.u32 1.1754944e-38, %v3851_v7  ;;  %vm3850_vm12 = vcmp.eq.f32.partialorder %v3849_v17, 8.507059e+37 }
0x3d23   :  { %v3829_v57 = vadd.f32 %v6508_v39, %v3828_v61 }
0x3d25   :  { %v3833_v1 = vsel %vm3832_vm1, %v6508_v39, %v3829_v57 }
0x3d26   :  { %v3838_v22 = vsel %vm3835_vm2, %v3837_v63, %v3833_v1  ;;  %v6512_v23 = vpop.eup %6511 }
0x3d27   :  { %v3841_v62 = vmul.f32 %v6512_v23, %v3824_v27  ;;  %vm3846_vm5 = vweird.f32 %v6512_v23  ;;  %v3863_v16 = vmul.f32 %v3859_v12, %v3838_v22 }
0x3d28   :  { %vm3847_vm8 = vmor %vm3845_vm7, %vm3846_vm5 }
0x3d29   :  { %v3842_v59 = vsub.f32 1.0, %v3841_v62 }
0x3d2b   :  { %v3843_v56 = vmul.f32 %v6512_v23, %v3842_v59 }
0x3d2d   :  { %v3844_v5 = vadd.f32 %v6512_v23, %v3843_v56 }
0x3d2f   :  { %v3848_v11 = vsel %vm3847_vm8, %v6512_v23, %v3844_v5 }
0x3d30   :  { %v3853_v14 = vsel %vm3850_vm12, %v3852_v0, %v3848_v11 }
0x3d31   :  { %v3864_v20 = vmul.f32 %v3860_v4, %v3853_v14 }
0x3d6c   :  { %v3868_v18 = vpop.permute.xlu2 %3867 }
0x3d6d   :  { %v3873_v8 = vmul.f32 %v3868_v18, %v3838_v22 }
0x3d6f   :  { %3877 = vrot.lane.b32.xlu1 %v3873_v8, %s6890_s2 }
0x3d85   :  { %v3870_v13 = vpop.permute.xlu0 %3869 }
0x3d86   :  { %v3874_v15 = vmul.f32 %v3870_v13, %v3853_v14 }
0x3d88   :  { %3879 = vrot.lane.b32.xlu2 %v3874_v15, %s6890_s2 }
0x3de1   :  { %v3878_v28 = vpop.permute.xlu1 %3877 }
0x3de2   :  { %v3880_v2 = vpop.permute.xlu2 %3879  ;;  %v7724_v30 = vadd.f32 %v3878_v28, %v3863_v16 }
0x3de3   :  { %v7726_v31 = vadd.f32 %v3880_v2, %v3864_v20 }
0x3de4   :  { %6513 = vtanh.f32 %v7724_v30  ;;  %v3975_v12 = vrot.slane %v7724_v30, 7 }
0x3de5   :  { %6515 = vtanh.f32 %v7726_v31  ;;  %v3976_v2 = vrot.slane %v7726_v31, 7 }
0x3dea   :  { %v6514_v9 = vpop.eup %6513 }
0x3deb   :  { %v6516_v21 = vpop.eup %6515  ;;  %3889 = vrot.lane.b32.xlu0 %v6514_v9, %s6886_s17 }
0x3dec   :  { %3891 = vrot.lane.b32.xlu1 %v6516_v21, %s6886_s17 }
0x3e5d   :  { %v3890_v45 = vpop.permute.xlu0 %3889 }
0x3e5e   :  { %v3892_v6 = vpop.permute.xlu1 %3891  ;;  %v3895_v44 = vmul.f32 %v3890_v45, %v3838_v22 }
0x3e5f   :  { %v3896_v3 = vmul.f32 %v3892_v6, %v3853_v14 }
0x3e60   :  { %v3899_v38 = vrot.slane %v3895_v44, 2  ;;  %v7739_v51 = vsel %vm1048_vm15, %v4477_v24, %v3895_v44 }
0x3e61   :  { %v3900_v32 = vrot.slane %v3896_v3, 1  ;;  %v7742_v41 = vsel %vm1048_vm15, %v4478_v42, %v3896_v3 }
0x3e63   :  { %v3901_v58 = vsel %vm239_vm10, %v3900_v32, %v3899_v38 }
0x3e64   :  { %3902 = vrot.lane.b32.xlu2 %v3901_v58, %s6890_s2 }
0x3ebe   :  { %v3903_v19 = vpop.permute.xlu2 %3902 }
0x3ebf   :  { %5963 = vmatmul.msk.f32.vlgmr.msra.gmra.mxu0 %vm132_vm11, %v3903_v19 }
0x3f3c   :  { %v3923_v35 = vpop.f32.mrf.mxu0 }
0x3f3d   :  { %v3927_v29 = vrot.slane %v3923_v35, 5  ;;  %v3928_v36 = vrot.slane %v3923_v35, 6 }
0x3f3f   :  { %v3931_v34 = vadd.f32 %v3927_v29, %v7664_v49  ;;  %v3932_v33 = vadd.f32 %v3928_v36, %v7667_v25 }
0x3f41   :  { %6517 = vtanh.f32 %v3931_v34  ;;  %v5964_v48 = vmul.f32 -1.442695, %v3931_v34  ;;  %v5965_v46 = vmul.f32 -1.442695, %v3932_v33 }
0x3f42   :  { %6519 = vtanh.f32 %v3932_v33 }
0x3f43   :  { %6521 = vpow2.f32 %v5964_v48 }
0x3f44   :  { %6523 = vpow2.f32 %v5965_v46 }
0x3f47   :  { %v6518_v55 = vpop.eup %6517 }
0x3f48   :  { %v6520_v40 = vpop.eup %6519  ;;  %3983 = vrot.lane.b32.xlu0 %v6518_v55, %s6886_s17 }
0x3f49   :  { %3985 = vrot.lane.b32.xlu1 %v6520_v40, %s6886_s17  ;;  %v6522_v43 = vpop.eup %6521 }
0x3f4a   :  { %v6524_v39 = vpop.eup %6523  ;;  %v3939_v54 = vadd.f32 1.0, %v6522_v43 }
0x3f4b   :  { %v3940_v60 = vadd.f32 1.0, %v6524_v39 }
0x3f4c   :  { %6525 = vrcp.f32 %v3939_v54  ;;  %v3952_v22 = vand.u32 2147483648, %v3939_v54  ;;  %vm3946_vm1 = vweird.f32 %v3939_v54  ;;  %v3950_v23 = vand.u32 2147483647, %v3939_v54 }
0x3f4d   :  { %6527 = vrcp.f32 %v3940_v60  ;;  %v3967_v8 = vand.u32 2147483648, %v3940_v60  ;;  %vm3961_vm2 = vweird.f32 %v3940_v60  ;;  %v3965_v62 = vand.u32 2147483647, %v3940_v60 }
0x3f4e   :  { %v3953_v5 = vor.u32 1.1754944e-38, %v3952_v22  ;;  %vm3951_vm8 = vcmp.eq.f32.partialorder %v3950_v23, 8.507059e+37 }
0x3f4f   :  { %v3968_v7 = vor.u32 1.1754944e-38, %v3967_v8  ;;  %vm3966_vm12 = vcmp.eq.f32.partialorder %v3965_v62, 8.507059e+37 }
0x3f52   :  { %v6526_v50 = vpop.eup %6525 }
0x3f53   :  { %v6528_v61 = vpop.eup %6527  ;;  %v3942_v53 = vmul.f32 %v6526_v50, %v3939_v54  ;;  %vm3947_vm13 = vweird.f32 %v6526_v50 }
0x3f54   :  { %v3957_v27 = vmul.f32 %v6528_v61, %v3940_v60  ;;  %vm3962_vm14 = vweird.f32 %v6528_v61  ;;  %vm3948_vm5 = vmor %vm3946_vm1, %vm3947_vm13 }
0x3f55   :  { %v3943_v57 = vsub.f32 1.0, %v3942_v53  ;;  %vm3963_vm7 = vmor %vm3961_vm2, %vm3962_vm14 }
0x3f56   :  { %v3958_v47 = vsub.f32 1.0, %v3957_v27 }
0x3f57   :  { %v3944_v52 = vmul.f32 %v6526_v50, %v3943_v57 }
0x3f58   :  { %v3959_v1 = vmul.f32 %v6528_v61, %v3958_v47 }
0x3f59   :  { %v3945_v63 = vadd.f32 %v6526_v50, %v3944_v52 }
0x3f5a   :  { %v3960_v18 = vadd.f32 %v6528_v61, %v3959_v1 }
0x3f5b   :  { %v3949_v59 = vsel %vm3948_vm5, %v6526_v50, %v3945_v63 }
0x3f5c   :  { %v3964_v56 = vsel %vm3963_vm7, %v6528_v61, %v3960_v18  ;;  %v3954_v11 = vsel %vm3951_vm8, %v3953_v5, %v3949_v59 }
0x3f5d   :  { %v3969_v13 = vsel %vm3966_vm12, %v3968_v7, %v3964_v56  ;;  %v3979_v4 = vmul.f32 %v3975_v12, %v3954_v11 }
0x3f5e   :  { %v3980_v9 = vmul.f32 %v3976_v2, %v3969_v13 }
0x3fba   :  { %v3984_v17 = vpop.permute.xlu0 %3983 }
0x3fbb   :  { %v3986_v0 = vpop.permute.xlu1 %3985  ;;  %v3989_v14 = vmul.f32 %v3984_v17, %v3954_v11 }
0x3fbc   :  { %v3990_v15 = vmul.f32 %v3986_v0, %v3969_v13 }
0x3fbd   :  { %3993 = vrot.lane.b32.xlu2 %v3989_v14, %s6890_s2 }
0x3fbe   :  { %3995 = vrot.lane.b32.xlu0 %v3990_v15, %s6890_s2 }
0x4017   :  { %v3994_v16 = vpop.permute.xlu2 %3993 }
0x4018   :  { %v7754_v20 = vadd.f32 %v3994_v16, %v3979_v4 }
0x401a   :  { %6529 = vtanh.f32 %v7754_v20 }
0x4020   :  { %v6530_v28 = vpop.eup %6529 }
0x4021   :  { %4005 = vrot.lane.b32.xlu1 %v6530_v28, %s6886_s17  ;;  %v4091_v28 = vrot.slane %v7754_v20, 7 }
0x4030   :  { %v3996_v21 = vpop.permute.xlu0 %3995 }
0x4031   :  { %v7759_v45 = vadd.f32 %v3996_v21, %v3980_v9 }
0x4033   :  { %6531 = vtanh.f32 %v7759_v45  ;;  %v4092_v14 = vrot.slane %v7759_v45, 7 }
0x4039   :  { %v6532_v6 = vpop.eup %6531 }
0x403a   :  { %4007 = vrot.lane.b32.xlu2 %v6532_v6, %s6886_s17 }
0x4093   :  { %v4006_v30 = vpop.permute.xlu1 %4005 }
0x4094   :  { %v4008_v44 = vpop.permute.xlu2 %4007  ;;  %v4011_v24 = vmul.f32 %v4006_v30, %v3954_v11 }
0x4095   :  { %v4012_v3 = vmul.f32 %v4008_v44, %v3969_v13 }
0x4096   :  { %v4015_v42 = vrot.slane %v4011_v24, 3  ;;  %v7765_v38 = vsel %vm1051_vm9, %v7739_v51, %v4011_v24 }
0x4097   :  { %v4016_v32 = vrot.slane %v4012_v3, 2  ;;  %v7769_v31 = vsel %vm1051_vm9, %v7742_v41, %v4012_v3 }
0x4099   :  { %v4017_v58 = vsel %vm239_vm10, %v4016_v32, %v4015_v42 }
0x409a   :  { %4018 = vrot.lane.b32.xlu0 %v4017_v58, %s6890_s2 }
0x410c   :  { %v4019_v19 = vpop.permute.xlu0 %4018 }
0x410d   :  { %5966 = vmatmul.msk.f32.vlgmr.msrb.gmra.mxu1 %vm132_vm11, %v4019_v19 }
0x418a   :  { %v4039_v35 = vpop.f32.mrf.mxu1 }
0x418b   :  { %v4043_v29 = vrot.slane %v4039_v35, 4  ;;  %v4044_v36 = vrot.slane %v4039_v35, 5 }
0x418d   :  { %v4047_v34 = vadd.f32 %v4043_v29, %v7664_v49  ;;  %v4048_v51 = vadd.f32 %v4044_v36, %v7667_v25 }
0x418f   :  { %6533 = vtanh.f32 %v4047_v34  ;;  %v5968_v41 = vmul.f32 -1.442695, %v4048_v51  ;;  %v5967_v43 = vmul.f32 -1.442695, %v4047_v34 }
0x4190   :  { %6535 = vtanh.f32 %v4048_v51 }
0x4191   :  { %6537 = vpow2.f32 %v5968_v41 }
0x4195   :  { %v6534_v33 = vpop.eup %6533 }
0x4196   :  { %v6536_v55 = vpop.eup %6535  ;;  %4099 = vrot.lane.b32.xlu1 %v6534_v33, %s6886_s17 }
0x4197   :  { %4101 = vrot.lane.b32.xlu2 %v6536_v55, %s6886_s17  ;;  %v6538_v40 = vpop.eup %6537 }
0x4198   :  { %v4056_v48 = vadd.f32 1.0, %v6538_v40 }
0x419a   :  { %6539 = vrcp.f32 %v4056_v48  ;;  %v4083_v27 = vand.u32 2147483648, %v4056_v48  ;;  %vm4077_vm14 = vweird.f32 %v4056_v48  ;;  %v4081_v57 = vand.u32 2147483647, %v4056_v48 }
0x419b   :  { %6541 = vpow2.f32 %v5967_v43 }
0x419c   :  { %v4084_v52 = vor.u32 1.1754944e-38, %v4083_v27  ;;  %vm4082_vm2 = vcmp.eq.f32.partialorder %v4081_v57, 8.507059e+37 }
0x41a0   :  { %v6540_v46 = vpop.eup %6539 }
0x41a1   :  { %v4073_v39 = vmul.f32 %v6540_v46, %v4056_v48  ;;  %v6542_v60 = vpop.eup %6541  ;;  %vm4078_vm13 = vweird.f32 %v6540_v46 }
0x41a2   :  { %v4055_v61 = vadd.f32 1.0, %v6542_v60  ;;  %vm4079_vm1 = vmor %vm4077_vm14, %vm4078_vm13 }
0x41a3   :  { %v4074_v54 = vsub.f32 1.0, %v4073_v39 }
0x41a4   :  { %6543 = vrcp.f32 %v4055_v61  ;;  %v4068_v56 = vand.u32 2147483648, %v4055_v61  ;;  %vm4062_vm7 = vweird.f32 %v4055_v61  ;;  %v4066_v5 = vand.u32 2147483647, %v4055_v61 }
0x41a5   :  { %v4075_v50 = vmul.f32 %v6540_v46, %v4074_v54 }
0x41a6   :  { %v4069_v17 = vor.u32 1.1754944e-38, %v4068_v56  ;;  %vm4067_vm12 = vcmp.eq.f32.partialorder %v4066_v5, 8.507059e+37 }
0x41a7   :  { %v4076_v53 = vadd.f32 %v6540_v46, %v4075_v50 }
0x41a9   :  { %v4080_v47 = vsel %vm4079_vm1, %v6540_v46, %v4076_v53 }
0x41aa   :  { %v4085_v63 = vsel %vm4082_vm2, %v4084_v52, %v4080_v47  ;;  %v6544_v18 = vpop.eup %6543 }
0x41ab   :  { %v4058_v8 = vmul.f32 %v6544_v18, %v4055_v61  ;;  %vm4063_vm5 = vweird.f32 %v6544_v18  ;;  %v4096_v15 = vmul.f32 %v4092_v14, %v4085_v63 }
0x41ac   :  { %vm4064_vm8 = vmor %vm4062_vm7, %vm4063_vm5 }
0x41ad   :  { %v4059_v23 = vsub.f32 1.0, %v4058_v8 }
0x41af   :  { %v4060_v62 = vmul.f32 %v6544_v18, %v4059_v23 }
0x41b1   :  { %v4061_v59 = vadd.f32 %v6544_v18, %v4060_v62 }
0x41b3   :  { %v4065_v7 = vsel %vm4064_vm8, %v6544_v18, %v4061_v59 }
0x41b4   :  { %v4070_v0 = vsel %vm4067_vm12, %v4069_v17, %v4065_v7 }
0x41b5   :  { %v4095_v2 = vmul.f32 %v4091_v28, %v4070_v0 }
0x41f1   :  { %v4102_v1 = vpop.permute.xlu2 %4101 }
0x41f2   :  { %v4106_v22 = vmul.f32 %v4102_v1, %v4085_v63 }
0x41f4   :  { %4111 = vrot.lane.b32.xlu1 %v4106_v22, %s6890_s2 }
0x4208   :  { %v4100_v11 = vpop.permute.xlu1 %4099 }
0x4209   :  { %v4105_v13 = vmul.f32 %v4100_v11, %v4070_v0 }
0x420b   :  { %4109 = vrot.lane.b32.xlu0 %v4105_v13, %s6890_s2 }
0x4266   :  { %v4112_v12 = vpop.permute.xlu1 %4111 }
0x4267   :  { %v7781_v4 = vadd.f32 %v4112_v12, %v4096_v15 }
0x4269   :  { %6545 = vtanh.f32 %v7781_v4  ;;  %v4208_v13 = vrot.slane %v7781_v4, 7 }
0x426f   :  { %v6546_v16 = vpop.eup %6545 }
0x4270   :  { %4123 = vrot.lane.b32.xlu0 %v6546_v16, %s6886_s17 }
0x427d   :  { %v4110_v9 = vpop.permute.xlu0 %4109 }
0x427e   :  { %v7786_v21 = vadd.f32 %v4110_v9, %v4095_v2 }
0x4280   :  { %6547 = vtanh.f32 %v7786_v21 }
0x4286   :  { %v6548_v6 = vpop.eup %6547 }
0x4287   :  { %4121 = vrot.lane.b32.xlu2 %v6548_v6, %s6886_s17 }
0x42e1   :  { %v4122_v45 = vpop.permute.xlu2 %4121 }
0x42e2   :  { %v4124_v30 = vpop.permute.xlu0 %4123  ;;  %v4127_v44 = vmul.f32 %v4122_v45, %v4070_v0  ;;  %v4207_v0 = vrot.slane %v7786_v21, 7 }
0x42e3   :  { %v4128_v24 = vmul.f32 %v4124_v30, %v4085_v63 }
0x42e4   :  { %v4131_v3 = vrot.slane %v4127_v44, 4  ;;  %v7792_v42 = vsel %vm1054_vm6, %v7765_v38, %v4127_v44 }
0x42e5   :  { %v4132_v32 = vrot.slane %v4128_v24, 3  ;;  %v7796_v20 = vsel %vm1054_vm6, %v7769_v31, %v4128_v24 }
0x42e7   :  { %v4133_v58 = vsel %vm239_vm10, %v4132_v32, %v4131_v3 }
0x42e8   :  { %4134 = vrot.lane.b32.xlu1 %v4133_v58, %s6890_s2 }
0x435a   :  { %v4135_v19 = vpop.permute.xlu1 %4134 }
0x435b   :  { %5969 = vmatmul.msk.f32.vlgmr.msra.gmra.mxu2 %vm132_vm11, %v4135_v19 }
0x43de   :  { %v4155_v35 = vpop.f32.mrf.mxu2 }
0x43df   :  { %v4159_v29 = vrot.slane %v4155_v35, 3  ;;  %v4160_v36 = vrot.slane %v4155_v35, 4 }
0x43e1   :  { %v4163_v34 = vadd.f32 %v4159_v29, %v7664_v49  ;;  %v4164_v38 = vadd.f32 %v4160_v36, %v7667_v25 }
0x43e3   :  { %6549 = vtanh.f32 %v4163_v34  ;;  %v5970_v31 = vmul.f32 -1.442695, %v4163_v34  ;;  %v5971_v48 = vmul.f32 -1.442695, %v4164_v38 }
0x43e4   :  { %6551 = vtanh.f32 %v4164_v38 }
0x43e5   :  { %6553 = vpow2.f32 %v5970_v31 }
0x43e9   :  { %v6550_v51 = vpop.eup %6549 }
0x43ea   :  { %v6552_v33 = vpop.eup %6551  ;;  %4215 = vrot.lane.b32.xlu2 %v6550_v51, %s6886_s17 }
0x43eb   :  { %4217 = vrot.lane.b32.xlu0 %v6552_v33, %s6886_s17  ;;  %v6554_v55 = vpop.eup %6553 }
0x43ec   :  { %v4171_v41 = vadd.f32 1.0, %v6554_v55 }
0x43ee   :  { %6555 = vrcp.f32 %v4171_v41  ;;  %v4184_v61 = vand.u32 2147483648, %v4171_v41  ;;  %vm4178_vm14 = vweird.f32 %v4171_v41  ;;  %v4182_v53 = vand.u32 2147483647, %v4171_v41 }
0x43ef   :  { %6557 = vpow2.f32 %v5971_v48 }
0x43f0   :  { %v4185_v57 = vor.u32 1.1754944e-38, %v4184_v61  ;;  %vm4183_vm2 = vcmp.eq.f32.partialorder %v4182_v53, 8.507059e+37 }
0x43f4   :  { %v6556_v40 = vpop.eup %6555 }
0x43f5   :  { %v4174_v46 = vmul.f32 %v6556_v40, %v4171_v41  ;;  %v6558_v54 = vpop.eup %6557  ;;  %vm4179_vm13 = vweird.f32 %v6556_v40 }
0x43f6   :  { %v4172_v60 = vadd.f32 1.0, %v6558_v54  ;;  %vm4180_vm1 = vmor %vm4178_vm14, %vm4179_vm13 }
0x43f7   :  { %v4175_v43 = vsub.f32 1.0, %v4174_v46 }
0x43f8   :  { %6559 = vrcp.f32 %v4172_v60  ;;  %v4199_v62 = vand.u32 2147483648, %v4172_v60  ;;  %vm4193_vm7 = vweird.f32 %v4172_v60  ;;  %v4197_v59 = vand.u32 2147483647, %v4172_v60 }
0x43f9   :  { %v4176_v39 = vmul.f32 %v6556_v40, %v4175_v43 }
0x43fa   :  { %v4200_v5 = vor.u32 1.1754944e-38, %v4199_v62  ;;  %vm4198_vm12 = vcmp.eq.f32.partialorder %v4197_v59, 8.507059e+37 }
0x43fb   :  { %v4177_v50 = vadd.f32 %v6556_v40, %v4176_v39 }
0x43fd   :  { %v4181_v27 = vsel %vm4180_vm1, %v6556_v40, %v4177_v50 }
0x43fe   :  { %v4186_v52 = vsel %vm4183_vm2, %v4185_v57, %v4181_v27  ;;  %v6560_v63 = vpop.eup %6559 }
0x43ff   :  { %v4189_v18 = vmul.f32 %v6560_v63, %v4172_v60  ;;  %vm4194_vm5 = vweird.f32 %v6560_v63  ;;  %v4211_v14 = vmul.f32 %v4207_v0, %v4186_v52 }
0x4400   :  { %vm4195_vm8 = vmor %vm4193_vm7, %vm4194_vm5 }
0x4401   :  { %v4190_v22 = vsub.f32 1.0, %v4189_v18 }
0x4403   :  { %v4191_v8 = vmul.f32 %v6560_v63, %v4190_v22 }
0x4405   :  { %v4192_v23 = vadd.f32 %v6560_v63, %v4191_v8 }
0x4407   :  { %v4196_v56 = vsel %vm4195_vm8, %v6560_v63, %v4192_v23 }
0x4408   :  { %v4201_v17 = vsel %vm4198_vm12, %v4200_v5, %v4196_v56 }
0x4409   :  { %v4212_v15 = vmul.f32 %v4208_v13, %v4201_v17 }
0x4444   :  { %v4216_v47 = vpop.permute.xlu2 %4215 }
0x4445   :  { %v4221_v1 = vmul.f32 %v4216_v47, %v4186_v52 }
0x4447   :  { %4225 = vrot.lane.b32.xlu1 %v4221_v1, %s6890_s2 }
0x445d   :  { %v4218_v7 = vpop.permute.xlu0 %4217 }
0x445e   :  { %v4222_v11 = vmul.f32 %v4218_v7, %v4201_v17 }
0x4460   :  { %4227 = vrot.lane.b32.xlu2 %v4222_v11, %s6890_s2 }
0x44b9   :  { %v4226_v12 = vpop.permute.xlu1 %4225 }
0x44ba   :  { %v4228_v16 = vpop.permute.xlu2 %4227  ;;  %v7809_v28 = vadd.f32 %v4226_v12, %v4211_v14 }
0x44bb   :  { %v7811_v2 = vadd.f32 %v4228_v16, %v4212_v15 }
0x44bc   :  { %6561 = vtanh.f32 %v7809_v28 }
0x44bd   :  { %6563 = vtanh.f32 %v7811_v2  ;;  %v4324_v15 = vrot.slane %v7811_v2, 7 }
0x44c2   :  { %v6562_v9 = vpop.eup %6561 }
0x44c3   :  { %v6564_v6 = vpop.eup %6563  ;;  %4237 = vrot.lane.b32.xlu0 %v6562_v9, %s6886_s17 }
0x44c4   :  { %4239 = vrot.lane.b32.xlu1 %v6564_v6, %s6886_s17 }
0x4535   :  { %v4238_v21 = vpop.permute.xlu0 %4237 }
0x4536   :  { %v4240_v4 = vpop.permute.xlu1 %4239  ;;  %v4243_v45 = vmul.f32 %v4238_v21, %v4186_v52 }
0x4537   :  { %v4244_v30 = vmul.f32 %v4240_v4, %v4201_v17  ;;  %v4323_v17 = vrot.slane %v7809_v28, 7 }
0x4538   :  { %v4247_v44 = vrot.slane %v4243_v45, 5  ;;  %v7819_v24 = vsel %vm1057_vm4, %v7792_v42, %v4243_v45 }
0x4539   :  { %v4248_v3 = vrot.slane %v4244_v30, 4  ;;  %v7823_v32 = vsel %vm1057_vm4, %v7796_v20, %v4244_v30 }
0x453b   :  { %v4249_v58 = vsel %vm239_vm10, %v4248_v3, %v4247_v44 }
0x453c   :  { %4250 = vrot.lane.b32.xlu2 %v4249_v58, %s6890_s2 }
0x4596   :  { %v4251_v19 = vpop.permute.xlu2 %4250 }
0x4597   :  { %5972 = vmatmul.msk.f32.vlgmr.msrb.gmra.mxu3 %vm132_vm11, %v4251_v19 }
0x461a   :  { %v4271_v35 = vpop.f32.mrf.mxu3 }
0x461b   :  { %v4275_v29 = vrot.slane %v4271_v35, 2  ;;  %v4276_v36 = vrot.slane %v4271_v35, 3 }
0x461d   :  { %v4279_v34 = vadd.f32 %v4275_v29, %v7664_v49  ;;  %v4280_v42 = vadd.f32 %v4276_v36, %v7667_v25 }
0x461f   :  { %6565 = vtanh.f32 %v4279_v34  ;;  %v5973_v20 = vmul.f32 -1.442695, %v4279_v34  ;;  %v5974_v33 = vmul.f32 -1.442695, %v4280_v42 }
0x4620   :  { %6567 = vtanh.f32 %v4280_v42 }
0x4621   :  { %6569 = vpow2.f32 %v5973_v20 }
0x4622   :  { %6571 = vpow2.f32 %v5974_v33 }
0x4625   :  { %v6566_v38 = vpop.eup %6565 }
0x4626   :  { %v6568_v51 = vpop.eup %6567  ;;  %4331 = vrot.lane.b32.xlu0 %v6566_v38, %s6886_s17 }
0x4627   :  { %4333 = vrot.lane.b32.xlu1 %v6568_v51, %s6886_s17  ;;  %v6570_v31 = vpop.eup %6569 }
0x4628   :  { %v6572_v55 = vpop.eup %6571  ;;  %v4287_v41 = vadd.f32 1.0, %v6570_v31 }
0x4629   :  { %v4288_v40 = vadd.f32 1.0, %v6572_v55 }
0x462a   :  { %6573 = vrcp.f32 %v4287_v41  ;;  %v4300_v57 = vand.u32 2147483648, %v4287_v41  ;;  %vm4294_vm1 = vweird.f32 %v4287_v41  ;;  %v4298_v52 = vand.u32 2147483647, %v4287_v41 }
0x462b   :  { %6575 = vrcp.f32 %v4288_v40  ;;  %v4315_v47 = vand.u32 2147483648, %v4288_v40  ;;  %vm4309_vm2 = vweird.f32 %v4288_v40  ;;  %v4313_v1 = vand.u32 2147483647, %v4288_v40 }
0x462c   :  { %v4301_v22 = vor.u32 1.1754944e-38, %v4300_v57  ;;  %vm4299_vm8 = vcmp.eq.f32.partialorder %v4298_v52, 8.507059e+37 }
0x462d   :  { %v4316_v8 = vor.u32 1.1754944e-38, %v4315_v47  ;;  %vm4314_vm12 = vcmp.eq.f32.partialorder %v4313_v1, 8.507059e+37 }
0x4630   :  { %v6574_v48 = vpop.eup %6573 }
0x4631   :  { %v6576_v46 = vpop.eup %6575  ;;  %v4290_v43 = vmul.f32 %v6574_v48, %v4287_v41  ;;  %vm4295_vm13 = vweird.f32 %v6574_v48 }
0x4632   :  { %v4305_v39 = vmul.f32 %v6576_v46, %v4288_v40  ;;  %vm4310_vm14 = vweird.f32 %v6576_v46  ;;  %vm4296_vm5 = vmor %vm4294_vm1, %vm4295_vm13 }
0x4633   :  { %v4291_v54 = vsub.f32 1.0, %v4290_v43  ;;  %vm4311_vm7 = vmor %vm4309_vm2, %vm4310_vm14 }
0x4634   :  { %v4306_v60 = vsub.f32 1.0, %v4305_v39 }
0x4635   :  { %v4292_v50 = vmul.f32 %v6574_v48, %v4291_v54 }
0x4636   :  { %v4307_v61 = vmul.f32 %v6576_v46, %v4306_v60 }
0x4637   :  { %v4293_v53 = vadd.f32 %v6574_v48, %v4292_v50 }
0x4638   :  { %v4308_v27 = vadd.f32 %v6576_v46, %v4307_v61 }
0x4639   :  { %v4297_v63 = vsel %vm4296_vm5, %v6574_v48, %v4293_v53 }
0x463a   :  { %v4312_v18 = vsel %vm4311_vm7, %v6576_v46, %v4308_v27  ;;  %v4302_v62 = vsel %vm4299_vm8, %v4301_v22, %v4297_v63 }
0x463b   :  { %v4317_v56 = vsel %vm4314_vm12, %v4316_v8, %v4312_v18  ;;  %v4327_v11 = vmul.f32 %v4323_v17, %v4302_v62 }
0x463c   :  { %v4328_v12 = vmul.f32 %v4324_v15, %v4317_v56 }
0x4698   :  { %v4332_v23 = vpop.permute.xlu0 %4331 }
0x4699   :  { %v4334_v59 = vpop.permute.xlu1 %4333  ;;  %v4337_v5 = vmul.f32 %v4332_v23, %v4302_v62 }
0x469a   :  { %v4338_v7 = vmul.f32 %v4334_v59, %v4317_v56 }
0x469b   :  { %4341 = vrot.lane.b32.xlu2 %v4337_v5, %s6890_s2 }
0x469c   :  { %4343 = vrot.lane.b32.xlu0 %v4338_v7, %s6890_s2 }
0x46f5   :  { %v4342_v0 = vpop.permute.xlu2 %4341 }
0x46f6   :  { %v7835_v13 = vadd.f32 %v4342_v0, %v4327_v11 }
0x46f8   :  { %6577 = vtanh.f32 %v7835_v13  ;;  %v4439_v11 = vrot.slane %v7835_v13, 7  ;;  %v4496_v13 = vld [vmem:[#allocation8 + $0x170] sm:$0xff] }
0x46f9   :  { %4521 = vmatpush.msra.mxu1 %v4496_v13 }
0x46fe   :  { %v6578_v14 = vpop.eup %6577 }
0x46ff   :  { %4353 = vrot.lane.b32.xlu1 %v6578_v14, %s6886_s17 }
0x470e   :  { %v4344_v16 = vpop.permute.xlu0 %4343 }
0x470f   :  { %v7840_v9 = vadd.f32 %v4344_v16, %v4328_v12 }
0x4711   :  { %6579 = vtanh.f32 %v7840_v9  ;;  %v4440_v59 = vrot.slane %v7840_v9, 7 }
0x4717   :  { %v6580_v6 = vpop.eup %6579 }
0x4718   :  { %4355 = vrot.lane.b32.xlu2 %v6580_v6, %s6886_s17 }
0x4771   :  { %v4354_v28 = vpop.permute.xlu1 %4353 }
0x4772   :  { %v4356_v21 = vpop.permute.xlu2 %4355  ;;  %v4359_v4 = vmul.f32 %v4354_v28, %v4302_v62 }
0x4773   :  { %v4360_v45 = vmul.f32 %v4356_v21, %v4317_v56 }
0x4774   :  { %v4363_v30 = vrot.slane %v4359_v4, 6  ;;  %v7846_v44 = vsel %vm1060_vm3, %v7819_v24, %v4359_v4 }
0x4775   :  { %v4364_v3 = vrot.slane %v4360_v45, 5  ;;  %v7850_v2 = vsel %vm1060_vm3, %v7823_v32, %v4360_v45 }
0x4777   :  { %v4365_v58 = vsel %vm239_vm10, %v4364_v3, %v4363_v30  ;;  %v4495_v3 = vld [vmem:[#allocation8 + $0x168] sm:$0xff] }
0x4778   :  { %4366 = vrot.lane.b32.xlu0 %v4365_v58, %s6890_s2  ;;  %v4494_v58 = vld [vmem:[#allocation8 + $0x160] sm:$0xff]  ;;  %4522 = vmatpush.msra.mxu1 %v4495_v3 }
0x477a   :  { %4523 = vmatpush.msra.mxu1 %v4494_v58 }
0x47ea   :  { %v4367_v19 = vpop.permute.xlu0 %4366 }
0x47eb   :  { %5975 = vmatmul.msk.f32.vlgmr.msrb.gmra.mxu0 %vm132_vm11, %v4367_v19  ;;  %v4493_v19 = vld [vmem:[#allocation8 + $0x158] sm:$0xff] }
0x47ec   :  { %4524 = vmatpush.msra.mxu1 %v4493_v19 }
0x4868   :  { %v4387_v35 = vpop.f32.mrf.mxu0 }
0x4869   :  { %v4391_v29 = vrot.slane %v4387_v35, 1  ;;  %v4392_v36 = vrot.slane %v4387_v35, 2  ;;  %v4537_v35 = vld [vmem:[#allocation8 + $0x198] sm:$0xff] }
0x486a   :  { %4558 = vmatpush.msrb.mxu2 %v4537_v35 }
0x486b   :  { %v4395_v34 = vadd.f32 %v4391_v29, %v7664_v49  ;;  %v4396_v24 = vadd.f32 %v4392_v36, %v7667_v25  ;;  %v4536_v29 = vld [vmem:[#allocation8 + $0x190] sm:$0xff]  ;;  %v4535_v36 = vld [vmem:[#allocation8 + $0x188] sm:$0xff] }
0x486c   :  { %4559 = vmatpush.msrb.mxu2 %v4536_v29 }
0x486d   :  { %6581 = vtanh.f32 %v4395_v34  ;;  %v5977_v32 = vmul.f32 -1.442695, %v4396_v24  ;;  %v5976_v31 = vmul.f32 -1.442695, %v4395_v34  ;;  %v4534_v34 = vld [vmem:[#allocation8 + $0x180] sm:$0xff] }
0x486e   :  { %6583 = vtanh.f32 %v4396_v24  ;;  %4560 = vmatpush.msrb.mxu2 %v4535_v36  ;;  %v6080_v24 = vld [vmem:[#allocation8 + $0x178] ss:$0 sm:$0xff] }
0x486f   :  { %6585 = vpow2.f32 %v5977_v32 }
0x4870   :  { %4561 = vmatpush.msrb.mxu2 %v4534_v34 }
0x4873   :  { %v6582_v42 = vpop.eup %6581 }
0x4874   :  { %v6584_v38 = vpop.eup %6583  ;;  %4447 = vrot.lane.b32.xlu1 %v6582_v42, %s6886_s17 }
0x4875   :  { %4449 = vrot.lane.b32.xlu2 %v6584_v38, %s6886_s17  ;;  %v6586_v51 = vpop.eup %6585 }
0x4876   :  { %v4404_v20 = vadd.f32 1.0, %v6586_v51 }
0x4878   :  { %6587 = vrcp.f32 %v4404_v20  ;;  %v4431_v46 = vand.u32 2147483648, %v4404_v20  ;;  %vm4425_vm14 = vweird.f32 %v4404_v20  ;;  %v4429_v43 = vand.u32 2147483647, %v4404_v20 }
0x4879   :  { %6589 = vpow2.f32 %v5976_v31  ;;  %v4580_v31 = vld [vmem:[#allocation8 + $0x1a8] sm:$0xff] }
0x487a   :  { %v4432_v54 = vor.u32 1.1754944e-38, %v4431_v46  ;;  %vm4430_vm2 = vcmp.eq.f32.partialorder %v4429_v43, 8.507059e+37  ;;  %4605 = vmatpush.msra.mxu3 %v4580_v31  ;;  %v4615_v46 = vld [vmem:[#allocation8 + $0x1c0] sm:$0xff]  ;;  %v4614_v43 = vld [vmem:[#allocation8 + $0x1b8] sm:$0xff] }
0x487e   :  { %v6588_v33 = vpop.eup %6587 }
0x487f   :  { %v4421_v55 = vmul.f32 %v6588_v33, %v4404_v20  ;;  %v6590_v41 = vpop.eup %6589  ;;  %vm4426_vm13 = vweird.f32 %v6588_v33 }
0x4880   :  { %v4403_v40 = vadd.f32 1.0, %v6590_v41  ;;  %vm4427_vm1 = vmor %vm4425_vm14, %vm4426_vm13  ;;  %vm8124_vm13 = vcmask 1046528  }
0x4881   :  { %v4422_v49 = vsub.f32 1.0, %v4421_v55  ;;  %vm8125_vm14 = vmmov %vm8124_vm13  ;;  %v6081_v55 = vld [vmem:[#allocation8 + $0x1a0] ss:$0 sm:$0xff] }
0x4882   :  { %6591 = vrcp.f32 %v4403_v40  ;;  %v4416_v1 = vand.u32 2147483648, %v4403_v40  ;;  %vm4410_vm7 = vweird.f32 %v4403_v40  ;;  %v4414_v63 = vand.u32 2147483647, %v4403_v40 }
0x4883   :  { %v4423_v25 = vmul.f32 %v6588_v33, %v4422_v49 }
0x4884   :  { %v4417_v22 = vor.u32 1.1754944e-38, %v4416_v1  ;;  %vm4415_vm12 = vcmp.eq.f32.partialorder %v4414_v63, 8.507059e+37 }
0x4885   :  { %v4424_v48 = vadd.f32 %v6588_v33, %v4423_v25 }
0x4887   :  { %v4428_v39 = vsel %vm4427_vm1, %v6588_v33, %v4424_v48  ;;  %v4616_v48 = vld [vmem:[#allocation8 + $0x1c8] sm:$0xff]  ;;  %vm8119_vm1 = vcmask 31744  }
0x4888   :  { %v4433_v50 = vsel %vm4430_vm2, %v4432_v54, %v4428_v39  ;;  %v6592_v61 = vpop.eup %6591  ;;  %4629 = vmatpush.msra.mxu0 %v4616_v48  ;;  %4851 = vmatpush.msrb.mxu1 %v4616_v48  ;;  %v4613_v39 = vld [vmem:[#allocation8 + $0x1b0] sm:$0xff]  ;;  %v6078_v54 = vld [vmem:[#allocation8 + $0xe0] ss:$0 sm:$0xff]  ;;  %vm4583_vm2 = vcmask 64512  }
0x4889   :  { %v4406_v27 = vmul.f32 %v6592_v61, %v4403_v40  ;;  %vm4411_vm5 = vweird.f32 %v6592_v61  ;;  %v4444_v56 = vmul.f32 %v4440_v59, %v4433_v50  ;;  %4967 = vmatpush.msra.mxu2 %v4616_v48  ;;  %5083 = vmatpush.msrb.mxu3 %v4616_v48 }
0x488a   :  { %vm4412_vm8 = vmor %vm4410_vm7, %vm4411_vm5  ;;  %4630 = vmatpush.msra.mxu0 %v4615_v46  ;;  %4852 = vmatpush.msrb.mxu1 %v4615_v46 }
0x488b   :  { %v4407_v57 = vsub.f32 1.0, %v4406_v27  ;;  %4968 = vmatpush.msra.mxu2 %v4615_v46  ;;  %5084 = vmatpush.msrb.mxu3 %v4615_v46 }
0x488c   :  { %4631 = vmatpush.msra.mxu0 %v4614_v43  ;;  %4853 = vmatpush.msrb.mxu1 %v4614_v43 }
0x488d   :  { %v4408_v47 = vmul.f32 %v6592_v61, %v4407_v57  ;;  %4969 = vmatpush.msra.mxu2 %v4614_v43  ;;  %5085 = vmatpush.msrb.mxu3 %v4614_v43  ;;  %v6082_v57 = vld [vmem:[#allocation8 + $0x1d0] ss:$0 sm:$0xff] }
0x488e   :  { %4632 = vmatpush.msra.mxu0 %v4613_v39  ;;  %4854 = vmatpush.msrb.mxu1 %v4613_v39 }
0x488f   :  { %v4409_v52 = vadd.f32 %v6592_v61, %v4408_v47  ;;  %4633 = vmatmul.f32.vlgmr.msra.gmra.mxu0 %v6889_v10  ;;  %4970 = vmatpush.msra.mxu2 %v4613_v39  ;;  %v2105_v10 = vadd.f32 %v6078_v54, %v7438_v26 }
0x4890   :  { %4737 = vmatpush.msrb.mxu0 %v4616_v48  ;;  %5086 = vmatpush.msrb.mxu3 %v4613_v39 }
0x4891   :  { %v4413_v18 = vsel %vm4412_vm8, %v6592_v61, %v4409_v52  ;;  %v2108_v61 = vadd.f32 %v6078_v54, %v7440_v37 }
0x4892   :  { %v4418_v23 = vsel %vm4415_vm12, %v4417_v22, %v4413_v18  ;;  %4738 = vmatpush.msrb.mxu0 %v4615_v46 }
0x4893   :  { %v4443_v0 = vmul.f32 %v4439_v11, %v4418_v23 }
0x4894   :  { %4739 = vmatpush.msrb.mxu0 %v4614_v43 }
0x4896   :  { %4740 = vmatpush.msrb.mxu0 %v4613_v39 }
0x4898   :  { %5199 = vmatpush.msra.mxu0 %v4616_v48 }
0x489a   :  { %5200 = vmatpush.msra.mxu0 %v4615_v46 }
0x489c   :  { %5201 = vmatpush.msra.mxu0 %v4614_v43 }
0x489e   :  { %5202 = vmatpush.msra.mxu0 %v4613_v39 }
0x48cf   :  { %v4450_v60 = vpop.permute.xlu2 %4449 }
0x48d0   :  { %v4454_v53 = vmul.f32 %v4450_v60, %v4433_v50 }
0x48d2   :  { %4459 = vrot.lane.b32.xlu1 %v4454_v53, %s6890_s2 }
0x48e6   :  { %v4448_v8 = vpop.permute.xlu1 %4447 }
0x48e7   :  { %v4453_v62 = vmul.f32 %v4448_v8, %v4418_v23 }
0x48e9   :  { %4457 = vrot.lane.b32.xlu0 %v4453_v62, %s6890_s2 }
0x490c   :  { %v4634_v52 = vpop.f32.mrf.mxu0 }
0x490d   :  { %v4638_v26 = vrot.slane %v4634_v52, 1 }
0x4944   :  { %v4460_v5 = vpop.permute.xlu1 %4459 }
0x4945   :  { %v4464_v7 = vadd.f32 %v4460_v5, %v4444_v56 }
0x4947   :  { %6593 = vtanh.f32 %v4464_v7 }
0x494d   :  { %v6594_v17 = vpop.eup %6593 }
0x494e   :  { %4471 = vrot.lane.b32.xlu0 %v6594_v17, %s6886_s17 }
0x495b   :  { %v4458_v14 = vpop.permute.xlu0 %4457 }
0x495c   :  { %v4463_v15 = vadd.f32 %v4458_v14, %v4443_v0 }
0x495e   :  { %6595 = vtanh.f32 %v4463_v15 }
0x4964   :  { %v6596_v12 = vpop.eup %6595 }
0x4965   :  { %4469 = vrot.lane.b32.xlu2 %v6596_v12, %s6886_s17 }
0x49bf   :  { %v4470_v16 = vpop.permute.xlu2 %4469 }
0x49c0   :  { %v4472_v6 = vpop.permute.xlu0 %4471  ;;  %v4475_v28 = vmul.f32 %v4470_v16, %v4418_v23 }
0x49c1   :  { %v4476_v9 = vmul.f32 %v4472_v6, %v4433_v50 }
0x49c2   :  { %v4489_v21 = vsel %vm8124_vm13, %v7846_v44, %v4475_v28 }
0x49c3   :  { %v4490_v4 = vsel %vm8125_vm14, %v7850_v2, %v4476_v9  ;;  %v4491_v45 = vmax.f32 %v4489_v21, 0.0 }
0x49c4   :  { %v4492_v30 = vmax.f32 %v4490_v4, 0.0 }
0x49c5   :  { %4501 = vrot.lane.b32.xlu1 %v4491_v45, %s6890_s2 }
0x49c6   :  { %4503 = vrot.lane.b32.xlu2 %v4492_v30, %s6890_s2 }
0x4a20   :  { %v4504_v2 = vpop.permute.xlu2 %4503 }
0x4a37   :  { %v4502_v44 = vpop.permute.xlu1 %4501 }
0x4a38   :  { %5978 = vmatmul.msk.f32.vlgmr.msra.gmra.mxu1 %vm132_vm11, %v4502_v44 }
0x4a39   :  { %5315 = vmatpush.msra.mxu1 %v4616_v48 }
0x4a3b   :  { %5316 = vmatpush.msra.mxu1 %v4615_v46 }
0x4a3d   :  { %5317 = vmatpush.msra.mxu1 %v4614_v43 }
0x4a3f   :  { %5318 = vmatpush.msra.mxu1 %v4613_v39 }
0x4a40   :  { %5979 = vmatmul.msk.f32.gmra.mxu1 %vm132_vm11, %v4504_v2 }
0x4ab5   :  { %v4526_v42 = vpop.f32.mrf.mxu1 }
0x4ab6   :  { %v4527_v38 = vadd.f32 %v6080_v24, %v4526_v42 }
0x4ab8   :  { %v4532_v32 = vmax.f32 %v4527_v38, 0.0 }
0x4aba   :  { %5980 = vmatmul.msk.f32.vlgmr.msrb.gmra.mxu2 %vm132_vm11, %v4532_v32 }
0x4abb   :  { %5431 = vmatpush.msrb.mxu2 %v4616_v48 }
0x4abd   :  { %v4529_v51 = vpop.f32.mrf.mxu1  ;;  %5432 = vmatpush.msrb.mxu2 %v4615_v46 }
0x4abe   :  { %v4530_v20 = vadd.f32 %v6080_v24, %v4529_v51 }
0x4abf   :  { %5433 = vmatpush.msrb.mxu2 %v4614_v43 }
0x4ac0   :  { %v4533_v33 = vmax.f32 %v4530_v20, 0.0 }
0x4ac1   :  { %5434 = vmatpush.msrb.mxu2 %v4613_v39 }
0x4ac2   :  { %5981 = vmatmul.msk.f32.gmra.mxu2 %vm132_vm11, %v4533_v33 }
0x4b3d   :  { %v4563_v49 = vpop.f32.mrf.mxu2 }
0x4b3e   :  { %v4564_v41 = vadd.f32 %v6081_v55, %v4563_v49 }
0x4b40   :  { %4571 = vrot.lane.b32.xlu0 %v4564_v41, %s6887_s18 }
0x4b45   :  { %v4566_v25 = vpop.f32.mrf.mxu2 }
0x4b46   :  { %v4567_v40 = vadd.f32 %v6081_v55, %v4566_v25 }
0x4b48   :  { %4573 = vrot.lane.b32.xlu1 %v4567_v40, %s6887_s18 }
0x4bb2   :  { %v4572_v60 = vpop.permute.xlu0 %4571 }
0x4bb3   :  { %v4578_v50 = vsel %vm8119_vm1, %v2105_v10, %v4572_v60 }
0x4bb4   :  { %5982 = vmatmul.msk.f32.vlgmr.msra.gmra.mxu3 %vm4583_vm2, %v4578_v50 }
0x4bba   :  { %v4574_v53 = vpop.permute.xlu1 %4573 }
0x4bbb   :  { %v4579_v27 = vsel %vm8119_vm1, %v2108_v61, %v4574_v53 }
0x4bbc   :  { %5983 = vmatmul.msk.f32.gmra.mxu3 %vm4583_vm2, %v4579_v27 }
0x4c37   :  { %v4607_v47 = vpop.f32.mrf.mxu3 }
0x4c38   :  { %v7882_v1 = vadd.f32 %v6082_v57, %v4607_v47 }
0x4c3a   :  { %v4641_v63 = vadd.f32 %v4634_v52, %v7882_v1 }
0x4c3c   :  { %6597 = vtanh.f32 %v4641_v63  ;;  %v5984_v5 = vmul.f32 -1.442695, %v4641_v63 }
0x4c3f   :  { %v4610_v18 = vpop.f32.mrf.mxu3 }
0x4c40   :  { %v7885_v22 = vadd.f32 %v6082_v57, %v4610_v18 }
0x4c42   :  { %v6598_v8 = vpop.eup %6597  ;;  %v4642_v23 = vadd.f32 %v4638_v26, %v7885_v22 }
0x4c43   :  { %4687 = vrot.lane.b32.xlu0 %v6598_v8, %s6886_s17 }
0x4c44   :  { %6599 = vtanh.f32 %v4642_v23  ;;  %v5985_v62 = vmul.f32 -1.442695, %v4642_v23 }
0x4c46   :  { %6601 = vpow2.f32 %v5985_v62 }
0x4c4a   :  { %v6600_v37 = vpop.eup %6599 }
0x4c4b   :  { %4689 = vrot.lane.b32.xlu2 %v6600_v37, %s6886_s17 }
0x4c4c   :  { %v6602_v59 = vpop.eup %6601 }
0x4c4d   :  { %v4650_v56 = vadd.f32 1.0, %v6602_v59 }
0x4c4f   :  { %6603 = vrcp.f32 %v4650_v56  ;;  %v4677_v6 = vand.u32 2147483648, %v4650_v56  ;;  %vm4671_vm7 = vweird.f32 %v4650_v56  ;;  %v4675_v28 = vand.u32 2147483647, %v4650_v56 }
0x4c50   :  { %6605 = vpow2.f32 %v5984_v5 }
0x4c51   :  { %v4678_v4 = vor.u32 1.1754944e-38, %v4677_v6  ;;  %vm4676_vm12 = vcmp.eq.f32.partialorder %v4675_v28, 8.507059e+37 }
0x4c55   :  { %v6604_v7 = vpop.eup %6603 }
0x4c56   :  { %v6606_v17 = vpop.eup %6605  ;;  %v4667_v11 = vmul.f32 %v6604_v7, %v4650_v56  ;;  %vm4672_vm5 = vweird.f32 %v6604_v7 }
0x4c57   :  { %v4649_v0 = vadd.f32 1.0, %v6606_v17  ;;  %vm4673_vm8 = vmor %vm4671_vm7, %vm4672_vm5 }
0x4c58   :  { %v4668_v14 = vsub.f32 1.0, %v4667_v11 }
0x4c59   :  { %6607 = vrcp.f32 %v4649_v0  ;;  %v4662_v35 = vand.u32 2147483648, %v4649_v0  ;;  %vm4656_vm14 = vweird.f32 %v4649_v0  ;;  %v4660_v29 = vand.u32 2147483647, %v4649_v0 }
0x4c5a   :  { %v4669_v15 = vmul.f32 %v6604_v7, %v4668_v14 }
0x4c5b   :  { %v4663_v2 = vor.u32 1.1754944e-38, %v4662_v35  ;;  %vm4661_vm5 = vcmp.eq.f32.partialorder %v4660_v29, 8.507059e+37 }
0x4c5c   :  { %v4670_v12 = vadd.f32 %v6604_v7, %v4669_v15 }
0x4c5e   :  { %v4674_v9 = vsel %vm4673_vm8, %v6604_v7, %v4670_v12 }
0x4c5f   :  { %v6608_v16 = vpop.eup %6607  ;;  %v4679_v30 = vsel %vm4676_vm12, %v4678_v4, %v4674_v9 }
0x4c60   :  { %v4652_v21 = vmul.f32 %v6608_v16, %v4649_v0  ;;  %vm4657_vm13 = vweird.f32 %v6608_v16  ;;  %v4684_v51 = vmul.f32 0.0, %v4679_v30 }
0x4c61   :  { %vm4658_vm2 = vmor %vm4656_vm14, %vm4657_vm13 }
0x4c62   :  { %v4653_v3 = vsub.f32 1.0, %v4652_v21 }
0x4c64   :  { %v4654_v58 = vmul.f32 %v6608_v16, %v4653_v3 }
0x4c66   :  { %v4655_v19 = vadd.f32 %v6608_v16, %v4654_v58 }
0x4c68   :  { %v4659_v44 = vsel %vm4658_vm2, %v6608_v16, %v4655_v19 }
0x4c69   :  { %v4664_v34 = vsel %vm4661_vm5, %v4663_v2, %v4659_v44 }
0x4c6a   :  { %v4683_v42 = vmul.f32 0.0, %v4664_v34 }
0x4ca5   :  { %v4690_v45 = vpop.permute.xlu2 %4689 }
0x4ca6   :  { %v4694_v13 = vmul.f32 %v4690_v45, %v4679_v30 }
0x4ca8   :  { %4699 = vrot.lane.b32.xlu1 %v4694_v13, %s6890_s2 }
0x4cb5   :  { %v4688_v36 = vpop.permute.xlu0 %4687 }
0x4cb6   :  { %v4693_v24 = vmul.f32 %v4688_v36, %v4664_v34 }
0x4cb8   :  { %4697 = vrot.lane.b32.xlu2 %v4693_v24, %s6890_s2 }
0x4d12   :  { %v4698_v38 = vpop.permute.xlu2 %4697 }
0x4d13   :  { %v7892_v32 = vadd.f32 %v4698_v38, %v4683_v42 }
0x4d15   :  { %6609 = vtanh.f32 %v7892_v32  ;;  %v4793_v13 = vrot.slane %v7892_v32, 7 }
0x4d1a   :  { %v4700_v20 = vpop.permute.xlu1 %4699 }
0x4d1b   :  { %v6610_v33 = vpop.eup %6609  ;;  %v7895_v31 = vadd.f32 %v4700_v20, %v4684_v51 }
0x4d1c   :  { %4709 = vrot.lane.b32.xlu1 %v6610_v33, %s6886_s17 }
0x4d1d   :  { %6611 = vtanh.f32 %v7895_v31  ;;  %v4794_v29 = vrot.slane %v7895_v31, 7 }
0x4d23   :  { %v6612_v55 = vpop.eup %6611 }
0x4d24   :  { %4711 = vrot.lane.b32.xlu0 %v6612_v55, %s6886_s17 }
0x4d8e   :  { %v4710_v49 = vpop.permute.xlu1 %4709 }
0x4d8f   :  { %v7902_v40 = vmul.f32 %v4710_v49, %v4664_v34 }
0x4d96   :  { %v4712_v41 = vpop.permute.xlu0 %4711 }
0x4d97   :  { %v7900_v25 = vmul.f32 %v4712_v41, %v4679_v30 }
0x4d99   :  { %v4719_v48 = vrot.slane %v7900_v25, 7 }
0x4d9b   :  { %v4720_v46 = vsel %vm239_vm10, %v4719_v48, %v7902_v40 }
0x4d9c   :  { %4721 = vrot.lane.b32.xlu2 %v4720_v46, %s6890_s2 }
0x4df6   :  { %v4722_v43 = vpop.permute.xlu2 %4721 }
0x4df7   :  { %5986 = vmatmul.msk.f32.vlgmr.msrb.gmra.mxu0 %vm132_vm11, %v4722_v43 }
0x4e74   :  { %v4742_v39 = vpop.f32.mrf.mxu0 }
0x4e75   :  { %v4746_v54 = vrot.slane %v4742_v39, 7  ;;  %v4750_v10 = vadd.f32 %v4742_v39, %v7885_v22 }
0x4e77   :  { %v4749_v60 = vadd.f32 %v4746_v54, %v7882_v1  ;;  %6613 = vtanh.f32 %v4750_v10  ;;  %v5988_v53 = vmul.f32 -1.442695, %v4750_v10 }
0x4e79   :  { %6615 = vtanh.f32 %v4749_v60  ;;  %v5987_v27 = vmul.f32 -1.442695, %v4749_v60 }
0x4e7a   :  { %6617 = vpow2.f32 %v5988_v53 }
0x4e7b   :  { %6619 = vpow2.f32 %v5987_v27 }
0x4e7d   :  { %v6614_v50 = vpop.eup %6613 }
0x4e7e   :  { %4803 = vrot.lane.b32.xlu1 %v6614_v50, %s6886_s17 }
0x4e7f   :  { %v6616_v61 = vpop.eup %6615 }
0x4e80   :  { %4801 = vrot.lane.b32.xlu0 %v6616_v61, %s6886_s17  ;;  %v6618_v57 = vpop.eup %6617 }
0x4e81   :  { %v6620_v47 = vpop.eup %6619  ;;  %v4758_v52 = vadd.f32 1.0, %v6618_v57 }
0x4e82   :  { %v4757_v63 = vadd.f32 1.0, %v6620_v47 }
0x4e83   :  { %6621 = vrcp.f32 %v4758_v52  ;;  %v4785_v7 = vand.u32 2147483648, %v4758_v52  ;;  %vm4779_vm8 = vweird.f32 %v4758_v52  ;;  %v4783_v17 = vand.u32 2147483647, %v4758_v52 }
0x4e84   :  { %6623 = vrcp.f32 %v4757_v63  ;;  %v4770_v14 = vand.u32 2147483648, %v4757_v63  ;;  %vm4764_vm14 = vweird.f32 %v4757_v63  ;;  %v4768_v12 = vand.u32 2147483647, %v4757_v63 }
0x4e85   :  { %v4786_v15 = vor.u32 1.1754944e-38, %v4785_v7  ;;  %vm4784_vm2 = vcmp.eq.f32.partialorder %v4783_v17, 8.507059e+37 }
0x4e86   :  { %v4771_v21 = vor.u32 1.1754944e-38, %v4770_v14  ;;  %vm4769_vm1 = vcmp.eq.f32.partialorder %v4768_v12, 8.507059e+37 }
0x4e89   :  { %v6622_v26 = vpop.eup %6621 }
0x4e8a   :  { %v6624_v18 = vpop.eup %6623  ;;  %v4775_v8 = vmul.f32 %v6622_v26, %v4758_v52  ;;  %vm4780_vm7 = vweird.f32 %v6622_v26 }
0x4e8b   :  { %v4760_v23 = vmul.f32 %v6624_v18, %v4757_v63  ;;  %vm4781_vm12 = vmor %vm4779_vm8, %vm4780_vm7  ;;  %vm4765_vm13 = vweird.f32 %v6624_v18 }
0x4e8c   :  { %v4776_v37 = vsub.f32 1.0, %v4775_v8  ;;  %vm4766_vm5 = vmor %vm4764_vm14, %vm4765_vm13 }
0x4e8d   :  { %v4761_v62 = vsub.f32 1.0, %v4760_v23 }
0x4e8e   :  { %v4777_v59 = vmul.f32 %v6622_v26, %v4776_v37 }
0x4e8f   :  { %v4762_v56 = vmul.f32 %v6624_v18, %v4761_v62 }
0x4e90   :  { %v4778_v5 = vadd.f32 %v6622_v26, %v4777_v59 }
0x4e91   :  { %v4763_v11 = vadd.f32 %v6624_v18, %v4762_v56 }
0x4e92   :  { %v4782_v0 = vsel %vm4781_vm12, %v6622_v26, %v4778_v5 }
0x4e93   :  { %v4787_v6 = vsel %vm4784_vm2, %v4786_v15, %v4782_v0  ;;  %v4767_v28 = vsel %vm4766_vm5, %v6624_v18, %v4763_v11 }
0x4e94   :  { %v4772_v45 = vsel %vm4769_vm1, %v4771_v21, %v4767_v28  ;;  %v4798_v44 = vmul.f32 %v4794_v29, %v4787_v6 }
0x4e95   :  { %v4797_v3 = vmul.f32 %v4793_v13, %v4772_v45 }
0x4ef0   :  { %v4804_v16 = vpop.permute.xlu1 %4803 }
0x4ef1   :  { %v4808_v9 = vmul.f32 %v4804_v16, %v4787_v6 }
0x4ef2   :  { %v4802_v4 = vpop.permute.xlu0 %4801 }
0x4ef3   :  { %4813 = vrot.lane.b32.xlu0 %v4808_v9, %s6890_s2  ;;  %v4807_v30 = vmul.f32 %v4802_v4, %v4772_v45 }
0x4ef5   :  { %4811 = vrot.lane.b32.xlu2 %v4807_v30, %s6890_s2 }
0x4f4f   :  { %v4812_v58 = vpop.permute.xlu2 %4811 }
0x4f50   :  { %v7916_v19 = vadd.f32 %v4812_v58, %v4797_v3 }
0x4f52   :  { %6625 = vtanh.f32 %v7916_v19  ;;  %v4908_v30 = vrot.slane %v7916_v19, 7 }
0x4f58   :  { %v6626_v35 = vpop.eup %6625 }
0x4f59   :  { %4823 = vrot.lane.b32.xlu1 %v6626_v35, %s6886_s17 }
0x4f65   :  { %v4814_v2 = vpop.permute.xlu0 %4813 }
0x4f66   :  { %v7921_v36 = vadd.f32 %v4814_v2, %v4798_v44 }
0x4f68   :  { %6627 = vtanh.f32 %v7921_v36  ;;  %v4909_v28 = vrot.slane %v7921_v36, 7 }
0x4f6e   :  { %v6628_v34 = vpop.eup %6627 }
0x4f6f   :  { %4825 = vrot.lane.b32.xlu2 %v6628_v34, %s6886_s17 }
0x4fc9   :  { %v4826_v24 = vpop.permute.xlu2 %4825 }
0x4fca   :  { %v7927_v32 = vmul.f32 %v4826_v24, %v4787_v6 }
0x4fcb   :  { %v4824_v42 = vpop.permute.xlu1 %4823 }
0x4fcc   :  { %v7925_v38 = vmul.f32 %v4824_v42, %v4772_v45  ;;  %v5527_v19 = vsel %vm101_vm0, %v7900_v25, %v7927_v32 }
0x4fce   :  { %v4833_v51 = vrot.slane %v7925_v38, 1  ;;  %v5526_v36 = vsel %vm101_vm0, %v7902_v40, %v7925_v38 }
0x4fd0   :  { %v4834_v20 = vsel %vm239_vm10, %v7927_v32, %v4833_v51 }
0x4fd1   :  { %4835 = vrot.lane.b32.xlu0 %v4834_v20, %s6890_s2 }
0x5043   :  { %v4836_v33 = vpop.permute.xlu0 %4835 }
0x5044   :  { %5989 = vmatmul.msk.f32.vlgmr.msrb.gmra.mxu1 %vm132_vm11, %v4836_v33 }
0x50c1   :  { %v4856_v31 = vpop.f32.mrf.mxu1 }
0x50c2   :  { %v4860_v55 = vrot.slane %v4856_v31, 6  ;;  %v4861_v49 = vrot.slane %v4856_v31, 7 }
0x50c4   :  { %v4864_v41 = vadd.f32 %v4860_v55, %v7882_v1  ;;  %v4865_v48 = vadd.f32 %v4861_v49, %v7885_v22 }
0x50c6   :  { %6629 = vtanh.f32 %v4864_v41  ;;  %v5991_v39 = vmul.f32 -1.442695, %v4865_v48  ;;  %v5990_v50 = vmul.f32 -1.442695, %v4864_v41 }
0x50c7   :  { %6631 = vtanh.f32 %v4865_v48 }
0x50c8   :  { %6633 = vpow2.f32 %v5991_v39 }
0x50cc   :  { %v6630_v46 = vpop.eup %6629 }
0x50cd   :  { %v6632_v43 = vpop.eup %6631  ;;  %4916 = vrot.lane.b32.xlu1 %v6630_v46, %s6886_s17 }
0x50ce   :  { %4918 = vrot.lane.b32.xlu2 %v6632_v43, %s6886_s17  ;;  %v6634_v54 = vpop.eup %6633 }
0x50cf   :  { %v4873_v10 = vadd.f32 1.0, %v6634_v54 }
0x50d1   :  { %6635 = vrcp.f32 %v4873_v10  ;;  %v4900_v63 = vand.u32 2147483648, %v4873_v10  ;;  %vm4894_vm7 = vweird.f32 %v4873_v10  ;;  %v4898_v26 = vand.u32 2147483647, %v4873_v10 }
0x50d2   :  { %6637 = vpow2.f32 %v5990_v50 }
0x50d3   :  { %v4901_v8 = vor.u32 1.1754944e-38, %v4900_v63  ;;  %vm4899_vm12 = vcmp.eq.f32.partialorder %v4898_v26, 8.507059e+37 }
0x50d7   :  { %v6636_v60 = vpop.eup %6635 }
0x50d8   :  { %v4890_v61 = vmul.f32 %v6636_v60, %v4873_v10  ;;  %v6638_v27 = vpop.eup %6637  ;;  %vm4895_vm1 = vweird.f32 %v6636_v60 }
0x50d9   :  { %v4872_v47 = vadd.f32 1.0, %v6638_v27  ;;  %vm4896_vm8 = vmor %vm4894_vm7, %vm4895_vm1 }
0x50da   :  { %v4891_v53 = vsub.f32 1.0, %v4890_v61 }
0x50db   :  { %6639 = vrcp.f32 %v4872_v47  ;;  %v4885_v11 = vand.u32 2147483648, %v4872_v47  ;;  %vm4879_vm14 = vweird.f32 %v4872_v47  ;;  %v4883_v0 = vand.u32 2147483647, %v4872_v47 }
0x50dc   :  { %v4892_v57 = vmul.f32 %v6636_v60, %v4891_v53 }
0x50dd   :  { %v4886_v15 = vor.u32 1.1754944e-38, %v4885_v11  ;;  %vm4884_vm5 = vcmp.eq.f32.partialorder %v4883_v0, 8.507059e+37 }
0x50de   :  { %v4893_v52 = vadd.f32 %v6636_v60, %v4892_v57 }
0x50e0   :  { %v4897_v18 = vsel %vm4896_vm8, %v6636_v60, %v4893_v52 }
0x50e1   :  { %v4902_v37 = vsel %vm4899_vm12, %v4901_v8, %v4897_v18  ;;  %v6640_v62 = vpop.eup %6639 }
0x50e2   :  { %v4875_v56 = vmul.f32 %v6640_v62, %v4872_v47  ;;  %vm4880_vm13 = vweird.f32 %v6640_v62  ;;  %v4913_v9 = vmul.f32 %v4909_v28, %v4902_v37 }
0x50e3   :  { %vm4881_vm2 = vmor %vm4879_vm14, %vm4880_vm13 }
0x50e4   :  { %v4876_v5 = vsub.f32 1.0, %v4875_v56 }
0x50e6   :  { %v4877_v7 = vmul.f32 %v6640_v62, %v4876_v5 }
0x50e8   :  { %v4878_v17 = vadd.f32 %v6640_v62, %v4877_v7 }
0x50ea   :  { %v4882_v14 = vsel %vm4881_vm2, %v6640_v62, %v4878_v17 }
0x50eb   :  { %v4887_v16 = vsel %vm4884_vm5, %v4886_v15, %v4882_v14 }
0x50ec   :  { %v4912_v13 = vmul.f32 %v4908_v30, %v4887_v16 }
0x5128   :  { %v4919_v23 = vpop.permute.xlu2 %4918 }
0x5129   :  { %v4923_v59 = vmul.f32 %v4919_v23, %v4902_v37 }
0x512b   :  { %4928 = vrot.lane.b32.xlu1 %v4923_v59, %s6890_s2 }
0x513f   :  { %v4917_v12 = vpop.permute.xlu1 %4916 }
0x5140   :  { %v4922_v6 = vmul.f32 %v4917_v12, %v4887_v16 }
0x5142   :  { %4926 = vrot.lane.b32.xlu0 %v4922_v6, %s6890_s2 }
0x519d   :  { %v4929_v21 = vpop.permute.xlu1 %4928 }
0x519e   :  { %v7941_v4 = vadd.f32 %v4929_v21, %v4913_v9 }
0x51a0   :  { %6641 = vtanh.f32 %v7941_v4 }
0x51a6   :  { %v6642_v45 = vpop.eup %6641 }
0x51a7   :  { %4940 = vrot.lane.b32.xlu0 %v6642_v45, %s6886_s17 }
0x51b4   :  { %v4927_v3 = vpop.permute.xlu0 %4926 }
0x51b5   :  { %v7946_v58 = vadd.f32 %v4927_v3, %v4912_v13 }
0x51b7   :  { %6643 = vtanh.f32 %v7946_v58  ;;  %v5024_v12 = vrot.slane %v7946_v58, 7 }
0x51bd   :  { %v6644_v35 = vpop.eup %6643 }
0x51be   :  { %4938 = vrot.lane.b32.xlu2 %v6644_v35, %s6886_s17 }
0x5218   :  { %v4939_v29 = vpop.permute.xlu2 %4938 }
0x5219   :  { %v4941_v44 = vpop.permute.xlu0 %4940  ;;  %v4944_v2 = vmul.f32 %v4939_v29, %v4887_v16  ;;  %v5025_v16 = vrot.slane %v7941_v4, 7 }
0x521a   :  { %v4945_v34 = vmul.f32 %v4941_v44, %v4902_v37 }
0x521b   :  { %v4948_v24 = vrot.slane %v4944_v2, 2  ;;  %v7957_v42 = vsel %vm1048_vm15, %v5526_v36, %v4944_v2 }
0x521c   :  { %v4949_v51 = vrot.slane %v4945_v34, 1  ;;  %v7960_v20 = vsel %vm1048_vm15, %v5527_v19, %v4945_v34 }
0x521e   :  { %v4950_v33 = vsel %vm239_vm10, %v4949_v51, %v4948_v24 }
0x521f   :  { %4951 = vrot.lane.b32.xlu1 %v4950_v33, %s6890_s2 }
0x5291   :  { %v4952_v31 = vpop.permute.xlu1 %4951 }
0x5292   :  { %5992 = vmatmul.msk.f32.vlgmr.msra.gmra.mxu2 %vm132_vm11, %v4952_v31 }
0x5315   :  { %v4972_v40 = vpop.f32.mrf.mxu2 }
0x5316   :  { %v4976_v38 = vrot.slane %v4972_v40, 5  ;;  %v4977_v55 = vrot.slane %v4972_v40, 6 }
0x5318   :  { %v4980_v25 = vadd.f32 %v4976_v38, %v7882_v1  ;;  %v4981_v32 = vadd.f32 %v4977_v55, %v7885_v22 }
0x531a   :  { %6645 = vtanh.f32 %v4980_v25  ;;  %v5993_v48 = vmul.f32 -1.442695, %v4980_v25  ;;  %v5994_v54 = vmul.f32 -1.442695, %v4981_v32 }
0x531b   :  { %6647 = vtanh.f32 %v4981_v32 }
0x531c   :  { %6649 = vpow2.f32 %v5993_v48 }
0x5320   :  { %v6646_v49 = vpop.eup %6645 }
0x5321   :  { %v6648_v41 = vpop.eup %6647  ;;  %5032 = vrot.lane.b32.xlu2 %v6646_v49, %s6886_s17 }
0x5322   :  { %5034 = vrot.lane.b32.xlu0 %v6648_v41, %s6886_s17  ;;  %v6650_v46 = vpop.eup %6649 }
0x5323   :  { %v4988_v43 = vadd.f32 1.0, %v6650_v46 }
0x5325   :  { %6651 = vrcp.f32 %v4988_v43  ;;  %v5001_v57 = vand.u32 2147483648, %v4988_v43  ;;  %vm4995_vm15 = vweird.f32 %v4988_v43  ;;  %v4999_v47 = vand.u32 2147483647, %v4988_v43 }
0x5326   :  { %6653 = vpow2.f32 %v5994_v54 }
0x5327   :  { %v5002_v63 = vor.u32 1.1754944e-38, %v5001_v57  ;;  %vm5000_vm7 = vcmp.eq.f32.partialorder %v4999_v47, 8.507059e+37 }
0x532b   :  { %v6652_v39 = vpop.eup %6651 }
0x532c   :  { %v4991_v10 = vmul.f32 %v6652_v39, %v4988_v43  ;;  %v6654_v61 = vpop.eup %6653  ;;  %vm4996_vm0 = vweird.f32 %v6652_v39 }
0x532d   :  { %v4989_v53 = vadd.f32 1.0, %v6654_v61  ;;  %vm4997_vm1 = vmor %vm4995_vm15, %vm4996_vm0 }
0x532e   :  { %v4992_v60 = vsub.f32 1.0, %v4991_v10 }
0x532f   :  { %6655 = vrcp.f32 %v4989_v53  ;;  %v5016_v5 = vand.u32 2147483648, %v4989_v53  ;;  %vm5010_vm12 = vweird.f32 %v4989_v53  ;;  %v5014_v7 = vand.u32 2147483647, %v4989_v53 }
0x5330   :  { %v4993_v50 = vmul.f32 %v6652_v39, %v4992_v60 }
0x5331   :  { %v5017_v11 = vor.u32 1.1754944e-38, %v5016_v5  ;;  %vm5015_vm14 = vcmp.eq.f32.partialorder %v5014_v7, 8.507059e+37 }
0x5332   :  { %v4994_v27 = vadd.f32 %v6652_v39, %v4993_v50 }
0x5334   :  { %v4998_v52 = vsel %vm4997_vm1, %v6652_v39, %v4994_v27 }
0x5335   :  { %v5003_v18 = vsel %vm5000_vm7, %v5002_v63, %v4998_v52  ;;  %v6656_v23 = vpop.eup %6655 }
0x5336   :  { %v5006_v37 = vmul.f32 %v6656_v23, %v4989_v53  ;;  %vm5011_vm8 = vweird.f32 %v6656_v23  ;;  %v5028_v6 = vmul.f32 %v5024_v12, %v5003_v18 }
0x5337   :  { %vm5012_vm13 = vmor %vm5010_vm12, %vm5011_vm8 }
0x5338   :  { %v5007_v62 = vsub.f32 1.0, %v5006_v37 }
0x533a   :  { %v5008_v59 = vmul.f32 %v6656_v23, %v5007_v62 }
0x533c   :  { %v5009_v56 = vadd.f32 %v6656_v23, %v5008_v59 }
0x533e   :  { %v5013_v17 = vsel %vm5012_vm13, %v6656_v23, %v5009_v56 }
0x533f   :  { %v5018_v14 = vsel %vm5015_vm14, %v5017_v11, %v5013_v17 }
0x5340   :  { %v5029_v28 = vmul.f32 %v5025_v16, %v5018_v14 }
0x537b   :  { %v5033_v26 = vpop.permute.xlu2 %5032 }
0x537c   :  { %v5038_v8 = vmul.f32 %v5033_v26, %v5003_v18 }
0x537e   :  { %5042 = vrot.lane.b32.xlu1 %v5038_v8, %s6890_s2 }
0x5394   :  { %v5035_v0 = vpop.permute.xlu0 %5034 }
0x5395   :  { %v5039_v15 = vmul.f32 %v5035_v0, %v5018_v14 }
0x5397   :  { %5044 = vrot.lane.b32.xlu2 %v5039_v15, %s6890_s2 }
0x53f0   :  { %v5043_v9 = vpop.permute.xlu1 %5042 }
0x53f1   :  { %v5045_v21 = vpop.permute.xlu2 %5044  ;;  %v7973_v45 = vadd.f32 %v5043_v9, %v5028_v6 }
0x53f2   :  { %v7975_v30 = vadd.f32 %v5045_v21, %v5029_v28 }
0x53f3   :  { %6657 = vtanh.f32 %v7973_v45  ;;  %v5140_v17 = vrot.slane %v7973_v45, 7 }
0x53f4   :  { %6659 = vtanh.f32 %v7975_v30  ;;  %v5141_v12 = vrot.slane %v7975_v30, 7 }
0x53f9   :  { %v6658_v13 = vpop.eup %6657 }
0x53fa   :  { %v6660_v3 = vpop.eup %6659  ;;  %5054 = vrot.lane.b32.xlu0 %v6658_v13, %s6886_s17 }
0x53fb   :  { %5056 = vrot.lane.b32.xlu1 %v6660_v3, %s6886_s17 }
0x546c   :  { %v5055_v58 = vpop.permute.xlu0 %5054 }
0x546d   :  { %v5057_v4 = vpop.permute.xlu1 %5056  ;;  %v5060_v35 = vmul.f32 %v5055_v58, %v5003_v18 }
0x546e   :  { %v5061_v29 = vmul.f32 %v5057_v4, %v5018_v14 }
0x546f   :  { %v5064_v44 = vrot.slane %v5060_v35, 3  ;;  %v7983_v2 = vsel %vm1051_vm9, %v7957_v42, %v5060_v35 }
0x5470   :  { %v5065_v36 = vrot.slane %v5061_v29, 2  ;;  %v7987_v34 = vsel %vm1051_vm9, %v7960_v20, %v5061_v29 }
0x5472   :  { %v5066_v19 = vsel %vm239_vm10, %v5065_v36, %v5064_v44 }
0x5473   :  { %5067 = vrot.lane.b32.xlu2 %v5066_v19, %s6890_s2 }
0x54cd   :  { %v5068_v24 = vpop.permute.xlu2 %5067 }
0x54ce   :  { %5995 = vmatmul.msk.f32.vlgmr.msrb.gmra.mxu3 %vm132_vm11, %v5068_v24 }
0x5551   :  { %v5088_v51 = vpop.f32.mrf.mxu3 }
0x5552   :  { %v5092_v33 = vrot.slane %v5088_v51, 4  ;;  %v5093_v31 = vrot.slane %v5088_v51, 5 }
0x5554   :  { %v5096_v40 = vadd.f32 %v5092_v33, %v7882_v1  ;;  %v5097_v42 = vadd.f32 %v5093_v31, %v7885_v22 }
0x5556   :  { %6661 = vtanh.f32 %v5096_v40  ;;  %v5996_v20 = vmul.f32 -1.442695, %v5096_v40  ;;  %v5997_v25 = vmul.f32 -1.442695, %v5097_v42 }
0x5557   :  { %6663 = vtanh.f32 %v5097_v42 }
0x5558   :  { %6665 = vpow2.f32 %v5996_v20 }
0x5559   :  { %6667 = vpow2.f32 %v5997_v25 }
0x555c   :  { %v6662_v38 = vpop.eup %6661 }
0x555d   :  { %v6664_v55 = vpop.eup %6663  ;;  %5148 = vrot.lane.b32.xlu0 %v6662_v38, %s6886_s17 }
0x555e   :  { %5150 = vrot.lane.b32.xlu1 %v6664_v55, %s6886_s17  ;;  %v6666_v32 = vpop.eup %6665 }
0x555f   :  { %v6668_v49 = vpop.eup %6667  ;;  %v5104_v41 = vadd.f32 1.0, %v6666_v32 }
0x5560   :  { %v5105_v48 = vadd.f32 1.0, %v6668_v49 }
0x5561   :  { %6669 = vrcp.f32 %v5104_v41  ;;  %v5117_v57 = vand.u32 2147483648, %v5104_v41  ;;  %vm5111_vm5 = vweird.f32 %v5104_v41  ;;  %v5115_v52 = vand.u32 2147483647, %v5104_v41 }
0x5562   :  { %6671 = vrcp.f32 %v5105_v48  ;;  %v5132_v47 = vand.u32 2147483648, %v5105_v48  ;;  %vm5126_vm0 = vweird.f32 %v5105_v48  ;;  %v5130_v63 = vand.u32 2147483647, %v5105_v48 }
0x5563   :  { %v5118_v8 = vor.u32 1.1754944e-38, %v5117_v57  ;;  %vm5116_vm7 = vcmp.eq.f32.partialorder %v5115_v52, 8.507059e+37 }
0x5564   :  { %v5133_v23 = vor.u32 1.1754944e-38, %v5132_v47  ;;  %vm5131_vm8 = vcmp.eq.f32.partialorder %v5130_v63, 8.507059e+37 }
0x5567   :  { %v6670_v46 = vpop.eup %6669 }
0x5568   :  { %v6672_v43 = vpop.eup %6671  ;;  %v5107_v39 = vmul.f32 %v6670_v46, %v5104_v41  ;;  %vm5112_vm9 = vweird.f32 %v6670_v46 }
0x5569   :  { %v5122_v54 = vmul.f32 %v6672_v43, %v5105_v48  ;;  %vm5127_vm2 = vweird.f32 %v6672_v43  ;;  %vm5113_vm15 = vmor %vm5111_vm5, %vm5112_vm9 }
0x556a   :  { %v5108_v10 = vsub.f32 1.0, %v5107_v39  ;;  %vm5128_vm1 = vmor %vm5126_vm0, %vm5127_vm2 }
0x556b   :  { %v5123_v60 = vsub.f32 1.0, %v5122_v54 }
0x556c   :  { %v5109_v50 = vmul.f32 %v6670_v46, %v5108_v10 }
0x556d   :  { %v5124_v61 = vmul.f32 %v6672_v43, %v5123_v60 }
0x556e   :  { %v5110_v53 = vadd.f32 %v6670_v46, %v5109_v50 }
0x556f   :  { %v5125_v27 = vadd.f32 %v6672_v43, %v5124_v61 }
0x5570   :  { %v5114_v26 = vsel %vm5113_vm15, %v6670_v46, %v5110_v53 }
0x5571   :  { %v5129_v18 = vsel %vm5128_vm1, %v6672_v43, %v5125_v27  ;;  %v5119_v62 = vsel %vm5116_vm7, %v5118_v8, %v5114_v26 }
0x5572   :  { %v5134_v56 = vsel %vm5131_vm8, %v5133_v23, %v5129_v18  ;;  %v5144_v11 = vmul.f32 %v5140_v17, %v5119_v62 }
0x5573   :  { %v5145_v16 = vmul.f32 %v5141_v12, %v5134_v56 }
0x55cf   :  { %v5149_v37 = vpop.permute.xlu0 %5148 }
0x55d0   :  { %v5151_v59 = vpop.permute.xlu1 %5150  ;;  %v5154_v5 = vmul.f32 %v5149_v37, %v5119_v62 }
0x55d1   :  { %v5155_v7 = vmul.f32 %v5151_v59, %v5134_v56 }
0x55d2   :  { %5158 = vrot.lane.b32.xlu2 %v5154_v5, %s6890_s2 }
0x55d3   :  { %5160 = vrot.lane.b32.xlu0 %v5155_v7, %s6890_s2 }
0x562c   :  { %v5159_v0 = vpop.permute.xlu2 %5158 }
0x562d   :  { %v7999_v14 = vadd.f32 %v5159_v0, %v5144_v11 }
0x562f   :  { %6673 = vtanh.f32 %v7999_v14  ;;  %v5256_v17 = vrot.slane %v7999_v14, 7 }
0x5635   :  { %v6674_v15 = vpop.eup %6673 }
0x5636   :  { %5170 = vrot.lane.b32.xlu1 %v6674_v15, %s6886_s17 }
0x5645   :  { %v5161_v6 = vpop.permute.xlu0 %5160 }
0x5646   :  { %v8004_v28 = vadd.f32 %v5161_v6, %v5145_v16 }
0x5648   :  { %6675 = vtanh.f32 %v8004_v28 }
0x564e   :  { %v6676_v9 = vpop.eup %6675 }
0x564f   :  { %5172 = vrot.lane.b32.xlu2 %v6676_v9, %s6886_s17 }
0x56a8   :  { %v5171_v21 = vpop.permute.xlu1 %5170 }
0x56a9   :  { %v5173_v45 = vpop.permute.xlu2 %5172  ;;  %v5176_v13 = vmul.f32 %v5171_v21, %v5119_v62  ;;  %v5257_v62 = vrot.slane %v8004_v28, 7 }
0x56aa   :  { %v5177_v3 = vmul.f32 %v5173_v45, %v5134_v56 }
0x56ab   :  { %v5180_v58 = vrot.slane %v5176_v13, 4  ;;  %v8010_v4 = vsel %vm1054_vm6, %v7983_v2, %v5176_v13 }
0x56ac   :  { %v5181_v35 = vrot.slane %v5177_v3, 3  ;;  %v8014_v30 = vsel %vm1054_vm6, %v7987_v34, %v5177_v3 }
0x56ae   :  { %v5182_v29 = vsel %vm239_vm10, %v5181_v35, %v5180_v58 }
0x56af   :  { %5183 = vrot.lane.b32.xlu0 %v5182_v29, %s6890_s2 }
0x5721   :  { %v5184_v44 = vpop.permute.xlu0 %5183 }
0x5722   :  { %5998 = vmatmul.msk.f32.vlgmr.msra.gmra.mxu0 %vm132_vm11, %v5184_v44 }
0x579f   :  { %v5204_v36 = vpop.f32.mrf.mxu0 }
0x57a0   :  { %v5208_v19 = vrot.slane %v5204_v36, 3  ;;  %v5209_v24 = vrot.slane %v5204_v36, 4 }
0x57a2   :  { %v5212_v51 = vadd.f32 %v5208_v19, %v7882_v1  ;;  %v5213_v2 = vadd.f32 %v5209_v24, %v7885_v22 }
0x57a4   :  { %6677 = vtanh.f32 %v5212_v51  ;;  %v6000_v34 = vmul.f32 -1.442695, %v5213_v2  ;;  %v5999_v55 = vmul.f32 -1.442695, %v5212_v51 }
0x57a5   :  { %6679 = vtanh.f32 %v5213_v2 }
0x57a6   :  { %6681 = vpow2.f32 %v6000_v34 }
0x57aa   :  { %v6678_v33 = vpop.eup %6677 }
0x57ab   :  { %v6680_v31 = vpop.eup %6679  ;;  %5264 = vrot.lane.b32.xlu1 %v6678_v33, %s6886_s17 }
0x57ac   :  { %5266 = vrot.lane.b32.xlu2 %v6680_v31, %s6886_s17  ;;  %v6682_v40 = vpop.eup %6681 }
0x57ad   :  { %v5221_v42 = vadd.f32 1.0, %v6682_v40 }
0x57af   :  { %6683 = vrcp.f32 %v5221_v42  ;;  %v5248_v46 = vand.u32 2147483648, %v5221_v42  ;;  %vm5242_vm12 = vweird.f32 %v5221_v42  ;;  %v5246_v43 = vand.u32 2147483647, %v5221_v42 }
0x57b0   :  { %6685 = vpow2.f32 %v5999_v55 }
0x57b1   :  { %v5249_v54 = vor.u32 1.1754944e-38, %v5248_v46  ;;  %vm5247_vm14 = vcmp.eq.f32.partialorder %v5246_v43, 8.507059e+37 }
0x57b5   :  { %v6684_v38 = vpop.eup %6683 }
0x57b6   :  { %v5238_v20 = vmul.f32 %v6684_v38, %v5221_v42  ;;  %v6686_v32 = vpop.eup %6685  ;;  %vm5243_vm6 = vweird.f32 %v6684_v38 }
0x57b7   :  { %v5220_v41 = vadd.f32 1.0, %v6686_v32  ;;  %vm5244_vm13 = vmor %vm5242_vm12, %vm5243_vm6 }
0x57b8   :  { %v5239_v25 = vsub.f32 1.0, %v5238_v20 }
0x57b9   :  { %6687 = vrcp.f32 %v5220_v41  ;;  %v5233_v52 = vand.u32 2147483648, %v5220_v41  ;;  %vm5227_vm2 = vweird.f32 %v5220_v41  ;;  %v5231_v63 = vand.u32 2147483647, %v5220_v41 }
0x57ba   :  { %v5240_v49 = vmul.f32 %v6684_v38, %v5239_v25 }
0x57bb   :  { %v5234_v18 = vor.u32 1.1754944e-38, %v5233_v52  ;;  %vm5232_vm0 = vcmp.eq.f32.partialorder %v5231_v63, 8.507059e+37 }
0x57bc   :  { %v5241_v48 = vadd.f32 %v6684_v38, %v5240_v49 }
0x57be   :  { %v5245_v39 = vsel %vm5244_vm13, %v6684_v38, %v5241_v48 }
0x57bf   :  { %v5250_v60 = vsel %vm5247_vm14, %v5249_v54, %v5245_v39  ;;  %v6688_v50 = vpop.eup %6687 }
0x57c0   :  { %v5223_v53 = vmul.f32 %v6688_v50, %v5220_v41  ;;  %vm5228_vm9 = vweird.f32 %v6688_v50  ;;  %v5261_v59 = vmul.f32 %v5257_v62, %v5250_v60 }
0x57c1   :  { %vm5229_vm5 = vmor %vm5227_vm2, %vm5228_vm9 }
0x57c2   :  { %v5224_v27 = vsub.f32 1.0, %v5223_v53 }
0x57c4   :  { %v5225_v57 = vmul.f32 %v6688_v50, %v5224_v27 }
0x57c6   :  { %v5226_v47 = vadd.f32 %v6688_v50, %v5225_v57 }
0x57c8   :  { %v5230_v26 = vsel %vm5229_vm5, %v6688_v50, %v5226_v47 }
0x57c9   :  { %v5235_v23 = vsel %vm5232_vm0, %v5234_v18, %v5230_v26 }
0x57ca   :  { %v5260_v11 = vmul.f32 %v5256_v17, %v5235_v23 }
0x5806   :  { %v5267_v10 = vpop.permute.xlu2 %5266 }
0x5807   :  { %v5271_v61 = vmul.f32 %v5267_v10, %v5250_v60 }
0x5809   :  { %5276 = vrot.lane.b32.xlu1 %v5271_v61, %s6890_s2 }
0x581d   :  { %v5265_v8 = vpop.permute.xlu1 %5264 }
0x581e   :  { %v5270_v37 = vmul.f32 %v5265_v8, %v5235_v23 }
0x5820   :  { %5274 = vrot.lane.b32.xlu0 %v5270_v37, %s6890_s2 }
0x587b   :  { %v5277_v56 = vpop.permute.xlu1 %5276 }
0x587c   :  { %v8026_v5 = vadd.f32 %v5277_v56, %v5261_v59 }
0x587e   :  { %6689 = vtanh.f32 %v8026_v5  ;;  %v5373_v18 = vrot.slane %v8026_v5, 7 }
0x5884   :  { %v6690_v7 = vpop.eup %6689 }
0x5885   :  { %5288 = vrot.lane.b32.xlu0 %v6690_v7, %s6886_s17 }
0x5892   :  { %v5275_v0 = vpop.permute.xlu0 %5274 }
0x5893   :  { %v8031_v15 = vadd.f32 %v5275_v0, %v5260_v11 }
0x5895   :  { %6691 = vtanh.f32 %v8031_v15  ;;  %v5372_v26 = vrot.slane %v8031_v15, 7 }
0x589b   :  { %v6692_v12 = vpop.eup %6691 }
0x589c   :  { %5286 = vrot.lane.b32.xlu2 %v6692_v12, %s6886_s17 }
0x58f6   :  { %v5287_v16 = vpop.permute.xlu2 %5286 }
0x58f7   :  { %v5289_v6 = vpop.permute.xlu0 %5288  ;;  %v5292_v28 = vmul.f32 %v5287_v16, %v5235_v23 }
0x58f8   :  { %v5293_v9 = vmul.f32 %v5289_v6, %v5250_v60 }
0x58f9   :  { %v5296_v21 = vrot.slane %v5292_v28, 5  ;;  %v8037_v45 = vsel %vm1057_vm4, %v8010_v4, %v5292_v28 }
0x58fa   :  { %v5297_v13 = vrot.slane %v5293_v9, 4  ;;  %v8041_v14 = vsel %vm1057_vm4, %v8014_v30, %v5293_v9 }
0x58fc   :  { %v5298_v3 = vsel %vm239_vm10, %v5297_v13, %v5296_v21 }
0x58fd   :  { %5299 = vrot.lane.b32.xlu1 %v5298_v3, %s6890_s2 }
0x596f   :  { %v5300_v58 = vpop.permute.xlu1 %5299 }
0x5970   :  { %6001 = vmatmul.msk.f32.vlgmr.msra.gmra.mxu1 %vm132_vm11, %v5300_v58 }
0x59ed   :  { %v5320_v35 = vpop.f32.mrf.mxu1 }
0x59ee   :  { %v5324_v29 = vrot.slane %v5320_v35, 2  ;;  %v5325_v44 = vrot.slane %v5320_v35, 3 }
0x59f0   :  { %v5328_v36 = vadd.f32 %v5324_v29, %v7882_v1  ;;  %v5329_v4 = vadd.f32 %v5325_v44, %v7885_v22 }
0x59f2   :  { %6693 = vtanh.f32 %v5328_v36  ;;  %v6002_v30 = vmul.f32 -1.442695, %v5328_v36  ;;  %v6003_v31 = vmul.f32 -1.442695, %v5329_v4 }
0x59f3   :  { %6695 = vtanh.f32 %v5329_v4 }
0x59f4   :  { %6697 = vpow2.f32 %v6002_v30 }
0x59f8   :  { %v6694_v19 = vpop.eup %6693 }
0x59f9   :  { %v6696_v24 = vpop.eup %6695  ;;  %5380 = vrot.lane.b32.xlu2 %v6694_v19, %s6886_s17 }
0x59fa   :  { %5382 = vrot.lane.b32.xlu0 %v6696_v24, %s6886_s17  ;;  %v6698_v51 = vpop.eup %6697 }
0x59fb   :  { %v5336_v2 = vadd.f32 1.0, %v6698_v51 }
0x59fd   :  { %6699 = vrcp.f32 %v5336_v2  ;;  %v5349_v25 = vand.u32 2147483648, %v5336_v2  ;;  %vm5343_vm15 = vweird.f32 %v5336_v2  ;;  %v5347_v32 = vand.u32 2147483647, %v5336_v2 }
0x59fe   :  { %6701 = vpow2.f32 %v6003_v31 }
0x59ff   :  { %v5350_v41 = vor.u32 1.1754944e-38, %v5349_v25  ;;  %vm5348_vm7 = vcmp.eq.f32.partialorder %v5347_v32, 8.507059e+37 }
0x5a03   :  { %v6700_v33 = vpop.eup %6699 }
0x5a04   :  { %v5339_v34 = vmul.f32 %v6700_v33, %v5336_v2  ;;  %v6702_v38 = vpop.eup %6701  ;;  %vm5344_vm4 = vweird.f32 %v6700_v33 }
0x5a05   :  { %v5337_v55 = vadd.f32 1.0, %v6702_v38  ;;  %vm5345_vm1 = vmor %vm5343_vm15, %vm5344_vm4  ;;  %vm8126_vm15 = vcmask 1046528  }
0x5a06   :  { %v5340_v40 = vsub.f32 1.0, %v5339_v34 }
0x5a07   :  { %6703 = vrcp.f32 %v5337_v55  ;;  %v5364_v61 = vand.u32 2147483648, %v5337_v55  ;;  %vm5358_vm6 = vweird.f32 %v5337_v55  ;;  %v5362_v53 = vand.u32 2147483647, %v5337_v55 }
0x5a08   :  { %v5341_v42 = vmul.f32 %v6700_v33, %v5340_v40 }
0x5a09   :  { %v5365_v57 = vor.u32 1.1754944e-38, %v5364_v61  ;;  %vm5363_vm13 = vcmp.eq.f32.partialorder %v5362_v53, 8.507059e+37 }
0x5a0a   :  { %v5342_v20 = vadd.f32 %v6700_v33, %v5341_v42 }
0x5a0c   :  { %v5346_v49 = vsel %vm5345_vm1, %v6700_v33, %v5342_v20  ;;  %vm8127_vm1 = vmmov %vm8126_vm15 }
0x5a0d   :  { %v5351_v46 = vsel %vm5348_vm7, %v5350_v41, %v5346_v49  ;;  %v6704_v39 = vpop.eup %6703  ;;  %vm5629_vm7 = vcmask 261127  }
0x5a0e   :  { %v5354_v54 = vmul.f32 %v6704_v39, %v5337_v55  ;;  %vm5359_vm8 = vweird.f32 %v6704_v39  ;;  %v5376_v8 = vmul.f32 %v5372_v26, %v5351_v46 }
0x5a0f   :  { %vm5360_vm12 = vmor %vm5358_vm6, %vm5359_vm8  ;;  %vm5631_vm8 = vcmask 253952   ;;  %vm8128_vm6 = vcmask 31744  }
0x5a10   :  { %v5355_v10 = vsub.f32 1.0, %v5354_v54 }
0x5a12   :  { %v5356_v60 = vmul.f32 %v6704_v39, %v5355_v10 }
0x5a14   :  { %v5357_v50 = vadd.f32 %v6704_v39, %v5356_v60 }
0x5a16   :  { %v5361_v27 = vsel %vm5360_vm12, %v6704_v39, %v5357_v50 }
0x5a17   :  { %v5366_v52 = vsel %vm5363_vm13, %v5365_v57, %v5361_v27 }
0x5a18   :  { %v5377_v23 = vmul.f32 %v5373_v18, %v5366_v52 }
0x5a53   :  { %v5381_v48 = vpop.permute.xlu2 %5380 }
0x5a54   :  { %v5386_v43 = vmul.f32 %v5381_v48, %v5351_v46 }
0x5a56   :  { %5390 = vrot.lane.b32.xlu1 %v5386_v43, %s6890_s2 }
0x5a6c   :  { %v5383_v47 = vpop.permute.xlu0 %5382 }
0x5a6d   :  { %v5387_v63 = vmul.f32 %v5383_v47, %v5366_v52 }
0x5a6f   :  { %5392 = vrot.lane.b32.xlu2 %v5387_v63, %s6890_s2 }
0x5ac8   :  { %v5391_v37 = vpop.permute.xlu1 %5390 }
0x5ac9   :  { %v5393_v62 = vpop.permute.xlu2 %5392  ;;  %v8054_v59 = vadd.f32 %v5391_v37, %v5376_v8 }
0x5aca   :  { %v8056_v56 = vadd.f32 %v5393_v62, %v5377_v23 }
0x5acb   :  { %6705 = vtanh.f32 %v8054_v59  ;;  %v5488_v61 = vrot.slane %v8054_v59, 7 }
0x5acc   :  { %6707 = vtanh.f32 %v8056_v56 }
0x5ad1   :  { %v6706_v7 = vpop.eup %6705 }
0x5ad2   :  { %v6708_v17 = vpop.eup %6707  ;;  %5402 = vrot.lane.b32.xlu0 %v6706_v7, %s6886_s17 }
0x5ad3   :  { %5404 = vrot.lane.b32.xlu1 %v6708_v17, %s6886_s17 }
0x5b44   :  { %v5403_v11 = vpop.permute.xlu0 %5402 }
0x5b45   :  { %v5405_v5 = vpop.permute.xlu1 %5404  ;;  %v5408_v0 = vmul.f32 %v5403_v11, %v5351_v46 }
0x5b46   :  { %v5409_v15 = vmul.f32 %v5405_v5, %v5366_v52  ;;  %v5489_v52 = vrot.slane %v8056_v56, 7 }
0x5b47   :  { %v5412_v12 = vrot.slane %v5408_v0, 6  ;;  %v8064_v16 = vsel %vm1060_vm3, %v8037_v45, %v5408_v0 }
0x5b48   :  { %v5413_v6 = vrot.slane %v5409_v15, 5  ;;  %v8068_v28 = vsel %vm1060_vm3, %v8041_v14, %v5409_v15  ;;  %v5545_v15 = vld [vmem:[#allocation8 + $0x1f0] sm:$0xff] }
0x5b49   :  { %5570 = vmatpush.msra.mxu3 %v5545_v15 }
0x5b4a   :  { %v5414_v9 = vsel %vm239_vm10, %v5413_v6, %v5412_v12  ;;  %v5544_v12 = vld [vmem:[#allocation8 + $0x1e8] sm:$0xff]  ;;  %v5542_v6 = vld [vmem:[#allocation8 + $0x1d8] sm:$0xff] }
0x5b4b   :  { %5415 = vrot.lane.b32.xlu2 %v5414_v9, %s6890_s2  ;;  %5571 = vmatpush.msra.mxu3 %v5544_v12  ;;  %v5586_v9 = vld [vmem:[#allocation8 + $0x218] sm:$0xff] }
0x5b4c   :  { %5607 = vmatpush.msrb.mxu0 %v5586_v9 }
0x5ba5   :  { %v5416_v21 = vpop.permute.xlu2 %5415 }
0x5ba6   :  { %6004 = vmatmul.msk.f32.vlgmr.msrb.gmra.mxu2 %vm132_vm11, %v5416_v21  ;;  %v5585_v21 = vld [vmem:[#allocation8 + $0x210] sm:$0xff] }
0x5ba7   :  { %5608 = vmatpush.msrb.mxu0 %v5585_v21 }
0x5c29   :  { %v5436_v13 = vpop.f32.mrf.mxu2 }
0x5c2a   :  { %v5440_v3 = vrot.slane %v5436_v13, 1  ;;  %v5441_v58 = vrot.slane %v5436_v13, 2 }
0x5c2c   :  { %v5444_v35 = vadd.f32 %v5440_v3, %v7882_v1  ;;  %v5445_v45 = vadd.f32 %v5441_v58, %v7885_v22 }
0x5c2e   :  { %6709 = vtanh.f32 %v5444_v35  ;;  %v6005_v14 = vmul.f32 -1.442695, %v5444_v35  ;;  %v6006_v36 = vmul.f32 -1.442695, %v5445_v45 }
0x5c2f   :  { %6711 = vtanh.f32 %v5445_v45 }
0x5c30   :  { %6713 = vpow2.f32 %v6005_v14  ;;  %v6083_v14 = vld [vmem:[#allocation8 + $0x1f8] ss:$0 sm:$0xff] }
0x5c31   :  { %6715 = vpow2.f32 %v6006_v36 }
0x5c34   :  { %v6710_v29 = vpop.eup %6709 }
0x5c35   :  { %v6712_v44 = vpop.eup %6711  ;;  %5496 = vrot.lane.b32.xlu0 %v6710_v29, %s6886_s17  ;;  %v5584_v29 = vld [vmem:[#allocation8 + $0x208] sm:$0xff] }
0x5c36   :  { %5498 = vrot.lane.b32.xlu1 %v6712_v44, %s6886_s17  ;;  %v6714_v4 = vpop.eup %6713  ;;  %5609 = vmatpush.msrb.mxu0 %v5584_v29  ;;  %v5583_v44 = vld [vmem:[#allocation8 + $0x200] sm:$0xff] }
0x5c37   :  { %v6716_v19 = vpop.eup %6715  ;;  %v5452_v24 = vadd.f32 1.0, %v6714_v4 }
0x5c38   :  { %v5453_v30 = vadd.f32 1.0, %v6716_v19  ;;  %5610 = vmatpush.msrb.mxu0 %v5583_v44 }
0x5c39   :  { %6717 = vrcp.f32 %v5452_v24  ;;  %v5465_v55 = vand.u32 2147483648, %v5452_v24  ;;  %vm5459_vm14 = vweird.f32 %v5452_v24  ;;  %v5463_v25 = vand.u32 2147483647, %v5452_v24 }
0x5c3a   :  { %6719 = vrcp.f32 %v5453_v30  ;;  %v5480_v20 = vand.u32 2147483648, %v5453_v30  ;;  %vm5474_vm9 = vweird.f32 %v5453_v30  ;;  %v5478_v32 = vand.u32 2147483647, %v5453_v30 }
0x5c3b   :  { %v5466_v48 = vor.u32 1.1754944e-38, %v5465_v55  ;;  %vm5464_vm0 = vcmp.eq.f32.partialorder %v5463_v25, 8.507059e+37 }
0x5c3c   :  { %v5481_v46 = vor.u32 1.1754944e-38, %v5480_v20  ;;  %vm5479_vm4 = vcmp.eq.f32.partialorder %v5478_v32, 8.507059e+37 }
0x5c3f   :  { %v6718_v1 = vpop.eup %6717 }
0x5c40   :  { %v6720_v22 = vpop.eup %6719  ;;  %v5455_v51 = vmul.f32 %v6718_v1, %v5452_v24  ;;  %vm5460_vm10 = vweird.f32 %v6718_v1 }
0x5c41   :  { %v5470_v2 = vmul.f32 %v6720_v22, %v5453_v30  ;;  %vm5475_vm3 = vweird.f32 %v6720_v22  ;;  %vm5461_vm2 = vmor %vm5459_vm14, %vm5460_vm10 }
0x5c42   :  { %v5456_v33 = vsub.f32 1.0, %v5455_v51  ;;  %vm5476_vm5 = vmor %vm5474_vm9, %vm5475_vm3 }
0x5c43   :  { %v5471_v31 = vsub.f32 1.0, %v5470_v2 }
0x5c44   :  { %v5457_v34 = vmul.f32 %v6718_v1, %v5456_v33 }
0x5c45   :  { %v5472_v40 = vmul.f32 %v6720_v22, %v5471_v31 }
0x5c46   :  { %v5458_v42 = vadd.f32 %v6718_v1, %v5457_v34 }
0x5c47   :  { %v5473_v38 = vadd.f32 %v6720_v22, %v5472_v40 }
0x5c48   :  { %v5462_v49 = vsel %vm5461_vm2, %v6718_v1, %v5458_v42 }
0x5c49   :  { %v5477_v41 = vsel %vm5476_vm5, %v6720_v22, %v5473_v38  ;;  %v5467_v39 = vsel %vm5464_vm0, %v5466_v48, %v5462_v49  ;;  %v6084_v22 = vld [vmem:[#allocation8 + $0x220] ss:$0 sm:$0xff] }
0x5c4a   :  { %v5482_v10 = vsel %vm5479_vm4, %v5481_v46, %v5477_v41  ;;  %v5492_v53 = vmul.f32 %v5488_v61, %v5467_v39 }
0x5c4b   :  { %v5493_v63 = vmul.f32 %v5489_v52, %v5482_v10 }
0x5ca7   :  { %v5497_v43 = vpop.permute.xlu0 %5496 }
0x5ca8   :  { %v5499_v54 = vpop.permute.xlu1 %5498  ;;  %v5502_v60 = vmul.f32 %v5497_v43, %v5467_v39 }
0x5ca9   :  { %v5503_v50 = vmul.f32 %v5499_v54, %v5482_v10 }
0x5caa   :  { %5506 = vrot.lane.b32.xlu2 %v5502_v60, %s6890_s2 }
0x5cab   :  { %5508 = vrot.lane.b32.xlu0 %v5503_v50, %s6890_s2 }
0x5d04   :  { %v5507_v27 = vpop.permute.xlu2 %5506 }
0x5d05   :  { %v5512_v57 = vadd.f32 %v5507_v27, %v5492_v53 }
0x5d07   :  { %6721 = vtanh.f32 %v5512_v57 }
0x5d0d   :  { %v6722_v47 = vpop.eup %6721 }
0x5d0e   :  { %5518 = vrot.lane.b32.xlu1 %v6722_v47, %s6886_s17 }
0x5d1d   :  { %v5509_v26 = vpop.permute.xlu0 %5508 }
0x5d1e   :  { %v5513_v18 = vadd.f32 %v5509_v26, %v5493_v63 }
0x5d20   :  { %6723 = vtanh.f32 %v5513_v18  ;;  %v5635_v5 = vrot.slane %v5513_v18, 7 }
0x5d26   :  { %v6724_v8 = vpop.eup %6723 }
0x5d27   :  { %5520 = vrot.lane.b32.xlu2 %v6724_v8, %s6886_s17 }
0x5d80   :  { %v5519_v23 = vpop.permute.xlu1 %5518 }
0x5d81   :  { %v5521_v37 = vpop.permute.xlu2 %5520  ;;  %v5524_v62 = vmul.f32 %v5519_v23, %v5467_v39 }
0x5d82   :  { %v5525_v59 = vmul.f32 %v5521_v37, %v5482_v10 }
0x5d83   :  { %v5538_v7 = vsel %vm8126_vm15, %v8064_v16, %v5524_v62  ;;  %5623 = vrot.lane.b32.xlu2 %v5524_v62, %s6890_s2  ;;  %v5543_v16 = vld [vmem:[#allocation8 + $0x1e0] sm:$0xff] }
0x5d84   :  { %v5539_v17 = vsel %vm8127_vm1, %v8068_v28, %v5525_v59  ;;  %v5540_v56 = vmax.f32 %v5538_v7, 0.0  ;;  %v5622_v0 = vrot.slane %v5525_v59, 7  ;;  %5572 = vmatpush.msra.mxu3 %v5543_v16 }
0x5d85   :  { %v5541_v11 = vmax.f32 %v5539_v17, 0.0 }
0x5d86   :  { %5550 = vrot.lane.b32.xlu0 %v5540_v56, %s6890_s2  ;;  %5573 = vmatpush.msra.mxu3 %v5542_v6 }
0x5d87   :  { %5552 = vrot.lane.b32.xlu1 %v5541_v11, %s6890_s2 }
0x5d8b   :  { %5638 = vrot.lane.b32.xlu2 %v5635_v5, %s6891_s3 }
0x5d8e   :  { %5625 = vrot.lane.b32.xlu0 %v5622_v0, %s6890_s2 }
0x5d8f   :  { %5636 = vrot.lane.b32.xlu1 %v5512_v57, %s6891_s3 }
0x5ddd   :  { %v5624_v28 = vpop.permute.xlu2 %5623 }
0x5dde   :  { %5630 = vst.msk [vmem:[#allocation10 - $0x7] sm:$0x80] %vm5629_vm7, %v5624_v28 }
0x5de5   :  { %v5639_v13 = vpop.permute.xlu2 %5638 }
0x5de6   :  { %5643 = vst.msk [vmem:[#allocation11 + $0x1] sm:$0x1] %vm5631_vm8, %v5639_v13 }
0x5df8   :  { %v5551_v3 = vpop.permute.xlu0 %5550 }
0x5df9   :  { %v5553_v58 = vpop.permute.xlu1 %5552  ;;  %6007 = vmatmul.msk.f32.vlgmr.msra.gmra.mxu3 %vm132_vm11, %v5551_v3 }
0x5e00   :  { %v5626_v35 = vpop.permute.xlu0 %5625 }
0x5e01   :  { %5632 = vst.msk [vmem:[#allocation10 + $0x1] sm:$0x1] %vm5631_vm8, %v5626_v35  ;;  %v5637_v45 = vpop.permute.xlu1 %5636  ;;  %6008 = vmatmul.msk.f32.gmra.mxu3 %vm132_vm11, %v5553_v58 }
0x5e02   :  { %5642 = vst.msk [vmem:[#allocation11 - $0x7] sm:$0x80] %vm5629_vm7, %v5637_v45  ;;  %5656 = dma.vmem_to_hbm [thread:$0]  %s5652_s22, 32, %s5654_s25, [#allocation4]  }
0x5e03   :  { %5667 = dma.vmem_to_hbm [thread:$0]  %s5663_s27, 32, %s5665_s30, [#allocation12]  }
0x5e7c   :  { %v5575_v36 = vpop.f32.mrf.mxu3 }
0x5e7d   :  { %v5576_v4 = vadd.f32 %v6083_v14, %v5575_v36 }
0x5e7f   :  { %v5581_v19 = vmax.f32 %v5576_v4, 0.0 }
0x5e81   :  { %6009 = vmatmul.msk.f32.vlgmr.msrb.gmra.mxu0 %vm132_vm11, %v5581_v19 }
0x5e84   :  { %v5578_v24 = vpop.f32.mrf.mxu3 }
0x5e85   :  { %v5579_v30 = vadd.f32 %v6083_v14, %v5578_v24 }
0x5e87   :  { %v5582_v1 = vmax.f32 %v5579_v30, 0.0 }
0x5e89   :  { %6010 = vmatmul.msk.f32.gmra.mxu0 %vm132_vm11, %v5582_v1  ;;  %vm8129_vm11 = vmmov %vm8128_vm6 }
0x5efe   :  { %v5612_v51 = vpop.f32.mrf.mxu0 }
0x5eff   :  { %v5613_v2 = vadd.f32 %v6084_v22, %v5612_v51 }
0x5f01   :  { %5618 = vst.msk [vmem:[%s8115_s4] sm:$0xff] %vm8128_vm6, %v5613_v2 }
0x5f06   :  { %v5615_v33 = vpop.f32.mrf.mxu0 }
0x5f07   :  { %v5616_v31 = vadd.f32 %v6084_v22, %v5615_v33 }
0x5f09   :  { %5619 = vst.msk [vmem:[%s8115_s4 + $0x8] sm:$0xff] %vm8129_vm11, %v5616_v31 }
0x5f0a   :  { %6875 = dma.done.wait [#allocation4], 32  }
0x5f0b   :  { %6876 = vsyncadd [#allocation4], 4294967264 }
0x5f0c   :  { %6877 = dma.done.wait [#allocation12], 32  }
0x5f0d   :  { %6878 = vsyncadd [#allocation12], 4294967264 }
0x5f0e   :  { %5678 = vsyncpa [#allocation3], 1 }
0x5f0f   :  { %5679 = vsyncpa [#allocation6], 1 }
0x5f10   :  { %5680 = vsyncpa [#allocation9], 1 }
0x5f11   :  { %5681 = vsyncpa [#allocation4], 1 }
0x5f12   :  { %5682 = vsyncpa [#allocation12], 1 }

</bundles_post_ra>
